<compile_context>
chip_gen: v7x
topology: tpu7x:2x2x1
jax: 0.10.0
libtpu: 0.0.40
codegen_flags: <defaults>
</compile_context>

<pallas_src>
import math
from functools import partial

import jax
import jax.numpy as jnp
from jax import lax
from jax.experimental import pallas as pl
from jax.experimental.pallas import tpu as pltpu


# ----------------------------------------------------------------------------
# Pallas kernel: one transformer block (optionally fused with final RMSNorm)
# ----------------------------------------------------------------------------
def _block_kernel(
    x_ref,            # (1, S, D)  f32   activations
    attn_nw_ref,      # (1, D)     f32   attention RMSNorm weight
    w_qkv_ref,        # (D, 5*D)   bf16  [Wq | Wq_swap | Wk | Wk_swap | Wv]
    wo_ref,           # (D, D)     bf16
    cos_ref,          # (S, D)     f32   cos, tiled across heads
    sin_ref,          # (S, D)     f32   signed sin, tiled across heads
    ffn_nw_ref,       # (1, D)     f32   ffn RMSNorm weight
    w13_ref,          # (D, 2*Hf)  bf16  [W1 | W3]
    b13_ref,          # (1, 2*Hf)  f32   [b1 | b3]
    w2_ref,           # (Hf, D)    bf16
    b2_ref,           # (1, D)     f32
    final_nw_ref,     # (1, D)     f32   final RMSNorm weight (used if fused)
    out_ref,          # (1, S, D)  f32
    attn_cat_ref,     # (S, D)     bf16  VMEM scratch: concatenated head outputs
    *, n_heads: int, head_dim: int, eps: float, fuse_final_norm: bool,
):
    x = x_ref[0]                                  # (S, D) f32
    S, D = x.shape
    Hf = w2_ref.shape[0]

    def rms(v, w):                                # f32 RMSNorm
        return v * lax.rsqrt(jnp.mean(v * v, axis=-1, keepdims=True) + eps) * w

    # ---------------- attention ----------------
    xn = rms(x, attn_nw_ref[...]).astype(jnp.bfloat16)
    qkv = jnp.dot(xn, w_qkv_ref[...], preferred_element_type=jnp.float32)  # (S, 5D) f32

    q, q_sw = qkv[:, 0 * D:1 * D], qkv[:, 1 * D:2 * D]
    k, k_sw = qkv[:, 2 * D:3 * D], qkv[:, 3 * D:4 * D]
    v = qkv[:, 4 * D:5 * D]

    cos = cos_ref[...]
    sin = sin_ref[...]
    scale = 1.0 / math.sqrt(head_dim)
    # rotary (f32), whole (S, D) at once; 1/sqrt(hd) folded into q
    q = ((q * cos + q_sw * sin) * scale).astype(jnp.bfloat16)
    k = (k * cos + k_sw * sin).astype(jnp.bfloat16)
    v = v.astype(jnp.bfloat16)

    # per-head scores/softmax/PV; head outputs concatenated into VMEM scratch.
    # TODO(synk): for large n_heads switch to a batched (H,S,hd) contraction or
    #             a fori_loop / grid axis over heads to bound live ranges.
    for h in range(n_heads):
        lo = h * head_dim
        qh = q[:, lo:lo + head_dim]
        kh = k[:, lo:lo + head_dim]
        vh = v[:, lo:lo + head_dim]
        # contract head_dim of both operands — no materialized kh.T
        sc = lax.dot_general(qh, kh, (((1,), (1,)), ((), ())),
                             preferred_element_type=jnp.float32)        # (S, S)
        sc = sc - jnp.max(sc, axis=-1, keepdims=True)   # mask is None in forward()
        e = jnp.exp(sc)
        p = e * pl.reciprocal(jnp.sum(e, axis=-1, keepdims=True), approx=True)
        oh = jnp.dot(p.astype(jnp.bfloat16), vh,
                     preferred_element_type=jnp.float32)                # (S, hd)
        attn_cat_ref[:, lo:lo + head_dim] = oh.astype(jnp.bfloat16)

    attn = jnp.dot(attn_cat_ref[...], wo_ref[...],
                   preferred_element_type=jnp.float32)                  # (S, D)
    h1 = x + attn

    # ---------------- feed-forward ----------------
    hn = rms(h1, ffn_nw_ref[...]).astype(jnp.bfloat16)
    a13 = jnp.dot(hn, w13_ref[...], preferred_element_type=jnp.float32) + b13_ref[...]
    a1, a3 = a13[:, :Hf], a13[:, Hf:]
    g = (a1 * jax.nn.sigmoid(a1)) * a3                                  # SiLU(w1 x) * w3 x
    ff = jnp.dot(g.astype(jnp.bfloat16), w2_ref[...],
                 preferred_element_type=jnp.float32) + b2_ref[...]
    h2 = h1 + ff

    if fuse_final_norm:                     # static flag: last layer epilogue
        h2 = rms(h2, final_nw_ref[...])
    out_ref[0] = h2


# ----------------------------------------------------------------------------
# Wrappers
# ----------------------------------------------------------------------------
def _const_spec(a):
    return pl.BlockSpec(a.shape, lambda b, _nd=a.ndim: (0,) * _nd)


def transformer_block(x, consts, *, n_heads, head_dim, eps, fuse_final_norm):
    B, S, D = x.shape
    return pl.pallas_call(
        partial(_block_kernel, n_heads=n_heads, head_dim=head_dim,
                eps=eps, fuse_final_norm=fuse_final_norm),
        out_shape=jax.ShapeDtypeStruct((B, S, D), jnp.float32),
        grid=(B,),
        in_specs=[pl.BlockSpec((1, S, D), lambda b: (b, 0, 0))]
                 + [_const_spec(a) for a in consts],
        out_specs=pl.BlockSpec((1, S, D), lambda b: (b, 0, 0)),
        scratch_shapes=[pltpu.VMEM((S, D), jnp.bfloat16)],
        compiler_params=pltpu.CompilerParams(
            dimension_semantics=("parallel",),
            vmem_limit_bytes=32 * 1024 * 1024),
    )(x, *consts)


def prepare_block_consts(p, cos_d, sin_d, final_norm_w):
    """Host-side packing: bf16 weights, fused QKV(+swap) and W1/W3, fused biases."""
    D = p["wqt"].shape[0]
    swap = jnp.arange(D) ^ 1                       # pair-swap column permutation
    w_qkv = jnp.concatenate(
        [p["wqt"], p["wqt"][:, swap], p["wkt"], p["wkt"][:, swap], p["wvt"]],
        axis=1).astype(jnp.bfloat16)               # (D, 5D)
    w13 = jnp.concatenate([p["w1t"], p["w3t"]], axis=1).astype(jnp.bfloat16)
    b13 = jnp.concatenate([p["b1"], p["b3"]], axis=1)
    return [
        p["attn_norm_w"], w_qkv, p["wot"].astype(jnp.bfloat16),
        cos_d, sin_d,
        p["ffn_norm_w"], w13, b13,
        p["w2t"].astype(jnp.bfloat16), p["b2"],
        final_norm_w,
    ]


def llama_forward(x, layer_params, final_norm_w, cos_d, sin_d,
                  *, n_heads, head_dim, eps):
    L = len(layer_params)
    for i, p in enumerate(layer_params):
        consts = prepare_block_consts(p, cos_d, sin_d, final_norm_w)
        x = transformer_block(x, consts, n_heads=n_heads, head_dim=head_dim,
                              eps=eps, fuse_final_norm=(i == L - 1))
    return x


# ----------------------------------------------------------------------------
# Parameter / rope setup (plain JAX glue)
# ----------------------------------------------------------------------------
def ffn_hidden_dim(dim, multiple_of=256, ffn_dim_multiplier=None):
    hidden = 4 * dim
    hidden = int(2 * hidden / 3)
    if ffn_dim_multiplier is not None:
        hidden = int(ffn_dim_multiplier * hidden)
    return multiple_of * ((hidden + multiple_of - 1) // multiple_of)


def precompute_rope_full(head_dim, n_heads, seq_len, theta):
    """cos/sin tables expanded to (S, D): interleaved-pair rotary, tiled per head."""
    freqs = 1.0 / (theta ** (jnp.arange(0, head_dim, 2, dtype=jnp.float32)[: head_dim // 2]
                             / head_dim))
    t = jnp.arange(seq_len, dtype=jnp.float32)
    angles = jnp.outer(t, freqs)                          # (S, hd//2)
    cos_h = jnp.repeat(jnp.cos(angles), 2, axis=-1)       # [c0, c0, c1, c1, ...]
    s = jnp.sin(angles)
    sin_h = jnp.stack([-s, s], axis=-1).reshape(seq_len, head_dim)  # [-s0, s0, ...]
    return jnp.tile(cos_h, (1, n_heads)), jnp.tile(sin_h, (1, n_heads))


def init_layer_params(key, D, Hf, scale=0.02):
    ks = jax.random.split(key, 10)
    n = lambda k, shp: scale * jax.random.normal(k, shp, jnp.float32)
    return dict(
        attn_norm_w=jnp.ones((1, D), jnp.float32),
        wqt=n(ks[0], (D, D)), wkt=n(ks[1], (D, D)),
        wvt=n(ks[2], (D, D)), wot=n(ks[3], (D, D)),
        ffn_norm_w=jnp.ones((1, D), jnp.float32),
        w1t=n(ks[4], (D, Hf)), b1=n(ks[5], (1, Hf)),
        w3t=n(ks[6], (D, Hf)), b3=n(ks[7], (1, Hf)),
        w2t=n(ks[8], (Hf, D)), b2=n(ks[9], (1, D)),
    )


# ----------------------------------------------------------------------------
# Pure-JAX f32 reference (sanity check against the PyTorch semantics)
# ----------------------------------------------------------------------------
def _ref_forward(x, layer_params, final_norm_w, cos_d, sin_d, n_heads, head_dim, eps):
    def rms(v, w):
        return v * lax.rsqrt(jnp.mean(v * v, -1, keepdims=True) + eps) * w

    B, S, D = x.shape
    swap = jnp.arange(D) ^ 1
    for p in layer_params:
        xn = rms(x, p["attn_norm_w"])
        q, k, v = xn @ p["wqt"], xn @ p["wkt"], xn @ p["wvt"]
        q = q * cos_d + q[..., swap] * sin_d
        k = k * cos_d + k[..., swap] * sin_d
        qh = q.reshape(B, S, n_heads, head_dim)
        kh = k.reshape(B, S, n_heads, head_dim)
        vh = v.reshape(B, S, n_heads, head_dim)
        sc = jnp.einsum("bqhd,bkhd->bhqk", qh, kh) / math.sqrt(head_dim)
        pr = jax.nn.softmax(sc, axis=-1)
        o = jnp.einsum("bhqk,bkhd->bqhd", pr, vh).reshape(B, S, D)
        h1 = x + o @ p["wot"]
        hn = rms(h1, p["ffn_norm_w"])
        a = hn @ p["w1t"] + p["b1"]
        g = a * jax.nn.sigmoid(a)
        b3 = hn @ p["w3t"] + p["b3"]
        x = h1 + (g * b3) @ p["w2t"] + p["b2"]
    return rms(x, final_norm_w)


# ----------------------------------------------------------------------------
if __name__ == "__main__":
    # Small config consistent with the module (seqlen == max_seq_len since the
    # forward passes the full freqs_cis table); head_dim kept at 128 lanes.
    B, S, D, H, L = 2, 128, 256, 2, 2
    HEAD_DIM = D // H                 # 128
    EPS = 1e-5
    ROPE_THETA = 500000.0
    HF = ffn_hidden_dim(D)            # 768 for D=256

    key = jax.random.PRNGKey(0)
    k_x, k_p = jax.random.split(key)
    embed = jax.random.normal(k_x, (B, S, D), jnp.float32)

    layer_keys = jax.random.split(k_p, L)
    layer_params = [init_layer_params(layer_keys[i], D, HF) for i in range(L)]
    final_norm_w = jnp.ones((1, D), jnp.float32)

    cos_d, sin_d = precompute_rope_full(HEAD_DIM, H, S, ROPE_THETA)

    out = llama_forward(embed, layer_params, final_norm_w, cos_d, sin_d,
                        n_heads=H, head_dim=HEAD_DIM, eps=EPS)
    out = jax.block_until_ready(out)

    ref = _ref_forward(embed, layer_params, final_norm_w, cos_d, sin_d,
                       H, HEAD_DIM, EPS)
    assert out.shape == (B, S, D)
    assert bool(jnp.all(jnp.isfinite(out)))
    assert bool(jnp.allclose(out, ref, atol=2e-2, rtol=2e-2))

    print("KERNEL_OK")
</pallas_src>

<mosaic_0001>
module attributes {stable_mosaic.version = 11 : i64} {
  func.func @_block_kernel(%arg0: i32, %arg1: memref<1x128x256xf32, #tpu.memory_space<vmem>>, %arg2: memref<1x256xf32, #tpu.memory_space<vmem>>, %arg3: memref<256x1280xbf16, #tpu.memory_space<vmem>>, %arg4: memref<256x256xbf16, #tpu.memory_space<vmem>>, %arg5: memref<128x256xf32, #tpu.memory_space<vmem>>, %arg6: memref<128x256xf32, #tpu.memory_space<vmem>>, %arg7: memref<1x256xf32, #tpu.memory_space<vmem>>, %arg8: memref<256x1536xbf16, #tpu.memory_space<vmem>>, %arg9: memref<1x1536xf32, #tpu.memory_space<vmem>>, %arg10: memref<768x256xbf16, #tpu.memory_space<vmem>>, %arg11: memref<1x256xf32, #tpu.memory_space<vmem>>, %arg12: memref<1x256xf32, #tpu.memory_space<vmem>>, %arg13: memref<1x128x256xf32, #tpu.memory_space<vmem>>, %arg14: memref<128x256xbf16, #tpu.memory_space<vmem>>) attributes {dimension_semantics = [#tpu.dimension_semantics<parallel>], iteration_bounds = array<i64: 2>, scalar_prefetch = 0 : i64, scratch_operands = 1 : i64, tpu.core_type = #tpu.core_type<tc>, window_params = [{transform_indices = @transform_0, window_bounds = array<i64: 1, 128, 256>}, {pipeline_mode = #tpu.pipeline_mode<synchronous>, transform_indices = @transform_1, window_bounds = array<i64: 1, 256>}, {pipeline_mode = #tpu.pipeline_mode<synchronous>, transform_indices = @transform_2, window_bounds = array<i64: 256, 1280>}, {pipeline_mode = #tpu.pipeline_mode<synchronous>, transform_indices = @transform_3, window_bounds = array<i64: 256, 256>}, {pipeline_mode = #tpu.pipeline_mode<synchronous>, transform_indices = @transform_4, window_bounds = array<i64: 128, 256>}, {pipeline_mode = #tpu.pipeline_mode<synchronous>, transform_indices = @transform_5, window_bounds = array<i64: 128, 256>}, {pipeline_mode = #tpu.pipeline_mode<synchronous>, transform_indices = @transform_6, window_bounds = array<i64: 1, 256>}, {pipeline_mode = #tpu.pipeline_mode<synchronous>, transform_indices = @transform_7, window_bounds = array<i64: 256, 1536>}, {pipeline_mode = #tpu.pipeline_mode<synchronous>, transform_indices = @transform_8, window_bounds = array<i64: 1, 1536>}, {pipeline_mode = #tpu.pipeline_mode<synchronous>, transform_indices = @transform_9, window_bounds = array<i64: 768, 256>}, {pipeline_mode = #tpu.pipeline_mode<synchronous>, transform_indices = @transform_10, window_bounds = array<i64: 1, 256>}, {pipeline_mode = #tpu.pipeline_mode<synchronous>, transform_indices = @transform_11, window_bounds = array<i64: 1, 256>}, {transform_indices = @transform_12, window_bounds = array<i64: 1, 128, 256>}]} {
    %c0 = arith.constant 0 : index
    %c0_0 = arith.constant 0 : index
    %c0_1 = arith.constant 0 : index
    %0 = vector.load %arg1[%c0, %c0_0, %c0_1] : memref<1x128x256xf32, #tpu.memory_space<vmem>>, vector<1x128x256xf32>
    %1 = vector.shape_cast %0 : vector<1x128x256xf32> to vector<128x256xf32>
    %c0_2 = arith.constant 0 : index
    %c0_3 = arith.constant 0 : index
    %2 = vector.load %arg2[%c0_2, %c0_3] : memref<1x256xf32, #tpu.memory_space<vmem>>, vector<1x256xf32>
    %3 = arith.mulf %1, %1 : vector<128x256xf32>
    %cst = arith.constant dense<0.000000e+00> : vector<128xf32>
    %4 = vector.multi_reduction <add>, %3, %cst [1] : vector<128x256xf32> to vector<128xf32>
    %5 = vector.shape_cast %4 : vector<128xf32> to vector<128x1xf32>
    %cst_4 = arith.constant 2.560000e+02 : f32
    %6 = vector.broadcast %cst_4 : f32 to vector<128x1xf32>
    %7 = arith.divf %5, %6 : vector<128x1xf32>
    %cst_5 = arith.constant 9.99999974E-6 : f32
    %8 = vector.broadcast %cst_5 : f32 to vector<128x1xf32>
    %9 = arith.addf %7, %8 : vector<128x1xf32>
    %10 = math.rsqrt %9 : vector<128x1xf32>
    %11 = vector.broadcast %10 : vector<128x1xf32> to vector<128x256xf32>
    %12 = arith.mulf %1, %11 : vector<128x256xf32>
    %13 = vector.broadcast %2 : vector<1x256xf32> to vector<128x256xf32>
    %14 = arith.mulf %12, %13 : vector<128x256xf32>
    %15 = arith.truncf %14 : vector<128x256xf32> to vector<128x256xbf16>
    %c0_6 = arith.constant 0 : index
    %c0_7 = arith.constant 0 : index
    %16 = vector.load %arg3[%c0_6, %c0_7] : memref<256x1280xbf16, #tpu.memory_space<vmem>>, vector<256x1280xbf16>
    %cst_8 = arith.constant dense<0.000000e+00> : vector<128x1280xf32>
    %17 = tpu.matmul %15, %16, %cst_8 {dimension_numbers = #tpu.dot_dimension_numbers<[1], [0], [0], [1], [0, 0, 1, 1], [], []>} : vector<128x256xbf16>, vector<256x1280xbf16>, vector<128x1280xf32> -> vector<128x1280xf32>
    %18 = vector.extract_strided_slice %17 {offsets = [0, 0], sizes = [128, 256], strides = [1, 1]} : vector<128x1280xf32> to vector<128x256xf32>
    %19 = vector.extract_strided_slice %17 {offsets = [0, 256], sizes = [128, 256], strides = [1, 1]} : vector<128x1280xf32> to vector<128x256xf32>
    %20 = vector.extract_strided_slice %17 {offsets = [0, 512], sizes = [128, 256], strides = [1, 1]} : vector<128x1280xf32> to vector<128x256xf32>
    %21 = vector.extract_strided_slice %17 {offsets = [0, 768], sizes = [128, 256], strides = [1, 1]} : vector<128x1280xf32> to vector<128x256xf32>
    %22 = vector.extract_strided_slice %17 {offsets = [0, 1024], sizes = [128, 256], strides = [1, 1]} : vector<128x1280xf32> to vector<128x256xf32>
    %c0_9 = arith.constant 0 : index
    %c0_10 = arith.constant 0 : index
    %23 = vector.load %arg5[%c0_9, %c0_10] : memref<128x256xf32, #tpu.memory_space<vmem>>, vector<128x256xf32>
    %c0_11 = arith.constant 0 : index
    %c0_12 = arith.constant 0 : index
    %24 = vector.load %arg6[%c0_11, %c0_12] : memref<128x256xf32, #tpu.memory_space<vmem>>, vector<128x256xf32>
    %25 = arith.mulf %18, %23 : vector<128x256xf32>
    %26 = arith.mulf %19, %24 : vector<128x256xf32>
    %27 = arith.addf %25, %26 : vector<128x256xf32>
    %cst_13 = arith.constant 0.0883883461 : f32
    %28 = vector.broadcast %cst_13 : f32 to vector<128x256xf32>
    %29 = arith.mulf %27, %28 : vector<128x256xf32>
    %30 = arith.truncf %29 : vector<128x256xf32> to vector<128x256xbf16>
    %31 = arith.mulf %20, %23 : vector<128x256xf32>
    %32 = arith.mulf %21, %24 : vector<128x256xf32>
    %33 = arith.addf %31, %32 : vector<128x256xf32>
    %34 = arith.truncf %33 : vector<128x256xf32> to vector<128x256xbf16>
    %35 = arith.truncf %22 : vector<128x256xf32> to vector<128x256xbf16>
    %36 = vector.extract_strided_slice %30 {offsets = [0, 0], sizes = [128, 128], strides = [1, 1]} : vector<128x256xbf16> to vector<128x128xbf16>
    %37 = vector.extract_strided_slice %34 {offsets = [0, 0], sizes = [128, 128], strides = [1, 1]} : vector<128x256xbf16> to vector<128x128xbf16>
    %38 = vector.extract_strided_slice %35 {offsets = [0, 0], sizes = [128, 128], strides = [1, 1]} : vector<128x256xbf16> to vector<128x128xbf16>
    %cst_14 = arith.constant dense<0.000000e+00> : vector<128x128xf32>
    %39 = tpu.matmul %36, %37, %cst_14 {dimension_numbers = #tpu.dot_dimension_numbers<[1], [1], [0], [0], [0, 0, 1, 0], [], []>} : vector<128x128xbf16>, vector<128x128xbf16>, vector<128x128xf32> -> vector<128x128xf32>
    %cst_15 = arith.constant dense<0xFF800000> : vector<128xf32>
    %40 = vector.multi_reduction <maximumf>, %39, %cst_15 [1] : vector<128x128xf32> to vector<128xf32>
    %41 = vector.shape_cast %40 : vector<128xf32> to vector<128x1xf32>
    %42 = vector.broadcast %41 : vector<128x1xf32> to vector<128x128xf32>
    %43 = arith.subf %39, %42 : vector<128x128xf32>
    %44 = math.exp %43 : vector<128x128xf32>
    %cst_16 = arith.constant dense<0.000000e+00> : vector<128xf32>
    %45 = vector.multi_reduction <add>, %44, %cst_16 [1] : vector<128x128xf32> to vector<128xf32>
    %46 = vector.shape_cast %45 : vector<128xf32> to vector<128x1xf32>
    %47 = tpu.reciprocal %46 {approx = true} : vector<128x1xf32> -> vector<128x1xf32>
    %48 = vector.broadcast %47 : vector<128x1xf32> to vector<128x128xf32>
    %49 = arith.mulf %44, %48 : vector<128x128xf32>
    %50 = arith.truncf %49 : vector<128x128xf32> to vector<128x128xbf16>
    %cst_17 = arith.constant dense<0.000000e+00> : vector<128x128xf32>
    %51 = tpu.matmul %50, %38, %cst_17 {dimension_numbers = #tpu.dot_dimension_numbers<[1], [0], [0], [1], [0, 0, 1, 1], [], []>} : vector<128x128xbf16>, vector<128x128xbf16>, vector<128x128xf32> -> vector<128x128xf32>
    %52 = arith.truncf %51 : vector<128x128xf32> to vector<128x128xbf16>
    %c0_18 = arith.constant 0 : index
    %c0_19 = arith.constant 0 : index
    %53 = vector.load %arg14[%c0_18, %c0_19] : memref<128x256xbf16, #tpu.memory_space<vmem>>, vector<128x128xbf16>
    tpu.vector_store %arg14[%c0_18, %c0_19], %52 {strides = array<i32>} : memref<128x256xbf16, #tpu.memory_space<vmem>>, vector<128x128xbf16>,
    %54 = vector.extract_strided_slice %30 {offsets = [0, 128], sizes = [128, 128], strides = [1, 1]} : vector<128x256xbf16> to vector<128x128xbf16>
    %55 = vector.extract_strided_slice %34 {offsets = [0, 128], sizes = [128, 128], strides = [1, 1]} : vector<128x256xbf16> to vector<128x128xbf16>
    %56 = vector.extract_strided_slice %35 {offsets = [0, 128], sizes = [128, 128], strides = [1, 1]} : vector<128x256xbf16> to vector<128x128xbf16>
    %cst_20 = arith.constant dense<0.000000e+00> : vector<128x128xf32>
    %57 = tpu.matmul %54, %55, %cst_20 {dimension_numbers = #tpu.dot_dimension_numbers<[1], [1], [0], [0], [0, 0, 1, 0], [], []>} : vector<128x128xbf16>, vector<128x128xbf16>, vector<128x128xf32> -> vector<128x128xf32>
    %cst_21 = arith.constant dense<0xFF800000> : vector<128xf32>
    %58 = vector.multi_reduction <maximumf>, %57, %cst_21 [1] : vector<128x128xf32> to vector<128xf32>
    %59 = vector.shape_cast %58 : vector<128xf32> to vector<128x1xf32>
    %60 = vector.broadcast %59 : vector<128x1xf32> to vector<128x128xf32>
    %61 = arith.subf %57, %60 : vector<128x128xf32>
    %62 = math.exp %61 : vector<128x128xf32>
    %cst_22 = arith.constant dense<0.000000e+00> : vector<128xf32>
    %63 = vector.multi_reduction <add>, %62, %cst_22 [1] : vector<128x128xf32> to vector<128xf32>
    %64 = vector.shape_cast %63 : vector<128xf32> to vector<128x1xf32>
    %65 = tpu.reciprocal %64 {approx = true} : vector<128x1xf32> -> vector<128x1xf32>
    %66 = vector.broadcast %65 : vector<128x1xf32> to vector<128x128xf32>
    %67 = arith.mulf %62, %66 : vector<128x128xf32>
    %68 = arith.truncf %67 : vector<128x128xf32> to vector<128x128xbf16>
    %cst_23 = arith.constant dense<0.000000e+00> : vector<128x128xf32>
    %69 = tpu.matmul %68, %56, %cst_23 {dimension_numbers = #tpu.dot_dimension_numbers<[1], [0], [0], [1], [0, 0, 1, 1], [], []>} : vector<128x128xbf16>, vector<128x128xbf16>, vector<128x128xf32> -> vector<128x128xf32>
    %70 = arith.truncf %69 : vector<128x128xf32> to vector<128x128xbf16>
    %c0_24 = arith.constant 0 : index
    %c128 = arith.constant 128 : index
    %71 = vector.load %arg14[%c0_24, %c128] : memref<128x256xbf16, #tpu.memory_space<vmem>>, vector<128x128xbf16>
    tpu.vector_store %arg14[%c0_24, %c128], %70 {strides = array<i32>} : memref<128x256xbf16, #tpu.memory_space<vmem>>, vector<128x128xbf16>,
    %c0_25 = arith.constant 0 : index
    %c0_26 = arith.constant 0 : index
    %72 = vector.load %arg14[%c0_25, %c0_26] : memref<128x256xbf16, #tpu.memory_space<vmem>>, vector<128x256xbf16>
    %c0_27 = arith.constant 0 : index
    %c0_28 = arith.constant 0 : index
    %73 = vector.load %arg4[%c0_27, %c0_28] : memref<256x256xbf16, #tpu.memory_space<vmem>>, vector<256x256xbf16>
    %cst_29 = arith.constant dense<0.000000e+00> : vector<128x256xf32>
    %74 = tpu.matmul %72, %73, %cst_29 {dimension_numbers = #tpu.dot_dimension_numbers<[1], [0], [0], [1], [0, 0, 1, 1], [], []>} : vector<128x256xbf16>, vector<256x256xbf16>, vector<128x256xf32> -> vector<128x256xf32>
    %75 = arith.addf %1, %74 : vector<128x256xf32>
    %c0_30 = arith.constant 0 : index
    %c0_31 = arith.constant 0 : index
    %76 = vector.load %arg7[%c0_30, %c0_31] : memref<1x256xf32, #tpu.memory_space<vmem>>, vector<1x256xf32>
    %77 = arith.mulf %75, %75 : vector<128x256xf32>
    %cst_32 = arith.constant dense<0.000000e+00> : vector<128xf32>
    %78 = vector.multi_reduction <add>, %77, %cst_32 [1] : vector<128x256xf32> to vector<128xf32>
    %79 = vector.shape_cast %78 : vector<128xf32> to vector<128x1xf32>
    %cst_33 = arith.constant 2.560000e+02 : f32
    %80 = vector.broadcast %cst_33 : f32 to vector<128x1xf32>
    %81 = arith.divf %79, %80 : vector<128x1xf32>
    %cst_34 = arith.constant 9.99999974E-6 : f32
    %82 = vector.broadcast %cst_34 : f32 to vector<128x1xf32>
    %83 = arith.addf %81, %82 : vector<128x1xf32>
    %84 = math.rsqrt %83 : vector<128x1xf32>
    %85 = vector.broadcast %84 : vector<128x1xf32> to vector<128x256xf32>
    %86 = arith.mulf %75, %85 : vector<128x256xf32>
    %87 = vector.broadcast %76 : vector<1x256xf32> to vector<128x256xf32>
    %88 = arith.mulf %86, %87 : vector<128x256xf32>
    %89 = arith.truncf %88 : vector<128x256xf32> to vector<128x256xbf16>
    %c0_35 = arith.constant 0 : index
    %c0_36 = arith.constant 0 : index
    %90 = vector.load %arg8[%c0_35, %c0_36] : memref<256x1536xbf16, #tpu.memory_space<vmem>>, vector<256x1536xbf16>
    %cst_37 = arith.constant dense<0.000000e+00> : vector<128x1536xf32>
    %91 = tpu.matmul %89, %90, %cst_37 {dimension_numbers = #tpu.dot_dimension_numbers<[1], [0], [0], [1], [0, 0, 1, 1], [], []>} : vector<128x256xbf16>, vector<256x1536xbf16>, vector<128x1536xf32> -> vector<128x1536xf32>
    %c0_38 = arith.constant 0 : index
    %c0_39 = arith.constant 0 : index
    %92 = vector.load %arg9[%c0_38, %c0_39] : memref<1x1536xf32, #tpu.memory_space<vmem>>, vector<1x1536xf32>
    %93 = vector.broadcast %92 : vector<1x1536xf32> to vector<128x1536xf32>
    %94 = arith.addf %91, %93 : vector<128x1536xf32>
    %95 = vector.extract_strided_slice %94 {offsets = [0, 0], sizes = [128, 768], strides = [1, 1]} : vector<128x1536xf32> to vector<128x768xf32>
    %96 = vector.extract_strided_slice %94 {offsets = [0, 768], sizes = [128, 768], strides = [1, 1]} : vector<128x1536xf32> to vector<128x768xf32>
    %97 = arith.negf %95 : vector<128x768xf32>
    %98 = math.exp %97 : vector<128x768xf32>
    %cst_40 = arith.constant 1.000000e+00 : f32
    %99 = vector.broadcast %cst_40 : f32 to vector<128x768xf32>
    %100 = arith.addf %99, %98 : vector<128x768xf32>
    %101 = arith.divf %99, %100 : vector<128x768xf32>
    %102 = arith.mulf %95, %101 : vector<128x768xf32>
    %103 = arith.mulf %102, %96 : vector<128x768xf32>
    %104 = arith.truncf %103 : vector<128x768xf32> to vector<128x768xbf16>
    %c0_41 = arith.constant 0 : index
    %c0_42 = arith.constant 0 : index
    %105 = vector.load %arg10[%c0_41, %c0_42] : memref<768x256xbf16, #tpu.memory_space<vmem>>, vector<768x256xbf16>
    %cst_43 = arith.constant dense<0.000000e+00> : vector<128x256xf32>
    %106 = tpu.matmul %104, %105, %cst_43 {dimension_numbers = #tpu.dot_dimension_numbers<[1], [0], [0], [1], [0, 0, 1, 1], [], []>} : vector<128x768xbf16>, vector<768x256xbf16>, vector<128x256xf32> -> vector<128x256xf32>
    %c0_44 = arith.constant 0 : index
    %c0_45 = arith.constant 0 : index
    %107 = vector.load %arg11[%c0_44, %c0_45] : memref<1x256xf32, #tpu.memory_space<vmem>>, vector<1x256xf32>
    %108 = vector.broadcast %107 : vector<1x256xf32> to vector<128x256xf32>
    %109 = arith.addf %106, %108 : vector<128x256xf32>
    %110 = arith.addf %75, %109 : vector<128x256xf32>
    %c0_46 = arith.constant 0 : index
    %c0_47 = arith.constant 0 : index
    %c0_48 = arith.constant 0 : index
    %111 = vector.load %arg13[%c0_46, %c0_47, %c0_48] : memref<1x128x256xf32, #tpu.memory_space<vmem>>, vector<1x128x256xf32>
    %112 = vector.shape_cast %111 : vector<1x128x256xf32> to vector<128x256xf32>
    %113 = vector.shape_cast %110 : vector<128x256xf32> to vector<1x128x256xf32>
    tpu.vector_store %arg13[%c0_46, %c0_47, %c0_48], %113 {strides = array<i32>} : memref<1x128x256xf32, #tpu.memory_space<vmem>>, vector<1x128x256xf32>,
    return
  }
  func.func @transform_0(%arg0: i32) -> (i32, i32, i32) {
    %c0_i32 = arith.constant 0 : i32
    %c0_i32_0 = arith.constant 0 : i32
    %c0_i32_1 = arith.constant 0 : i32
    return %arg0, %c0_i32, %c0_i32_0 : i32, i32, i32
  }
  func.func @transform_1(%arg0: i32) -> (i32, i32) {
    %c0_i32 = arith.constant 0 : i32
    %c0_i32_0 = arith.constant 0 : i32
    %c0_i32_1 = arith.constant 0 : i32
    return %c0_i32, %c0_i32_0 : i32, i32
  }
  func.func @transform_2(%arg0: i32) -> (i32, i32) {
    %c0_i32 = arith.constant 0 : i32
    %c0_i32_0 = arith.constant 0 : i32
    %c0_i32_1 = arith.constant 0 : i32
    return %c0_i32, %c0_i32_0 : i32, i32
  }
  func.func @transform_3(%arg0: i32) -> (i32, i32) {
    %c0_i32 = arith.constant 0 : i32
    %c0_i32_0 = arith.constant 0 : i32
    %c0_i32_1 = arith.constant 0 : i32
    return %c0_i32, %c0_i32_0 : i32, i32
  }
  func.func @transform_4(%arg0: i32) -> (i32, i32) {
    %c0_i32 = arith.constant 0 : i32
    %c0_i32_0 = arith.constant 0 : i32
    %c0_i32_1 = arith.constant 0 : i32
    return %c0_i32, %c0_i32_0 : i32, i32
  }
  func.func @transform_5(%arg0: i32) -> (i32, i32) {
    %c0_i32 = arith.constant 0 : i32
    %c0_i32_0 = arith.constant 0 : i32
    %c0_i32_1 = arith.constant 0 : i32
    return %c0_i32, %c0_i32_0 : i32, i32
  }
  func.func @transform_6(%arg0: i32) -> (i32, i32) {
    %c0_i32 = arith.constant 0 : i32
    %c0_i32_0 = arith.constant 0 : i32
    %c0_i32_1 = arith.constant 0 : i32
    return %c0_i32, %c0_i32_0 : i32, i32
  }
  func.func @transform_7(%arg0: i32) -> (i32, i32) {
    %c0_i32 = arith.constant 0 : i32
    %c0_i32_0 = arith.constant 0 : i32
    %c0_i32_1 = arith.constant 0 : i32
    return %c0_i32, %c0_i32_0 : i32, i32
  }
  func.func @transform_8(%arg0: i32) -> (i32, i32) {
    %c0_i32 = arith.constant 0 : i32
    %c0_i32_0 = arith.constant 0 : i32
    %c0_i32_1 = arith.constant 0 : i32
    return %c0_i32, %c0_i32_0 : i32, i32
  }
  func.func @transform_9(%arg0: i32) -> (i32, i32) {
    %c0_i32 = arith.constant 0 : i32
    %c0_i32_0 = arith.constant 0 : i32
    %c0_i32_1 = arith.constant 0 : i32
    return %c0_i32, %c0_i32_0 : i32, i32
  }
  func.func @transform_10(%arg0: i32) -> (i32, i32) {
    %c0_i32 = arith.constant 0 : i32
    %c0_i32_0 = arith.constant 0 : i32
    %c0_i32_1 = arith.constant 0 : i32
    return %c0_i32, %c0_i32_0 : i32, i32
  }
  func.func @transform_11(%arg0: i32) -> (i32, i32) {
    %c0_i32 = arith.constant 0 : i32
    %c0_i32_0 = arith.constant 0 : i32
    %c0_i32_1 = arith.constant 0 : i32
    return %c0_i32, %c0_i32_0 : i32, i32
  }
  func.func @transform_12(%arg0: i32) -> (i32, i32, i32) {
    %c0_i32 = arith.constant 0 : i32
    %c0_i32_0 = arith.constant 0 : i32
    %c0_i32_1 = arith.constant 0 : i32
    return %arg0, %c0_i32, %c0_i32_0 : i32, i32, i32
  }
}

</mosaic_0001>

<bundles_post_ra>
// kernel: tpu_custom_call.1
= control target key start
LH: loop header
LB: loop body
LE: loop exit
PB: predicated region body
PF: predicated region fallthrough
CT: control target
= control target key end

     0   :  { %s13873_s0 = inlined_call_operand.hbm [shape: f32[2,128,256], index: 0, kind: input, shape index: {}]   ;;  %s13874_s1 = inlined_call_operand.vmem [shape: f32[1,256], index: 1, kind: input, shape index: {}]   ;;  %s13875_s2 = inlined_call_operand.hbm [shape: bf16[256,1280], index: 2, kind: input, shape index: {}]   ;;  %s13876_s3 = inlined_call_operand.hbm [shape: bf16[256,256], index: 3, kind: input, shape index: {}]   ;;  %s13877_s4 = inlined_call_operand.hbm [shape: f32[128,256], index: 4, kind: input, shape index: {}]   ;;  %s13878_s5 = inlined_call_operand.hbm [shape: f32[128,256], index: 5, kind: input, shape index: {}]   ;;  %s13879_s6 = inlined_call_operand.vmem [shape: f32[1,256], index: 6, kind: input, shape index: {}]   ;;  %s13880_s7 = inlined_call_operand.hbm [shape: bf16[256,1536], index: 7, kind: input, shape index: {}]   ;;  %s13881_s8 = inlined_call_operand.vmem [shape: f32[1,1536], index: 8, kind: input, shape index: {}]   ;;  %s13882_s9 = inlined_call_operand.hbm [shape: bf16[768,256], index: 9, kind: input, shape index: {}]   ;;  %s13883_s10 = inlined_call_operand.vmem [shape: f32[1,256], index: 10, kind: input, shape index: {}]   ;;  %s13884_s11 = inlined_call_operand.vmem [shape: f32[1,256], index: 11, kind: input, shape index: {}]   ;;  %s13885_s12 = inlined_call_operand.hbm [shape: f32[2,128,256], index: 12, kind: output, shape index: {}]  }
   0x1   :  { %14059 = sst [smem:[#allocation129_spill]] %s13875_s2 }
   0x2   :  { %14060 = sst [smem:[#allocation130_spill]] %s13876_s3 }
   0x3   :  { %14061 = sst [smem:[#allocation131_spill]] %s13881_s8 }
   0x4   :  { %14062 = sst [smem:[#allocation132_spill]] %s13883_s10 }
   0x5   :  { %14063 = sst [smem:[#allocation133_spill]] %s13885_s12 }
   0x6   :  { %17 = vsyncpa [#allocation4], 0 }
   0x7   :  { %19 = vsyncpa [#allocation4 + $0x1], 0 }
   0x8   :  { %20 = vsyncpa [#allocation7], 0 }
   0x9   :  { %21 = vsyncpa [#allocation10], 0 }
   0xa   :  { %22 = vsyncpa [#allocation13], 0 }
   0xb   :  { %23 = vsyncpa [#allocation5], 0 }
   0xc   :  { %25 = vsyncpa [#allocation5 + $0x1], 0  ;;  %s10506_s21 = smov 0   ;;  %s10508_s22 = smov 0  }
   0xd   :  { %s10510_s23 = smov 0   ;;  %s10512_s24 = smov 0  }
   0xe LB: > { %s10423_s11 = smov [#allocation6]   ;;  %s10527_s26 = sadd.s32 4294967295, %s10421_s24   ;;  %s10421_s24 = sphi %s10512_s24, %s14563_s24   ;;  %s10417_s23 = sphi %s10510_s23, %s14562_s23   ;;  %s10413_s22 = sphi %s10508_s22, %s14561_s22   ;;  %s10409_s21 = sphi %s10506_s21, %s14560_s21  }
   0xf   : > { %s334_s25 = sshll.u32 %s10423_s11, 4  ;;  %p7777_p0 = scmp.ge.s32.totalorder %s10421_s24, 1  ;;  %s10532_s25 = int_to_ptr.vmem [resolvable:$true] %s334_s25 }
  0x10   : > { %p13888_p1 = scmp.eq.s32.totalorder %s10527_s26, 0  ;;  %p319_p2 = scmp.lt.s32.totalorder %s10421_s24, 3 }
  0x11   : > { %s10424_s28 = smov [#allocation9]   ;;  %s10425_s13 = smov [#allocation12]  }
  0x12   : > { %p10534_p3 = pnand %p7777_p0, %p319_p2  ;;  %s360_s29 = sshll.u32 %s10424_s28, 4  ;;  %s10547_s29 = int_to_ptr.vmem [resolvable:$true] %s360_s29 }
  0x13   : > { %s10549_s14 = sshll.u32 %s10425_s13, 4  ;;  %s14066_s2 = sld [smem:[#allocation129_spill]]  ;;  %s390_s14 = int_to_ptr.vmem [resolvable:$true] %s10549_s14 }
  0x14   : > { %s14064_s27 = scalar_select %p10534_p3, 1, 0 }
  0x15   : > { %p8696_p5 = pneg %p10534_p3 }
  0x17   : > { %p10543_p6 = pnand %p8696_p5, %p13888_p1 }
  0x19   : > { %s10145_s17 = scalar_lea.hbm %s14066_s2, 20480  ;;  %p10559_p8 = pneg %p10543_p6 }
  0x1a   : > { %p10146_p7 = scmp.ne.s32.totalorder %s14066_s2, %s10145_s17  ;;  %p10152_p11 = scmp.lt.u32.totalorder %s10145_s17, %s14066_s2 }
  0x1c   : > { %p10148_p9 = pnand %p10559_p8, %p10146_p7 }
  0x1e   : > { %p10149_p10 = pneg %p10148_p9 }
  0x20   : > { %p10154_p12 = pnand %p10152_p11, %p10149_p10 }
  0x22   : > { %10157 = shalt.err (!%p10154_p12)
}
  0x23   : > { %s10158_s13 = scalar_lea.vmem %s10532_s25, 20480  ;;  %p10166_p5 = scmp.lt.s32.totalorder %s10532_s25, %s10532_s25 }
  0x24   : > { %p10159_p13 = scmp.ne.s32.totalorder %s10532_s25, %s10158_s13  ;;  %p10167_p4 = scmp.lt.s32.totalorder %s10158_s13, %s10158_s13 }
  0x26   : > { %p10161_p0 = pnand %p10159_p13, %p10559_p8  ;;  %p10168_p7 = por %p10167_p4, %p10166_p5 }
  0x28   : > { %p10162_p2 = pneg %p10161_p0 }
  0x2a   : > { %p10169_p9 = pnand %p10168_p7, %p10162_p2 }
  0x2c   : > { %10172 = shalt.err (!%p10169_p9)
}
  0x2d   : > { %s10426_s15 = smov 640   ;;  %s10427_s16 = smov 40  }
  0x2e   : > { %8699 = dma.hbm_to_vmem [thread:$0]  (!%p10543_p6), %s14066_s2, 20480, %s10532_s25, [#allocation7], %s10426_s15, %s10426_s15, %s10427_s16  }
  0x2f   : > { %s10173_s28 = scalar_lea.hbm %s13877_s4, 4096 }
  0x30   : > { %p10174_p4 = scmp.ne.s32.totalorder %s13877_s4, %s10173_s28  ;;  %p10180_p12 = scmp.lt.u32.totalorder %s10173_s28, %s13877_s4 }
  0x32   : > { %p10176_p10 = pnand %p10174_p4, %p10559_p8 }
  0x34   : > { %p10177_p11 = pneg %p10176_p10 }
  0x36   : > { %p10182_p13 = pnand %p10180_p12, %p10177_p11 }
  0x38   : > { %10185 = shalt.err (!%p10182_p13)
}
  0x39   : > { %s10186_s25 = scalar_lea.vmem %s10547_s29, 4096  ;;  %p10194_p7 = scmp.lt.s32.totalorder %s10547_s29, %s10547_s29 }
  0x3a   : > { %p10187_p0 = scmp.ne.s32.totalorder %s10547_s29, %s10186_s25  ;;  %p10195_p9 = scmp.lt.s32.totalorder %s10186_s25, %s10186_s25 }
  0x3c   : > { %p10189_p2 = pnand %p10187_p0, %p10559_p8  ;;  %p10196_p4 = por %p10195_p9, %p10194_p7 }
  0x3e   : > { %p10190_p5 = pneg %p10189_p2 }
  0x40   : > { %p10197_p10 = pnand %p10196_p4, %p10190_p5 }
  0x42   : > { %10200 = shalt.err (!%p10197_p10)
}
  0x43   : > { %s13890_s10 = smov 256   ;;  %s13892_s8 = smov 16  }
  0x44   : > { %8705 = dma.hbm_to_vmem [thread:$0]  (!%p10543_p6), %s13877_s4, 4096, %s10547_s29, [#allocation10], %s13890_s10, %s13890_s10, %s13892_s8  }
  0x45   : > { %s10201_s18 = scalar_lea.hbm %s13880_s7, 24576 }
  0x46   : > { %p10202_p11 = scmp.ne.s32.totalorder %s13880_s7, %s10201_s18  ;;  %p10208_p0 = scmp.lt.u32.totalorder %s10201_s18, %s13880_s7 }
  0x48   : > { %p10204_p12 = pnand %p10202_p11, %p10559_p8 }
  0x4a   : > { %p10205_p13 = pneg %p10204_p12 }
  0x4c   : > { %p10210_p2 = pnand %p10208_p0, %p10205_p13 }
  0x4e   : > { %10213 = shalt.err (!%p10210_p2)
}
  0x4f   : > { %s10214_s25 = scalar_lea.vmem %s390_s14, 24576  ;;  %p10222_p4 = scmp.lt.s32.totalorder %s390_s14, %s390_s14 }
  0x50   : > { %p10215_p5 = scmp.ne.s32.totalorder %s390_s14, %s10214_s25  ;;  %p10223_p10 = scmp.lt.s32.totalorder %s10214_s25, %s10214_s25 }
  0x52   : > { %p10217_p7 = pnand %p10215_p5, %p10559_p8  ;;  %p10224_p1 = por %p10223_p10, %p10222_p4 }
  0x54   : > { %p10218_p9 = pneg %p10217_p7 }
  0x56   : > { %p10225_p3 = pnand %p10224_p1, %p10218_p9 }
  0x58   : > { %10228 = shalt.err (!%p10225_p3)
}
  0x59   : > { %s10430_s29 = smov 768   ;;  %s10431_s12 = smov 48  }
  0x5a   : > { %8711 = dma.hbm_to_vmem [thread:$0]  (!%p10543_p6), %s13880_s7, 24576, %s390_s14, [#allocation13], %s10430_s29, %s10430_s29, %s10431_s12  }
  0x5b   : > { %s10432_s17 = smov [#allocation8]   ;;  %s14068_s3 = sld [smem:[#allocation130_spill]] }
  0x5c   : > { %s347_s18 = sshll.u32 %s10432_s17, 4  ;;  %s348_s18 = int_to_ptr.vmem [resolvable:$true] %s347_s18 }
  0x61   : > { %s10229_s28 = scalar_lea.hbm %s14068_s3, 4096 }
  0x62   : > { %p10230_p1 = scmp.ne.s32.totalorder %s14068_s3, %s10229_s28  ;;  %p10236_p12 = scmp.lt.u32.totalorder %s10229_s28, %s14068_s3 }
  0x64   : > { %p10232_p3 = pnand %p10230_p1, %p10559_p8 }
  0x66   : > { %p10233_p11 = pneg %p10232_p3 }
  0x68   : > { %p10238_p13 = pnand %p10236_p12, %p10233_p11 }
  0x6a   : > { %10241 = shalt.err (!%p10238_p13)
}
  0x6b   : > { %s10242_s14 = scalar_lea.vmem %s348_s18, 4096  ;;  %p10250_p7 = scmp.lt.s32.totalorder %s348_s18, %s348_s18 }
  0x6c   : > { %p10243_p0 = scmp.ne.s32.totalorder %s348_s18, %s10242_s14  ;;  %p10251_p9 = scmp.lt.s32.totalorder %s10242_s14, %s10242_s14 }
  0x6e   : > { %p10245_p2 = pnand %p10243_p0, %p10559_p8  ;;  %p10252_p4 = por %p10251_p9, %p10250_p7 }
  0x70   : > { %p10246_p5 = pneg %p10245_p2 }
  0x72   : > { %p10253_p10 = pnand %p10252_p4, %p10246_p5 }
  0x74   : > { %10256 = shalt.err (!%p10253_p10)
}
  0x75   : > { %s13894_s29 = smov 128   ;;  %s10434_s12 = smov 8  }
  0x76   : > { %8702 = dma.hbm_to_vmem [thread:$0]  (!%p10543_p6), %s14068_s3, 4096, %s348_s18, [#allocation7], %s13894_s29, %s13894_s29, %s10434_s12  }
  0x77   : > { %s10435_s15 = smov [#allocation11]   ;;  %s10436_s17 = smov [#allocation14]  }
  0x78   : > { %s373_s16 = sshll.u32 %s10435_s15, 4  ;;  %s405_s19 = sshll.u32 %s10436_s17, 4  ;;  %s374_s16 = int_to_ptr.vmem [resolvable:$true] %s373_s16  ;;  %s10646_s19 = int_to_ptr.vmem [resolvable:$true] %s405_s19 }
  0x79   : > { %s10257_s13 = scalar_lea.hbm %s13878_s5, 4096 }
  0x7a   : > { %p10258_p1 = scmp.ne.s32.totalorder %s13878_s5, %s10257_s13  ;;  %p10264_p12 = scmp.lt.u32.totalorder %s10257_s13, %s13878_s5 }
  0x7c   : > { %p10260_p3 = pnand %p10258_p1, %p10559_p8 }
  0x7e   : > { %p10261_p11 = pneg %p10260_p3 }
  0x80   : > { %p10266_p13 = pnand %p10264_p12, %p10261_p11 }
  0x82   : > { %10269 = shalt.err (!%p10266_p13)
}
  0x83   : > { %s10270_s8 = scalar_lea.vmem %s374_s16, 4096  ;;  %p10278_p7 = scmp.lt.s32.totalorder %s374_s16, %s374_s16 }
  0x84   : > { %p10271_p0 = scmp.ne.s32.totalorder %s374_s16, %s10270_s8  ;;  %p10279_p9 = scmp.lt.s32.totalorder %s10270_s8, %s10270_s8 }
  0x86   : > { %p10273_p2 = pnand %p10271_p0, %p10559_p8  ;;  %p10280_p4 = por %p10279_p9, %p10278_p7 }
  0x88   : > { %p10274_p5 = pneg %p10273_p2 }
  0x8a   : > { %p10281_p10 = pnand %p10280_p4, %p10274_p5 }
  0x8c   : > { %10284 = shalt.err (!%p10281_p10)
}
  0x8d   : > { %s14069_s15 = smov 16   ;;  %s14070_s17 = smov 256  }
  0x8e   : > { %8708 = dma.hbm_to_vmem [thread:$0]  (!%p10543_p6), %s13878_s5, 4096, %s374_s16, [#allocation10], %s14070_s17, %s14070_s17, %s14069_s15  }
  0x8f   : > { %s10285_s14 = scalar_lea.hbm %s13882_s9, 12288 }
  0x90   : > { %p10286_p1 = scmp.ne.s32.totalorder %s13882_s9, %s10285_s14  ;;  %p10292_p12 = scmp.lt.u32.totalorder %s10285_s14, %s13882_s9 }
  0x92   : > { %p10288_p3 = pnand %p10286_p1, %p10559_p8 }
  0x94   : > { %p10289_p11 = pneg %p10288_p3 }
  0x96   : > { %p10294_p13 = pnand %p10292_p12, %p10289_p11 }
  0x98   : > { %10297 = shalt.err (!%p10294_p13)
}
  0x99   : > { %s10298_s16 = scalar_lea.vmem %s10646_s19, 12288  ;;  %p10306_p7 = scmp.lt.s32.totalorder %s10646_s19, %s10646_s19 }
  0x9a   : > { %p10299_p0 = scmp.ne.s32.totalorder %s10646_s19, %s10298_s16  ;;  %p10307_p9 = scmp.lt.s32.totalorder %s10298_s16, %s10298_s16 }
  0x9c   : > { %p10301_p2 = pnand %p10299_p0, %p10559_p8  ;;  %p10308_p4 = por %p10307_p9, %p10306_p7 }
  0x9e   : > { %p10302_p5 = pneg %p10301_p2 }
  0xa0   : > { %p10309_p10 = pnand %p10308_p4, %p10302_p5 }
  0xa2   : > { %10312 = shalt.err (!%p10309_p10)
}
  0xa3   : > { %s14071_s29 = smov 128   ;;  %s7776_s30 = sadd.s32 4294967294, %s10421_s24  }
  0xa4   : > { %8714 = dma.hbm_to_vmem [thread:$0]  (!%p10543_p6), %s13882_s9, 12288, %s10646_s19, [#allocation13], %s14071_s29, %s14071_s29, %s10434_s12  }
  0xa5   : > { %s10697_s20 = sadd.s32 1, %s10421_s24   ;;  %s38_s25 = sadd.s32 1, %s10417_s23 }
  0xa6   : > { %s35_s13 = ssub.s32 %s10421_s24, %s10697_s20  ;;  %p45_p1 = scmp.ne.s32.totalorder %s10417_s23, %s10413_s22 }
  0xa7   : > { %p36_p8 = scmp.eq.s32.totalorder %s35_s13, 0  ;;  %p46_p3 = scmp.eq.s32.totalorder %s10421_s24, 0 }
  0xa8   : > { %p51_p11 = scmp.ne.s32.totalorder %s10413_s22, %s10409_s21  ;;  %p14073_p13 = scmp.eq.s32.totalorder %s10527_s26, 0 }
  0xa9   : > { %s10708_s14 = scalar_select %p36_p8, %s10417_s23, %s38_s25  }
  0xaa   : > { %p10710_p12 = por %p46_p3, %p45_p1  ;;  %p10716_p6 = por %p14073_p13, %p51_p11 }
  0xab   : > { %p306_p0 = scmp.eq.s32.totalorder %s10527_s26, 1  ;;  %p312_p2 = scmp.eq.s32.totalorder %s7776_s30, 1 }
  0xac   : > { %p8729_p5 = scmp.lt.s32.totalorder %s10421_s24, 2  ;;  %s425_s19 = sand.u32 1, %s10417_s23  }
  0xad   : > { %p10723_p7 = por %p306_p0, %p45_p1  ;;  %p10727_p9 = por %p312_p2, %p51_p11 }
  0xae   : > { %s7785_s16 = sshll.u32 %s425_s19, 8  ;;  %s8378_s29 = sshll.u32 %s10421_s24, 12 }
  0xaf   : > { %s14075_s18 = scalar_select %p10723_p7, 1, 0 }
  0xb0   : > { %s14076_s8 = scalar_select %p10727_p9, 1, 0 }
  0xb1   : > { %s10735_s13 = scalar_lea.hbm %s13873_s0, %s8378_s29  ;;  %s429_s30 = scalar_lea.vmem [#allocation3], %s7785_s16 }
  0xb2   : > { %s436_s25 = sshll.u32 %s429_s30, 4  ;;  %p10741_p4 = pnand %p8729_p5, %p10710_p12  ;;  %s10737_s25 = int_to_ptr.vmem [resolvable:$true] %s436_s25 }
  0xb3   : > { %s10745_s3 = scalar_lea.sflag [#allocation4], %s425_s19  ;;  %s10313_s11 = scalar_lea.hbm %s10735_s13, 4096 }
  0xb4   : > { %p10314_p10 = scmp.ne.s32.totalorder %s10735_s13, %s10313_s11  ;;  %p10315_p8 = pneg %p10741_p4 }
  0xb5   : > { %s10318_s10 = scalar_lea.hbm %s13873_s0, 8192  ;;  %p10319_p11 = scmp.lt.u32.totalorder %s10735_s13, %s13873_s0 }
  0xb6   : > { %p10316_p1 = pnand %p10315_p8, %p10314_p10  ;;  %p10320_p12 = scmp.lt.u32.totalorder %s10318_s10, %s10313_s11 }
  0xb7   : > { %p10322_p0 = scmp.lt.u32.totalorder %s10313_s11, %s10735_s13 }
  0xb8   : > { %p10317_p3 = pneg %p10316_p1  ;;  %p10321_p13 = por %p10320_p12, %p10319_p11 }
  0xba   : > { %p10323_p2 = por %p10322_p0, %p10321_p13 }
  0xbc   : > { %p10324_p5 = pnand %p10323_p2, %p10317_p3 }
  0xbe   : > { %10327 = shalt.err (!%p10324_p5)
}
  0xbf   : > { %s10328_s19 = scalar_lea.vmem %s10737_s25, 4096  ;;  %s10437_s16 = smov [#allocation3]  }
  0xc0   : > { %p10329_p10 = scmp.ne.s32.totalorder %s10737_s25, %s10328_s19  ;;  %s10333_s29 = sshll.u32 %s10437_s16, 4  ;;  %s10334_s29 = int_to_ptr.vmem [resolvable:$false] %s10333_s29 }
  0xc1   : > { %s10335_s28 = scalar_lea.vmem %s10334_s29, 8192  ;;  %p10336_p7 = scmp.lt.s32.totalorder %s10737_s25, %s10334_s29 }
  0xc2   : > { %p10331_p1 = pnand %p10329_p10, %p10315_p8  ;;  %p10337_p11 = scmp.lt.s32.totalorder %s10335_s28, %s10328_s19 }
  0xc4   : > { %p10332_p9 = pneg %p10331_p1  ;;  %p10338_p12 = por %p10337_p11, %p10336_p7 }
  0xc6   : > { %p10339_p13 = pnand %p10338_p12, %p10332_p9 }
  0xc8   : > { %10342 = shalt.err (!%p10339_p13)
}
  0xc9   : > { %8718 = dma.hbm_to_vmem [thread:$0]  (!%p10741_p4), %s10735_s13, 4096, %s10737_s25, %s10745_s3, %s14070_s17, %s14070_s17, %s14069_s15  }
  0xca   : > { %p14078_p8 = scmp.ne.s32.totalorder %s14064_s27, 0 }
  0xcc   : > { %448 = sbr.rel (%p14078_p8) target bundleno = 2710 (0xa96), region = 68 }
  0xd3   : > { %s10779_s11 = sand.u32 1, %s10413_s22  }
  0xd4   : > { %s7789_s10 = sshll.u32 %s10779_s11, 8  ;;  %s451_s30 = scalar_lea.sflag [#allocation4], %s10779_s11 }
  0xd5   : > { %s10785_s2 = scalar_lea.vmem [#allocation3], %s7789_s10 }
  0xd6   : > { %10388 = dma.done.wait (%p10716_p6), %s451_s30, 4096  }
  0xd7   : > { %10390 = vsyncadd (%p10716_p6), %s451_s30, 4294963200  ;;  %p14079_p7 = scmp.eq.s32.totalorder %s10527_s26, 0 }
  0xd9   : > { %10392 = dma.done.wait (%p14079_p7), [#allocation7], 24576   ;;  %p14080_p9 = pmov %p14079_p7 }
  0xda   : > { %p14081_p4 = pmov %p14079_p7 }
  0xdb   : > { %10394 = vsyncadd (%p14080_p9), [#allocation7], 4294942720 }
  0xdc   : > { %10396 = dma.done.wait (%p14081_p4), [#allocation10], 8192   ;;  %p14082_p3 = pmov %p14081_p4 }
  0xde   : > { %10398 = vsyncadd (%p14082_p3), [#allocation10], 4294959104  ;;  %p14083_p0 = pmov %p14082_p3 }
  0xe0   : > { %10400 = dma.done.wait (%p14083_p0), [#allocation13], 36864   ;;  %p14084_p2 = pmov %p14083_p0 }
  0xe1   : > { %v520_v0 = vld [vmem:[%s10785_s2] sm:$0xff]  ;;  %v521_v1 = vld [vmem:[%s10785_s2 + $0x8] sm:$0xff]  ;;  %v522_v7 = vld [vmem:[%s10785_s2 + $0x10] sm:$0xff]  ;;  %s14277_s25 = sld [smem:[#allocation131_spill]]  ;;  %s14521_s30 = sld [smem:[#allocation132_spill]] }
  0xe2   : > { %10402 = vsyncadd (%p14084_p2), [#allocation13], 4294930432  ;;  %v524_v2 = vld [vmem:[%s10785_s2 + $0x20] sm:$0xff]  ;;  %v553_v3 = vmul.f32 %v520_v0, %v520_v0  ;;  %v554_v4 = vmul.f32 %v521_v1, %v521_v1  ;;  %v525_v5 = vld [vmem:[%s10785_s2 + $0x28] sm:$0xff]  ;;  %v555_v10 = vmul.f32 %v522_v7, %v522_v7  ;;  %s14555_s17 = sld [smem:[#allocation133_spill]]  ;;  %p14557_p5 = scmp.ne.s32.totalorder %s14075_s18, 0 }
  0xe3   : > { %v557_v6 = vmul.f32 %v524_v2, %v524_v2  ;;  %v523_v8 = vld [vmem:[%s10785_s2 + $0x18] sm:$0xff]  ;;  %v558_v9 = vmul.f32 %v525_v5, %v525_v5  ;;  %v526_v12 = vld [vmem:[%s10785_s2 + $0x30] sm:$0xff]  ;;  %v528_v19 = vld [vmem:[%s10785_s2 + $0x40] sm:$0xff]  ;;  %s10438_s19 = smov [#allocation15]  }
  0xe4   : > { %v556_v11 = vmul.f32 %v523_v8, %v523_v8  ;;  %v527_v13 = vld [vmem:[%s10785_s2 + $0x38] sm:$0xff]  ;;  %v530_v14 = vld [vmem:[%s10785_s2 + $0x50] sm:$0xff]  ;;  %v585_v15 = vadd.f32 %v554_v4, %v553_v3  ;;  %v559_v16 = vmul.f32 %v526_v12, %v526_v12  ;;  %v529_v20 = vld [vmem:[%s10785_s2 + $0x48] sm:$0xff]  ;;  %v561_v23 = vmul.f32 %v528_v19, %v528_v19  ;;  %s10347_s16 = sshll.u32 %s10438_s19, 4  ;;  %s10348_s16 = int_to_ptr.vmem [resolvable:$false] %s10347_s16 }
  0xe5   : > { %v560_v17 = vmul.f32 %v527_v13, %v527_v13  ;;  %v531_v18 = vld [vmem:[%s10785_s2 + $0x58] sm:$0xff]  ;;  %v591_v21 = vadd.f32 %v558_v9, %v557_v6  ;;  %v562_v24 = vmul.f32 %v529_v20, %v529_v20  ;;  %v563_v26 = vmul.f32 %v530_v14, %v530_v14  ;;  %v532_v28 = vld [vmem:[%s10785_s2 + $0x60] sm:$0xff]  ;;  %v533_v29 = vld [vmem:[%s10785_s2 + $0x68] sm:$0xff]  ;;  %s10349_s29 = scalar_lea.vmem %s10348_s16, 8192 }
  0xe6   : > { %586 = vadd.xlane.f32.xlu0 %v585_v15  ;;  %v588_v22 = vadd.f32 %v556_v11, %v555_v10  ;;  %v564_v27 = vmul.f32 %v531_v18, %v531_v18  ;;  %v534_v30 = vld [vmem:[%s10785_s2 + $0x70] sm:$0xff]  ;;  %v535_v31 = vld [vmem:[%s10785_s2 + $0x78] sm:$0xff]  ;;  %v565_v33 = vmul.f32 %v532_v28, %v532_v28  ;;  %v566_v34 = vmul.f32 %v533_v29, %v533_v29  ;;  %v536_v40 = vld [vmem:[%s10785_s2 + $0x80] sm:$0xff] }
  0xe7   : > { %592 = vadd.xlane.f32.xlu1 %v591_v21  ;;  %v594_v25 = vadd.f32 %v560_v17, %v559_v16  ;;  %v597_v32 = vadd.f32 %v562_v24, %v561_v23  ;;  %v538_v35 = vld [vmem:[%s10785_s2 + $0x90] sm:$0xff]  ;;  %v539_v36 = vld [vmem:[%s10785_s2 + $0x98] sm:$0xff]  ;;  %v567_v38 = vmul.f32 %v534_v30, %v534_v30  ;;  %v568_v39 = vmul.f32 %v535_v31, %v535_v31  ;;  %v537_v41 = vld [vmem:[%s10785_s2 + $0x88] sm:$0xff] }
  0xe8   : > { %v600_v37 = vadd.f32 %v564_v27, %v563_v26  ;;  %v8785_v42 = vld [vmem:[#allocation6 + $0x4] ss:$40 sps:$4 sm:$0xff]   ;;  %v8789_v46 = vld [vmem:[#allocation6] ss:$40 sps:$4 sm:$0xff]   ;;  %v603_v47 = vadd.f32 %v566_v34, %v565_v33  ;;  %v569_v48 = vmul.f32 %v536_v40, %v536_v40  ;;  %v570_v49 = vmul.f32 %v537_v41, %v537_v41  ;;  %v542_v50 = vld [vmem:[%s10785_s2 + $0xb0] sm:$0xff] }
  0xe9   : > { %v540_v43 = vld [vmem:[%s10785_s2 + $0xa0] sm:$0xff]  ;;  %v541_v44 = vld [vmem:[%s10785_s2 + $0xa8] sm:$0xff]  ;;  %v543_v51 = vld [vmem:[%s10785_s2 + $0xb8] sm:$0xff]  ;;  %1733 = vmatprep.subr.bf16.mxu0 %v8785_v42  ;;  %v606_v53 = vadd.f32 %v568_v39, %v567_v38  ;;  %v571_v54 = vmul.f32 %v538_v35, %v538_v35  ;;  %v572_v55 = vmul.f32 %v539_v36, %v539_v36  ;;  %v575_v5 = vmul.f32 %v542_v50, %v542_v50 }
  0xea   : > { %589 = vadd.xlane.f32.xlu0 %v588_v22  ;;  %v8787_v45 = vld [vmem:[#allocation6 + $0x1c] ss:$40 sps:$4 sm:$0xff]   ;;  %v8790_v52 = vld [vmem:[#allocation6 + $0x18] ss:$40 sps:$4 sm:$0xff]   ;;  %1734 = vmatpush1.bf16.msra.mxu0 %v8789_v46  ;;  %v8793_v57 = vld [vmem:[#allocation6 + $0x6c] ss:$40 sps:$4 sm:$0xff]   ;;  %v609_v62 = vadd.f32 %v570_v49, %v569_v48  ;;  %v573_v63 = vmul.f32 %v540_v43, %v540_v43  ;;  %v574_v0 = vmul.f32 %v541_v44, %v541_v44 }
  0xeb   : > { %595 = vadd.xlane.f32.xlu1 %v594_v25  ;;  %2072 = vmatprep.subr.bf16.mxu1 %v8787_v45  ;;  %v8791_v56 = vld [vmem:[#allocation6 + $0x54] ss:$40 sps:$4 sm:$0xff]   ;;  %v8795_v58 = vld [vmem:[#allocation6 + $0x50] ss:$40 sps:$4 sm:$0xff]   ;;  %v544_v60 = vld [vmem:[%s10785_s2 + $0xc0] sm:$0xff]  ;;  %v612_v4 = vadd.f32 %v572_v55, %v571_v54  ;;  %v576_v6 = vmul.f32 %v543_v51, %v543_v51 }
  0xec   : > { %2073 = vmatpush1.bf16.msra.mxu1 %v8790_v52  ;;  %v8796_v59 = vld [vmem:[#allocation6 + $0x68] ss:$40 sps:$4 sm:$0xff]   ;;  %1735 = vmatprep.subr.bf16.mxu0 %v8791_v56  ;;  %v8797_v61 = vld [vmem:[#allocation6 + $0xa4] ss:$40 sps:$4 sm:$0xff]   ;;  %v547_v2 = vld [vmem:[%s10785_s2 + $0xd8] sm:$0xff]  ;;  %v615_v12 = vadd.f32 %v574_v0, %v573_v63  ;;  %v577_v13 = vmul.f32 %v544_v60, %v544_v60 }
  0xed   : > { %v546_v1 = vld [vmem:[%s10785_s2 + $0xd0] sm:$0xff]  ;;  %2074 = vmatprep.subr.bf16.mxu1 %v8793_v57  ;;  %v8799_v3 = vld [vmem:[#allocation6 + $0xbc] ss:$40 sps:$4 sm:$0xff]   ;;  %v545_v7 = vld [vmem:[%s10785_s2 + $0xc8] sm:$0xff]  ;;  %v618_v18 = vadd.f32 %v576_v6, %v575_v5  ;;  %v580_v20 = vmul.f32 %v547_v2, %v547_v2 }
  0xee   : > { %598 = vadd.xlane.f32.xlu0 %v597_v32  ;;  %v8801_v8 = vld [vmem:[#allocation6 + $0xa0] ss:$40 sps:$4 sm:$0xff]   ;;  %1736 = vmatpush1.bf16.msra.mxu0 %v8795_v58  ;;  %v8803_v10 = vld [vmem:[#allocation6 + $0xf4] ss:$40 sps:$4 sm:$0xff]   ;;  %v578_v14 = vmul.f32 %v545_v7, %v545_v7  ;;  %v579_v19 = vmul.f32 %v546_v1, %v546_v1  ;;  %v8807_v22 = vld [vmem:[#allocation6 + $0xf0] ss:$40 sps:$4 sm:$0xff]  }
  0xef   : > { %601 = vadd.xlane.f32.xlu1 %v600_v37  ;;  %v8802_v9 = vld [vmem:[#allocation6 + $0xb8] ss:$40 sps:$4 sm:$0xff]   ;;  %1737 = vmatprep.subr.bf16.mxu0 %v8797_v61  ;;  %v8805_v11 = vld [vmem:[#allocation6 + $0x10c] ss:$40 sps:$4 sm:$0xff]   ;;  %v8808_v23 = vld [vmem:[#allocation6 + $0x108] ss:$40 sps:$4 sm:$0xff]  }
  0xf0   : > { %2075 = vmatpush1.bf16.msra.mxu1 %v8796_v59  ;;  %v550_v15 = vld [vmem:[%s10785_s2 + $0xf0] sm:$0xff]  ;;  %v551_v16 = vld [vmem:[%s10785_s2 + $0xf8] sm:$0xff]  ;;  %v548_v17 = vld [vmem:[%s10785_s2 + $0xe0] sm:$0xff]  ;;  %v621_v26 = vadd.f32 %v578_v14, %v577_v13  ;;  %v624_v29 = vadd.f32 %v580_v20, %v579_v19 }
  0xf1   : > { %2076 = vmatprep.subr.bf16.mxu1 %v8799_v3  ;;  %v549_v21 = vld [vmem:[%s10785_s2 + $0xe8] sm:$0xff]  ;;  %v8811_v25 = vld [vmem:[#allocation6 + $0x15c] ss:$40 sps:$4 sm:$0xff]   ;;  %v581_v27 = vmul.f32 %v548_v17, %v548_v17  ;;  %v583_v30 = vmul.f32 %v550_v15, %v550_v15  ;;  %v584_v31 = vmul.f32 %v551_v16, %v551_v16  ;;  %v8814_v33 = vld [vmem:[#allocation6 + $0x158] ss:$40 sps:$4 sm:$0xff]  }
  0xf2   : > { %604 = vadd.xlane.f32.xlu0 %v603_v47  ;;  %1738 = vmatpush1.bf16.msra.mxu0 %v8801_v8  ;;  %v8809_v24 = vld [vmem:[#allocation6 + $0x144] ss:$40 sps:$4 sm:$0xff]   ;;  %v582_v28 = vmul.f32 %v549_v21, %v549_v21  ;;  %v8813_v32 = vld [vmem:[#allocation6 + $0x140] ss:$40 sps:$4 sm:$0xff]   ;;  %v8815_v34 = vld [vmem:[#allocation6 + $0x194] ss:$40 sps:$4 sm:$0xff]  }
  0xf3   : > { %607 = vadd.xlane.f32.xlu1 %v606_v53  ;;  %1739 = vmatprep.subr.bf16.mxu0 %v8803_v10  ;;  %v8817_v35 = vld [vmem:[#allocation6 + $0x1ac] ss:$40 sps:$4 sm:$0xff]   ;;  %v630_v37 = vadd.f32 %v584_v31, %v583_v30  ;;  %v8819_v38 = vld [vmem:[#allocation6 + $0x190] ss:$40 sps:$4 sm:$0xff]   ;;  %v8823_v41 = vld [vmem:[#allocation6 + $0x1fc] ss:$40 sps:$4 sm:$0xff]  }
  0xf4   : > { %2077 = vmatpush1.bf16.msra.mxu1 %v8802_v9  ;;  %v627_v36 = vadd.f32 %v582_v28, %v581_v27  ;;  %v8820_v39 = vld [vmem:[#allocation6 + $0x1a8] ss:$40 sps:$4 sm:$0xff]   ;;  %v8821_v40 = vld [vmem:[#allocation6 + $0x1e4] ss:$40 sps:$4 sm:$0xff]   ;;  %v8826_v43 = vld [vmem:[#allocation6 + $0x1f8] ss:$40 sps:$4 sm:$0xff]  }
  0xf5   : > { %2078 = vmatprep.subr.bf16.mxu1 %v8805_v11  ;;  %v8825_v42 = vld [vmem:[#allocation6 + $0x1e0] ss:$40 sps:$4 sm:$0xff]   ;;  %v8827_v44 = vld [vmem:[#allocation6 + $0x234] ss:$40 sps:$4 sm:$0xff]   ;;  %v8831_v46 = vld [vmem:[#allocation6 + $0x230] ss:$40 sps:$4 sm:$0xff]  }
  0xf6   : > { %610 = vadd.xlane.f32.xlu0 %v609_v62  ;;  %1740 = vmatpush1.bf16.msra.mxu0 %v8807_v22  ;;  %v8829_v45 = vld [vmem:[#allocation6 + $0x24c] ss:$40 sps:$4 sm:$0xff]   ;;  %v8832_v47 = vld [vmem:[#allocation6 + $0x248] ss:$40 sps:$4 sm:$0xff]   ;;  %v8835_v49 = vld [vmem:[#allocation6 + $0x29c] ss:$40 sps:$4 sm:$0xff]  }
  0xf7   : > { %613 = vadd.xlane.f32.xlu1 %v612_v4  ;;  %1741 = vmatprep.subr.bf16.mxu0 %v8809_v24  ;;  %v8833_v48 = vld [vmem:[#allocation6 + $0x284] ss:$40 sps:$4 sm:$0xff]   ;;  %v8837_v50 = vld [vmem:[#allocation6 + $0x280] ss:$40 sps:$4 sm:$0xff]   ;;  %v8839_v52 = vld [vmem:[#allocation6 + $0x2d4] ss:$40 sps:$4 sm:$0xff]  }
  0xf8   : > { %2079 = vmatpush1.bf16.msra.mxu1 %v8808_v23  ;;  %v8838_v51 = vld [vmem:[#allocation6 + $0x298] ss:$40 sps:$4 sm:$0xff]   ;;  %v8841_v53 = vld [vmem:[#allocation6 + $0x2ec] ss:$40 sps:$4 sm:$0xff]   ;;  %v8844_v55 = vld [vmem:[#allocation6 + $0x2e8] ss:$40 sps:$4 sm:$0xff]  }
  0xf9   : > { %2080 = vmatprep.subr.bf16.mxu1 %v8811_v25  ;;  %v8843_v54 = vld [vmem:[#allocation6 + $0x2d0] ss:$40 sps:$4 sm:$0xff]   ;;  %v8845_v56 = vld [vmem:[#allocation6 + $0x324] ss:$40 sps:$4 sm:$0xff]   ;;  %v8849_v58 = vld [vmem:[#allocation6 + $0x320] ss:$40 sps:$4 sm:$0xff]  }
  0xfa   : > { %616 = vadd.xlane.f32.xlu0 %v615_v12  ;;  %1742 = vmatpush1.bf16.msra.mxu0 %v8813_v32  ;;  %v8847_v57 = vld [vmem:[#allocation6 + $0x33c] ss:$40 sps:$4 sm:$0xff]   ;;  %v8850_v59 = vld [vmem:[#allocation6 + $0x338] ss:$40 sps:$4 sm:$0xff]   ;;  %v8853_v61 = vld [vmem:[#allocation6 + $0x38c] ss:$40 sps:$4 sm:$0xff]  }
  0xfb   : > { %619 = vadd.xlane.f32.xlu1 %v618_v18  ;;  %1743 = vmatprep.subr.bf16.mxu0 %v8815_v34  ;;  %v8851_v60 = vld [vmem:[#allocation6 + $0x374] ss:$40 sps:$4 sm:$0xff]   ;;  %v8855_v62 = vld [vmem:[#allocation6 + $0x370] ss:$40 sps:$4 sm:$0xff]   ;;  %v8857_v0 = vld [vmem:[#allocation6 + $0x3c4] ss:$40 sps:$4 sm:$0xff]  }
  0xfc   : > { %2081 = vmatpush1.bf16.msra.mxu1 %v8814_v33  ;;  %v8856_v63 = vld [vmem:[#allocation6 + $0x388] ss:$40 sps:$4 sm:$0xff]   ;;  %v8859_v1 = vld [vmem:[#allocation6 + $0x3dc] ss:$40 sps:$4 sm:$0xff]   ;;  %v8862_v3 = vld [vmem:[#allocation6 + $0x3d8] ss:$40 sps:$4 sm:$0xff]  }
  0xfd   : > { %2082 = vmatprep.subr.bf16.mxu1 %v8817_v35  ;;  %v8861_v2 = vld [vmem:[#allocation6 + $0x3c0] ss:$40 sps:$4 sm:$0xff]   ;;  %v8863_v4 = vld [vmem:[#allocation6 + $0x414] ss:$40 sps:$4 sm:$0xff]   ;;  %v8867_v6 = vld [vmem:[#allocation6 + $0x410] ss:$40 sps:$4 sm:$0xff]  }
  0xfe   : > { %622 = vadd.xlane.f32.xlu0 %v621_v26  ;;  %1744 = vmatpush1.bf16.msra.mxu0 %v8819_v38  ;;  %v8865_v5 = vld [vmem:[#allocation6 + $0x42c] ss:$40 sps:$4 sm:$0xff]   ;;  %v8868_v7 = vld [vmem:[#allocation6 + $0x428] ss:$40 sps:$4 sm:$0xff]   ;;  %v8871_v9 = vld [vmem:[#allocation6 + $0x47c] ss:$40 sps:$4 sm:$0xff]   ;;  %v715_v26 = vlaneseq }
  0xff   : > { %625 = vadd.xlane.f32.xlu1 %v624_v29  ;;  %1745 = vmatprep.subr.bf16.mxu0 %v8821_v40  ;;  %v8869_v8 = vld [vmem:[#allocation6 + $0x464] ss:$40 sps:$4 sm:$0xff]   ;;  %v8873_v10 = vld [vmem:[#allocation6 + $0x460] ss:$40 sps:$4 sm:$0xff]   ;;  %v8875_v12 = vld [vmem:[#allocation6 + $0x4b4] ss:$40 sps:$4 sm:$0xff]  }
 0x100   : > { %2083 = vmatpush1.bf16.msra.mxu1 %v8820_v39  ;;  %v8874_v11 = vld [vmem:[#allocation6 + $0x478] ss:$40 sps:$4 sm:$0xff]   ;;  %v8877_v13 = vld [vmem:[#allocation6 + $0x4cc] ss:$40 sps:$4 sm:$0xff]   ;;  %v8880_v15 = vld [vmem:[#allocation6 + $0x4c8] ss:$40 sps:$4 sm:$0xff]  }
 0x101   : > { %2084 = vmatprep.subr.bf16.mxu1 %v8823_v41  ;;  %v8879_v14 = vld [vmem:[#allocation6 + $0x4b0] ss:$40 sps:$4 sm:$0xff]   ;;  %v8883_v16 = vld [vmem:[#allocation6 + $0xc] ss:$40 sps:$4 sm:$0xff]   ;;  %v10835_v33 = vshrl.u32 %v715_v26, 7 }
 0x102   : > { %628 = vadd.xlane.f32.xlu0 %v627_v36  ;;  %1746 = vmatpush1.bf16.msra.mxu0 %v8825_v42 }
 0x103   : > { %631 = vadd.xlane.f32.xlu1 %v630_v37  ;;  %1747 = vmatprep.subr.bf16.mxu0 %v8827_v44  ;;  %14085 = vst [vmem:[#allocation21_spill] sm:$0xff] %v10835_v33  ;;  %v552_v37 = vld [vmem:[%s13874_s1] sm:$0x3]  ;;  %v10841_v39 = vsub.s32 1, %v10835_v33  ;;  %v10844_v42 = vsub.s32 0, %v10835_v33 }
 0x104   : > { %2085 = vmatpush1.bf16.msra.mxu1 %v8826_v43 }
 0x105   : > { %2086 = vmatprep.subr.bf16.mxu1 %v8829_v45  ;;  %14086 = vst [vmem:[#allocation22_spill] sm:$0xff] %v10841_v39  ;;  %14087 = vst [vmem:[#allocation23_spill] sm:$0xff] %v10844_v42 }
 0x106   : > { %1748 = vmatpush1.bf16.msra.mxu0 %v8831_v46 }
 0x107   : > { %1749 = vmatprep.subr.bf16.mxu0 %v8833_v48 }
 0x108   : > { %2087 = vmatpush1.bf16.msra.mxu1 %v8832_v47 }
 0x109   : > { %2088 = vmatprep.subr.bf16.mxu1 %v8835_v49  ;;  %v10081_v49 = vld [vmem:[%s10785_s2 + $0x8] sm:$0xff] }
 0x10a   : > { %1750 = vmatpush1.bf16.msra.mxu0 %v8837_v50 }
 0x10b   : > { %1751 = vmatprep.subr.bf16.mxu0 %v8839_v52 }
 0x10c   : > { %2089 = vmatpush1.bf16.msra.mxu1 %v8838_v51  ;;  %v10082_v51 = vld [vmem:[%s10785_s2 + $0x28] sm:$0xff] }
 0x10d   : > { %2090 = vmatprep.subr.bf16.mxu1 %v8841_v53  ;;  %v10849_v53 = vrot.slane %v552_v37, %v10841_v39 }
 0x10e   : > { %1752 = vmatpush1.bf16.msra.mxu0 %v8843_v54 }
 0x10f   : > { %1753 = vmatprep.subr.bf16.mxu0 %v8845_v56 }
 0x110   : > { %2091 = vmatpush1.bf16.msra.mxu1 %v8844_v55  ;;  %v10083_v55 = vld [vmem:[%s10785_s2] sm:$0xff] }
 0x111   : > { %2092 = vmatprep.subr.bf16.mxu1 %v8847_v57  ;;  %v10853_v57 = vrot.slane %v552_v37, %v10844_v42 }
 0x112   : > { %1754 = vmatpush1.bf16.msra.mxu0 %v8849_v58 }
 0x113   : > { %1755 = vmatprep.subr.bf16.mxu0 %v8851_v60 }
 0x114   : > { %2093 = vmatpush1.bf16.msra.mxu1 %v8850_v59 }
 0x115   : > { %2094 = vmatprep.subr.bf16.mxu1 %v8853_v61 }
 0x116   : > { %1756 = vmatpush1.bf16.msra.mxu0 %v8855_v62  ;;  %v10084_v62 = vld [vmem:[%s10785_s2 + $0x10] sm:$0xff] }
 0x117   : > { %1757 = vmatprep.subr.bf16.mxu0 %v8857_v0  ;;  %v10085_v0 = vld [vmem:[%s10785_s2 + $0x18] sm:$0xff] }
 0x118   : > { %2095 = vmatpush1.bf16.msra.mxu1 %v8856_v63 }
 0x119   : > { %2096 = vmatprep.subr.bf16.mxu1 %v8859_v1 }
 0x11a   : > { %1758 = vmatpush1.bf16.msra.mxu0 %v8861_v2  ;;  %v10086_v2 = vld [vmem:[%s10785_s2 + $0x38] sm:$0xff] }
 0x11b   : > { %1759 = vmatprep.subr.bf16.mxu0 %v8863_v4 }
 0x11c   : > { %2097 = vmatpush1.bf16.msra.mxu1 %v8862_v3 }
 0x11d   : > { %2098 = vmatprep.subr.bf16.mxu1 %v8865_v5 }
 0x11e   : > { %1760 = vmatpush1.bf16.msra.mxu0 %v8867_v6 }
 0x11f   : > { %1761 = vmatprep.subr.bf16.mxu0 %v8869_v8 }
 0x120   : > { %2099 = vmatpush1.bf16.msra.mxu1 %v8868_v7 }
 0x121   : > { %2100 = vmatprep.subr.bf16.mxu1 %v8871_v9  ;;  %v8881_v9 = vld [vmem:[#allocation6 + $0x8] ss:$40 sps:$4 sm:$0xff]  }
 0x122   : > { %1762 = vmatpush1.bf16.msra.mxu0 %v8873_v10 }
 0x123   : > { %1763 = vmatprep.subr.bf16.mxu0 %v8875_v12 }
 0x124   : > { %2101 = vmatpush1.bf16.msra.mxu1 %v8874_v11 }
 0x125   : > { %2102 = vmatprep.subr.bf16.mxu1 %v8877_v13 }
 0x126   : > { %1764 = vmatpush1.bf16.msra.mxu0 %v8879_v14 }
 0x127   : > { %1846 = vmatprep.subr.bf16.mxu0 %v8883_v16  ;;  %v10087_v16 = vld [vmem:[%s10785_s2 + $0x48] sm:$0xff] }
 0x128   : > { %2103 = vmatpush1.bf16.msra.mxu1 %v8880_v15 }
 0x173   : > { %v587_v17 = vpop.xlane.xlu0 %586 }
 0x174   : > { %v634_v18 = vmul.f32 0.00390625, %v587_v17  ;;  %v593_v19 = vpop.xlane.xlu1 %592 }
 0x175   : > { %v636_v20 = vmul.f32 0.00390625, %v593_v19 }
 0x176   : > { %v650_v21 = vadd.f32 1e-05, %v634_v18 }
 0x177   : > { %v652_v22 = vadd.f32 1e-05, %v636_v20  ;;  %v590_v23 = vpop.xlane.xlu0 %589 }
 0x178   : > { %9505 = vrsqrt.f32 %v650_v21  ;;  %v635_v24 = vmul.f32 0.00390625, %v590_v23  ;;  %v596_v25 = vpop.xlane.xlu1 %595  ;;  %v10088_v21 = vld [vmem:[%s10785_s2 + $0x20] sm:$0xff]  ;;  %v10089_v23 = vld [vmem:[%s10785_s2 + $0x30] sm:$0xff] }
 0x179   : > { %9507 = vrsqrt.f32 %v652_v22  ;;  %v637_v27 = vmul.f32 0.00390625, %v596_v25  ;;  %v10090_v25 = vld [vmem:[%s10785_s2 + $0x58] sm:$0xff] }
 0x17a   : > { %v651_v28 = vadd.f32 1e-05, %v635_v24 }
 0x17b   : > { %v653_v29 = vadd.f32 1e-05, %v637_v27  ;;  %v599_v30 = vpop.xlane.xlu0 %598 }
 0x17c   : > { %9509 = vrsqrt.f32 %v651_v28  ;;  %v602_v31 = vpop.xlane.xlu1 %601  ;;  %v638_v32 = vmul.f32 0.00390625, %v599_v30  ;;  %v8886_v28 = vld [vmem:[#allocation6 + $0x5c] ss:$40 sps:$4 sm:$0xff]  }
 0x17d   : > { %9511 = vrsqrt.f32 %v653_v29  ;;  %v639_v34 = vmul.f32 0.00390625, %v602_v31 }
 0x17e   : > { %v654_v35 = vadd.f32 1e-05, %v638_v32  ;;  %v8884_v32 = vld [vmem:[#allocation6 + $0x58] ss:$40 sps:$4 sm:$0xff]  }
 0x17f   : > { %v655_v36 = vadd.f32 1e-05, %v639_v34  ;;  %v605_v38 = vpop.xlane.xlu0 %604  ;;  %v8889_v34 = vld [vmem:[#allocation6 + $0xac] ss:$40 sps:$4 sm:$0xff]  }
 0x180   : > { %9513 = vrsqrt.f32 %v654_v35  ;;  %v608_v40 = vpop.xlane.xlu1 %607  ;;  %v640_v41 = vmul.f32 0.00390625, %v605_v38 }
 0x181   : > { %9515 = vrsqrt.f32 %v655_v36  ;;  %v641_v43 = vmul.f32 0.00390625, %v608_v40 }
 0x182   : > { %v9506_v44 = vpop.eup %9505  ;;  %v656_v45 = vadd.f32 1e-05, %v640_v41  ;;  %v8887_v41 = vld [vmem:[#allocation6 + $0xa8] ss:$40 sps:$4 sm:$0xff]  }
 0x183   : > { %v9508_v46 = vpop.eup %9507  ;;  %v657_v47 = vadd.f32 1e-05, %v641_v43  ;;  %v611_v48 = vpop.xlane.xlu0 %610  ;;  %v683_v50 = vmul.f32 %v10081_v49, %v9506_v44  ;;  %v682_v56 = vmul.f32 %v10083_v55, %v9506_v44  ;;  %v10091_v44 = vld [vmem:[%s10785_s2 + $0x50] sm:$0xff] }
 0x184   : > { %v687_v52 = vmul.f32 %v10082_v51, %v9508_v46  ;;  %v614_v54 = vpop.xlane.xlu1 %613  ;;  %9517 = vrsqrt.f32 %v656_v45  ;;  %v642_v58 = vmul.f32 0.00390625, %v611_v48  ;;  %v686_v22 = vmul.f32 %v10088_v21, %v9508_v46  ;;  %v10092_v46 = vld [vmem:[%s10785_s2 + $0x40] sm:$0xff] }
 0x185   : > { %9519 = vrsqrt.f32 %v657_v47  ;;  %v643_v60 = vmul.f32 0.00390625, %v614_v54  ;;  %v726_v4 = vmul.f32 %v10849_v53, %v683_v50  ;;  %v725_v7 = vmul.f32 %v10853_v57, %v682_v56  ;;  %v10093_v50 = vld [vmem:[%s10785_s2 + $0x78] sm:$0xff] }
 0x186   : > { %v9510_v59 = vpop.eup %9509  ;;  %v730_v5 = vmul.f32 %v10849_v53, %v687_v52  ;;  %v658_v10 = vadd.f32 1e-05, %v642_v58  ;;  %v729_v38 = vmul.f32 %v10853_v57, %v686_v22  ;;  %v10094_v52 = vld [vmem:[%s10785_s2 + $0x68] sm:$0xff] }
 0x187   : > { %v9512_v61 = vpop.eup %9511  ;;  %v684_v63 = vmul.f32 %v10084_v62, %v9510_v59  ;;  %v685_v1 = vmul.f32 %v10085_v0, %v9510_v59  ;;  %v659_v13 = vadd.f32 1e-05, %v643_v60  ;;  %v617_v14 = vpop.xlane.xlu0 %616  ;;  %v8892_v59 = vld [vmem:[#allocation6 + $0xfc] ss:$40 sps:$4 sm:$0xff]  }
 0x188   : > { %v689_v3 = vmul.f32 %v10086_v2, %v9512_v61  ;;  %v620_v20 = vpop.xlane.xlu1 %619  ;;  %v688_v24 = vmul.f32 %v10089_v23, %v9512_v61  ;;  %9521 = vrsqrt.f32 %v658_v10  ;;  %v644_v29 = vmul.f32 0.00390625, %v617_v14  ;;  %v8895_v2 = vld [vmem:[#allocation6 + $0x14c] ss:$40 sps:$4 sm:$0xff]   ;;  %v10096_v10 = vld [vmem:[%s10785_s2 + $0x60] sm:$0xff] }
 0x189   : > { %v728_v6 = vmul.f32 %v10849_v53, %v685_v1  ;;  %v727_v8 = vmul.f32 %v10853_v57, %v684_v63  ;;  %9523 = vrsqrt.f32 %v659_v13  ;;  %v645_v30 = vmul.f32 0.00390625, %v620_v20  ;;  %v8890_v1 = vld [vmem:[#allocation6 + $0xf8] ss:$40 sps:$4 sm:$0xff]   ;;  %v8898_v23 = vld [vmem:[#allocation6 + $0x19c] ss:$40 sps:$4 sm:$0xff]  }
 0x18a   : > { %v9514_v11 = vpop.eup %9513  ;;  %v732_v12 = vmul.f32 %v10849_v53, %v689_v3  ;;  %v731_v40 = vmul.f32 %v10853_v57, %v688_v24  ;;  %v660_v43 = vadd.f32 1e-05, %v644_v29 }
 0x18b   : > { %v9516_v15 = vpop.eup %9515  ;;  %v691_v17 = vmul.f32 %v10087_v16, %v9514_v11  ;;  %v10865_v18 = vpack.c.bf16 %v728_v6, %v726_v4  ;;  %v10867_v19 = vpack.c.bf16 %v727_v8, %v725_v7  ;;  %v690_v47 = vmul.f32 %v10092_v46, %v9514_v11  ;;  %v623_v56 = vpop.xlane.xlu0 %622  ;;  %v8893_v6 = vld [vmem:[#allocation6 + $0x148] ss:$40 sps:$4 sm:$0xff]   ;;  %v10101_v46 = vld [vmem:[%s10785_s2 + $0xb8] sm:$0xff] }
 0x18c   : > { %v693_v26 = vmul.f32 %v10090_v25, %v9516_v15  ;;  %v10872_v27 = vpack.c.bf16 %v732_v12, %v730_v5  ;;  %v692_v45 = vmul.f32 %v10091_v44, %v9516_v15  ;;  %v661_v48 = vadd.f32 1e-05, %v645_v30  ;;  %v626_v49 = vpop.xlane.xlu1 %625  ;;  %v10095_v8 = vld [vmem:[%s10785_s2 + $0x70] sm:$0xff]  ;;  %v10097_v15 = vld [vmem:[%s10785_s2 + $0x98] sm:$0xff] }
 0x18d   : > { %1765 = vmatprep.mubr.bf16.mxu0 %v10865_v18  ;;  %2104 = vmatprep.mubr.bf16.mxu1 %v10865_v18  ;;  %v734_v35 = vmul.f32 %v10849_v53, %v691_v17  ;;  %v10890_v58 = vpack.c.bf16 %v731_v40, %v729_v38  ;;  %9525 = vrsqrt.f32 %v660_v43  ;;  %v647_v60 = vmul.f32 0.00390625, %v626_v49  ;;  %v10098_v17 = vld [vmem:[%s10785_s2 + $0x88] sm:$0xff]  ;;  %v8896_v30 = vld [vmem:[#allocation6 + $0x198] ss:$40 sps:$4 sm:$0xff]   ;;  %v10099_v38 = vld [vmem:[%s10785_s2 + $0x90] sm:$0xff] }
 0x18e   : > { %1766 = vmatmul.mubr.bf16.vlgmr.msra.gmra.mrb[0].mxu0 %v10867_v19  ;;  %2105 = vmatmul.mubr.bf16.vlgmr.msra.gmra.mrb[0].mxu1 %v10867_v19  ;;  %v9518_v31 = vpop.eup %9517  ;;  %v736_v36 = vmul.f32 %v10849_v53, %v693_v26  ;;  %v733_v61 = vmul.f32 %v10853_v57, %v690_v47  ;;  %v735_v62 = vmul.f32 %v10853_v57, %v692_v45  ;;  %9527 = vrsqrt.f32 %v661_v48  ;;  %v10102_v48 = vld [vmem:[%s10785_s2 + $0xa8] sm:$0xff] }
 0x18f   : > { %1847 = vmatpush1.bf16.msra.mxu0 %v8881_v9  ;;  %1775 = vmatprep.mubr.bf16.mxu0 %v10872_v27  ;;  %v9520_v37 = vpop.eup %9519  ;;  %v695_v54 = vmul.f32 %v10094_v52, %v9518_v31  ;;  %v646_v63 = vmul.f32 0.00390625, %v623_v56  ;;  %v663_v7 = vadd.f32 1e-05, %v647_v60  ;;  %v694_v11 = vmul.f32 %v10096_v10, %v9518_v31  ;;  %v629_v22 = vpop.xlane.xlu0 %628  ;;  %v8901_v31 = vld [vmem:[#allocation6 + $0x1ec] ss:$40 sps:$4 sm:$0xff]  }
 0x190   : > { %2114 = vmatprep.mubr.bf16.mxu1 %v10872_v27  ;;  %1848 = vmatprep.subr.bf16.mxu0 %v8886_v28  ;;  %v697_v51 = vmul.f32 %v10093_v50, %v9520_v37  ;;  %v10888_v55 = vpack.c.bf16 %v736_v36, %v734_v35  ;;  %v696_v9 = vmul.f32 %v10095_v8, %v9520_v37  ;;  %v632_v14 = vpop.xlane.xlu1 %631  ;;  %v648_v28 = vmul.f32 0.00390625, %v629_v22  ;;  %v8899_v36 = vld [vmem:[#allocation6 + $0x1e8] ss:$40 sps:$4 sm:$0xff]   ;;  %v8907_v60 = vld [vmem:[#allocation6 + $0x28c] ss:$40 sps:$4 sm:$0xff]  }
 0x191   : > { %v738_v3 = vmul.f32 %v10849_v53, %v695_v54  ;;  %v10902_v12 = vpack.c.bf16 %v735_v62, %v733_v61  ;;  %v662_v13 = vadd.f32 1e-05, %v646_v63  ;;  %9529 = vrsqrt.f32 %v663_v7  ;;  %v10106_v8 = vld [vmem:[%s10785_s2 + $0xc8] sm:$0xff] }
 0x192   : > { %v9522_v0 = vpop.eup %9521  ;;  %v740_v4 = vmul.f32 %v10849_v53, %v697_v51  ;;  %v649_v24 = vmul.f32 0.00390625, %v632_v14  ;;  %v737_v25 = vmul.f32 %v10853_v57, %v694_v11  ;;  %v739_v26 = vmul.f32 %v10853_v57, %v696_v9  ;;  %v8904_v51 = vld [vmem:[#allocation6 + $0x23c] ss:$40 sps:$4 sm:$0xff]  }
 0x193   : > { %1849 = vmatpush1.bf16.msra.mxu0 %v8884_v32  ;;  %v9524_v5 = vpop.eup %9523  ;;  %v699_v20 = vmul.f32 %v10098_v17, %v9522_v0  ;;  %9531 = vrsqrt.f32 %v662_v13  ;;  %v664_v45 = vadd.f32 1e-05, %v648_v28  ;;  %v8910_v11 = vld [vmem:[#allocation6 + $0x2dc] ss:$40 sps:$4 sm:$0xff]   ;;  %v8913_v17 = vld [vmem:[#allocation6 + $0x32c] ss:$40 sps:$4 sm:$0xff]  }
 0x194   : > { %1850 = vmatprep.subr.bf16.mxu0 %v8889_v34  ;;  %v701_v16 = vmul.f32 %v10097_v15, %v9524_v5  ;;  %v10906_v21 = vpack.c.bf16 %v740_v4, %v738_v3  ;;  %v665_v37 = vadd.f32 1e-05, %v649_v24  ;;  %v700_v40 = vmul.f32 %v10099_v38, %v9524_v5  ;;  %v10104_v3 = vld [vmem:[%s10785_s2 + $0xa0] sm:$0xff]  ;;  %v8911_v24 = vld [vmem:[#allocation6 + $0x328] ss:$40 sps:$4 sm:$0xff]  }
 0x195   : > { %v742_v32 = vmul.f32 %v10849_v53, %v699_v20  ;;  %v10918_v44 = vpack.c.bf16 %v739_v26, %v737_v25  ;;  %v10107_v25 = vld [vmem:[%s10785_s2 + $0xd0] sm:$0xff]  ;;  %v10108_v28 = vld [vmem:[%s10785_s2 + $0xc0] sm:$0xff] }
 0x196   : > { %1776 = vmatmul.mubr.bf16.gmra.mrb[4].mxu0 %v10890_v58  ;;  %2115 = vmatmul.mubr.bf16.gmra.mrb[4].mxu1 %v10890_v58  ;;  %v744_v34 = vmul.f32 %v10849_v53, %v701_v16  ;;  %9533 = vrsqrt.f32 %v665_v37  ;;  %v743_v54 = vmul.f32 %v10853_v57, %v700_v40  ;;  %v8908_v16 = vld [vmem:[#allocation6 + $0x2d8] ss:$40 sps:$4 sm:$0xff]   ;;  %v8916_v37 = vld [vmem:[#allocation6 + $0x37c] ss:$40 sps:$4 sm:$0xff]  }
 0x197   : > { %1851 = vmatpush1.bf16.msra.mxu0 %v8887_v41  ;;  %1785 = vmatprep.mubr.bf16.mxu0 %v10888_v55  ;;  %v9526_v29 = vpop.eup %9525  ;;  %v10100_v41 = vld [vmem:[%s10785_s2 + $0x80] sm:$0xff]  ;;  %9535 = vrsqrt.f32 %v664_v45 }
 0x198   : > { %1852 = vmatprep.subr.bf16.mxu0 %v8892_v59  ;;  %2124 = vmatprep.mubr.bf16.mxu1 %v10888_v55  ;;  %v9528_v35 = vpop.eup %9527  ;;  %v698_v43 = vmul.f32 %v10100_v41, %v9522_v0  ;;  %v703_v49 = vmul.f32 %v10102_v48, %v9526_v29  ;;  %v10922_v50 = vpack.c.bf16 %v744_v34, %v742_v32  ;;  %v8902_v59 = vld [vmem:[#allocation6 + $0x238] ss:$40 sps:$4 sm:$0xff]   ;;  %v8905_v0 = vld [vmem:[#allocation6 + $0x288] ss:$40 sps:$4 sm:$0xff]  }
 0x199   : > { %v705_v47 = vmul.f32 %v10101_v46, %v9528_v35  ;;  %v702_v4 = vmul.f32 %v10104_v3, %v9526_v29  ;;  %v10110_v34 = vld [vmem:[%s10785_s2 + $0xe8] sm:$0xff]  ;;  %v8914_v41 = vld [vmem:[#allocation6 + $0x378] ss:$40 sps:$4 sm:$0xff]   ;;  %v10111_v48 = vld [vmem:[%s10785_s2 + $0xf0] sm:$0xff] }
 0x19a   : > { %v741_v52 = vmul.f32 %v10853_v57, %v698_v43  ;;  %v746_v61 = vmul.f32 %v10849_v53, %v703_v49  ;;  %v8919_v43 = vld [vmem:[#allocation6 + $0x3cc] ss:$40 sps:$4 sm:$0xff]   ;;  %v8929_v3 = vld [vmem:[#allocation6 + $0x10] ss:$40 sps:$4 sm:$0xff]  }
 0x19b   : > { %1853 = vmatpush1.bf16.msra.mxu0 %v8890_v1  ;;  %v9530_v56 = vpop.eup %9529  ;;  %v748_v62 = vmul.f32 %v10849_v53, %v705_v47  ;;  %v10103_v1 = vld [vmem:[%s10785_s2 + $0xb0] sm:$0xff]  ;;  %v745_v13 = vmul.f32 %v10853_v57, %v702_v4  ;;  %v8934_v4 = vld [vmem:[#allocation6 + $0x64] ss:$40 sps:$4 sm:$0xff]  }
 0x19c   : > { %1854 = vmatprep.subr.bf16.mxu0 %v8895_v2  ;;  %v704_v2 = vmul.f32 %v10103_v1, %v9528_v35  ;;  %v10934_v5 = vpack.c.bf16 %v743_v54, %v741_v52  ;;  %v708_v26 = vmul.f32 %v10107_v25, %v9530_v56  ;;  %v8917_v47 = vld [vmem:[#allocation6 + $0x3c8] ss:$40 sps:$4 sm:$0xff]   ;;  %v8928_v1 = vld [vmem:[#allocation6 + $0x4bc] ss:$40 sps:$4 sm:$0xff]  }
 0x19d   : > { %v9532_v63 = vpop.eup %9531  ;;  %v10938_v10 = vpack.c.bf16 %v748_v62, %v746_v61  ;;  %v8920_v61 = vld [vmem:[#allocation6 + $0x418] ss:$40 sps:$4 sm:$0xff]   ;;  %v8925_v62 = vld [vmem:[#allocation6 + $0x46c] ss:$40 sps:$4 sm:$0xff]  }
 0x19e   : > { %1786 = vmatmul.mubr.bf16.gmra.mrb[8].mxu0 %v10902_v12  ;;  %2125 = vmatmul.mubr.bf16.gmra.mrb[8].mxu1 %v10902_v12  ;;  %v707_v9 = vmul.f32 %v10106_v8, %v9532_v63  ;;  %v747_v14 = vmul.f32 %v10853_v57, %v704_v2  ;;  %v706_v29 = vmul.f32 %v10108_v28, %v9532_v63  ;;  %v8931_v2 = vld [vmem:[#allocation6 + $0x14] ss:$40 sps:$4 sm:$0xff]   ;;  %v8935_v8 = vld [vmem:[#allocation6 + $0xb0] ss:$40 sps:$4 sm:$0xff]   ;;  %v8956_v28 = vld [vmem:[#allocation6 + $0x2e0] ss:$40 sps:$4 sm:$0xff]  }
 0x19f   : > { %1855 = vmatpush1.bf16.msra.mxu0 %v8893_v6  ;;  %1795 = vmatprep.mubr.bf16.mxu0 %v10906_v21  ;;  %v10105_v6 = vld [vmem:[%s10785_s2 + $0xd8] sm:$0xff]  ;;  %v751_v40 = vmul.f32 %v10853_v57, %v708_v26  ;;  %v8958_v26 = vld [vmem:[#allocation6 + $0x2e4] ss:$40 sps:$4 sm:$0xff]  }
 0x1a0   : > { %1856 = vmatprep.subr.bf16.mxu0 %v8898_v23  ;;  %2134 = vmatprep.mubr.bf16.mxu1 %v10906_v21  ;;  %v709_v7 = vmul.f32 %v10105_v6, %v9530_v56  ;;  %v9534_v15 = vpop.eup %9533  ;;  %v750_v20 = vmul.f32 %v10849_v53, %v707_v9  ;;  %v749_v38 = vmul.f32 %v10853_v57, %v706_v29  ;;  %v8932_v6 = vld [vmem:[#allocation6 + $0x60] ss:$40 sps:$4 sm:$0xff]   ;;  %v8940_v9 = vld [vmem:[#allocation6 + $0x104] ss:$40 sps:$4 sm:$0xff]   ;;  %v8953_v25 = vld [vmem:[#allocation6 + $0x290] ss:$40 sps:$4 sm:$0xff]  }
 0x1a1   : > { %v9536_v23 = vpop.eup %9535  ;;  %v712_v49 = vmul.f32 %v10111_v48, %v9534_v15  ;;  %v8961_v29 = vld [vmem:[#allocation6 + $0x334] ss:$40 sps:$4 sm:$0xff]   ;;  %v8977_v48 = vld [vmem:[#allocation6 + $0x20] ss:$40 sps:$4 sm:$0xff]  }
 0x1a2   : > { %v752_v22 = vmul.f32 %v10849_v53, %v709_v7  ;;  %v711_v35 = vmul.f32 %v10110_v34, %v9536_v23  ;;  %v10966_v54 = vpack.c.bf16 %v751_v40, %v749_v38  ;;  %v8937_v7 = vld [vmem:[#allocation6 + $0xb4] ss:$40 sps:$4 sm:$0xff]   ;;  %v8962_v34 = vld [vmem:[#allocation6 + $0x380] ss:$40 sps:$4 sm:$0xff]   ;;  %v8970_v38 = vld [vmem:[#allocation6 + $0x424] ss:$40 sps:$4 sm:$0xff]  }
 0x1a3   : > { %1857 = vmatpush1.bf16.msra.mxu0 %v8896_v30  ;;  %v10950_v30 = vpack.c.bf16 %v747_v14, %v745_v13  ;;  %v8943_v13 = vld [vmem:[#allocation6 + $0x154] ss:$40 sps:$4 sm:$0xff]   ;;  %v8941_v14 = vld [vmem:[#allocation6 + $0x150] ss:$40 sps:$4 sm:$0xff]   ;;  %v8968_v40 = vld [vmem:[#allocation6 + $0x420] ss:$40 sps:$4 sm:$0xff]  }
 0x1a4   : > { %1858 = vmatprep.subr.bf16.mxu0 %v8901_v31  ;;  %v10109_v31 = vld [vmem:[%s10785_s2 + $0xf8] sm:$0xff]  ;;  %v754_v45 = vmul.f32 %v10849_v53, %v711_v35 }
 0x1a5   : > { %v713_v32 = vmul.f32 %v10109_v31, %v9534_v15  ;;  %v8946_v15 = vld [vmem:[#allocation6 + $0x1a4] ss:$40 sps:$4 sm:$0xff]   ;;  %v8959_v31 = vld [vmem:[#allocation6 + $0x330] ss:$40 sps:$4 sm:$0xff]   ;;  %v8967_v35 = vld [vmem:[#allocation6 + $0x3d4] ss:$40 sps:$4 sm:$0xff]  }
 0x1a6   : > { %1796 = vmatmul.mubr.bf16.gmra.mrb[12].mxu0 %v10918_v44  ;;  %2135 = vmatmul.mubr.bf16.gmra.mrb[12].mxu1 %v10918_v44 }
 0x1a7   : > { %1859 = vmatpush1.bf16.msra.mxu0 %v8899_v36  ;;  %1805 = vmatprep.mubr.bf16.mxu0 %v10922_v50  ;;  %v10954_v36 = vpack.c.bf16 %v752_v22, %v750_v20  ;;  %v756_v46 = vmul.f32 %v10849_v53, %v713_v32  ;;  %v8947_v20 = vld [vmem:[#allocation6 + $0x1f0] ss:$40 sps:$4 sm:$0xff]   ;;  %v8952_v22 = vld [vmem:[#allocation6 + $0x244] ss:$40 sps:$4 sm:$0xff]  }
 0x1a8   : > { %1860 = vmatprep.subr.bf16.mxu0 %v8904_v51  ;;  %2144 = vmatprep.mubr.bf16.mxu1 %v10922_v50  ;;  %v10112_v51 = vld [vmem:[%s10785_s2 + $0xe0] sm:$0xff] }
 0x1a9   : > { %v710_v52 = vmul.f32 %v10112_v51, %v9536_v23  ;;  %v10968_v56 = vpack.c.bf16 %v756_v46, %v754_v45  ;;  %v8950_v23 = vld [vmem:[#allocation6 + $0x240] ss:$40 sps:$4 sm:$0xff]   ;;  %v8964_v32 = vld [vmem:[#allocation6 + $0x384] ss:$40 sps:$4 sm:$0xff]   ;;  %v8980_v51 = vld [vmem:[#allocation6 + $0x70] ss:$40 sps:$4 sm:$0xff]  }
 0x1aa   : > { %v8976_v45 = vld [vmem:[#allocation6 + $0x4c4] ss:$40 sps:$4 sm:$0xff]   ;;  %v8974_v46 = vld [vmem:[#allocation6 + $0x4c0] ss:$40 sps:$4 sm:$0xff]  }
 0x1ab   : > { %1861 = vmatpush1.bf16.msra.mxu0 %v8902_v59  ;;  %v8922_v59 = vld [vmem:[#allocation6 + $0x41c] ss:$40 sps:$4 sm:$0xff]   ;;  %v753_v53 = vmul.f32 %v10853_v57, %v710_v52 }
 0x1ac   : > { %1862 = vmatprep.subr.bf16.mxu0 %v8907_v60  ;;  %v755_v60 = vmul.f32 %v10853_v57, %v712_v49  ;;  %v8926_v57 = vld [vmem:[#allocation6 + $0x4b8] ss:$40 sps:$4 sm:$0xff]   ;;  %v8982_v49 = vld [vmem:[#allocation6 + $0x74] ss:$40 sps:$4 sm:$0xff]   ;;  %v8985_v52 = vld [vmem:[#allocation6 + $0xc4] ss:$40 sps:$4 sm:$0xff]  }
 0x1ae   : > { %1806 = vmatmul.mubr.bf16.gmra.mrb[16].mxu0 %v10934_v5  ;;  %2145 = vmatmul.mubr.bf16.gmra.mrb[16].mxu1 %v10934_v5  ;;  %v10976_v63 = vpack.c.bf16 %v755_v60, %v753_v53  ;;  %v8988_v53 = vld [vmem:[#allocation6 + $0x114] ss:$40 sps:$4 sm:$0xff]   ;;  %v8986_v60 = vld [vmem:[#allocation6 + $0x110] ss:$40 sps:$4 sm:$0xff]  }
 0x1af   : > { %1863 = vmatpush1.bf16.msra.mxu0 %v8905_v0  ;;  %1815 = vmatprep.mubr.bf16.mxu0 %v10938_v10  ;;  %v8923_v0 = vld [vmem:[#allocation6 + $0x468] ss:$40 sps:$4 sm:$0xff]  }
 0x1b0   : > { %1864 = vmatprep.subr.bf16.mxu0 %v8910_v11  ;;  %2154 = vmatprep.mubr.bf16.mxu1 %v10938_v10  ;;  %v8938_v11 = vld [vmem:[#allocation6 + $0x100] ss:$40 sps:$4 sm:$0xff]  }
 0x1b3   : > { %1865 = vmatpush1.bf16.msra.mxu0 %v8908_v16  ;;  %v8944_v16 = vld [vmem:[#allocation6 + $0x1a0] ss:$40 sps:$4 sm:$0xff]  }
 0x1b4   : > { %1866 = vmatprep.subr.bf16.mxu0 %v8913_v17  ;;  %v8949_v17 = vld [vmem:[#allocation6 + $0x1f4] ss:$40 sps:$4 sm:$0xff]  }
 0x1b6   : > { %1816 = vmatmul.mubr.bf16.gmra.mrb[20].mxu0 %v10950_v30  ;;  %2155 = vmatmul.mubr.bf16.gmra.mrb[20].mxu1 %v10950_v30 }
 0x1b7   : > { %1867 = vmatpush1.bf16.msra.mxu0 %v8911_v24  ;;  %1825 = vmatprep.mubr.bf16.mxu0 %v10954_v36  ;;  %v8955_v24 = vld [vmem:[#allocation6 + $0x294] ss:$40 sps:$4 sm:$0xff]  }
 0x1b8   : > { %1868 = vmatprep.subr.bf16.mxu0 %v8916_v37  ;;  %2164 = vmatprep.mubr.bf16.mxu1 %v10954_v36  ;;  %v8965_v37 = vld [vmem:[#allocation6 + $0x3d0] ss:$40 sps:$4 sm:$0xff]  }
 0x1bb   : > { %1869 = vmatpush1.bf16.msra.mxu0 %v8914_v41  ;;  %v8973_v41 = vld [vmem:[#allocation6 + $0x474] ss:$40 sps:$4 sm:$0xff]  }
 0x1bc   : > { %1870 = vmatprep.subr.bf16.mxu0 %v8919_v43  ;;  %v8971_v43 = vld [vmem:[#allocation6 + $0x470] ss:$40 sps:$4 sm:$0xff]  }
 0x1be   : > { %1826 = vmatmul.mubr.bf16.gmra.mrb[24].mxu0 %v10966_v54  ;;  %2165 = vmatmul.mubr.bf16.gmra.mrb[24].mxu1 %v10966_v54 }
 0x1bf   : > { %1871 = vmatpush1.bf16.msra.mxu0 %v8917_v47  ;;  %1835 = vmatprep.mubr.bf16.mxu0 %v10968_v56  ;;  %v8979_v47 = vld [vmem:[#allocation6 + $0x24] ss:$40 sps:$4 sm:$0xff]  }
 0x1c0   : > { %1872 = vmatprep.subr.bf16.mxu0 %v8922_v59  ;;  %2174 = vmatprep.mubr.bf16.mxu1 %v10968_v56  ;;  %v8983_v59 = vld [vmem:[#allocation6 + $0xc0] ss:$40 sps:$4 sm:$0xff]  }
 0x1c3   : > { %1873 = vmatpush1.bf16.msra.mxu0 %v8920_v61  ;;  %v8991_v61 = vld [vmem:[#allocation6 + $0x164] ss:$40 sps:$4 sm:$0xff]  }
 0x1c4   : > { %1874 = vmatprep.subr.bf16.mxu0 %v8925_v62  ;;  %v8989_v62 = vld [vmem:[#allocation6 + $0x160] ss:$40 sps:$4 sm:$0xff]  }
 0x1c6   : > { %1836 = vmatmul.mubr.bf16.gmra.mrb[28].mxu0 %v10976_v63  ;;  %2175 = vmatmul.mubr.bf16.gmra.mrb[28].mxu1 %v10976_v63 }
 0x1c7   : > { %1875 = vmatpush1.bf16.msra.mxu0 %v8923_v0  ;;  %1878 = vmatprep.mubr.bf16.mxu0 %v10865_v18  ;;  %v8994_v0 = vld [vmem:[#allocation6 + $0x1b4] ss:$40 sps:$4 sm:$0xff]  }
 0x1c8   : > { %1876 = vmatprep.subr.bf16.mxu0 %v8928_v1  ;;  %v8992_v1 = vld [vmem:[#allocation6 + $0x1b0] ss:$40 sps:$4 sm:$0xff]  }
 0x1cb   : > { %1877 = vmatpush1.bf16.msra.mxu0 %v8926_v57  ;;  %v8997_v57 = vld [vmem:[#allocation6 + $0x204] ss:$40 sps:$4 sm:$0xff]  }
 0x1cc   : > { %1959 = vmatprep.subr.bf16.mxu0 %v8931_v2  ;;  %v8995_v2 = vld [vmem:[#allocation6 + $0x200] ss:$40 sps:$4 sm:$0xff]  }
 0x1ce   : > { %1879 = vmatmul.mubr.bf16.vlgmr.msra.gmra.mrb[32].mxu0 %v10867_v19 }
 0x1cf   : > { %1888 = vmatprep.mubr.bf16.mxu0 %v10872_v27  ;;  %1960 = vmatpush1.bf16.msra.mxu0 %v8929_v3  ;;  %v9000_v3 = vld [vmem:[#allocation6 + $0x254] ss:$40 sps:$4 sm:$0xff]  }
 0x1d0   : > { %1961 = vmatprep.subr.bf16.mxu0 %v8934_v4  ;;  %v8998_v4 = vld [vmem:[#allocation6 + $0x250] ss:$40 sps:$4 sm:$0xff]  }
 0x1d3   : > { %1962 = vmatpush1.bf16.msra.mxu0 %v8932_v6  ;;  %v9003_v6 = vld [vmem:[#allocation6 + $0x2a4] ss:$40 sps:$4 sm:$0xff]  }
 0x1d4   : > { %1963 = vmatprep.subr.bf16.mxu0 %v8937_v7  ;;  %v9001_v7 = vld [vmem:[#allocation6 + $0x2a0] ss:$40 sps:$4 sm:$0xff]  }
 0x1d6   : > { %1889 = vmatmul.mubr.bf16.gmra.mrb[36].mxu0 %v10890_v58 }
 0x1d7   : > { %1898 = vmatprep.mubr.bf16.mxu0 %v10888_v55  ;;  %1964 = vmatpush1.bf16.msra.mxu0 %v8935_v8  ;;  %v9006_v8 = vld [vmem:[#allocation6 + $0x2f4] ss:$40 sps:$4 sm:$0xff]  }
 0x1d8   : > { %1965 = vmatprep.subr.bf16.mxu0 %v8940_v9  ;;  %v9004_v9 = vld [vmem:[#allocation6 + $0x2f0] ss:$40 sps:$4 sm:$0xff]  }
 0x1db   : > { %1966 = vmatpush1.bf16.msra.mxu0 %v8938_v11  ;;  %v9009_v11 = vld [vmem:[#allocation6 + $0x344] ss:$40 sps:$4 sm:$0xff]  }
 0x1dc   : > { %1967 = vmatprep.subr.bf16.mxu0 %v8943_v13  ;;  %v9007_v13 = vld [vmem:[#allocation6 + $0x340] ss:$40 sps:$4 sm:$0xff]  }
 0x1de   : > { %1899 = vmatmul.mubr.bf16.gmra.mrb[40].mxu0 %v10902_v12 }
 0x1df   : > { %1908 = vmatprep.mubr.bf16.mxu0 %v10906_v21  ;;  %1968 = vmatpush1.bf16.msra.mxu0 %v8941_v14  ;;  %v9012_v14 = vld [vmem:[#allocation6 + $0x394] ss:$40 sps:$4 sm:$0xff]  }
 0x1e0   : > { %1969 = vmatprep.subr.bf16.mxu0 %v8946_v15  ;;  %v9010_v15 = vld [vmem:[#allocation6 + $0x390] ss:$40 sps:$4 sm:$0xff]  }
 0x1e3   : > { %1970 = vmatpush1.bf16.msra.mxu0 %v8944_v16  ;;  %v9015_v16 = vld [vmem:[#allocation6 + $0x3e4] ss:$40 sps:$4 sm:$0xff]  }
 0x1e4   : > { %1971 = vmatprep.subr.bf16.mxu0 %v8949_v17  ;;  %v9013_v17 = vld [vmem:[#allocation6 + $0x3e0] ss:$40 sps:$4 sm:$0xff]  }
 0x1e6   : > { %1909 = vmatmul.mubr.bf16.gmra.mrb[44].mxu0 %v10918_v44 }
 0x1e7   : > { %1918 = vmatprep.mubr.bf16.mxu0 %v10922_v50  ;;  %1972 = vmatpush1.bf16.msra.mxu0 %v8947_v20  ;;  %v9018_v20 = vld [vmem:[#allocation6 + $0x434] ss:$40 sps:$4 sm:$0xff]  }
 0x1e8   : > { %1973 = vmatprep.subr.bf16.mxu0 %v8952_v22  ;;  %v9016_v22 = vld [vmem:[#allocation6 + $0x430] ss:$40 sps:$4 sm:$0xff]  }
 0x1eb   : > { %1974 = vmatpush1.bf16.msra.mxu0 %v8950_v23  ;;  %v9021_v23 = vld [vmem:[#allocation6 + $0x484] ss:$40 sps:$4 sm:$0xff]  }
 0x1ec   : > { %1975 = vmatprep.subr.bf16.mxu0 %v8955_v24  ;;  %v9019_v24 = vld [vmem:[#allocation6 + $0x480] ss:$40 sps:$4 sm:$0xff]  }
 0x1ee   : > { %1919 = vmatmul.mubr.bf16.gmra.mrb[48].mxu0 %v10934_v5 }
 0x1ef   : > { %1928 = vmatprep.mubr.bf16.mxu0 %v10938_v10  ;;  %1976 = vmatpush1.bf16.msra.mxu0 %v8953_v25  ;;  %v9024_v25 = vld [vmem:[#allocation6 + $0x4d4] ss:$40 sps:$4 sm:$0xff]  }
 0x1f0   : > { %1977 = vmatprep.subr.bf16.mxu0 %v8958_v26  ;;  %v9022_v26 = vld [vmem:[#allocation6 + $0x4d0] ss:$40 sps:$4 sm:$0xff]  }
 0x1f3   : > { %1978 = vmatpush1.bf16.msra.mxu0 %v8956_v28  ;;  %v11019_v28 = vld [vmem:[#allocation11] sm:$0xff] }
 0x1f4   : > { %1979 = vmatprep.subr.bf16.mxu0 %v8961_v29  ;;  %v11021_v29 = vld [vmem:[#allocation11 + $0x8] sm:$0xff] }
 0x1f6   : > { %1929 = vmatmul.mubr.bf16.gmra.mrb[52].mxu0 %v10950_v30 }
 0x1f7   : > { %1938 = vmatprep.mubr.bf16.mxu0 %v10954_v36  ;;  %1980 = vmatpush1.bf16.msra.mxu0 %v8959_v31 }
 0x1f8   : > { %1981 = vmatprep.subr.bf16.mxu0 %v8964_v32  ;;  %v11025_v32 = vld [vmem:[#allocation11 + $0x10] sm:$0xff] }
 0x1fb   : > { %1982 = vmatpush1.bf16.msra.mxu0 %v8962_v34 }
 0x1fc   : > { %1983 = vmatprep.subr.bf16.mxu0 %v8967_v35 }
 0x1fe   : > { %1939 = vmatmul.mubr.bf16.gmra.mrb[56].mxu0 %v10966_v54 }
 0x1ff   : > { %1948 = vmatprep.mubr.bf16.mxu0 %v10968_v56  ;;  %1984 = vmatpush1.bf16.msra.mxu0 %v8965_v37 }
 0x200   : > { %1985 = vmatprep.subr.bf16.mxu0 %v8970_v38 }
 0x203   : > { %1986 = vmatpush1.bf16.msra.mxu0 %v8968_v40 }
 0x204   : > { %1987 = vmatprep.subr.bf16.mxu0 %v8973_v41 }
 0x206   : > { %1949 = vmatmul.mubr.bf16.gmra.mrb[60].mxu0 %v10976_v63 }
 0x207   : > { %1988 = vmatpush1.bf16.msra.mxu0 %v8971_v43  ;;  %1991 = vmatprep.mubr.bf16.mxu0 %v10865_v18 }
 0x208   : > { %1989 = vmatprep.subr.bf16.mxu0 %v8976_v45 }
 0x20b   : > { %1990 = vmatpush1.bf16.msra.mxu0 %v8974_v46 }
 0x20c   : > { %2185 = vmatprep.subr.bf16.mxu0 %v8979_v47 }
 0x20e   : > { %1992 = vmatmul.mubr.bf16.vlgmr.msra.gmra.mrb[64].mxu0 %v10867_v19 }
 0x20f   : > { %2001 = vmatprep.mubr.bf16.mxu0 %v10872_v27  ;;  %2186 = vmatpush1.bf16.msra.mxu0 %v8977_v48 }
 0x210   : > { %2187 = vmatprep.subr.bf16.mxu0 %v8982_v49 }
 0x213   : > { %2188 = vmatpush1.bf16.msra.mxu0 %v8980_v51 }
 0x214   : > { %2189 = vmatprep.subr.bf16.mxu0 %v8985_v52 }
 0x216   : > { %2002 = vmatmul.mubr.bf16.gmra.mrb[68].mxu0 %v10890_v58 }
 0x217   : > { %2011 = vmatprep.mubr.bf16.mxu0 %v10888_v55  ;;  %2190 = vmatpush1.bf16.msra.mxu0 %v8983_v59 }
 0x218   : > { %2191 = vmatprep.subr.bf16.mxu0 %v8988_v53 }
 0x21b   : > { %2192 = vmatpush1.bf16.msra.mxu0 %v8986_v60 }
 0x21c   : > { %2193 = vmatprep.subr.bf16.mxu0 %v8991_v61 }
 0x21e   : > { %2012 = vmatmul.mubr.bf16.gmra.mrb[72].mxu0 %v10902_v12 }
 0x21f   : > { %2021 = vmatprep.mubr.bf16.mxu0 %v10906_v21  ;;  %2194 = vmatpush1.bf16.msra.mxu0 %v8989_v62 }
 0x220   : > { %2195 = vmatprep.subr.bf16.mxu0 %v8994_v0 }
 0x223   : > { %2196 = vmatpush1.bf16.msra.mxu0 %v8992_v1 }
 0x224   : > { %2197 = vmatprep.subr.bf16.mxu0 %v8997_v57 }
 0x226   : > { %2022 = vmatmul.mubr.bf16.gmra.mrb[76].mxu0 %v10918_v44 }
 0x227   : > { %2031 = vmatprep.mubr.bf16.mxu0 %v10922_v50  ;;  %2198 = vmatpush1.bf16.msra.mxu0 %v8995_v2 }
 0x228   : > { %2199 = vmatprep.subr.bf16.mxu0 %v9000_v3 }
 0x22b   : > { %2200 = vmatpush1.bf16.msra.mxu0 %v8998_v4 }
 0x22c   : > { %2201 = vmatprep.subr.bf16.mxu0 %v9003_v6 }
 0x22e   : > { %2032 = vmatmul.mubr.bf16.gmra.mrb[80].mxu0 %v10934_v5 }
 0x22f   : > { %2041 = vmatprep.mubr.bf16.mxu0 %v10938_v10  ;;  %2202 = vmatpush1.bf16.msra.mxu0 %v9001_v7 }
 0x230   : > { %2203 = vmatprep.subr.bf16.mxu0 %v9006_v8 }
 0x233   : > { %2204 = vmatpush1.bf16.msra.mxu0 %v9004_v9 }
 0x234   : > { %2205 = vmatprep.subr.bf16.mxu0 %v9009_v11 }
 0x236   : > { %2042 = vmatmul.mubr.bf16.gmra.mrb[84].mxu0 %v10950_v30 }
 0x237   : > { %2051 = vmatprep.mubr.bf16.mxu0 %v10954_v36  ;;  %2206 = vmatpush1.bf16.msra.mxu0 %v9007_v13 }
 0x238   : > { %2207 = vmatprep.subr.bf16.mxu0 %v9012_v14 }
 0x23b   : > { %2208 = vmatpush1.bf16.msra.mxu0 %v9010_v15 }
 0x23c   : > { %2209 = vmatprep.subr.bf16.mxu0 %v9015_v16 }
 0x23e   : > { %2052 = vmatmul.mubr.bf16.gmra.mrb[88].mxu0 %v10966_v54 }
 0x23f   : > { %2061 = vmatprep.mubr.bf16.mxu0 %v10968_v56  ;;  %2210 = vmatpush1.bf16.msra.mxu0 %v9013_v17 }
 0x240   : > { %2211 = vmatprep.subr.bf16.mxu0 %v9018_v20 }
 0x243   : > { %2212 = vmatpush1.bf16.msra.mxu0 %v9016_v22 }
 0x244   : > { %2213 = vmatprep.subr.bf16.mxu0 %v9021_v23 }
 0x246   : > { %2062 = vmatmul.mubr.bf16.gmra.mrb[92].mxu0 %v10976_v63 }
 0x247   : > { %2214 = vmatpush1.bf16.msra.mxu0 %v9019_v24  ;;  %2217 = vmatprep.mubr.bf16.mxu0 %v10865_v18 }
 0x248   : > { %2215 = vmatprep.subr.bf16.mxu0 %v9024_v25 }
 0x24b   : > { %2216 = vmatpush1.bf16.msra.mxu0 %v9022_v26 }
 0x24e   : > { %2218 = vmatmul.mubr.bf16.vlgmr.msra.gmra.mrb[96].mxu0 %v10867_v19 }
 0x24f   : > { %2227 = vmatprep.mubr.bf16.mxu0 %v10872_v27 }
 0x256   : > { %2228 = vmatmul.mubr.bf16.gmra.mrb[100].mxu0 %v10890_v58 }
 0x257   : > { %2237 = vmatprep.mubr.bf16.mxu0 %v10888_v55  ;;  %v11032_v55 = vld [vmem:[#allocation11 + $0x18] sm:$0xff] }
 0x25e   : > { %2238 = vmatmul.mubr.bf16.gmra.mrb[104].mxu0 %v10902_v12 }
 0x25f   : > { %2247 = vmatprep.mubr.bf16.mxu0 %v10906_v21 }
 0x261   : > { %v11023_v18 = vpop.f32.mrb[0].mxu0  ;;  %v2106_v31 = vpop.f32.mrb[0].mxu1 }
 0x262   : > { %v11028_v19 = vmul.f32 %v11019_v28, %v2106_v31  ;;  %v11030_v27 = vpop.f32.mrb[1].mxu0  ;;  %v2108_v58 = vpop.f32.mrb[1].mxu1 }
 0x263   : > { %v11035_v12 = vmul.f32 %v11021_v29, %v2108_v58  ;;  %v11037_v21 = vpop.f32.mrb[2].mxu0  ;;  %v2110_v34 = vpop.f32.mrb[2].mxu1 }
 0x264   : > { %v11040_v35 = vmul.f32 %v11025_v32, %v2110_v34  ;;  %v11042_v37 = vpop.f32.mrb[3].mxu0  ;;  %v2112_v38 = vpop.f32.mrb[3].mxu1 }
 0x265   : > { %v11045_v40 = vmul.f32 %v11032_v55, %v2112_v38 }
 0x266   : > { %2248 = vmatmul.mubr.bf16.gmra.mrb[108].mxu0 %v10918_v44 }
 0x267   : > { %2257 = vmatprep.mubr.bf16.mxu0 %v10922_v50 }
 0x269   : > { %v11049_v41 = vpop.f32.mrb[4].mxu0  ;;  %v11051_v43 = vpop.f32.mrb[4].mxu1 }
 0x26a   : > { %v11053_v45 = vpop.f32.mrb[5].mxu0  ;;  %v11055_v46 = vpop.f32.mrb[5].mxu1 }
 0x26b   : > { %v11057_v47 = vpop.f32.mrb[6].mxu0  ;;  %v11059_v48 = vpop.f32.mrb[6].mxu1 }
 0x26c   : > { %v11061_v49 = vpop.f32.mrb[7].mxu0  ;;  %v11063_v51 = vpop.f32.mrb[7].mxu1 }
 0x26e   : > { %2258 = vmatmul.mubr.bf16.gmra.mrb[112].mxu0 %v10934_v5 }
 0x26f   : > { %2267 = vmatprep.mubr.bf16.mxu0 %v10938_v10 }
 0x271   : > { %v11067_v44 = vpop.f32.mrb[8].mxu0  ;;  %v11069_v50 = vpop.f32.mrb[8].mxu1 }
 0x272   : > { %14088 = vst [vmem:[#allocation24_spill] sm:$0xff] %v11069_v50  ;;  %v11071_v52 = vpop.f32.mrb[9].mxu0  ;;  %v11073_v59 = vpop.f32.mrb[9].mxu1  ;;  %v11218_v50 = vld [vmem:[#allocation11 + $0x40] sm:$0xff] }
 0x273   : > { %14089 = vst [vmem:[#allocation25_spill] sm:$0xff] %v11073_v59  ;;  %v11075_v53 = vpop.f32.mrb[10].mxu0  ;;  %v11077_v60 = vpop.f32.mrb[10].mxu1  ;;  %v11192_v59 = vld [vmem:[#allocation9 + $0x28] sm:$0xff]  ;;  %14113 = vst [vmem:[#allocation49_spill] sm:$0xff] %v11218_v50 }
 0x274   : > { %14090 = vst [vmem:[#allocation26_spill] sm:$0xff] %v11077_v60  ;;  %v11079_v61 = vpop.f32.mrb[11].mxu0  ;;  %v11081_v62 = vpop.f32.mrb[11].mxu1  ;;  %v11188_v60 = vld [vmem:[#allocation9 + $0x20] sm:$0xff] }
 0x275   : > { %14091 = vst [vmem:[#allocation27_spill] sm:$0xff] %v11081_v62 }
 0x276   : > { %2268 = vmatmul.mubr.bf16.gmra.mrb[116].mxu0 %v10950_v30 }
 0x277   : > { %2277 = vmatprep.mubr.bf16.mxu0 %v10954_v36 }
 0x279   : > { %v11085_v5 = vpop.f32.mrb[12].mxu0  ;;  %v11087_v10 = vpop.f32.mrb[12].mxu1 }
 0x27a   : > { %14092 = vst [vmem:[#allocation28_spill] sm:$0xff] %v11087_v10  ;;  %v11089_v0 = vpop.f32.mrb[13].mxu0  ;;  %v11091_v1 = vpop.f32.mrb[13].mxu1 }
 0x27b   : > { %14093 = vst [vmem:[#allocation29_spill] sm:$0xff] %v11091_v1  ;;  %v11093_v57 = vpop.f32.mrb[14].mxu0  ;;  %v11095_v2 = vpop.f32.mrb[14].mxu1 }
 0x27c   : > { %14094 = vst [vmem:[#allocation30_spill] sm:$0xff] %v11095_v2  ;;  %v11097_v3 = vpop.f32.mrb[15].mxu0  ;;  %v11099_v4 = vpop.f32.mrb[15].mxu1 }
 0x27d   : > { %14095 = vst [vmem:[#allocation31_spill] sm:$0xff] %v11099_v4 }
 0x27e   : > { %2278 = vmatmul.mubr.bf16.gmra.mrb[120].mxu0 %v10966_v54 }
 0x27f   : > { %2287 = vmatprep.mubr.bf16.mxu0 %v10968_v56 }
 0x281   : > { %v11103_v30 = vpop.f32.mrb[16].mxu0  ;;  %v11105_v36 = vpop.f32.mrb[16].mxu1 }
 0x282   : > { %14096 = vst [vmem:[#allocation32_spill] sm:$0xff] %v11105_v36  ;;  %v11107_v6 = vpop.f32.mrb[17].mxu0  ;;  %v11109_v7 = vpop.f32.mrb[17].mxu1 }
 0x283   : > { %14097 = vst [vmem:[#allocation33_spill] sm:$0xff] %v11109_v7  ;;  %v11111_v8 = vpop.f32.mrb[18].mxu0  ;;  %v11113_v9 = vpop.f32.mrb[18].mxu1 }
 0x284   : > { %14098 = vst [vmem:[#allocation34_spill] sm:$0xff] %v11113_v9  ;;  %v11115_v11 = vpop.f32.mrb[19].mxu0  ;;  %v11117_v13 = vpop.f32.mrb[19].mxu1 }
 0x285   : > { %14099 = vst [vmem:[#allocation35_spill] sm:$0xff] %v11117_v13  ;;  %v11176_v13 = vld [vmem:[#allocation9 + $0x18] sm:$0xff] }
 0x286   : > { %2288 = vmatmul.mubr.bf16.gmra.mrb[124].mxu0 %v10976_v63 }
 0x289   : > { %v11120_v54 = vpop.f32.mrb[20].mxu0  ;;  %v11122_v56 = vpop.f32.mrb[20].mxu1 }
 0x28a   : > { %14100 = vst [vmem:[#allocation36_spill] sm:$0xff] %v11122_v56  ;;  %v11124_v14 = vpop.f32.mrb[21].mxu0  ;;  %v11126_v15 = vpop.f32.mrb[21].mxu1 }
 0x28b   : > { %14101 = vst [vmem:[#allocation37_spill] sm:$0xff] %v11126_v15  ;;  %v11128_v16 = vpop.f32.mrb[22].mxu0  ;;  %v11130_v17 = vpop.f32.mrb[22].mxu1  ;;  %v11170_v15 = vld [vmem:[#allocation9 + $0x8] sm:$0xff] }
 0x28c   : > { %14102 = vst [vmem:[#allocation38_spill] sm:$0xff] %v11130_v17  ;;  %v11132_v20 = vpop.f32.mrb[23].mxu0  ;;  %v11134_v22 = vpop.f32.mrb[23].mxu1 }
 0x28d   : > { %14103 = vst [vmem:[#allocation39_spill] sm:$0xff] %v11134_v22 }
 0x291   : > { %v11136_v23 = vpop.f32.mrb[24].mxu0  ;;  %v11138_v24 = vpop.f32.mrb[24].mxu1 }
 0x292   : > { %14104 = vst [vmem:[#allocation40_spill] sm:$0xff] %v11138_v24  ;;  %v11140_v63 = vpop.f32.mrb[25].mxu0  ;;  %v11142_v25 = vpop.f32.mrb[25].mxu1 }
 0x293   : > { %14105 = vst [vmem:[#allocation41_spill] sm:$0xff] %v11142_v25  ;;  %v11144_v26 = vpop.f32.mrb[26].mxu0  ;;  %v11146_v31 = vpop.f32.mrb[26].mxu1 }
 0x294   : > { %14106 = vst [vmem:[#allocation42_spill] sm:$0xff] %v11146_v31  ;;  %v11148_v58 = vpop.f32.mrb[27].mxu0  ;;  %v11150_v34 = vpop.f32.mrb[27].mxu1  ;;  %v11168_v31 = vld [vmem:[#allocation9] sm:$0xff] }
 0x295   : > { %14107 = vst [vmem:[#allocation43_spill] sm:$0xff] %v11150_v34  ;;  %v11172_v34 = vld [vmem:[#allocation9 + $0x10] sm:$0xff] }
 0x296   : > { %v2364_v36 = vmul.f32 %v11172_v34, %v11037_v21  ;;  %v11194_v21 = vld [vmem:[#allocation9 + $0x30] sm:$0xff] }
 0x299   : > { %v11152_v38 = vpop.f32.mrb[28].mxu0  ;;  %v11154_v33 = vpop.f32.mrb[28].mxu1 }
 0x29a   : > { %14108 = vst [vmem:[#allocation44_spill] sm:$0xff] %v11154_v33  ;;  %v11156_v39 = vpop.f32.mrb[29].mxu0  ;;  %v11158_v42 = vpop.f32.mrb[29].mxu1  ;;  %v2362_v33 = vmul.f32 %v11168_v31, %v11023_v18  ;;  %v2365_v18 = vmul.f32 %v11176_v13, %v11042_v37 }
 0x29b   : > { %14109 = vst [vmem:[#allocation45_spill] sm:$0xff] %v11158_v42  ;;  %v11160_v24 = vpop.f32.mrb[30].mxu0  ;;  %v11162_v22 = vpop.f32.mrb[30].mxu1 }
 0x29c   : > { %14110 = vst [vmem:[#allocation46_spill] sm:$0xff] %v11162_v22  ;;  %v11164_v25 = vpop.f32.mrb[31].mxu0  ;;  %v11166_v17 = vpop.f32.mrb[31].mxu1  ;;  %v2363_v22 = vmul.f32 %v11170_v15, %v11030_v27  ;;  %v11190_v27 = vld [vmem:[#allocation11 + $0x20] sm:$0xff] }
 0x29d   : > { %14111 = vst [vmem:[#allocation47_spill] sm:$0xff] %v11166_v17 }
 0x2a1   : > { %v1880_v56 = vpop.f32.mrb[32].mxu0 }
 0x2a2   : > { %v2394_v42 = vmul.f32 %v11019_v28, %v1880_v56  ;;  %v1882_v9 = vpop.f32.mrb[33].mxu0 }
 0x2a3   : > { %v2395_v17 = vmul.f32 %v11021_v29, %v1882_v9  ;;  %v1884_v7 = vpop.f32.mrb[34].mxu0 }
 0x2a4   : > { %v2426_v4 = vadd.f32 %v2394_v42, %v2362_v33  ;;  %v2396_v2 = vmul.f32 %v11025_v32, %v1884_v7  ;;  %v1886_v1 = vpop.f32.mrb[35].mxu0  ;;  %v11196_v7 = vld [vmem:[#allocation11 + $0x28] sm:$0xff] }
 0x2a5   : > { %v2427_v10 = vadd.f32 %v2395_v17, %v2363_v22  ;;  %v2397_v28 = vmul.f32 %v11032_v55, %v1886_v1  ;;  %v2367_v22 = vmul.f32 %v11192_v59, %v11053_v45  ;;  %v11216_v45 = vld [vmem:[#allocation9 + $0x40] sm:$0xff] }
 0x2a6   : > { %v2428_v56 = vadd.f32 %v2396_v2, %v2364_v36  ;;  %v2458_v29 = vmul.f32 0.088388346, %v2426_v4  ;;  %v2366_v2 = vmul.f32 %v11188_v60, %v11049_v41  ;;  %v11201_v36 = vld [vmem:[#allocation9 + $0x38] sm:$0xff]  ;;  %v11203_v4 = vld [vmem:[#allocation11 + $0x30] sm:$0xff]  ;;  %v2368_v41 = vmul.f32 %v11194_v21, %v11057_v47  ;;  %14112 = vst [vmem:[#allocation48_spill] sm:$0xff] %v11216_v45 }
 0x2a7   : > { %v2429_v62 = vadd.f32 %v2397_v28, %v2365_v18  ;;  %v2459_v33 = vmul.f32 0.088388346, %v2427_v10  ;;  %v11208_v18 = vld [vmem:[#allocation11 + $0x38] sm:$0xff] }
 0x2a8   : > { %v2460_v9 = vmul.f32 0.088388346, %v2428_v56 }
 0x2a9   : > { %v2461_v42 = vmul.f32 0.088388346, %v2429_v62  ;;  %v1890_v32 = vpop.f32.mrb[36].mxu0 }
 0x2aa   : > { %v2398_v37 = vmul.f32 %v11190_v27, %v1890_v32  ;;  %v1892_v55 = vpop.f32.mrb[37].mxu0  ;;  %v2490_v1 = vpack.c.bf16 %v2460_v9, %v2458_v29 }
 0x2ab   : > { %v2399_v17 = vmul.f32 %v11196_v7, %v1892_v55  ;;  %v1894_v10 = vpop.f32.mrb[38].mxu0  ;;  %v2491_v62 = vpack.c.bf16 %v2461_v42, %v2459_v33  ;;  %v2369_v33 = vmul.f32 %v11201_v36, %v11061_v49  ;;  %v11232_v49 = vld [vmem:[#allocation11 + $0x48] sm:$0xff] }
 0x2ac   : > { %v2400_v28 = vmul.f32 %v11203_v4, %v1894_v10  ;;  %v1896_v56 = vpop.f32.mrb[39].mxu0  ;;  %8460 = vmatprep.mubr.bf16.mxu1 %v2490_v1  ;;  %v2430_v29 = vadd.f32 %v2398_v37, %v2366_v2  ;;  %v11224_v37 = vld [vmem:[#allocation9 + $0x48] sm:$0xff]  ;;  %14118 = vst [vmem:[#allocation54_spill] sm:$0xff] %v11232_v49 }
 0x2ad   : > { %v2401_v9 = vmul.f32 %v11208_v18, %v1896_v56  ;;  %8524 = vmatprep.mubr.bf16.mxu0 %v2491_v62  ;;  %v2431_v32 = vadd.f32 %v2399_v17, %v2367_v22  ;;  %v11230_v17 = vld [vmem:[#allocation9 + $0x50] sm:$0xff] }
 0x2ae   : > { %v2432_v42 = vadd.f32 %v2400_v28, %v2368_v41  ;;  %v11220_v10 = vmul.f32 0.088388346, %v2430_v29  ;;  %v2370_v29 = vmul.f32 %v11216_v45, %v11067_v44  ;;  %v11239_v41 = vld [vmem:[#allocation9 + $0x58] sm:$0xff]  ;;  %v2372_v44 = vmul.f32 %v11230_v17, %v11075_v53 }
 0x2af   : > { %v2433_v55 = vadd.f32 %v2401_v9, %v2369_v33  ;;  %v11226_v2 = vmul.f32 0.088388346, %v2431_v32  ;;  %14119 = vst [vmem:[#allocation55_spill] sm:$0xff] %v11239_v41  ;;  %v11241_v9 = vld [vmem:[#allocation11 + $0x50] sm:$0xff] }
 0x2b0   : > { %14114 = vst [vmem:[#allocation50_spill] sm:$0xff] %v11220_v10  ;;  %v11222_v1 = vmul.f32 0.088388346, %v2432_v42 }
 0x2b1   : > { %v1900_v47 = vpop.f32.mrb[40].mxu0  ;;  %14116 = vst [vmem:[#allocation52_spill] sm:$0xff] %v11226_v2  ;;  %v11228_v62 = vmul.f32 0.088388346, %v2433_v55  ;;  %v2371_v55 = vmul.f32 %v11224_v37, %v11071_v52  ;;  %v11256_v2 = vld [vmem:[#allocation9 + $0x60] sm:$0xff] }
 0x2b2   : > { %14115 = vst [vmem:[#allocation51_spill] sm:$0xff] %v11222_v1  ;;  %v2402_v22 = vmul.f32 %v11218_v50, %v1900_v47  ;;  %v1902_v28 = vpop.f32.mrb[41].mxu0  ;;  %v11248_v47 = vld [vmem:[#allocation11 + $0x58] sm:$0xff]  ;;  %14120 = vst [vmem:[#allocation56_spill] sm:$0xff] %v11256_v2  ;;  %v11258_v52 = vld [vmem:[#allocation11 + $0x60] sm:$0xff] }
 0x2b3   : > { %14117 = vst [vmem:[#allocation53_spill] sm:$0xff] %v11228_v62  ;;  %v2403_v32 = vmul.f32 %v11232_v49, %v1902_v28  ;;  %v1904_v33 = vpop.f32.mrb[42].mxu0  ;;  %v2373_v28 = vmul.f32 %v11239_v41, %v11079_v61  ;;  %14121 = vst [vmem:[#allocation57_spill] sm:$0xff] %v11258_v52  ;;  %v11272_v61 = vld [vmem:[#allocation11 + $0x68] sm:$0xff] }
 0x2b4   : > { %v2404_v56 = vmul.f32 %v11241_v9, %v1904_v33  ;;  %v1906_v10 = vpop.f32.mrb[43].mxu0  ;;  %v2434_v1 = vadd.f32 %v2402_v22, %v2370_v29  ;;  %v11264_v22 = vld [vmem:[#allocation9 + $0x68] sm:$0xff]  ;;  %14127 = vst [vmem:[#allocation63_spill] sm:$0xff] %v11272_v61 }
 0x2b5   : > { %v2405_v45 = vmul.f32 %v11248_v47, %v1906_v10  ;;  %v2435_v50 = vadd.f32 %v2403_v32, %v2371_v55  ;;  %14124 = vst [vmem:[#allocation60_spill] sm:$0xff] %v11264_v22  ;;  %v11270_v32 = vld [vmem:[#allocation9 + $0x70] sm:$0xff]  ;;  %v11277_v55 = vld [vmem:[#allocation9 + $0x78] sm:$0xff] }
 0x2b6   : > { %v2436_v49 = vadd.f32 %v2404_v56, %v2372_v44  ;;  %v11260_v62 = vmul.f32 0.088388346, %v2434_v1  ;;  %v2374_v1 = vmul.f32 %v11256_v2, %v11085_v5  ;;  %v11281_v44 = vld [vmem:[#allocation11 + $0x70] sm:$0xff] }
 0x2b7   : > { %v2437_v42 = vadd.f32 %v2405_v45, %v2373_v28  ;;  %v11266_v53 = vmul.f32 0.088388346, %v2435_v50  ;;  %v2375_v28 = vmul.f32 %v11264_v22, %v11089_v0  ;;  %v11296_v0 = vld [vmem:[#allocation9 + $0x80] sm:$0xff] }
 0x2b8   : > { %14122 = vst [vmem:[#allocation58_spill] sm:$0xff] %v11260_v62  ;;  %v11262_v33 = vmul.f32 0.088388346, %v2436_v49  ;;  %v2376_v49 = vmul.f32 %v11270_v32, %v11093_v57  ;;  %14128 = vst [vmem:[#allocation64_spill] sm:$0xff] %v11296_v0 }
 0x2b9   : > { %v1910_v29 = vpop.f32.mrb[44].mxu0  ;;  %14125 = vst [vmem:[#allocation61_spill] sm:$0xff] %v11266_v53  ;;  %v11268_v10 = vmul.f32 0.088388346, %v2437_v42  ;;  %v11300_v53 = vld [vmem:[#allocation9 + $0x88] sm:$0xff] }
 0x2ba   : > { %14123 = vst [vmem:[#allocation59_spill] sm:$0xff] %v11262_v33  ;;  %v2406_v45 = vmul.f32 %v11258_v52, %v1910_v29  ;;  %v1912_v56 = vpop.f32.mrb[45].mxu0  ;;  %v11288_v52 = vld [vmem:[#allocation11 + $0x78] sm:$0xff]  ;;  %v11298_v29 = vld [vmem:[#allocation11 + $0x80] sm:$0xff]  ;;  %14130 = vst [vmem:[#allocation66_spill] sm:$0xff] %v11300_v53 }
 0x2bb   : > { %14126 = vst [vmem:[#allocation62_spill] sm:$0xff] %v11268_v10  ;;  %v2407_v50 = vmul.f32 %v11272_v61, %v1912_v56  ;;  %v1914_v42 = vpop.f32.mrb[46].mxu0  ;;  %v2377_v56 = vmul.f32 %v11277_v55, %v11097_v3  ;;  %14129 = vst [vmem:[#allocation65_spill] sm:$0xff] %v11298_v29  ;;  %v2378_v3 = vmul.f32 %v11296_v0, %v11103_v30  ;;  %v11330_v0 = vld [vmem:[#allocation11 + $0x98] sm:$0xff]  ;;  %v11338_v30 = vld [vmem:[#allocation11 + $0xa0] sm:$0xff] }
 0x2bc   : > { %v2408_v5 = vmul.f32 %v11281_v44, %v1914_v42  ;;  %v1916_v2 = vpop.f32.mrb[47].mxu0  ;;  %v2438_v41 = vadd.f32 %v2406_v45, %v2374_v1  ;;  %v11306_v1 = vld [vmem:[#allocation9 + $0x90] sm:$0xff]  ;;  %14137 = vst [vmem:[#allocation73_spill] sm:$0xff] %v11338_v30 }
 0x2bd   : > { %v2409_v62 = vmul.f32 %v11288_v52, %v1916_v2  ;;  %v2439_v33 = vadd.f32 %v2407_v50, %v2375_v28  ;;  %v2380_v10 = vmul.f32 %v11306_v1, %v11111_v8 }
 0x2be   : > { %v2440_v61 = vadd.f32 %v2408_v5, %v2376_v49  ;;  %v11302_v42 = vmul.f32 0.088388346, %v2438_v41  ;;  %v11314_v49 = vld [vmem:[#allocation11 + $0x88] sm:$0xff]  ;;  %v2379_v5 = vmul.f32 %v11300_v53, %v11107_v6  ;;  %v11336_v53 = vld [vmem:[#allocation9 + $0xa0] sm:$0xff] }
 0x2bf   : > { %v2441_v22 = vadd.f32 %v2409_v62, %v2377_v56  ;;  %v11308_v2 = vmul.f32 0.088388346, %v2439_v33  ;;  %14135 = vst [vmem:[#allocation71_spill] sm:$0xff] %v11314_v49  ;;  %v11316_v62 = vld [vmem:[#allocation9 + $0x98] sm:$0xff]  ;;  %v11323_v33 = vld [vmem:[#allocation11 + $0x90] sm:$0xff]  ;;  %14136 = vst [vmem:[#allocation72_spill] sm:$0xff] %v11336_v53 }
 0x2c0   : > { %14131 = vst [vmem:[#allocation67_spill] sm:$0xff] %v11302_v42  ;;  %v11304_v45 = vmul.f32 0.088388346, %v2440_v61  ;;  %v2381_v6 = vmul.f32 %v11316_v62, %v11115_v11 }
 0x2c1   : > { %v1920_v57 = vpop.f32.mrb[48].mxu0  ;;  %14133 = vst [vmem:[#allocation69_spill] sm:$0xff] %v11308_v2  ;;  %v11310_v50 = vmul.f32 0.088388346, %v2441_v22  ;;  %v11340_v2 = vld [vmem:[#allocation9 + $0xa8] sm:$0xff] }
 0x2c2   : > { %14132 = vst [vmem:[#allocation68_spill] sm:$0xff] %v11304_v45  ;;  %v2410_v28 = vmul.f32 %v11298_v29, %v1920_v57  ;;  %v1922_v41 = vpop.f32.mrb[49].mxu0  ;;  %14138 = vst [vmem:[#allocation74_spill] sm:$0xff] %v11340_v2 }
 0x2c3   : > { %14134 = vst [vmem:[#allocation70_spill] sm:$0xff] %v11310_v50  ;;  %v2411_v22 = vmul.f32 %v11314_v49, %v1922_v41  ;;  %v1924_v56 = vpop.f32.mrb[50].mxu0 }
 0x2c4   : > { %v2442_v57 = vadd.f32 %v2410_v28, %v2378_v3  ;;  %v2412_v29 = vmul.f32 %v11323_v33, %v1924_v56  ;;  %v1926_v61 = vpop.f32.mrb[51].mxu0  ;;  %v11346_v28 = vld [vmem:[#allocation9 + $0xb0] sm:$0xff] }
 0x2c5   : > { %v2443_v42 = vadd.f32 %v2411_v22, %v2379_v5  ;;  %v2413_v45 = vmul.f32 %v11330_v0, %v1926_v61  ;;  %v2384_v50 = vmul.f32 %v11346_v28, %v11128_v16 }
 0x2c6   : > { %v2444_v41 = vadd.f32 %v2412_v29, %v2380_v10  ;;  %v11342_v8 = vmul.f32 0.088388346, %v2442_v57  ;;  %v2382_v10 = vmul.f32 %v11336_v53, %v11120_v54  ;;  %v11354_v29 = vld [vmem:[#allocation11 + $0xa8] sm:$0xff]  ;;  %v11370_v53 = vld [vmem:[#allocation11 + $0xb8] sm:$0xff]  ;;  %v11378_v54 = vld [vmem:[#allocation11 + $0xc0] sm:$0xff] }
 0x2c7   : > { %v2445_v49 = vadd.f32 %v2413_v45, %v2381_v6  ;;  %v11348_v56 = vmul.f32 0.088388346, %v2443_v42  ;;  %14143 = vst [vmem:[#allocation79_spill] sm:$0xff] %v11354_v29  ;;  %v11356_v45 = vld [vmem:[#allocation9 + $0xb8] sm:$0xff]  ;;  %v2383_v42 = vmul.f32 %v11340_v2, %v11124_v14  ;;  %v11363_v6 = vld [vmem:[#allocation11 + $0xb0] sm:$0xff]  ;;  %v11376_v2 = vld [vmem:[#allocation9 + $0xc0] sm:$0xff] }
 0x2c8   : > { %14139 = vst [vmem:[#allocation75_spill] sm:$0xff] %v11342_v8  ;;  %v11344_v3 = vmul.f32 0.088388346, %v2444_v41  ;;  %v2385_v14 = vmul.f32 %v11356_v45, %v11132_v20  ;;  %14144 = vst [vmem:[#allocation80_spill] sm:$0xff] %v11376_v2 }
 0x2c9   : > { %14141 = vst [vmem:[#allocation77_spill] sm:$0xff] %v11348_v56  ;;  %v11350_v11 = vmul.f32 0.088388346, %v2445_v49  ;;  %v1930_v5 = vpop.f32.mrb[52].mxu0  ;;  %14145 = vst [vmem:[#allocation81_spill] sm:$0xff] %v11378_v54  ;;  %v11380_v56 = vld [vmem:[#allocation9 + $0xc8] sm:$0xff] }
 0x2ca   : > { %14140 = vst [vmem:[#allocation76_spill] sm:$0xff] %v11344_v3  ;;  %v2414_v61 = vmul.f32 %v11338_v30, %v1930_v5  ;;  %v1932_v22 = vpop.f32.mrb[53].mxu0  ;;  %14146 = vst [vmem:[#allocation82_spill] sm:$0xff] %v11380_v56 }
 0x2cb   : > { %14142 = vst [vmem:[#allocation78_spill] sm:$0xff] %v11350_v11  ;;  %v2415_v49 = vmul.f32 %v11354_v29, %v1932_v22  ;;  %v1934_v41 = vpop.f32.mrb[54].mxu0 }
 0x2cc   : > { %v2446_v5 = vadd.f32 %v2414_v61, %v2382_v10  ;;  %v2416_v30 = vmul.f32 %v11363_v6, %v1934_v41  ;;  %v1936_v57 = vpop.f32.mrb[55].mxu0  ;;  %v11386_v61 = vld [vmem:[#allocation9 + $0xd0] sm:$0xff] }
 0x2cd   : > { %v2447_v8 = vadd.f32 %v2415_v49, %v2383_v42  ;;  %v2417_v3 = vmul.f32 %v11370_v53, %v1936_v57  ;;  %v2388_v11 = vmul.f32 %v11386_v61, %v11144_v26 }
 0x2ce   : > { %v2448_v22 = vadd.f32 %v2416_v30, %v2384_v50  ;;  %v11382_v16 = vmul.f32 0.088388346, %v2446_v5  ;;  %v2386_v50 = vmul.f32 %v11376_v2, %v11136_v23  ;;  %v11394_v30 = vld [vmem:[#allocation11 + $0xc8] sm:$0xff]  ;;  %v11410_v2 = vld [vmem:[#allocation11 + $0xd8] sm:$0xff]  ;;  %v11418_v23 = vld [vmem:[#allocation11 + $0xe0] sm:$0xff] }
 0x2cf   : > { %v2449_v29 = vadd.f32 %v2417_v3, %v2385_v14  ;;  %v11388_v41 = vmul.f32 0.088388346, %v2447_v8  ;;  %14151 = vst [vmem:[#allocation87_spill] sm:$0xff] %v11394_v30  ;;  %v11396_v3 = vld [vmem:[#allocation9 + $0xd8] sm:$0xff]  ;;  %v2387_v8 = vmul.f32 %v11380_v56, %v11140_v63  ;;  %v11403_v14 = vld [vmem:[#allocation11 + $0xd0] sm:$0xff]  ;;  %v11416_v56 = vld [vmem:[#allocation9 + $0xe0] sm:$0xff] }
 0x2d0   : > { %14147 = vst [vmem:[#allocation83_spill] sm:$0xff] %v11382_v16  ;;  %v11384_v10 = vmul.f32 0.088388346, %v2448_v22  ;;  %v2389_v63 = vmul.f32 %v11396_v3, %v11148_v58  ;;  %14152 = vst [vmem:[#allocation88_spill] sm:$0xff] %v11416_v56 }
 0x2d1   : > { %14149 = vst [vmem:[#allocation85_spill] sm:$0xff] %v11388_v41  ;;  %v11390_v20 = vmul.f32 0.088388346, %v2449_v29  ;;  %v1940_v42 = vpop.f32.mrb[56].mxu0  ;;  %14153 = vst [vmem:[#allocation89_spill] sm:$0xff] %v11418_v23  ;;  %v11420_v41 = vld [vmem:[#allocation9 + $0xe8] sm:$0xff] }
 0x2d2   : > { %14148 = vst [vmem:[#allocation84_spill] sm:$0xff] %v11384_v10  ;;  %v2418_v57 = vmul.f32 %v11378_v54, %v1940_v42  ;;  %v1942_v49 = vpop.f32.mrb[57].mxu0  ;;  %14154 = vst [vmem:[#allocation90_spill] sm:$0xff] %v11420_v41 }
 0x2d3   : > { %14150 = vst [vmem:[#allocation86_spill] sm:$0xff] %v11390_v20  ;;  %v2419_v29 = vmul.f32 %v11394_v30, %v1942_v49  ;;  %v1944_v22 = vpop.f32.mrb[58].mxu0 }
 0x2d4   : > { %v2450_v42 = vadd.f32 %v2418_v57, %v2386_v50  ;;  %v2420_v54 = vmul.f32 %v11403_v14, %v1944_v22  ;;  %v1946_v5 = vpop.f32.mrb[59].mxu0  ;;  %v11426_v57 = vld [vmem:[#allocation9 + $0xf0] sm:$0xff] }
 0x2d5   : > { %v2451_v16 = vadd.f32 %v2419_v29, %v2387_v8  ;;  %v2421_v10 = vmul.f32 %v11410_v2, %v1946_v5  ;;  %v2392_v20 = vmul.f32 %v11426_v57, %v11160_v24 }
 0x2d6   : > { %v2452_v49 = vadd.f32 %v2420_v54, %v2388_v11  ;;  %v11422_v26 = vmul.f32 0.088388346, %v2450_v42  ;;  %v2390_v11 = vmul.f32 %v11416_v56, %v11152_v38  ;;  %v11434_v54 = vld [vmem:[#allocation11 + $0xe8] sm:$0xff]  ;;  %v11450_v56 = vld [vmem:[#allocation11 + $0xf8] sm:$0xff] }
 0x2d7   : > { %v2453_v30 = vadd.f32 %v2421_v10, %v2389_v63  ;;  %v11428_v22 = vmul.f32 0.088388346, %v2451_v16  ;;  %14158 = vst [vmem:[#allocation94_spill] sm:$0xff] %v11434_v54  ;;  %v11436_v10 = vld [vmem:[#allocation9 + $0xf8] sm:$0xff]  ;;  %v2391_v16 = vmul.f32 %v11420_v41, %v11156_v39  ;;  %v11443_v63 = vld [vmem:[#allocation11 + $0xf0] sm:$0xff] }
 0x2d8   : > { %14155 = vst [vmem:[#allocation91_spill] sm:$0xff] %v11422_v26  ;;  %v11424_v50 = vmul.f32 0.088388346, %v2452_v49  ;;  %v2393_v39 = vmul.f32 %v11436_v10, %v11164_v25 }
 0x2d9   : > { %14157 = vst [vmem:[#allocation93_spill] sm:$0xff] %v11428_v22  ;;  %v11430_v58 = vmul.f32 0.088388346, %v2453_v30  ;;  %v1950_v8 = vpop.f32.mrb[60].mxu0 }
 0x2da   : > { %14156 = vst [vmem:[#allocation92_spill] sm:$0xff] %v11424_v50  ;;  %v2422_v5 = vmul.f32 %v11418_v23, %v1950_v8  ;;  %v1952_v29 = vpop.f32.mrb[61].mxu0 }
 0x2db   : > { %v2423_v30 = vmul.f32 %v11434_v54, %v1952_v29  ;;  %v1954_v49 = vpop.f32.mrb[62].mxu0 }
 0x2dc   : > { %v2454_v8 = vadd.f32 %v2422_v5, %v2390_v11  ;;  %v2424_v23 = vmul.f32 %v11443_v63, %v1954_v49  ;;  %v1956_v42 = vpop.f32.mrb[63].mxu0 }
 0x2dd   : > { %v2455_v26 = vadd.f32 %v2423_v30, %v2391_v16  ;;  %v2425_v50 = vmul.f32 %v11450_v56, %v1956_v42 }
 0x2de   : > { %v2456_v29 = vadd.f32 %v2424_v23, %v2392_v20  ;;  %v11456_v54 = vmul.f32 0.088388346, %v2454_v8 }
 0x2df   : > { %v2457_v41 = vadd.f32 %v2425_v50, %v2393_v39  ;;  %v11460_v22 = vmul.f32 0.088388346, %v2455_v26 }
 0x2e0   : > { %v11458_v38 = vmul.f32 0.088388346, %v2456_v29 }
 0x2e1   : > { %v11462_v24 = vmul.f32 0.088388346, %v2457_v41  ;;  %v1993_v11 = vpop.f32.mrb[64].mxu0 }
 0x2e2   : > { %v2506_v5 = vmul.f32 %v11168_v31, %v1993_v11  ;;  %v1995_v49 = vpop.f32.mrb[65].mxu0  ;;  %v2504_v25 = vpack.c.bf16 %v11458_v38, %v11456_v54  ;;  %v2542_v11 = vmul.f32 %v11190_v27, %v11051_v43  ;;  %v2545_v43 = vmul.f32 %v11208_v18, %v11063_v51 }
 0x2e3   : > { %v2507_v16 = vmul.f32 %v11170_v15, %v1995_v49  ;;  %v1997_v42 = vpop.f32.mrb[66].mxu0  ;;  %v2505_v20 = vpack.c.bf16 %v11462_v24, %v11460_v22 }
 0x2e4   : > { %v2570_v23 = vadd.f32 %v11028_v19, %v2506_v5  ;;  %v2508_v26 = vmul.f32 %v11172_v34, %v1997_v42  ;;  %v1999_v50 = vpop.f32.mrb[67].mxu0  ;;  %v2543_v34 = vmul.f32 %v11196_v7, %v11055_v46 }
 0x2e5   : > { %v2571_v41 = vadd.f32 %v11035_v12, %v2507_v16  ;;  %v2509_v30 = vmul.f32 %v11176_v13, %v1999_v50  ;;  %v14160_v50 = vld [vmem:[#allocation49_spill] sm:$0xff] }
 0x2e6   : > { %v2572_v31 = vadd.f32 %v11040_v35, %v2508_v26  ;;  %v2544_v35 = vmul.f32 %v11203_v4, %v11059_v48  ;;  %v14159_v26 = vld [vmem:[#allocation24_spill] sm:$0xff] }
 0x2e7   : > { %v2573_v8 = vadd.f32 %v11045_v40, %v2509_v30  ;;  %v14161_v48 = vld [vmem:[#allocation48_spill] sm:$0xff] }
 0x2e8   : > { %v2602_v39 = vpack.c.bf16 %v2572_v31, %v2570_v23  ;;  %v14163_v31 = vld [vmem:[#allocation54_spill] sm:$0xff] }
 0x2e9   : > { %v2003_v29 = vpop.f32.mrb[68].mxu0  ;;  %v2603_v15 = vpack.c.bf16 %v2573_v8, %v2571_v41  ;;  %v2546_v41 = vmul.f32 %v14160_v50, %v14159_v26  ;;  %v14173_v50 = vld [vmem:[#allocation30_spill] sm:$0xff] }
 0x2ea   : > { %v2510_v49 = vmul.f32 %v11188_v60, %v2003_v29  ;;  %v2005_v19 = vpop.f32.mrb[69].mxu0  ;;  %8444 = vmatprep.subr.bf16.mxu1 %v2602_v39 }
 0x2eb   : > { %v2511_v12 = vmul.f32 %v11192_v59, %v2005_v19  ;;  %v2007_v13 = vpop.f32.mrb[70].mxu0  ;;  %8445 = vmatpush3.bf16.xpose.msra.mxu1 %v2602_v39  ;;  %8508 = vmatprep.subr.bf16.mxu0 %v2603_v15 }
 0x2ec   : > { %v2574_v40 = vadd.f32 %v2542_v11, %v2510_v49  ;;  %v2512_v5 = vmul.f32 %v11194_v21, %v2007_v13  ;;  %v2009_v16 = vpop.f32.mrb[71].mxu0  ;;  %8509 = vmatpush3.bf16.xpose.msra.mxu0 %v2603_v15  ;;  %v14162_v21 = vld [vmem:[#allocation25_spill] sm:$0xff]  ;;  %v14165_v49 = vld [vmem:[#allocation27_spill] sm:$0xff] }
 0x2ed   : > { %v2575_v60 = vadd.f32 %v2543_v34, %v2511_v12  ;;  %v2513_v27 = vmul.f32 %v11201_v36, %v2009_v16  ;;  %v2547_v8 = vmul.f32 %v14163_v31, %v14162_v21  ;;  %v14164_v36 = vld [vmem:[#allocation26_spill] sm:$0xff]  ;;  %v2549_v19 = vmul.f32 %v11248_v47, %v14165_v49  ;;  %v14166_v12 = vld [vmem:[#allocation55_spill] sm:$0xff]  ;;  %v14176_v49 = vld [vmem:[#allocation65_spill] sm:$0xff] }
 0x2ee   : > { %v2576_v46 = vadd.f32 %v2544_v35, %v2512_v5  ;;  %v2548_v39 = vmul.f32 %v11241_v9, %v14164_v36  ;;  %v14169_v9 = vld [vmem:[#allocation56_spill] sm:$0xff]  ;;  %v14174_v21 = vld [vmem:[#allocation31_spill] sm:$0xff] }
 0x2ef   : > { %v2577_v7 = vadd.f32 %v2545_v43, %v2513_v27  ;;  %v14167_v43 = vld [vmem:[#allocation28_spill] sm:$0xff]  ;;  %v2553_v31 = vmul.f32 %v11288_v52, %v14174_v21 }
 0x2f0   : > { %v2604_v59 = vpack.c.bf16 %v2576_v46, %v2574_v40 }
 0x2f1   : > { %v2013_v42 = vpop.f32.mrb[72].mxu0  ;;  %v2605_v23 = vpack.c.bf16 %v2577_v7, %v2575_v60  ;;  %v14168_v60 = vld [vmem:[#allocation57_spill] sm:$0xff] }
 0x2f2   : > { %v2514_v4 = vmul.f32 %v14161_v48, %v2013_v42  ;;  %v2015_v30 = vpop.f32.mrb[73].mxu0  ;;  %8446 = vmatprep.subr.bf16.mxu1 %v2604_v59  ;;  %v2550_v27 = vmul.f32 %v14168_v60, %v14167_v43 }
 0x2f3   : > { %v2515_v51 = vmul.f32 %v11224_v37, %v2015_v30  ;;  %v2017_v18 = vpop.f32.mrb[74].mxu0  ;;  %8447 = vmatpush3.bf16.xpose.msra.mxu1 %v2604_v59  ;;  %8510 = vmatprep.subr.bf16.mxu0 %v2605_v23  ;;  %v14171_v59 = vld [vmem:[#allocation63_spill] sm:$0xff] }
 0x2f4   : > { %v2578_v29 = vadd.f32 %v2546_v41, %v2514_v4  ;;  %v2516_v15 = vmul.f32 %v11230_v17, %v2017_v18  ;;  %v2019_v11 = vpop.f32.mrb[75].mxu0  ;;  %8511 = vmatpush3.bf16.xpose.msra.mxu0 %v2605_v23  ;;  %v14170_v17 = vld [vmem:[#allocation29_spill] sm:$0xff]  ;;  %v14172_v23 = vld [vmem:[#allocation60_spill] sm:$0xff]  ;;  %v2552_v41 = vmul.f32 %v11281_v44, %v14173_v50 }
 0x2f5   : > { %v2579_v34 = vadd.f32 %v2547_v8, %v2515_v51  ;;  %v2517_v13 = vmul.f32 %v14166_v12, %v2019_v11  ;;  %v2551_v42 = vmul.f32 %v14171_v59, %v14170_v17  ;;  %v14175_v11 = vld [vmem:[#allocation32_spill] sm:$0xff]  ;;  %v14184_v50 = vld [vmem:[#allocation73_spill] sm:$0xff] }
 0x2f6   : > { %v2580_v35 = vadd.f32 %v2548_v39, %v2516_v15  ;;  %v14177_v44 = vld [vmem:[#allocation64_spill] sm:$0xff] }
 0x2f7   : > { %v2581_v40 = vadd.f32 %v2549_v19, %v2517_v13  ;;  %v2554_v19 = vmul.f32 %v14176_v49, %v14175_v11  ;;  %v14179_v13 = vld [vmem:[#allocation71_spill] sm:$0xff] }
 0x2f8   : > { %v2606_v37 = vpack.c.bf16 %v2580_v35, %v2578_v29 }
 0x2f9   : > { %v2023_v5 = vpop.f32.mrb[76].mxu0  ;;  %v2607_v16 = vpack.c.bf16 %v2581_v40, %v2579_v34  ;;  %v14180_v40 = vld [vmem:[#allocation66_spill] sm:$0xff] }
 0x2fa   : > { %v2518_v46 = vmul.f32 %v14169_v9, %v2023_v5  ;;  %v2025_v7 = vpop.f32.mrb[77].mxu0  ;;  %8448 = vmatprep.subr.bf16.mxu1 %v2606_v37 }
 0x2fb   : > { %v2519_v47 = vmul.f32 %v14172_v23, %v2025_v7  ;;  %v2027_v26 = vpop.f32.mrb[78].mxu0  ;;  %8449 = vmatpush3.bf16.xpose.msra.mxu1 %v2606_v37  ;;  %8512 = vmatprep.subr.bf16.mxu0 %v2607_v16 }
 0x2fc   : > { %v2582_v48 = vadd.f32 %v2550_v27, %v2518_v46  ;;  %v2520_v4 = vmul.f32 %v11270_v32, %v2027_v26  ;;  %v2029_v30 = vpop.f32.mrb[79].mxu0  ;;  %8513 = vmatpush3.bf16.xpose.msra.mxu0 %v2607_v16  ;;  %v14178_v32 = vld [vmem:[#allocation33_spill] sm:$0xff]  ;;  %v14182_v27 = vld [vmem:[#allocation35_spill] sm:$0xff]  ;;  %v14183_v26 = vld [vmem:[#allocation36_spill] sm:$0xff] }
 0x2fd   : > { %v2583_v8 = vadd.f32 %v2551_v42, %v2519_v47  ;;  %v2521_v51 = vmul.f32 %v11277_v55, %v2029_v30  ;;  %v2555_v35 = vmul.f32 %v14179_v13, %v14178_v32  ;;  %v14181_v55 = vld [vmem:[#allocation34_spill] sm:$0xff]  ;;  %v2557_v9 = vmul.f32 %v11330_v0, %v14182_v27  ;;  %v14187_v30 = vld [vmem:[#allocation79_spill] sm:$0xff]  ;;  %v14191_v13 = vld [vmem:[#allocation40_spill] sm:$0xff] }
 0x2fe   : > { %v2584_v18 = vadd.f32 %v2552_v41, %v2520_v4  ;;  %v2556_v5 = vmul.f32 %v11323_v33, %v14181_v55  ;;  %v2558_v41 = vmul.f32 %v14184_v50, %v14183_v26  ;;  %v14185_v33 = vld [vmem:[#allocation72_spill] sm:$0xff]  ;;  %v14195_v55 = vld [vmem:[#allocation87_spill] sm:$0xff] }
 0x2ff   : > { %v2585_v36 = vadd.f32 %v2553_v31, %v2521_v51  ;;  %v14188_v31 = vld [vmem:[#allocation74_spill] sm:$0xff] }
 0x300   : > { %v2608_v39 = vpack.c.bf16 %v2584_v18, %v2582_v48 }
 0x301   : > { %v2033_v29 = vpop.f32.mrb[80].mxu0  ;;  %v2609_v15 = vpack.c.bf16 %v2585_v36, %v2583_v8 }
 0x302   : > { %v2522_v34 = vmul.f32 %v14177_v44, %v2033_v29  ;;  %v2035_v12 = vpop.f32.mrb[81].mxu0  ;;  %8450 = vmatprep.subr.bf16.mxu1 %v2608_v39  ;;  %v14190_v29 = vld [vmem:[#allocation39_spill] sm:$0xff] }
 0x303   : > { %v2523_v52 = vmul.f32 %v14180_v40, %v2035_v12  ;;  %v2037_v37 = vpop.f32.mrb[82].mxu0  ;;  %8451 = vmatpush3.bf16.xpose.msra.mxu1 %v2608_v39  ;;  %8514 = vmatprep.subr.bf16.mxu0 %v2609_v15 }
 0x304   : > { %v2586_v16 = vadd.f32 %v2554_v19, %v2522_v34  ;;  %v2524_v43 = vmul.f32 %v11306_v1, %v2037_v37  ;;  %v2039_v60 = vpop.f32.mrb[83].mxu0  ;;  %8515 = vmatpush3.bf16.xpose.msra.mxu0 %v2609_v15  ;;  %v14186_v1 = vld [vmem:[#allocation37_spill] sm:$0xff]  ;;  %v2561_v15 = vmul.f32 %v11370_v53, %v14190_v29 }
 0x305   : > { %v2587_v46 = vadd.f32 %v2555_v35, %v2523_v52  ;;  %v2525_v7 = vmul.f32 %v11316_v62, %v2039_v60  ;;  %v2559_v21 = vmul.f32 %v14187_v30, %v14186_v1  ;;  %v14189_v62 = vld [vmem:[#allocation38_spill] sm:$0xff]  ;;  %v14192_v35 = vld [vmem:[#allocation81_spill] sm:$0xff] }
 0x306   : > { %v2588_v17 = vadd.f32 %v2556_v5, %v2524_v43  ;;  %v2560_v51 = vmul.f32 %v11363_v6, %v14189_v62  ;;  %v2562_v40 = vmul.f32 %v14192_v35, %v14191_v13  ;;  %v14193_v6 = vld [vmem:[#allocation80_spill] sm:$0xff] }
 0x307   : > { %v2589_v59 = vadd.f32 %v2557_v9, %v2525_v7  ;;  %v14198_v7 = vld [vmem:[#allocation43_spill] sm:$0xff] }
 0x308   : > { %v2610_v42 = vpack.c.bf16 %v2588_v17, %v2586_v16  ;;  %v14196_v16 = vld [vmem:[#allocation82_spill] sm:$0xff]  ;;  %v2565_v17 = vmul.f32 %v11410_v2, %v14198_v7 }
 0x309   : > { %v2043_v23 = vpop.f32.mrb[84].mxu0  ;;  %v2611_v47 = vpack.c.bf16 %v2589_v59, %v2587_v46 }
 0x30a   : > { %v2526_v48 = vmul.f32 %v14185_v33, %v2043_v23  ;;  %v2045_v4 = vpop.f32.mrb[85].mxu0  ;;  %8452 = vmatprep.subr.bf16.mxu1 %v2610_v42  ;;  %v14199_v33 = vld [vmem:[#allocation44_spill] sm:$0xff] }
 0x30b   : > { %v2527_v0 = vmul.f32 %v14188_v31, %v2045_v4  ;;  %v2047_v8 = vpop.f32.mrb[86].mxu0  ;;  %8453 = vmatpush3.bf16.xpose.msra.mxu1 %v2610_v42  ;;  %8516 = vmatprep.subr.bf16.mxu0 %v2611_v47 }
 0x30c   : > { %v2590_v18 = vadd.f32 %v2558_v41, %v2526_v48  ;;  %v2528_v36 = vmul.f32 %v11346_v28, %v2047_v8  ;;  %v2049_v39 = vpop.f32.mrb[87].mxu0  ;;  %8517 = vmatpush3.bf16.xpose.msra.mxu0 %v2611_v47  ;;  %v14194_v28 = vld [vmem:[#allocation41_spill] sm:$0xff] }
 0x30d   : > { %v2591_v11 = vadd.f32 %v2559_v21, %v2527_v0  ;;  %v2529_v49 = vmul.f32 %v11356_v45, %v2049_v39  ;;  %v2563_v5 = vmul.f32 %v14195_v55, %v14194_v28  ;;  %v14197_v45 = vld [vmem:[#allocation42_spill] sm:$0xff]  ;;  %v14200_v48 = vld [vmem:[#allocation89_spill] sm:$0xff]  ;;  %v14206_v39 = vld [vmem:[#allocation47_spill] sm:$0xff] }
 0x30e   : > { %v2592_v19 = vadd.f32 %v2560_v51, %v2528_v36  ;;  %v2564_v60 = vmul.f32 %v11403_v14, %v14197_v45  ;;  %v2566_v4 = vmul.f32 %v14200_v48, %v14199_v33  ;;  %v14201_v14 = vld [vmem:[#allocation88_spill] sm:$0xff]  ;;  %v14203_v21 = vld [vmem:[#allocation94_spill] sm:$0xff]  ;;  %v2569_v29 = vmul.f32 %v11450_v56, %v14206_v39  ;;  %v14210_v28 = vld [vmem:[#allocation59_spill] sm:$0xff] }
 0x30f   : > { %v2593_v44 = vadd.f32 %v2561_v15, %v2529_v49  ;;  %v14204_v0 = vld [vmem:[#allocation90_spill] sm:$0xff]  ;;  %v14235_v39 = vld [vmem:[#allocation91_spill] sm:$0xff] }
 0x310   : > { %v2612_v34 = vpack.c.bf16 %v2592_v19, %v2590_v18  ;;  %v14211_v55 = vld [vmem:[#allocation58_spill] sm:$0xff] }
 0x311   : > { %v2053_v12 = vpop.f32.mrb[88].mxu0  ;;  %v2613_v32 = vpack.c.bf16 %v2593_v44, %v2591_v11 }
 0x312   : > { %v2530_v52 = vmul.f32 %v14193_v6, %v2053_v12  ;;  %v2055_v37 = vpop.f32.mrb[89].mxu0  ;;  %8454 = vmatprep.subr.bf16.mxu1 %v2612_v34  ;;  %v14207_v6 = vld [vmem:[#allocation51_spill] sm:$0xff] }
 0x313   : > { %v2531_v53 = vmul.f32 %v14196_v16, %v2055_v37  ;;  %v2057_v43 = vpop.f32.mrb[90].mxu0  ;;  %8455 = vmatpush3.bf16.xpose.msra.mxu1 %v2612_v34  ;;  %8518 = vmatprep.subr.bf16.mxu0 %v2613_v32 }
 0x314   : > { %v2594_v27 = vadd.f32 %v2562_v40, %v2530_v52  ;;  %v2532_v9 = vmul.f32 %v11386_v61, %v2057_v43  ;;  %v2059_v46 = vpop.f32.mrb[91].mxu0  ;;  %8519 = vmatpush3.bf16.xpose.msra.mxu0 %v2613_v32  ;;  %v14202_v61 = vld [vmem:[#allocation45_spill] sm:$0xff]  ;;  %v14214_v43 = vld [vmem:[#allocation52_spill] sm:$0xff] }
 0x315   : > { %v2595_v59 = vadd.f32 %v2563_v5, %v2531_v53  ;;  %v2533_v42 = vmul.f32 %v11396_v3, %v2059_v46  ;;  %v2567_v31 = vmul.f32 %v14203_v21, %v14202_v61  ;;  %v14205_v3 = vld [vmem:[#allocation46_spill] sm:$0xff]  ;;  %v14212_v5 = vpack.c.bf16 %v14210_v28, %v14211_v55  ;;  %v14213_v53 = vld [vmem:[#allocation53_spill] sm:$0xff] }
 0x316   : > { %v2596_v23 = vadd.f32 %v2564_v60, %v2532_v9  ;;  %v2568_v62 = vmul.f32 %v11443_v63, %v14205_v3  ;;  %v14215_v45 = vpack.c.bf16 %v14213_v53, %v14214_v43  ;;  %v14216_v9 = vld [vmem:[#allocation62_spill] sm:$0xff]  ;;  %v14217_v46 = vld [vmem:[#allocation61_spill] sm:$0xff]  ;;  %v14231_v3 = vld [vmem:[#allocation84_spill] sm:$0xff] }
 0x317   : > { %v2597_v47 = vadd.f32 %v2565_v17, %v2533_v42  ;;  %v14218_v7 = vpack.c.bf16 %v14216_v9, %v14217_v46  ;;  %v14219_v42 = vld [vmem:[#allocation68_spill] sm:$0xff]  ;;  %v14228_v21 = vld [vmem:[#allocation78_spill] sm:$0xff] }
 0x318   : > { %v2614_v26 = vpack.c.bf16 %v2596_v23, %v2594_v27  ;;  %v14220_v23 = vld [vmem:[#allocation67_spill] sm:$0xff] }
 0x319   : > { %v2063_v50 = vpop.f32.mrb[92].mxu0  ;;  %v2615_v41 = vpack.c.bf16 %v2597_v47, %v2595_v59  ;;  %v14221_v47 = vpack.c.bf16 %v14219_v42, %v14220_v23 }
 0x31a   : > { %v2534_v1 = vmul.f32 %v14201_v14, %v2063_v50  ;;  %v2065_v30 = vpop.f32.mrb[93].mxu0  ;;  %8456 = vmatprep.subr.bf16.mxu1 %v2614_v26  ;;  %v14222_v50 = vld [vmem:[#allocation76_spill] sm:$0xff]  ;;  %v14226_v14 = vld [vmem:[#allocation69_spill] sm:$0xff] }
 0x31b   : > { %v2535_v2 = vmul.f32 %v14204_v0, %v2065_v30  ;;  %v2067_v8 = vpop.f32.mrb[94].mxu0  ;;  %8457 = vmatpush3.bf16.xpose.msra.mxu1 %v2614_v26  ;;  %8520 = vmatprep.subr.bf16.mxu0 %v2615_v41 }
 0x31c   : > { %v2598_v51 = vadd.f32 %v2566_v4, %v2534_v1  ;;  %v2536_v18 = vmul.f32 %v11426_v57, %v2067_v8  ;;  %v2069_v36 = vpop.f32.mrb[95].mxu0  ;;  %8521 = vmatpush3.bf16.xpose.msra.mxu0 %v2615_v41  ;;  %v14223_v41 = vld [vmem:[#allocation75_spill] sm:$0xff]  ;;  %v14225_v4 = vld [vmem:[#allocation70_spill] sm:$0xff] }
 0x31d   : > { %v2599_v15 = vadd.f32 %v2567_v31, %v2535_v2  ;;  %v2537_v11 = vmul.f32 %v11436_v10, %v2069_v36  ;;  %v14208_v10 = vld [vmem:[#allocation50_spill] sm:$0xff]  ;;  %v14224_v33 = vpack.c.bf16 %v14222_v50, %v14223_v41  ;;  %v14227_v1 = vpack.c.bf16 %v14225_v4, %v14226_v14  ;;  %v14229_v31 = vld [vmem:[#allocation77_spill] sm:$0xff]  ;;  %v14234_v36 = vld [vmem:[#allocation92_spill] sm:$0xff] }
 0x31e   : > { %v2600_v49 = vadd.f32 %v2568_v62, %v2536_v18  ;;  %v14209_v52 = vpack.c.bf16 %v14207_v6, %v14208_v10  ;;  %v14230_v0 = vpack.c.bf16 %v14228_v21, %v14229_v31  ;;  %v14232_v62 = vld [vmem:[#allocation83_spill] sm:$0xff] }
 0x31f   : > { %v2601_v19 = vadd.f32 %v2569_v29, %v2537_v11  ;;  %v14236_v29 = vpack.c.bf16 %v14234_v36, %v14235_v39  ;;  %v14237_v11 = vld [vmem:[#allocation86_spill] sm:$0xff] }
 0x320   : > { %v2616_v44 = vpack.c.bf16 %v2600_v49, %v2598_v51  ;;  %v14233_v51 = vpack.c.bf16 %v14231_v3, %v14232_v62  ;;  %v14238_v49 = vld [vmem:[#allocation85_spill] sm:$0xff] }
 0x321   : > { %v2219_v34 = vpop.f32.mrb[96].mxu0  ;;  %v2617_v12 = vpack.c.bf16 %v2601_v19, %v2599_v15  ;;  %v14239_v19 = vpack.c.bf16 %v14237_v11, %v14238_v49 }
 0x322   : > { %v2221_v32 = vpop.f32.mrb[97].mxu0  ;;  %8458 = vmatprep.subr.bf16.mxu1 %v2616_v44 }
 0x323   : > { %v2223_v13 = vpop.f32.mrb[98].mxu0  ;;  %8459 = vmatpush3.bf16.xpose.msra.mxu1 %v2616_v44  ;;  %8522 = vmatprep.subr.bf16.mxu0 %v2617_v12 }
 0x324   : > { %v2618_v63 = vpack.c.bf16 %v2223_v13, %v2219_v34  ;;  %v2225_v57 = vpop.f32.mrb[99].mxu0  ;;  %8523 = vmatpush3.bf16.xpose.msra.mxu0 %v2617_v12  ;;  %v14240_v12 = vld [vmem:[#allocation93_spill] sm:$0xff] }
 0x325   : > { %v11560_v35 = vpack.c.bf16 %v2225_v57, %v2221_v32  ;;  %v14241_v32 = vpack.c.bf16 %v11430_v58, %v14240_v12 }
 0x326   : > { %8476 = vmatprep.subr.bf16.mxu1 %v2618_v63 }
 0x329   : > { %v2229_v56 = vpop.f32.mrb[100].mxu0 }
 0x32a   : > { %v2231_v40 = vpop.f32.mrb[101].mxu0  ;;  %8461 = vmatmul.mubr.bf16.vlgmr.msra.gmra.mrb[32].mxu1 %v14209_v52 }
 0x32b   : > { %v2233_v37 = vpop.f32.mrb[102].mxu0  ;;  %8464 = vmatprep.mubr.bf16.mxu1 %v14212_v5  ;;  %8477 = vmatpush3.bf16.msra.mxu1 %v2618_v63 }
 0x32c   : > { %v2620_v16 = vpack.c.bf16 %v2233_v37, %v2229_v56  ;;  %8525 = vmatmul.mubr.bf16.vlgmr.msra.gmra.mrb[128].mxu0 %v14215_v45  ;;  %v2235_v60 = vpop.f32.mrb[103].mxu0 }
 0x32d   : > { %v11571_v27 = vpack.c.bf16 %v2235_v60, %v2231_v40  ;;  %8528 = vmatprep.mubr.bf16.mxu0 %v14218_v7 }
 0x32e   : > { %8478 = vmatprep.subr.bf16.mxu1 %v2620_v16 }
 0x32f   : > { %8479 = vmatpush3.bf16.msra.mxu1 %v2620_v16 }
 0x331   : > { %v2239_v17 = vpop.f32.mrb[104].mxu0 }
 0x332   : > { %v2241_v59 = vpop.f32.mrb[105].mxu0  ;;  %8465 = vmatmul.mubr.bf16.gmra.mrb[36].mxu1 %v14221_v47 }
 0x333   : > { %v2243_v26 = vpop.f32.mrb[106].mxu0  ;;  %8468 = vmatprep.mubr.bf16.mxu1 %v14224_v33 }
 0x334   : > { %v2622_v48 = vpack.c.bf16 %v2243_v26, %v2239_v17  ;;  %8529 = vmatmul.mubr.bf16.gmra.mrb[132].mxu0 %v14227_v1  ;;  %v2245_v30 = vpop.f32.mrb[107].mxu0 }
 0x335   : > { %v11585_v61 = vpack.c.bf16 %v2245_v30, %v2241_v59  ;;  %8532 = vmatprep.mubr.bf16.mxu0 %v14230_v0 }
 0x336   : > { %8480 = vmatprep.subr.bf16.mxu1 %v2622_v48 }
 0x337   : > { %8481 = vmatpush3.bf16.msra.mxu1 %v2622_v48 }
 0x339   : > { %v2249_v2 = vpop.f32.mrb[108].mxu0 }
 0x33a   : > { %v2251_v8 = vpop.f32.mrb[109].mxu0  ;;  %8469 = vmatmul.mubr.bf16.gmra.mrb[40].mxu1 %v14233_v51 }
 0x33b   : > { %v2253_v18 = vpop.f32.mrb[110].mxu0  ;;  %8472 = vmatprep.mubr.bf16.mxu1 %v14236_v29 }
 0x33c   : > { %v2624_v15 = vpack.c.bf16 %v2253_v18, %v2249_v2  ;;  %8533 = vmatmul.mubr.bf16.gmra.mrb[136].mxu0 %v14239_v19  ;;  %v2255_v44 = vpop.f32.mrb[111].mxu0 }
 0x33d   : > { %v11599_v34 = vpack.c.bf16 %v2255_v44, %v2251_v8  ;;  %8536 = vmatprep.mubr.bf16.mxu0 %v14241_v32 }
 0x33e   : > { %8482 = vmatprep.subr.bf16.mxu1 %v2624_v15 }
 0x33f   : > { %8483 = vmatpush3.bf16.msra.mxu1 %v2624_v15 }
 0x341   : > { %v2259_v13 = vpop.f32.mrb[112].mxu0 }
 0x342   : > { %v2261_v63 = vpop.f32.mrb[113].mxu0  ;;  %8473 = vmatmul.mubr.bf16.gmra.mrb[44].mxu1 %v2504_v25 }
 0x343   : > { %v2263_v57 = vpop.f32.mrb[114].mxu0 }
 0x344   : > { %v2626_v56 = vpack.c.bf16 %v2263_v57, %v2259_v13  ;;  %8537 = vmatmul.mubr.bf16.gmra.mrb[140].mxu0 %v2505_v20  ;;  %v2265_v40 = vpop.f32.mrb[115].mxu0 }
 0x345   : > { %v11610_v6 = vpack.c.bf16 %v2265_v40, %v2261_v63 }
 0x346   : > { %8484 = vmatprep.subr.bf16.mxu1 %v2626_v56 }
 0x347   : > { %8485 = vmatpush3.bf16.msra.mxu1 %v2626_v56 }
 0x349   : > { %v2269_v58 = vpop.f32.mrb[116].mxu0 }
 0x34a   : > { %v2271_v10 = vpop.f32.mrb[117].mxu0 }
 0x34b   : > { %v2273_v52 = vpop.f32.mrb[118].mxu0 }
 0x34c   : > { %v2628_v37 = vpack.c.bf16 %v2273_v52, %v2269_v58  ;;  %v2275_v28 = vpop.f32.mrb[119].mxu0 }
 0x34d   : > { %v11612_v55 = vpack.c.bf16 %v2275_v28, %v2271_v10 }
 0x34e   : > { %8486 = vmatprep.subr.bf16.mxu1 %v2628_v37 }
 0x34f   : > { %8487 = vmatpush3.bf16.msra.mxu1 %v2628_v37 }
 0x351   : > { %v2279_v54 = vpop.f32.mrb[120].mxu0 }
 0x352   : > { %v2281_v38 = vpop.f32.mrb[121].mxu0 }
 0x353   : > { %v2283_v25 = vpop.f32.mrb[122].mxu0 }
 0x354   : > { %v2630_v5 = vpack.c.bf16 %v2283_v25, %v2279_v54  ;;  %v2285_v22 = vpop.f32.mrb[123].mxu0 }
 0x355   : > { %v11614_v24 = vpack.c.bf16 %v2285_v22, %v2281_v38 }
 0x356   : > { %8488 = vmatprep.subr.bf16.mxu1 %v2630_v5 }
 0x357   : > { %8489 = vmatpush3.bf16.msra.mxu1 %v2630_v5 }
 0x359   : > { %v2289_v20 = vpop.f32.mrb[124].mxu0 }
 0x35a   : > { %v2291_v16 = vpop.f32.mrb[125].mxu0 }
 0x35b   : > { %v2293_v53 = vpop.f32.mrb[126].mxu0 }
 0x35c   : > { %v2632_v43 = vpack.c.bf16 %v2293_v53, %v2289_v20  ;;  %v2295_v45 = vpop.f32.mrb[127].mxu0 }
 0x35d   : > { %v11616_v60 = vpack.c.bf16 %v2295_v45, %v2291_v16 }
 0x35e   : > { %8490 = vmatprep.subr.bf16.mxu1 %v2632_v43 }
 0x35f   : > { %8491 = vmatpush3.bf16.msra.mxu1 %v2632_v43 }
 0x360   : > { %8540 = vmatprep.subr.bf16.mxu1 %v11560_v35 }
 0x3fd   : > { %v11619_v9 = vpop.f32.mrb[32].mxu1 }
 0x3fe   : > { %v11621_v46 = vpop.f32.mrb[33].mxu1 }
 0x3ff   : > { %v11623_v7 = vpop.f32.mrb[128].mxu0  ;;  %2731 = vmax.xlane.f32.xlu0 %v11621_v46  ;;  %v11626_v17 = vpop.f32.mrb[34].mxu1 }
 0x400   : > { %v11628_v59 = vpop.f32.mrb[129].mxu0  ;;  %v11630_v42 = vpop.f32.mrb[35].mxu1 }
 0x401   : > { %v11632_v23 = vpop.f32.mrb[130].mxu0  ;;  %2733 = vmax.xlane.f32.xlu1 %v11630_v42 }
 0x402   : > { %v11635_v47 = vpop.f32.mrb[131].mxu0 }
 0x403   : > { %2735 = vmax.xlane.f32.xlu0 %v11619_v9 }
 0x405   : > { %2737 = vmax.xlane.f32.xlu1 %v11626_v17  ;;  %v11639_v26 = vpop.f32.mrb[36].mxu1 }
 0x406   : > { %v11641_v50 = vpop.f32.mrb[37].mxu1 }
 0x407   : > { %v11643_v41 = vpop.f32.mrb[132].mxu0  ;;  %2739 = vmax.xlane.f32.xlu0 %v11641_v50  ;;  %v11646_v33 = vpop.f32.mrb[38].mxu1 }
 0x408   : > { %v11648_v48 = vpop.f32.mrb[133].mxu0  ;;  %v11650_v4 = vpop.f32.mrb[39].mxu1 }
 0x409   : > { %v11652_v14 = vpop.f32.mrb[134].mxu0  ;;  %2741 = vmax.xlane.f32.xlu1 %v11650_v4 }
 0x40a   : > { %v11655_v1 = vpop.f32.mrb[135].mxu0 }
 0x40b   : > { %2743 = vmax.xlane.f32.xlu0 %v11639_v26 }
 0x40d   : > { %2745 = vmax.xlane.f32.xlu1 %v11646_v33  ;;  %v11659_v30 = vpop.f32.mrb[40].mxu1 }
 0x40e   : > { %v11661_v21 = vpop.f32.mrb[41].mxu1 }
 0x40f   : > { %v11663_v31 = vpop.f32.mrb[136].mxu0  ;;  %2747 = vmax.xlane.f32.xlu0 %v11661_v21  ;;  %v11666_v0 = vpop.f32.mrb[42].mxu1 }
 0x410   : > { %v11668_v2 = vpop.f32.mrb[137].mxu0  ;;  %v11670_v8 = vpop.f32.mrb[43].mxu1 }
 0x411   : > { %v11672_v3 = vpop.f32.mrb[138].mxu0  ;;  %2749 = vmax.xlane.f32.xlu1 %v11670_v8 }
 0x412   : > { %v11675_v62 = vpop.f32.mrb[139].mxu0 }
 0x413   : > { %2751 = vmax.xlane.f32.xlu0 %v11659_v30 }
 0x415   : > { %2753 = vmax.xlane.f32.xlu1 %v11666_v0  ;;  %v11679_v51 = vpop.f32.mrb[44].mxu1 }
 0x416   : > { %v11681_v18 = vpop.f32.mrb[45].mxu1 }
 0x417   : > { %v11683_v36 = vpop.f32.mrb[140].mxu0  ;;  %2755 = vmax.xlane.f32.xlu0 %v11681_v18  ;;  %v11686_v39 = vpop.f32.mrb[46].mxu1 }
 0x418   : > { %v11688_v29 = vpop.f32.mrb[141].mxu0  ;;  %v11690_v15 = vpop.f32.mrb[47].mxu1 }
 0x419   : > { %v11692_v11 = vpop.f32.mrb[142].mxu0  ;;  %2757 = vmax.xlane.f32.xlu1 %v11690_v15 }
 0x41a   : > { %v11695_v49 = vpop.f32.mrb[143].mxu0 }
 0x41b   : > { %2759 = vmax.xlane.f32.xlu0 %v11679_v51 }
 0x41d   : > { %2761 = vmax.xlane.f32.xlu1 %v11686_v39 }
 0x41f   : > { %3093 = vmax.xlane.f32.xlu0 %v11628_v59 }
 0x421   : > { %3095 = vmax.xlane.f32.xlu1 %v11635_v47 }
 0x423   : > { %3097 = vmax.xlane.f32.xlu0 %v11623_v7 }
 0x425   : > { %3099 = vmax.xlane.f32.xlu1 %v11632_v23 }
 0x427   : > { %3101 = vmax.xlane.f32.xlu0 %v11648_v48 }
 0x429   : > { %3103 = vmax.xlane.f32.xlu1 %v11655_v1 }
 0x42b   : > { %3105 = vmax.xlane.f32.xlu0 %v11643_v41 }
 0x42d   : > { %3107 = vmax.xlane.f32.xlu1 %v11652_v14 }
 0x42f   : > { %3109 = vmax.xlane.f32.xlu0 %v11668_v2 }
 0x431   : > { %3111 = vmax.xlane.f32.xlu1 %v11675_v62 }
 0x433   : > { %3113 = vmax.xlane.f32.xlu0 %v11663_v31 }
 0x435   : > { %3115 = vmax.xlane.f32.xlu1 %v11672_v3 }
 0x437   : > { %3117 = vmax.xlane.f32.xlu0 %v11688_v29 }
 0x439   : > { %3123 = vmax.xlane.f32.xlu1 %v11692_v11 }
 0x43b   : > { %3121 = vmax.xlane.f32.xlu0 %v11683_v36 }
 0x43d   : > { %3119 = vmax.xlane.f32.xlu1 %v11695_v49 }
 0x48c   : > { %v2732_v19 = vpop.xlane.xlu0 %2731 }
 0x48d   : > { %v2763_v44 = vsub.f32 %v11621_v46, %v2732_v19 }
 0x48e   : > { %v2734_v12 = vpop.xlane.xlu1 %2733 }
 0x48f   : > { %v2779_v32 = vmul.f32 1.442695, %v2763_v44  ;;  %v2764_v13 = vsub.f32 %v11630_v42, %v2734_v12 }
 0x490   : > { %v2736_v63 = vpop.xlane.xlu0 %2735 }
 0x491   : > { %9537 = vpow2.f32 %v2779_v32  ;;  %v2781_v57 = vmul.f32 1.442695, %v2764_v13  ;;  %v2765_v56 = vsub.f32 %v11619_v9, %v2736_v63 }
 0x492   : > { %v2738_v40 = vpop.xlane.xlu1 %2737 }
 0x493   : > { %9539 = vpow2.f32 %v2781_v57  ;;  %v2783_v58 = vmul.f32 1.442695, %v2765_v56  ;;  %v2766_v10 = vsub.f32 %v11626_v17, %v2738_v40 }
 0x494   : > { %v2740_v52 = vpop.xlane.xlu0 %2739 }
 0x495   : > { %9541 = vpow2.f32 %v2783_v58  ;;  %v2785_v37 = vmul.f32 1.442695, %v2766_v10  ;;  %v2767_v28 = vsub.f32 %v11641_v50, %v2740_v52 }
 0x496   : > { %v2742_v54 = vpop.xlane.xlu1 %2741 }
 0x497   : > { %9543 = vpow2.f32 %v2785_v37  ;;  %v2787_v38 = vmul.f32 1.442695, %v2767_v28  ;;  %v2768_v25 = vsub.f32 %v11650_v4, %v2742_v54 }
 0x498   : > { %v2744_v5 = vpop.xlane.xlu0 %2743 }
 0x499   : > { %9545 = vpow2.f32 %v2787_v38  ;;  %v2789_v22 = vmul.f32 1.442695, %v2768_v25  ;;  %v2769_v20 = vsub.f32 %v11639_v26, %v2744_v5 }
 0x49a   : > { %v2746_v16 = vpop.xlane.xlu1 %2745 }
 0x49b   : > { %v11722_v53 = vpop.eup %9537  ;;  %9547 = vpow2.f32 %v2789_v22  ;;  %v2791_v43 = vmul.f32 1.442695, %v2769_v20  ;;  %v2770_v45 = vsub.f32 %v11646_v33, %v2746_v16 }
 0x49c   : > { %v2748_v9 = vpop.xlane.xlu0 %2747  ;;  %2811 = vadd.xlane.f32.xlu0 %v11722_v53 }
 0x49d   : > { %v11726_v46 = vpop.eup %9539  ;;  %9549 = vpow2.f32 %v2791_v43  ;;  %v2793_v17 = vmul.f32 1.442695, %v2770_v45  ;;  %v2771_v42 = vsub.f32 %v11661_v21, %v2748_v9 }
 0x49e   : > { %v2750_v50 = vpop.xlane.xlu1 %2749  ;;  %2813 = vadd.xlane.f32.xlu1 %v11726_v46 }
 0x49f   : > { %v11730_v26 = vpop.eup %9541  ;;  %9551 = vpow2.f32 %v2793_v17  ;;  %v2795_v4 = vmul.f32 1.442695, %v2771_v42  ;;  %v2772_v19 = vsub.f32 %v11670_v8, %v2750_v50 }
 0x4a0   : > { %v2752_v44 = vpop.xlane.xlu0 %2751  ;;  %2815 = vadd.xlane.f32.xlu0 %v11730_v26 }
 0x4a1   : > { %v11734_v33 = vpop.eup %9543  ;;  %9553 = vpow2.f32 %v2795_v4  ;;  %v2797_v12 = vmul.f32 1.442695, %v2772_v19  ;;  %v2773_v32 = vsub.f32 %v11659_v30, %v2752_v44 }
 0x4a2   : > { %v2754_v13 = vpop.xlane.xlu1 %2753  ;;  %2817 = vadd.xlane.f32.xlu1 %v11734_v33 }
 0x4a3   : > { %v11738_v21 = vpop.eup %9545  ;;  %9555 = vpow2.f32 %v2797_v12  ;;  %v2799_v63 = vmul.f32 1.442695, %v2773_v32  ;;  %v2774_v57 = vsub.f32 %v11666_v0, %v2754_v13 }
 0x4a4   : > { %v2756_v56 = vpop.xlane.xlu0 %2755  ;;  %2819 = vadd.xlane.f32.xlu0 %v11738_v21 }
 0x4a5   : > { %v11742_v8 = vpop.eup %9547  ;;  %9557 = vpow2.f32 %v2799_v63  ;;  %v2801_v40 = vmul.f32 1.442695, %v2774_v57  ;;  %v2775_v58 = vsub.f32 %v11681_v18, %v2756_v56 }
 0x4a6   : > { %v2758_v10 = vpop.xlane.xlu1 %2757  ;;  %2821 = vadd.xlane.f32.xlu1 %v11742_v8 }
 0x4a7   : > { %v11746_v30 = vpop.eup %9549  ;;  %9559 = vpow2.f32 %v2801_v40  ;;  %v2803_v52 = vmul.f32 1.442695, %v2775_v58  ;;  %v2776_v37 = vsub.f32 %v11690_v15, %v2758_v10 }
 0x4a8   : > { %v2760_v28 = vpop.xlane.xlu0 %2759  ;;  %2823 = vadd.xlane.f32.xlu0 %v11746_v30 }
 0x4a9   : > { %v11750_v0 = vpop.eup %9551  ;;  %9561 = vpow2.f32 %v2803_v52  ;;  %v2805_v54 = vmul.f32 1.442695, %v2776_v37  ;;  %v2777_v38 = vsub.f32 %v11679_v51, %v2760_v28 }
 0x4aa   : > { %v2762_v25 = vpop.xlane.xlu1 %2761  ;;  %2825 = vadd.xlane.f32.xlu1 %v11750_v0 }
 0x4ab   : > { %v11754_v18 = vpop.eup %9553  ;;  %9563 = vpow2.f32 %v2805_v54  ;;  %v2807_v5 = vmul.f32 1.442695, %v2777_v38  ;;  %v2778_v22 = vsub.f32 %v11686_v39, %v2762_v25 }
 0x4ac   : > { %v3094_v20 = vpop.xlane.xlu0 %3093  ;;  %2827 = vadd.xlane.f32.xlu0 %v11754_v18 }
 0x4ad   : > { %v11758_v15 = vpop.eup %9555  ;;  %9565 = vpow2.f32 %v2807_v5  ;;  %v2809_v16 = vmul.f32 1.442695, %v2778_v22  ;;  %v3125_v43 = vsub.f32 %v11628_v59, %v3094_v20 }
 0x4ae   : > { %v3096_v45 = vpop.xlane.xlu1 %3095  ;;  %2829 = vadd.xlane.f32.xlu1 %v11758_v15 }
 0x4af   : > { %v11762_v51 = vpop.eup %9557  ;;  %9567 = vpow2.f32 %v2809_v16  ;;  %v3141_v9 = vmul.f32 1.442695, %v3125_v43  ;;  %v3126_v17 = vsub.f32 %v11635_v47, %v3096_v45 }
 0x4b0   : > { %v3098_v42 = vpop.xlane.xlu0 %3097  ;;  %2831 = vadd.xlane.f32.xlu0 %v11762_v51 }
 0x4b1   : > { %v11766_v39 = vpop.eup %9559  ;;  %9569 = vpow2.f32 %v3141_v9  ;;  %v3143_v50 = vmul.f32 1.442695, %v3126_v17  ;;  %v3127_v4 = vsub.f32 %v11623_v7, %v3098_v42 }
 0x4b2   : > { %v3100_v19 = vpop.xlane.xlu1 %3099  ;;  %2833 = vadd.xlane.f32.xlu1 %v11766_v39 }
 0x4b3   : > { %v11770_v59 = vpop.eup %9561  ;;  %9571 = vpow2.f32 %v3143_v50  ;;  %v3145_v44 = vmul.f32 1.442695, %v3127_v4  ;;  %v3128_v12 = vsub.f32 %v11632_v23, %v3100_v19 }
 0x4b4   : > { %v3102_v32 = vpop.xlane.xlu0 %3101  ;;  %2835 = vadd.xlane.f32.xlu0 %v11770_v59 }
 0x4b5   : > { %v11774_v47 = vpop.eup %9563  ;;  %9573 = vpow2.f32 %v3145_v44  ;;  %v3147_v13 = vmul.f32 1.442695, %v3128_v12  ;;  %v3129_v63 = vsub.f32 %v11648_v48, %v3102_v32 }
 0x4b6   : > { %v3104_v57 = vpop.xlane.xlu1 %3103  ;;  %2837 = vadd.xlane.f32.xlu1 %v11774_v47 }
 0x4b7   : > { %v11778_v7 = vpop.eup %9565  ;;  %9575 = vpow2.f32 %v3147_v13  ;;  %v3149_v56 = vmul.f32 1.442695, %v3129_v63  ;;  %v3130_v40 = vsub.f32 %v11655_v1, %v3104_v57 }
 0x4b8   : > { %v3106_v58 = vpop.xlane.xlu0 %3105  ;;  %2839 = vadd.xlane.f32.xlu0 %v11778_v7 }
 0x4b9   : > { %v11782_v23 = vpop.eup %9567  ;;  %9577 = vpow2.f32 %v3149_v56  ;;  %v3151_v10 = vmul.f32 1.442695, %v3130_v40  ;;  %v3131_v52 = vsub.f32 %v11643_v41, %v3106_v58 }
 0x4ba   : > { %v3108_v37 = vpop.xlane.xlu1 %3107  ;;  %2841 = vadd.xlane.f32.xlu1 %v11782_v23 }
 0x4bb   : > { %v11786_v48 = vpop.eup %9569  ;;  %9579 = vpow2.f32 %v3151_v10  ;;  %v3153_v28 = vmul.f32 1.442695, %v3131_v52  ;;  %v3132_v54 = vsub.f32 %v11652_v14, %v3108_v37 }
 0x4bc   : > { %v3110_v38 = vpop.xlane.xlu0 %3109  ;;  %3173 = vadd.xlane.f32.xlu0 %v11786_v48 }
 0x4bd   : > { %v11790_v1 = vpop.eup %9571  ;;  %9581 = vpow2.f32 %v3153_v28  ;;  %v3155_v25 = vmul.f32 1.442695, %v3132_v54  ;;  %v3133_v5 = vsub.f32 %v11668_v2, %v3110_v38 }
 0x4be   : > { %v3112_v22 = vpop.xlane.xlu1 %3111  ;;  %3175 = vadd.xlane.f32.xlu1 %v11790_v1 }
 0x4bf   : > { %v11794_v41 = vpop.eup %9573  ;;  %9583 = vpow2.f32 %v3155_v25  ;;  %v3157_v20 = vmul.f32 1.442695, %v3133_v5  ;;  %v3134_v16 = vsub.f32 %v11675_v62, %v3112_v22  ;;  %v9025_v25 = vld [vmem:[#allocation8] ss:$8 sps:$4 sm:$0xff]   ;;  %v9027_v5 = vld [vmem:[#allocation8 + $0x4] ss:$8 sps:$4 sm:$0xff]  }
 0x4c0   : > { %v3114_v43 = vpop.xlane.xlu0 %3113  ;;  %3177 = vadd.xlane.f32.xlu0 %v11794_v41  ;;  %v9030_v22 = vld [vmem:[#allocation8 + $0x14] ss:$8 sps:$4 sm:$0xff]   ;;  %3566 = vmatprep.subr.bf16.mxu0 %v9027_v5 }
 0x4c1   : > { %v11798_v14 = vpop.eup %9575  ;;  %9585 = vpow2.f32 %v3157_v20  ;;  %v3159_v45 = vmul.f32 1.442695, %v3134_v16  ;;  %v3135_v9 = vsub.f32 %v11663_v31, %v3114_v43  ;;  %3567 = vmatpush1.bf16.msra.mxu0 %v9025_v25  ;;  %v9028_v20 = vld [vmem:[#allocation8 + $0x10] ss:$8 sps:$4 sm:$0xff]   ;;  %v9033_v16 = vld [vmem:[#allocation8 + $0x24] ss:$8 sps:$4 sm:$0xff]  }
 0x4c2   : > { %v3116_v17 = vpop.xlane.xlu1 %3115  ;;  %3179 = vadd.xlane.f32.xlu1 %v11798_v14  ;;  %3568 = vmatprep.subr.bf16.mxu0 %v9030_v22  ;;  %v9031_v43 = vld [vmem:[#allocation8 + $0x20] ss:$8 sps:$4 sm:$0xff]  }
 0x4c3   : > { %v11802_v2 = vpop.eup %9577  ;;  %9587 = vpow2.f32 %v3159_v45  ;;  %v3161_v42 = vmul.f32 1.442695, %v3135_v9  ;;  %v3136_v50 = vsub.f32 %v11672_v3, %v3116_v17  ;;  %v9036_v45 = vld [vmem:[#allocation8 + $0x34] ss:$8 sps:$4 sm:$0xff]   ;;  %v9034_v9 = vld [vmem:[#allocation8 + $0x30] ss:$8 sps:$4 sm:$0xff]  }
 0x4c4   : > { %3181 = vadd.xlane.f32.xlu0 %v11802_v2  ;;  %v3118_v62 = vpop.xlane.xlu0 %3117  ;;  %v9039_v17 = vld [vmem:[#allocation8 + $0x44] ss:$8 sps:$4 sm:$0xff]  }
 0x4c5   : > { %v11806_v4 = vpop.eup %9579  ;;  %9589 = vpow2.f32 %v3161_v42  ;;  %v3163_v19 = vmul.f32 1.442695, %v3136_v50  ;;  %v3137_v44 = vsub.f32 %v11688_v29, %v3118_v62  ;;  %3569 = vmatpush1.bf16.msra.mxu0 %v9028_v20  ;;  %v9037_v42 = vld [vmem:[#allocation8 + $0x40] ss:$8 sps:$4 sm:$0xff]   ;;  %v9042_v50 = vld [vmem:[#allocation8 + $0x54] ss:$8 sps:$4 sm:$0xff]  }
 0x4c6   : > { %v3124_v12 = vpop.xlane.xlu1 %3123  ;;  %3183 = vadd.xlane.f32.xlu1 %v11806_v4  ;;  %3570 = vmatprep.subr.bf16.mxu0 %v9033_v16  ;;  %v9040_v62 = vld [vmem:[#allocation8 + $0x50] ss:$8 sps:$4 sm:$0xff]  }
 0x4c7   : > { %v11810_v31 = vpop.eup %9581  ;;  %9591 = vpow2.f32 %v3163_v19  ;;  %v3165_v32 = vmul.f32 1.442695, %v3137_v44  ;;  %v3140_v29 = vsub.f32 %v11692_v11, %v3124_v12  ;;  %v9045_v19 = vld [vmem:[#allocation8 + $0x64] ss:$8 sps:$4 sm:$0xff]   ;;  %v9043_v44 = vld [vmem:[#allocation8 + $0x60] ss:$8 sps:$4 sm:$0xff]  }
 0x4c8   : > { %3185 = vadd.xlane.f32.xlu0 %v11810_v31  ;;  %v3122_v13 = vpop.xlane.xlu0 %3121 }
 0x4c9   : > { %v11813_v3 = vpop.eup %9583  ;;  %9593 = vpow2.f32 %v3165_v32  ;;  %v3139_v63 = vsub.f32 %v11683_v36, %v3122_v13  ;;  %v3171_v36 = vmul.f32 1.442695, %v3140_v29  ;;  %3571 = vmatpush1.bf16.msra.mxu0 %v9031_v43 }
 0x4ca   : > { %3187 = vadd.xlane.f32.xlu1 %v11813_v3  ;;  %v3120_v57 = vpop.xlane.xlu1 %3119  ;;  %3572 = vmatprep.subr.bf16.mxu0 %v9036_v45 }
 0x4cb   : > { %v11817_v56 = vpop.eup %9585  ;;  %v3169_v40 = vmul.f32 1.442695, %v3139_v63  ;;  %v3138_v58 = vsub.f32 %v11695_v49, %v3120_v57 }
 0x4cc   : > { %3189 = vadd.xlane.f32.xlu0 %v11817_v56 }
 0x4cd   : > { %v11822_v10 = vpop.eup %9587  ;;  %9595 = vpow2.f32 %v3169_v40  ;;  %v3167_v52 = vmul.f32 1.442695, %v3138_v58  ;;  %3573 = vmatpush1.bf16.msra.mxu0 %v9034_v9 }
 0x4ce   : > { %3191 = vadd.xlane.f32.xlu1 %v11822_v10  ;;  %3574 = vmatprep.subr.bf16.mxu0 %v9039_v17 }
 0x4cf   : > { %v11825_v37 = vpop.eup %9589  ;;  %9597 = vpow2.f32 %v3167_v52 }
 0x4d0   : > { %3193 = vadd.xlane.f32.xlu0 %v11825_v37  ;;  %9599 = vpow2.f32 %v3171_v36 }
 0x4d1   : > { %v11828_v28 = vpop.eup %9591  ;;  %3575 = vmatpush1.bf16.msra.mxu0 %v9037_v42 }
 0x4d2   : > { %3195 = vadd.xlane.f32.xlu1 %v11828_v28  ;;  %3576 = vmatprep.subr.bf16.mxu0 %v9042_v50 }
 0x4d3   : > { %v11831_v11 = vpop.eup %9593 }
 0x4d4   : > { %3197 = vadd.xlane.f32.xlu0 %v11831_v11 }
 0x4d5   : > { %3577 = vmatpush1.bf16.msra.mxu0 %v9040_v62 }
 0x4d6   : > { %3578 = vmatprep.subr.bf16.mxu0 %v9045_v19 }
 0x4d7   : > { %v11834_v49 = vpop.eup %9595 }
 0x4d8   : > { %3201 = vadd.xlane.f32.xlu0 %v11834_v49 }
 0x4d9   : > { %v11837_v54 = vpop.eup %9597  ;;  %3579 = vmatpush1.bf16.msra.mxu0 %v9043_v44 }
 0x4da   : > { %3199 = vadd.xlane.f32.xlu1 %v11837_v54  ;;  %v11840_v38 = vpop.eup %9599 }
 0x4de   : > { %3203 = vadd.xlane.f32.xlu1 %v11840_v38 }
 0x529   : > { %v2812_v12 = vpop.xlane.xlu0 %2811 }
 0x52a   : > { %9601 = vrcp.f32 %v2812_v12 }
 0x52b   : > { %v2814_v32 = vpop.xlane.xlu1 %2813 }
 0x52c   : > { %9603 = vrcp.f32 %v2814_v32 }
 0x52d   : > { %v2816_v13 = vpop.xlane.xlu0 %2815 }
 0x52e   : > { %9605 = vrcp.f32 %v2816_v13 }
 0x52f   : > { %v2818_v63 = vpop.xlane.xlu1 %2817 }
 0x530   : > { %9607 = vrcp.f32 %v2818_v63 }
 0x531   : > { %v2820_v57 = vpop.xlane.xlu0 %2819 }
 0x532   : > { %9609 = vrcp.f32 %v2820_v57 }
 0x533   : > { %v2822_v29 = vpop.xlane.xlu1 %2821 }
 0x534   : > { %v9602_v40 = vpop.eup %9601  ;;  %9611 = vrcp.f32 %v2822_v29 }
 0x535   : > { %v2824_v58 = vpop.xlane.xlu0 %2823  ;;  %v2859_v25 = vmul.f32 %v9602_v40, %v11722_v53 }
 0x536   : > { %v9604_v52 = vpop.eup %9603  ;;  %9613 = vrcp.f32 %v2824_v58 }
 0x537   : > { %v2826_v36 = vpop.xlane.xlu1 %2825  ;;  %v2860_v5 = vmul.f32 %v9604_v52, %v11726_v46 }
 0x538   : > { %v9606_v22 = vpop.eup %9605  ;;  %9615 = vrcp.f32 %v2826_v36 }
 0x539   : > { %v2828_v20 = vpop.xlane.xlu0 %2827  ;;  %v2875_v16 = vpack.c.bf16 %v2860_v5, %v2859_v25  ;;  %v2861_v45 = vmul.f32 %v9606_v22, %v11730_v26 }
 0x53a   : > { %v9608_v43 = vpop.eup %9607  ;;  %9617 = vrcp.f32 %v2828_v20 }
 0x53b   : > { %v2862_v9 = vmul.f32 %v9608_v43, %v11734_v33  ;;  %8492 = vmatprep.mubr.bf16.mxu1 %v2875_v16  ;;  %v2830_v17 = vpop.xlane.xlu1 %2829 }
 0x53c   : > { %v9610_v42 = vpop.eup %9609  ;;  %9619 = vrcp.f32 %v2830_v17 }
 0x53d   : > { %v2832_v50 = vpop.xlane.xlu0 %2831  ;;  %v2876_v62 = vpack.c.bf16 %v2862_v9, %v2861_v45  ;;  %v2863_v46 = vmul.f32 %v9610_v42, %v11738_v21 }
 0x53e   : > { %v9612_v19 = vpop.eup %9611  ;;  %9621 = vrcp.f32 %v2832_v50 }
 0x53f   : > { %8493 = vmatmul.mubr.bf16.vlgmr.msra.gmra.mrb[48].mxu1 %v2876_v62  ;;  %v2834_v53 = vpop.xlane.xlu1 %2833  ;;  %v2864_v44 = vmul.f32 %v9612_v19, %v11742_v8 }
 0x540   : > { %v9614_v12 = vpop.eup %9613  ;;  %8541 = vmatpush3.bf16.msra.mxu1 %v11560_v35  ;;  %9623 = vrcp.f32 %v2834_v53 }
 0x541   : > { %8542 = vmatprep.subr.bf16.mxu1 %v11571_v27  ;;  %v2836_v26 = vpop.xlane.xlu0 %2835  ;;  %v2877_v33 = vpack.c.bf16 %v2864_v44, %v2863_v46  ;;  %v2865_v63 = vmul.f32 %v9614_v12, %v11746_v30 }
 0x542   : > { %v9616_v32 = vpop.eup %9615  ;;  %9625 = vrcp.f32 %v2836_v26 }
 0x543   : > { %8496 = vmatprep.mubr.bf16.mxu1 %v2877_v33  ;;  %v2838_v13 = vpop.xlane.xlu1 %2837  ;;  %v2866_v57 = vmul.f32 %v9616_v32, %v11750_v0 }
 0x544   : > { %v9618_v29 = vpop.eup %9617  ;;  %8543 = vmatpush3.bf16.msra.mxu1 %v11571_v27  ;;  %9627 = vrcp.f32 %v2838_v13 }
 0x545   : > { %8544 = vmatprep.subr.bf16.mxu1 %v11585_v61  ;;  %v2840_v35 = vpop.xlane.xlu0 %2839  ;;  %v2878_v21 = vpack.c.bf16 %v2866_v57, %v2865_v63  ;;  %v2867_v58 = vmul.f32 %v9618_v29, %v11754_v18 }
 0x546   : > { %v9620_v8 = vpop.eup %9619  ;;  %9629 = vrcp.f32 %v2840_v35 }
 0x547   : > { %8497 = vmatmul.mubr.bf16.gmra.mrb[52].mxu1 %v2878_v21  ;;  %v2842_v40 = vpop.xlane.xlu1 %2841  ;;  %v2868_v52 = vmul.f32 %v9620_v8, %v11758_v15 }
 0x548   : > { %v9622_v36 = vpop.eup %9621  ;;  %8545 = vmatpush3.bf16.msra.mxu1 %v11585_v61  ;;  %9631 = vrcp.f32 %v2842_v40 }
 0x549   : > { %8546 = vmatprep.subr.bf16.mxu1 %v11599_v34  ;;  %v3174_v27 = vpop.xlane.xlu0 %3173  ;;  %v2879_v30 = vpack.c.bf16 %v2868_v52, %v2867_v58  ;;  %v2869_v5 = vmul.f32 %v9622_v36, %v11762_v51 }
 0x54a   : > { %v9624_v0 = vpop.eup %9623  ;;  %9633 = vrcp.f32 %v3174_v27 }
 0x54b   : > { %8500 = vmatprep.mubr.bf16.mxu1 %v2879_v30  ;;  %v3176_v25 = vpop.xlane.xlu1 %3175  ;;  %v2870_v22 = vmul.f32 %v9624_v0, %v11766_v39 }
 0x54c   : > { %v9626_v20 = vpop.eup %9625  ;;  %8547 = vmatpush3.bf16.msra.mxu1 %v11599_v34  ;;  %9635 = vrcp.f32 %v3176_v25 }
 0x54d   : > { %8548 = vmatprep.subr.bf16.mxu1 %v11610_v6  ;;  %v3178_v61 = vpop.xlane.xlu0 %3177  ;;  %v2880_v18 = vpack.c.bf16 %v2870_v22, %v2869_v5  ;;  %v2871_v43 = vmul.f32 %v9626_v20, %v11770_v59 }
 0x54e   : > { %v9628_v15 = vpop.eup %9627  ;;  %9637 = vrcp.f32 %v3178_v61 }
 0x54f   : > { %8501 = vmatmul.mubr.bf16.gmra.mrb[56].mxu1 %v2880_v18  ;;  %v3180_v16 = vpop.xlane.xlu1 %3179  ;;  %v2872_v45 = vmul.f32 %v9628_v15, %v11774_v47 }
 0x550   : > { %v9630_v9 = vpop.eup %9629  ;;  %8549 = vmatpush3.bf16.msra.mxu1 %v11610_v6  ;;  %9639 = vrcp.f32 %v3180_v16 }
 0x551   : > { %8550 = vmatprep.subr.bf16.mxu1 %v11612_v55  ;;  %v3182_v34 = vpop.xlane.xlu0 %3181  ;;  %v2881_v51 = vpack.c.bf16 %v2872_v45, %v2871_v43  ;;  %v2873_v42 = vmul.f32 %v9630_v9, %v11778_v7  ;;  %v9046_v45 = vld [vmem:[#allocation8 + $0x70] ss:$8 sps:$4 sm:$0xff]   ;;  %v9051_v9 = vld [vmem:[#allocation8 + $0x84] ss:$8 sps:$4 sm:$0xff]  }
 0x552   : > { %v9632_v39 = vpop.eup %9631  ;;  %9641 = vrcp.f32 %v3182_v34  ;;  %v9049_v34 = vld [vmem:[#allocation8 + $0x80] ss:$8 sps:$4 sm:$0xff]  }
 0x553   : > { %8504 = vmatprep.mubr.bf16.mxu1 %v2881_v51  ;;  %v3184_v17 = vpop.xlane.xlu1 %3183  ;;  %v2874_v50 = vmul.f32 %v9632_v39, %v11782_v23  ;;  %v9057_v51 = vld [vmem:[#allocation8 + $0xa4] ss:$8 sps:$4 sm:$0xff]   ;;  %v9055_v39 = vld [vmem:[#allocation8 + $0xa0] ss:$8 sps:$4 sm:$0xff]  }
 0x554   : > { %v9634_v62 = vpop.eup %9633  ;;  %8551 = vmatpush3.bf16.msra.mxu1 %v11612_v55  ;;  %9643 = vrcp.f32 %v3184_v17  ;;  %v9063_v17 = vld [vmem:[#allocation8 + $0xc4] ss:$8 sps:$4 sm:$0xff]  }
 0x555   : > { %8552 = vmatprep.subr.bf16.mxu1 %v11614_v24  ;;  %v3186_v6 = vpop.xlane.xlu0 %3185  ;;  %v2882_v59 = vpack.c.bf16 %v2874_v50, %v2873_v42  ;;  %v3221_v53 = vmul.f32 %v9634_v62, %v11786_v48  ;;  %v9061_v42 = vld [vmem:[#allocation8 + $0xc0] ss:$8 sps:$4 sm:$0xff]   ;;  %v9066_v50 = vld [vmem:[#allocation8 + $0xd4] ss:$8 sps:$4 sm:$0xff]   ;;  %v9064_v62 = vld [vmem:[#allocation8 + $0xd0] ss:$8 sps:$4 sm:$0xff]  }
 0x556   : > { %v9636_v47 = vpop.eup %9635  ;;  %9645 = vrcp.f32 %v3186_v6  ;;  %v9069_v6 = vld [vmem:[#allocation8 + $0xe4] ss:$8 sps:$4 sm:$0xff]  }
 0x557   : > { %8505 = vmatmul.mubr.bf16.gmra.mrb[60].mxu1 %v2882_v59  ;;  %v3188_v19 = vpop.xlane.xlu1 %3187  ;;  %v3222_v46 = vmul.f32 %v9636_v47, %v11790_v1  ;;  %v9067_v59 = vld [vmem:[#allocation8 + $0xe0] ss:$8 sps:$4 sm:$0xff]   ;;  %v9072_v47 = vld [vmem:[#allocation8 + $0xf4] ss:$8 sps:$4 sm:$0xff]  }
 0x558   : > { %v9638_v44 = vpop.eup %9637  ;;  %8553 = vmatpush3.bf16.msra.mxu1 %v11614_v24  ;;  %9647 = vrcp.f32 %v3188_v19  ;;  %v9070_v19 = vld [vmem:[#allocation8 + $0xf0] ss:$8 sps:$4 sm:$0xff]  }
 0x559   : > { %8554 = vmatprep.subr.bf16.mxu1 %v11616_v60  ;;  %v3190_v55 = vpop.xlane.xlu0 %3189  ;;  %v3237_v7 = vpack.c.bf16 %v3222_v46, %v3221_v53  ;;  %v3223_v12 = vmul.f32 %v9638_v44, %v11794_v41 }
 0x55a   : > { %v9640_v23 = vpop.eup %9639  ;;  %9649 = vrcp.f32 %v3190_v55 }
 0x55b   : > { %v3224_v26 = vmul.f32 %v9640_v23, %v11798_v14  ;;  %8556 = vmatprep.mubr.bf16.mxu1 %v3237_v7  ;;  %v3192_v33 = vpop.xlane.xlu1 %3191 }
 0x55c   : > { %v9642_v32 = vpop.eup %9641  ;;  %9651 = vrcp.f32 %v3192_v33  ;;  %8555 = vmatpush3.bf16.msra.mxu1 %v11616_v60 }
 0x55d   : > { %v3194_v48 = vpop.xlane.xlu0 %3193  ;;  %v3238_v1 = vpack.c.bf16 %v3224_v26, %v3223_v12  ;;  %v3225_v63 = vmul.f32 %v9642_v32, %v11802_v2 }
 0x55e   : > { %v9644_v24 = vpop.eup %9643  ;;  %9653 = vrcp.f32 %v3194_v48 }
 0x55f   : > { %v3196_v13 = vpop.xlane.xlu1 %3195  ;;  %8557 = vmatmul.mubr.bf16.vlgmr.msra.gmra.mrb[64].mxu1 %v3238_v1  ;;  %v3226_v57 = vmul.f32 %v9644_v24, %v11806_v4 }
 0x560   : > { %v9646_v29 = vpop.eup %9645  ;;  %9655 = vrcp.f32 %v3196_v13 }
 0x561   : > { %v3198_v41 = vpop.xlane.xlu0 %3197  ;;  %v3239_v14 = vpack.c.bf16 %v3226_v57, %v3225_v63  ;;  %v3227_v21 = vmul.f32 %v9646_v29, %v11810_v31 }
 0x562   : > { %v9648_v35 = vpop.eup %9647  ;;  %9657 = vrcp.f32 %v3198_v41 }
 0x563   : > { %8560 = vmatprep.mubr.bf16.mxu1 %v3239_v14  ;;  %v3228_v60 = vmul.f32 %v9648_v35, %v11813_v3 }
 0x564   : > { %v9650_v8 = vpop.eup %9649 }
 0x565   : > { %v3240_v40 = vpack.c.bf16 %v3228_v60, %v3227_v21  ;;  %v3202_v52 = vpop.xlane.xlu0 %3201  ;;  %v3229_v2 = vmul.f32 %v9650_v8, %v11817_v56 }
 0x566   : > { %v9652_v58 = vpop.eup %9651 }
 0x567   : > { %v3200_v36 = vpop.xlane.xlu1 %3199  ;;  %8561 = vmatmul.mubr.bf16.gmra.mrb[68].mxu1 %v3240_v40  ;;  %v3230_v4 = vmul.f32 %v9652_v58, %v11822_v10 }
 0x568   : > { %v9654_v27 = vpop.eup %9653  ;;  %9659 = vrcp.f32 %v3200_v36 }
 0x569   : > { %v3241_v30 = vpack.c.bf16 %v3230_v4, %v3229_v2  ;;  %9661 = vrcp.f32 %v3202_v52  ;;  %v3231_v31 = vmul.f32 %v9654_v27, %v11825_v37 }
 0x56a   : > { %v9656_v0 = vpop.eup %9655 }
 0x56b   : > { %v3204_v25 = vpop.xlane.xlu1 %3203  ;;  %8564 = vmatprep.mubr.bf16.mxu1 %v3241_v30  ;;  %v3232_v3 = vmul.f32 %v9656_v0, %v11828_v28  ;;  %v9048_v28 = vld [vmem:[#allocation8 + $0x74] ss:$8 sps:$4 sm:$0xff]  }
 0x56c   : > { %9663 = vrcp.f32 %v3204_v25  ;;  %v9658_v22 = vpop.eup %9657  ;;  %3580 = vmatprep.subr.bf16.mxu0 %v9048_v28 }
 0x56d   : > { %v3242_v5 = vpack.c.bf16 %v3232_v3, %v3231_v31  ;;  %v3233_v56 = vmul.f32 %v9658_v22, %v11831_v11  ;;  %3581 = vmatpush1.bf16.msra.mxu0 %v9046_v45  ;;  %v9054_v11 = vld [vmem:[#allocation8 + $0x94] ss:$8 sps:$4 sm:$0xff]  }
 0x56e   : > { %3582 = vmatprep.subr.bf16.mxu0 %v9051_v9  ;;  %v9073_v9 = vld [vmem:[#allocation12] ss:$48 sps:$4 sm:$0xff]  }
 0x56f   : > { %8565 = vmatmul.mubr.bf16.gmra.mrb[72].mxu1 %v3242_v5 }
 0x571   : > { %3583 = vmatpush1.bf16.msra.mxu0 %v9049_v34  ;;  %v9075_v34 = vld [vmem:[#allocation12 + $0x4] ss:$48 sps:$4 sm:$0xff]  }
 0x572   : > { %v9660_v20 = vpop.eup %9659  ;;  %3584 = vmatprep.subr.bf16.mxu0 %v9054_v11  ;;  %v9076_v11 = vld [vmem:[#allocation12 + $0x8] ss:$48 sps:$4 sm:$0xff]   ;;  %5147 = vmatprep.subr.bf16.mxu1 %v9075_v34  ;;  %v10119_v34 = vld [vmem:[%s10785_s2 + $0x30] sm:$0xff] }
 0x573   : > { %v3234_v10 = vmul.f32 %v9660_v20, %v11837_v54  ;;  %v9662_v61 = vpop.eup %9661  ;;  %v9052_v54 = vld [vmem:[#allocation8 + $0x90] ss:$8 sps:$4 sm:$0xff]   ;;  %5148 = vmatpush1.bf16.msra.mxu1 %v9073_v9 }
 0x574   : > { %v3235_v16 = vmul.f32 %v9662_v61, %v11834_v49  ;;  %v9060_v49 = vld [vmem:[#allocation8 + $0xb4] ss:$8 sps:$4 sm:$0xff]  }
 0x575   : > { %v3243_v18 = vpack.c.bf16 %v3234_v10, %v3233_v56  ;;  %3585 = vmatpush1.bf16.msra.mxu0 %v9052_v54  ;;  %v9078_v54 = vld [vmem:[#allocation12 + $0xc] ss:$48 sps:$4 sm:$0xff]  }
 0x576   : > { %v9664_v15 = vpop.eup %9663  ;;  %3586 = vmatprep.subr.bf16.mxu0 %v9057_v51  ;;  %v9081_v51 = vld [vmem:[#allocation12 + $0x64] ss:$48 sps:$4 sm:$0xff]  }
 0x577   : > { %8568 = vmatprep.mubr.bf16.mxu1 %v3243_v18  ;;  %v3236_v43 = vmul.f32 %v9664_v15, %v11840_v38  ;;  %v9058_v38 = vld [vmem:[#allocation8 + $0xb0] ss:$8 sps:$4 sm:$0xff]   ;;  %5149 = vmatprep.subr.bf16.mxu1 %v9081_v51 }
 0x579   : > { %v3244_v37 = vpack.c.bf16 %v3236_v43, %v3235_v16  ;;  %3587 = vmatpush1.bf16.msra.mxu0 %v9055_v39  ;;  %v9084_v39 = vld [vmem:[#allocation12 + $0x6c] ss:$48 sps:$4 sm:$0xff]  }
 0x57a   : > { %3588 = vmatprep.subr.bf16.mxu0 %v9060_v49  ;;  %v9079_v49 = vld [vmem:[#allocation12 + $0x60] ss:$48 sps:$4 sm:$0xff]  }
 0x57b   : > { %8569 = vmatmul.mubr.bf16.gmra.mrb[76].mxu1 %v3244_v37 }
 0x57c   : > { %5150 = vmatpush1.bf16.msra.mxu1 %v9079_v49 }
 0x57d   : > { %3589 = vmatpush1.bf16.msra.mxu0 %v9058_v38  ;;  %v9082_v38 = vld [vmem:[#allocation12 + $0x68] ss:$48 sps:$4 sm:$0xff]  }
 0x57e   : > { %3590 = vmatprep.subr.bf16.mxu0 %v9063_v17  ;;  %v9087_v17 = vld [vmem:[#allocation12 + $0xc4] ss:$48 sps:$4 sm:$0xff]  }
 0x57f   : > { %5151 = vmatprep.subr.bf16.mxu1 %v9087_v17 }
 0x581   : > { %3591 = vmatpush1.bf16.msra.mxu0 %v9061_v42  ;;  %v9090_v42 = vld [vmem:[#allocation12 + $0xcc] ss:$48 sps:$4 sm:$0xff]  }
 0x582   : > { %3592 = vmatprep.subr.bf16.mxu0 %v9066_v50  ;;  %v9085_v50 = vld [vmem:[#allocation12 + $0xc0] ss:$48 sps:$4 sm:$0xff]  }
 0x583   : > { %5152 = vmatpush1.bf16.msra.mxu1 %v9085_v50 }
 0x585   : > { %3593 = vmatpush1.bf16.msra.mxu0 %v9064_v62  ;;  %v9088_v62 = vld [vmem:[#allocation12 + $0xc8] ss:$48 sps:$4 sm:$0xff]  }
 0x586   : > { %3594 = vmatprep.subr.bf16.mxu0 %v9069_v6  ;;  %v9093_v6 = vld [vmem:[#allocation12 + $0x124] ss:$48 sps:$4 sm:$0xff]  }
 0x587   : > { %5153 = vmatprep.subr.bf16.mxu1 %v9093_v6 }
 0x589   : > { %3595 = vmatpush1.bf16.msra.mxu0 %v9067_v59  ;;  %v9096_v59 = vld [vmem:[#allocation12 + $0x12c] ss:$48 sps:$4 sm:$0xff]  }
 0x58a   : > { %3596 = vmatprep.subr.bf16.mxu0 %v9072_v47  ;;  %v9091_v47 = vld [vmem:[#allocation12 + $0x120] ss:$48 sps:$4 sm:$0xff]  }
 0x58b   : > { %5154 = vmatpush1.bf16.msra.mxu1 %v9091_v47 }
 0x58d   : > { %3597 = vmatpush1.bf16.msra.mxu0 %v9070_v19  ;;  %v9094_v19 = vld [vmem:[#allocation12 + $0x128] ss:$48 sps:$4 sm:$0xff]  }
 0x58e   : > { %5260 = vmatprep.subr.bf16.mxu0 %v9078_v54 }
 0x612   : > { %v8494_v53 = vpop.f32.mrb[48].mxu1 }
 0x613   : > { %v2917_v46 = vpop.f32.mrb[49].mxu1 }
 0x614   : > { %v8495_v44 = vpop.f32.mrb[50].mxu1 }
 0x615   : > { %v2981_v55 = vpack.c.bf16 %v8495_v44, %v8494_v53  ;;  %v2920_v7 = vpop.f32.mrb[51].mxu1  ;;  %v9099_v53 = vld [vmem:[#allocation12 + $0x184] ss:$48 sps:$4 sm:$0xff]   ;;  %v9097_v44 = vld [vmem:[#allocation12 + $0x180] ss:$48 sps:$4 sm:$0xff]  }
 0x616   : > { %v2980_v23 = vpack.c.bf16 %v2920_v7, %v2917_v46  ;;  %v9102_v46 = vld [vmem:[#allocation12 + $0x18c] ss:$48 sps:$4 sm:$0xff]   ;;  %5155 = vmatprep.subr.bf16.mxu1 %v9099_v53  ;;  %v9105_v7 = vld [vmem:[#allocation12 + $0x1e4] ss:$48 sps:$4 sm:$0xff]  }
 0x617   : > { %5156 = vmatpush1.bf16.msra.mxu1 %v9097_v44  ;;  %v10122_v53 = vld [vmem:[%s10785_s2 + $0x48] sm:$0xff] }
 0x618   : > { %5157 = vmatprep.subr.bf16.mxu1 %v9105_v7 }
 0x61a   : > { %v8498_v12 = vpop.f32.mrb[52].mxu1 }
 0x61b   : > { %v2933_v26 = vpop.f32.mrb[53].mxu1 }
 0x61c   : > { %v8499_v33 = vpop.f32.mrb[54].mxu1 }
 0x61d   : > { %v2983_v32 = vpack.c.bf16 %v8499_v33, %v8498_v12  ;;  %v2936_v48 = vpop.f32.mrb[55].mxu1  ;;  %v9103_v12 = vld [vmem:[#allocation12 + $0x1e0] ss:$48 sps:$4 sm:$0xff]   ;;  %v9111_v33 = vld [vmem:[#allocation12 + $0x244] ss:$48 sps:$4 sm:$0xff]  }
 0x61e   : > { %v2982_v1 = vpack.c.bf16 %v2936_v48, %v2933_v26  ;;  %v9106_v26 = vld [vmem:[#allocation12 + $0x1e8] ss:$48 sps:$4 sm:$0xff]   ;;  %5158 = vmatpush1.bf16.msra.mxu1 %v9103_v12  ;;  %v9109_v48 = vld [vmem:[#allocation12 + $0x240] ss:$48 sps:$4 sm:$0xff]  }
 0x61f   : > { %5159 = vmatprep.subr.bf16.mxu1 %v9111_v33 }
 0x622   : > { %v8502_v24 = vpop.f32.mrb[56].mxu1  ;;  %5160 = vmatpush1.bf16.msra.mxu1 %v9109_v48 }
 0x623   : > { %v2949_v13 = vpop.f32.mrb[57].mxu1 }
 0x624   : > { %v8503_v63 = vpop.f32.mrb[58].mxu1 }
 0x625   : > { %v2985_v57 = vpack.c.bf16 %v8503_v63, %v8502_v24  ;;  %v2952_v29 = vpop.f32.mrb[59].mxu1  ;;  %v9117_v24 = vld [vmem:[#allocation12 + $0x2a4] ss:$48 sps:$4 sm:$0xff]   ;;  %v9115_v63 = vld [vmem:[#allocation12 + $0x2a0] ss:$48 sps:$4 sm:$0xff]  }
 0x626   : > { %v2984_v41 = vpack.c.bf16 %v2952_v29, %v2949_v13  ;;  %v9120_v13 = vld [vmem:[#allocation12 + $0x2ac] ss:$48 sps:$4 sm:$0xff]   ;;  %5161 = vmatprep.subr.bf16.mxu1 %v9117_v24  ;;  %v9123_v29 = vld [vmem:[#allocation12 + $0x304] ss:$48 sps:$4 sm:$0xff]  }
 0x627   : > { %5162 = vmatpush1.bf16.msra.mxu1 %v9115_v63  ;;  %v9138_v24 = vld [vmem:[#allocation12 + $0x3cc] ss:$48 sps:$4 sm:$0xff]  }
 0x628   : > { %5163 = vmatprep.subr.bf16.mxu1 %v9123_v29  ;;  %v9136_v29 = vld [vmem:[#allocation12 + $0x3c8] ss:$48 sps:$4 sm:$0xff]  }
 0x62a   : > { %v8506_v14 = vpop.f32.mrb[60].mxu1 }
 0x62b   : > { %v2965_v35 = vpop.f32.mrb[61].mxu1 }
 0x62c   : > { %v8507_v21 = vpop.f32.mrb[62].mxu1 }
 0x62d   : > { %v2987_v60 = vpack.c.bf16 %v8507_v21, %v8506_v14  ;;  %v2968_v8 = vpop.f32.mrb[63].mxu1  ;;  %v9121_v14 = vld [vmem:[#allocation12 + $0x300] ss:$48 sps:$4 sm:$0xff]   ;;  %v9129_v21 = vld [vmem:[#allocation12 + $0x364] ss:$48 sps:$4 sm:$0xff]  }
 0x62e   : > { %v2986_v40 = vpack.c.bf16 %v2968_v8, %v2965_v35  ;;  %v9124_v35 = vld [vmem:[#allocation12 + $0x308] ss:$48 sps:$4 sm:$0xff]   ;;  %5164 = vmatpush1.bf16.msra.mxu1 %v9121_v14  ;;  %v9127_v8 = vld [vmem:[#allocation12 + $0x360] ss:$48 sps:$4 sm:$0xff]  }
 0x62f   : > { %5165 = vmatprep.subr.bf16.mxu1 %v9129_v21 }
 0x632   : > { %v8558_v58 = vpop.f32.mrb[64].mxu1  ;;  %5166 = vmatpush1.bf16.msra.mxu1 %v9127_v8  ;;  %v9141_v8 = vld [vmem:[#allocation12 + $0x424] ss:$48 sps:$4 sm:$0xff]  }
 0x633   : > { %v3279_v52 = vpop.f32.mrb[65].mxu1 }
 0x634   : > { %v8559_v36 = vpop.f32.mrb[66].mxu1 }
 0x635   : > { %v3343_v2 = vpack.c.bf16 %v8559_v36, %v8558_v58  ;;  %v3282_v4 = vpop.f32.mrb[67].mxu1 }
 0x636   : > { %v3342_v27 = vpack.c.bf16 %v3282_v4, %v3279_v52  ;;  %v10113_v52 = vld [vmem:[%s10785_s2] sm:$0xff]  ;;  %v10114_v4 = vld [vmem:[%s10785_s2 + $0x8] sm:$0xff] }
 0x638   : > { %3598 = vmatprep.mubr.bf16.mxu0 %v3342_v27 }
 0x639   : > { %3599 = vmatmul.mubr.bf16.vlgmr.msra.gmra.mrb[144].mxu0 %v2980_v23  ;;  %v9108_v23 = vld [vmem:[#allocation12 + $0x1ec] ss:$48 sps:$4 sm:$0xff]  }
 0x63a   : > { %v8562_v30 = vpop.f32.mrb[68].mxu1  ;;  %3608 = vmatprep.mubr.bf16.mxu0 %v3343_v2  ;;  %5261 = vmatpush1.bf16.msra.mxu0 %v9076_v11 }
 0x63b   : > { %v3295_v0 = vpop.f32.mrb[69].mxu1  ;;  %5262 = vmatprep.subr.bf16.mxu0 %v9084_v39  ;;  %v10120_v39 = vld [vmem:[%s10785_s2 + $0x38] sm:$0xff] }
 0x63c   : > { %v8563_v25 = vpop.f32.mrb[70].mxu1 }
 0x63d   : > { %v3345_v31 = vpack.c.bf16 %v8563_v25, %v8562_v30  ;;  %v3298_v3 = vpop.f32.mrb[71].mxu1 }
 0x63e   : > { %v3344_v5 = vpack.c.bf16 %v3298_v3, %v3295_v0  ;;  %5263 = vmatpush1.bf16.msra.mxu0 %v9082_v38  ;;  %v10115_v0 = vld [vmem:[%s10785_s2 + $0x10] sm:$0xff] }
 0x63f   : > { %5264 = vmatprep.subr.bf16.mxu0 %v9090_v42 }
 0x641   : > { %3609 = vmatmul.mubr.bf16.gmra.mrb[148].mxu0 %v2981_v55  ;;  %v9100_v55 = vld [vmem:[#allocation12 + $0x188] ss:$48 sps:$4 sm:$0xff]  }
 0x642   : > { %v8566_v22 = vpop.f32.mrb[72].mxu1  ;;  %3618 = vmatprep.mubr.bf16.mxu0 %v3344_v5  ;;  %5265 = vmatpush1.bf16.msra.mxu0 %v9088_v62  ;;  %v10116_v5 = vld [vmem:[%s10785_s2 + $0x18] sm:$0xff] }
 0x643   : > { %v3311_v20 = vpop.f32.mrb[73].mxu1  ;;  %5266 = vmatprep.subr.bf16.mxu0 %v9096_v59  ;;  %v10121_v59 = vld [vmem:[%s10785_s2 + $0x40] sm:$0xff] }
 0x644   : > { %v8567_v56 = vpop.f32.mrb[74].mxu1 }
 0x645   : > { %v3347_v10 = vpack.c.bf16 %v8567_v56, %v8566_v22  ;;  %v3314_v61 = vpop.f32.mrb[75].mxu1 }
 0x646   : > { %v3346_v18 = vpack.c.bf16 %v3314_v61, %v3311_v20  ;;  %5267 = vmatpush1.bf16.msra.mxu0 %v9094_v19 }
 0x647   : > { %5268 = vmatprep.subr.bf16.mxu0 %v9102_v46 }
 0x649   : > { %3619 = vmatmul.mubr.bf16.gmra.mrb[152].mxu0 %v2982_v1  ;;  %v9112_v1 = vld [vmem:[#allocation12 + $0x248] ss:$48 sps:$4 sm:$0xff]  }
 0x64a   : > { %3628 = vmatprep.mubr.bf16.mxu0 %v3345_v31  ;;  %5269 = vmatpush1.bf16.msra.mxu0 %v9100_v55  ;;  %v10123_v55 = vld [vmem:[%s10785_s2 + $0x50] sm:$0xff] }
 0x64b   : > { %5270 = vmatprep.subr.bf16.mxu0 %v9108_v23 }
 0x64e   : > { %v8570_v15 = vpop.f32.mrb[76].mxu1  ;;  %5271 = vmatpush1.bf16.msra.mxu0 %v9106_v26  ;;  %v10124_v26 = vld [vmem:[%s10785_s2 + $0x58] sm:$0xff] }
 0x64f   : > { %v3327_v16 = vpop.f32.mrb[77].mxu1 }
 0x650   : > { %v8571_v43 = vpop.f32.mrb[78].mxu1 }
 0x651   : > { %v3349_v37 = vpack.c.bf16 %v8571_v43, %v8570_v15  ;;  %v3330_v28 = vpop.f32.mrb[79].mxu1  ;;  %3629 = vmatmul.mubr.bf16.gmra.mrb[156].mxu0 %v2983_v32  ;;  %v9114_v32 = vld [vmem:[#allocation12 + $0x24c] ss:$48 sps:$4 sm:$0xff]  }
 0x652   : > { %v3348_v45 = vpack.c.bf16 %v3330_v28, %v3327_v16  ;;  %3638 = vmatprep.mubr.bf16.mxu0 %v3346_v18  ;;  %5272 = vmatprep.subr.bf16.mxu0 %v9114_v32  ;;  %v10117_v16 = vld [vmem:[%s10785_s2 + $0x20] sm:$0xff]  ;;  %v10118_v28 = vld [vmem:[%s10785_s2 + $0x28] sm:$0xff] }
 0x653   : > { %5273 = vmatpush1.bf16.msra.mxu0 %v9112_v1  ;;  %v9135_v1 = vld [vmem:[#allocation12 + $0x3c4] ss:$48 sps:$4 sm:$0xff]  }
 0x654   : > { %5274 = vmatprep.subr.bf16.mxu0 %v9120_v13  ;;  %5167 = vmatprep.subr.bf16.mxu1 %v9135_v1  ;;  %v9159_v1 = vld [vmem:[#allocation12 + $0x544] ss:$48 sps:$4 sm:$0xff]  }
 0x659   : > { %3639 = vmatmul.mubr.bf16.gmra.mrb[160].mxu0 %v2984_v41  ;;  %v9126_v41 = vld [vmem:[#allocation12 + $0x30c] ss:$48 sps:$4 sm:$0xff]  }
 0x65a   : > { %3648 = vmatprep.mubr.bf16.mxu0 %v3347_v10 }
 0x661   : > { %3649 = vmatmul.mubr.bf16.gmra.mrb[164].mxu0 %v2985_v57  ;;  %v9118_v57 = vld [vmem:[#allocation12 + $0x2a8] ss:$48 sps:$4 sm:$0xff]  }
 0x662   : > { %3658 = vmatprep.mubr.bf16.mxu0 %v3348_v45  ;;  %5275 = vmatpush1.bf16.msra.mxu0 %v9118_v57  ;;  %v9133_v57 = vld [vmem:[#allocation12 + $0x3c0] ss:$48 sps:$4 sm:$0xff]  }
 0x663   : > { %5276 = vmatprep.subr.bf16.mxu0 %v9126_v41  ;;  %5168 = vmatpush1.bf16.msra.mxu1 %v9133_v57  ;;  %v9157_v57 = vld [vmem:[#allocation12 + $0x540] ss:$48 sps:$4 sm:$0xff]  }
 0x664   : > { %5169 = vmatprep.subr.bf16.mxu1 %v9141_v8 }
 0x666   : > { %5277 = vmatpush1.bf16.msra.mxu0 %v9124_v35  ;;  %v10125_v35 = vld [vmem:[%s10785_s2 + $0x60] sm:$0xff] }
 0x669   : > { %3659 = vmatmul.mubr.bf16.gmra.mrb[168].mxu0 %v2986_v40  ;;  %v9130_v40 = vld [vmem:[#allocation12 + $0x368] ss:$48 sps:$4 sm:$0xff]  }
 0x66a   : > { %3668 = vmatprep.mubr.bf16.mxu0 %v3349_v37 }
 0x671   : > { %3669 = vmatmul.mubr.bf16.gmra.mrb[172].mxu0 %v2987_v60  ;;  %v9132_v60 = vld [vmem:[#allocation12 + $0x36c] ss:$48 sps:$4 sm:$0xff]  }
 0x672   : > { %5278 = vmatprep.subr.bf16.mxu0 %v9132_v60 }
 0x673   : > { %5279 = vmatpush1.bf16.msra.mxu0 %v9130_v40  ;;  %v9144_v40 = vld [vmem:[#allocation12 + $0x42c] ss:$48 sps:$4 sm:$0xff]  }
 0x674   : > { %5280 = vmatprep.subr.bf16.mxu0 %v9138_v24  ;;  %v9162_v24 = vld [vmem:[#allocation12 + $0x54c] ss:$48 sps:$4 sm:$0xff]  }
 0x677   : > { %5281 = vmatpush1.bf16.msra.mxu0 %v9136_v29  ;;  %v9160_v29 = vld [vmem:[#allocation12 + $0x548] ss:$48 sps:$4 sm:$0xff]  }
 0x678   : > { %5282 = vmatprep.subr.bf16.mxu0 %v9144_v40  ;;  %v9165_v40 = vld [vmem:[#allocation12 + $0x5a4] ss:$48 sps:$4 sm:$0xff]  }
 0x70c   : > { %v3600_v58 = vpop.f32.mrb[144].mxu0 }
 0x70d   : > { %v11891_v36 = vadd.f32 %v10113_v52, %v3600_v58  ;;  %v3602_v2 = vpop.f32.mrb[145].mxu0  ;;  %v10126_v58 = vld [vmem:[%s10785_s2 + $0x68] sm:$0xff] }
 0x70e   : > { %v11894_v27 = vadd.f32 %v10114_v4, %v3602_v2  ;;  %v3604_v30 = vpop.f32.mrb[146].mxu0  ;;  %v9139_v4 = vld [vmem:[#allocation12 + $0x420] ss:$48 sps:$4 sm:$0xff]  }
 0x70f   : > { %14242 = vst [vmem:[#allocation24_spill] sm:$0xff] %v11891_v36  ;;  %v11897_v25 = vadd.f32 %v10115_v0, %v3604_v30  ;;  %v3606_v31 = vpop.f32.mrb[147].mxu0  ;;  %v3712_v3 = vmul.f32 %v11891_v36, %v11891_v36  ;;  %v9142_v30 = vld [vmem:[#allocation12 + $0x428] ss:$48 sps:$4 sm:$0xff]   ;;  %v10127_v0 = vld [vmem:[%s10785_s2 + $0x70] sm:$0xff]  ;;  %5170 = vmatpush1.bf16.msra.mxu1 %v9139_v4 }
 0x710   : > { %14243 = vst [vmem:[#allocation49_spill] sm:$0xff] %v11894_v27  ;;  %v11902_v22 = vadd.f32 %v10116_v5, %v3606_v31  ;;  %v3713_v20 = vmul.f32 %v11894_v27, %v11894_v27  ;;  %5283 = vmatpush1.bf16.msra.mxu0 %v9142_v30 }
 0x711   : > { %14244 = vst [vmem:[#allocation48_spill] sm:$0xff] %v11897_v25  ;;  %v3714_v56 = vmul.f32 %v11897_v25, %v11897_v25 }
 0x712   : > { %14245 = vst [vmem:[#allocation25_spill] sm:$0xff] %v11902_v22  ;;  %v3744_v10 = vadd.f32 %v3713_v20, %v3712_v3  ;;  %v3715_v61 = vmul.f32 %v11902_v22, %v11902_v22  ;;  %v10128_v20 = vld [vmem:[%s10785_s2 + $0x78] sm:$0xff] }
 0x714   : > { %3745 = vadd.xlane.f32.xlu0 %v3744_v10  ;;  %v3610_v18 = vpop.f32.mrb[148].mxu0  ;;  %v3747_v15 = vadd.f32 %v3715_v61, %v3714_v56 }
 0x715   : > { %v11911_v43 = vadd.f32 %v10117_v16, %v3610_v18  ;;  %v3612_v37 = vpop.f32.mrb[149].mxu0  ;;  %v9147_v18 = vld [vmem:[#allocation12 + $0x484] ss:$48 sps:$4 sm:$0xff]  }
 0x716   : > { %v11914_v45 = vadd.f32 %v10118_v28, %v3612_v37  ;;  %3748 = vadd.xlane.f32.xlu1 %v3747_v15  ;;  %v3614_v9 = vpop.f32.mrb[150].mxu0  ;;  %v9150_v15 = vld [vmem:[#allocation12 + $0x48c] ss:$48 sps:$4 sm:$0xff]   ;;  %v9145_v28 = vld [vmem:[#allocation12 + $0x480] ss:$48 sps:$4 sm:$0xff]   ;;  %5171 = vmatprep.subr.bf16.mxu1 %v9147_v18 }
 0x717   : > { %14246 = vst [vmem:[#allocation54_spill] sm:$0xff] %v11911_v43  ;;  %v11917_v11 = vadd.f32 %v10119_v34, %v3614_v9  ;;  %v3616_v54 = vpop.f32.mrb[151].mxu0  ;;  %v3716_v51 = vmul.f32 %v11911_v43, %v11911_v43  ;;  %v9148_v9 = vld [vmem:[#allocation12 + $0x488] ss:$48 sps:$4 sm:$0xff]   ;;  %5284 = vmatprep.subr.bf16.mxu0 %v9150_v15  ;;  %5172 = vmatpush1.bf16.msra.mxu1 %v9145_v28  ;;  %v9171_v28 = vld [vmem:[#allocation12 + $0x14] ss:$48 sps:$4 sm:$0xff]  }
 0x718   : > { %14247 = vst [vmem:[#allocation26_spill] sm:$0xff] %v11914_v45  ;;  %v11922_v49 = vadd.f32 %v10120_v39, %v3616_v54  ;;  %v3717_v38 = vmul.f32 %v11914_v45, %v11914_v45  ;;  %5285 = vmatpush1.bf16.msra.mxu0 %v9148_v9  ;;  %v10136_v18 = vld [vmem:[%s10785_s2 + $0xb8] sm:$0xff] }
 0x719   : > { %14248 = vst [vmem:[#allocation27_spill] sm:$0xff] %v11917_v11  ;;  %v3718_v17 = vmul.f32 %v11917_v11, %v11917_v11  ;;  %v9174_v9 = vld [vmem:[#allocation12 + $0x1c] ss:$48 sps:$4 sm:$0xff]  }
 0x71a   : > { %14249 = vst [vmem:[#allocation55_spill] sm:$0xff] %v11922_v49  ;;  %v3750_v42 = vadd.f32 %v3717_v38, %v3716_v51  ;;  %v3719_v50 = vmul.f32 %v11922_v49, %v11922_v49  ;;  %v10129_v51 = vld [vmem:[%s10785_s2 + $0x80] sm:$0xff] }
 0x71c   : > { %3751 = vadd.xlane.f32.xlu0 %v3750_v42  ;;  %v3620_v62 = vpop.f32.mrb[152].mxu0  ;;  %v3753_v6 = vadd.f32 %v3719_v50, %v3718_v17  ;;  %v9153_v17 = vld [vmem:[#allocation12 + $0x4e4] ss:$48 sps:$4 sm:$0xff]   ;;  %v9156_v42 = vld [vmem:[#allocation12 + $0x4ec] ss:$48 sps:$4 sm:$0xff]  }
 0x71d   : > { %v11931_v47 = vadd.f32 %v10121_v59, %v3620_v62  ;;  %v3622_v19 = vpop.f32.mrb[153].mxu0  ;;  %v10130_v50 = vld [vmem:[%s10785_s2 + $0x88] sm:$0xff]  ;;  %v9151_v59 = vld [vmem:[#allocation12 + $0x4e0] ss:$48 sps:$4 sm:$0xff]   ;;  %5173 = vmatprep.subr.bf16.mxu1 %v9153_v17  ;;  %5286 = vmatprep.subr.bf16.mxu0 %v9156_v42 }
 0x71e   : > { %v11934_v46 = vadd.f32 %v10122_v53, %v3622_v19  ;;  %3754 = vadd.xlane.f32.xlu1 %v3753_v6  ;;  %v3624_v44 = vpop.f32.mrb[154].mxu0  ;;  %v9154_v19 = vld [vmem:[#allocation12 + $0x4e8] ss:$48 sps:$4 sm:$0xff]   ;;  %v10131_v53 = vld [vmem:[%s10785_s2 + $0x90] sm:$0xff]  ;;  %5174 = vmatpush1.bf16.msra.mxu1 %v9151_v59  ;;  %v10137_v17 = vld [vmem:[%s10785_s2 + $0xc0] sm:$0xff] }
 0x71f   : > { %14250 = vst [vmem:[#allocation28_spill] sm:$0xff] %v11931_v47  ;;  %v11937_v7 = vadd.f32 %v10123_v55, %v3624_v44  ;;  %v3626_v23 = vpop.f32.mrb[155].mxu0  ;;  %v3720_v12 = vmul.f32 %v11931_v47, %v11931_v47  ;;  %5287 = vmatpush1.bf16.msra.mxu0 %v9154_v19  ;;  %5175 = vmatprep.subr.bf16.mxu1 %v9159_v1 }
 0x720   : > { %14251 = vst [vmem:[#allocation57_spill] sm:$0xff] %v11934_v46  ;;  %v11942_v33 = vadd.f32 %v10124_v26, %v3626_v23  ;;  %v3721_v32 = vmul.f32 %v11934_v46, %v11934_v46  ;;  %5288 = vmatprep.subr.bf16.mxu0 %v9162_v24 }
 0x721   : > { %14252 = vst [vmem:[#allocation56_spill] sm:$0xff] %v11937_v7  ;;  %v3722_v48 = vmul.f32 %v11937_v7, %v11937_v7 }
 0x722   : > { %14253 = vst [vmem:[#allocation29_spill] sm:$0xff] %v11942_v33  ;;  %v3756_v13 = vadd.f32 %v3721_v32, %v3720_v12  ;;  %v3723_v63 = vmul.f32 %v11942_v33, %v11942_v33  ;;  %v10132_v12 = vld [vmem:[%s10785_s2 + $0x98] sm:$0xff]  ;;  %5176 = vmatpush1.bf16.msra.mxu1 %v9157_v57 }
 0x723   : > { %5289 = vmatpush1.bf16.msra.mxu0 %v9160_v29  ;;  %5177 = vmatprep.subr.bf16.mxu1 %v9165_v40 }
 0x724   : > { %3757 = vadd.xlane.f32.xlu0 %v3756_v13  ;;  %v3630_v41 = vpop.f32.mrb[156].mxu0  ;;  %v3759_v14 = vadd.f32 %v3723_v63, %v3722_v48 }
 0x725   : > { %v11951_v21 = vadd.f32 %v10125_v35, %v3630_v41  ;;  %v3632_v60 = vpop.f32.mrb[157].mxu0  ;;  %v10133_v35 = vld [vmem:[%s10785_s2 + $0xa0] sm:$0xff] }
 0x726   : > { %v11954_v52 = vadd.f32 %v10126_v58, %v3632_v60  ;;  %3760 = vadd.xlane.f32.xlu1 %v3759_v14  ;;  %v3634_v2 = vpop.f32.mrb[158].mxu0  ;;  %v9168_v58 = vld [vmem:[#allocation12 + $0x5ac] ss:$48 sps:$4 sm:$0xff]  }
 0x727   : > { %14254 = vst [vmem:[#allocation63_spill] sm:$0xff] %v11951_v21  ;;  %v11957_v31 = vadd.f32 %v10127_v0, %v3634_v2  ;;  %v3636_v3 = vpop.f32.mrb[159].mxu0  ;;  %v3724_v5 = vmul.f32 %v11951_v21, %v11951_v21  ;;  %v10134_v2 = vld [vmem:[%s10785_s2 + $0xa8] sm:$0xff]  ;;  %v9163_v0 = vld [vmem:[#allocation12 + $0x5a0] ss:$48 sps:$4 sm:$0xff]   ;;  %5290 = vmatprep.subr.bf16.mxu0 %v9168_v58 }
 0x728   : > { %14255 = vst [vmem:[#allocation60_spill] sm:$0xff] %v11954_v52  ;;  %v11962_v56 = vadd.f32 %v10128_v20, %v3636_v3  ;;  %v3725_v10 = vmul.f32 %v11954_v52, %v11954_v52  ;;  %v9166_v3 = vld [vmem:[#allocation12 + $0x5a8] ss:$48 sps:$4 sm:$0xff]   ;;  %5178 = vmatpush1.bf16.msra.mxu1 %v9163_v0 }
 0x729   : > { %14256 = vst [vmem:[#allocation30_spill] sm:$0xff] %v11957_v31  ;;  %v3726_v61 = vmul.f32 %v11957_v31, %v11957_v31  ;;  %5291 = vmatpush1.bf16.msra.mxu0 %v9166_v3  ;;  %5373 = vmatprep.subr.bf16.mxu1 %v9171_v28 }
 0x72a   : > { %14257 = vst [vmem:[#allocation31_spill] sm:$0xff] %v11962_v56  ;;  %v3762_v16 = vadd.f32 %v3725_v10, %v3724_v5  ;;  %v3727_v37 = vmul.f32 %v11962_v56, %v11962_v56  ;;  %v10135_v5 = vld [vmem:[%s10785_s2 + $0xb0] sm:$0xff]  ;;  %5486 = vmatprep.subr.bf16.mxu0 %v9174_v9 }
 0x72c   : > { %3763 = vadd.xlane.f32.xlu0 %v3762_v16  ;;  %v3640_v34 = vpop.f32.mrb[160].mxu0  ;;  %v3765_v54 = vadd.f32 %v3727_v37, %v3726_v61 }
 0x72d   : > { %v11971_v39 = vadd.f32 %v10129_v51, %v3640_v34  ;;  %v3642_v38 = vpop.f32.mrb[161].mxu0 }
 0x72e   : > { %v11974_v62 = vadd.f32 %v10130_v50, %v3642_v38  ;;  %3766 = vadd.xlane.f32.xlu1 %v3765_v54  ;;  %v3644_v6 = vpop.f32.mrb[162].mxu0 }
 0x72f   : > { %14258 = vst [vmem:[#allocation32_spill] sm:$0xff] %v11971_v39  ;;  %v11977_v44 = vadd.f32 %v10131_v53, %v3644_v6  ;;  %v3646_v55 = vpop.f32.mrb[163].mxu0  ;;  %v3728_v23 = vmul.f32 %v11971_v39, %v11971_v39  ;;  %v10138_v6 = vld [vmem:[%s10785_s2 + $0xc8] sm:$0xff]  ;;  %v10139_v53 = vld [vmem:[%s10785_s2 + $0xd0] sm:$0xff] }
 0x730   : > { %14259 = vst [vmem:[#allocation65_spill] sm:$0xff] %v11974_v62  ;;  %v11982_v26 = vadd.f32 %v10132_v12, %v3646_v55  ;;  %v3729_v32 = vmul.f32 %v11974_v62, %v11974_v62 }
 0x731   : > { %14260 = vst [vmem:[#allocation64_spill] sm:$0xff] %v11977_v44  ;;  %v3730_v48 = vmul.f32 %v11977_v44, %v11977_v44 }
 0x732   : > { %14261 = vst [vmem:[#allocation33_spill] sm:$0xff] %v11982_v26  ;;  %v3768_v13 = vadd.f32 %v3729_v32, %v3728_v23  ;;  %v3731_v63 = vmul.f32 %v11982_v26, %v11982_v26  ;;  %v10140_v32 = vld [vmem:[%s10785_s2 + $0xd8] sm:$0xff] }
 0x734   : > { %3769 = vadd.xlane.f32.xlu0 %v3768_v13  ;;  %v3650_v41 = vpop.f32.mrb[164].mxu0  ;;  %v3771_v14 = vadd.f32 %v3731_v63, %v3730_v48 }
 0x735   : > { %v11991_v60 = vadd.f32 %v10133_v35, %v3650_v41  ;;  %v3652_v8 = vpop.f32.mrb[165].mxu0  ;;  %v10141_v41 = vld [vmem:[%s10785_s2 + $0xe0] sm:$0xff] }
 0x736   : > { %v11994_v4 = vadd.f32 %v10134_v2, %v3652_v8  ;;  %3772 = vadd.xlane.f32.xlu1 %v3771_v14  ;;  %v3654_v30 = vpop.f32.mrb[166].mxu0  ;;  %v10142_v8 = vld [vmem:[%s10785_s2 + $0xe8] sm:$0xff]  ;;  %v10143_v2 = vld [vmem:[%s10785_s2 + $0xf0] sm:$0xff] }
 0x737   : > { %14262 = vst [vmem:[#allocation71_spill] sm:$0xff] %v11991_v60  ;;  %v11997_v20 = vadd.f32 %v10135_v5, %v3654_v30  ;;  %v3656_v10 = vpop.f32.mrb[167].mxu0  ;;  %v3732_v61 = vmul.f32 %v11991_v60, %v11991_v60  ;;  %v10144_v5 = vld [vmem:[%s10785_s2 + $0xf8] sm:$0xff]  ;;  %s13730_s2 = scalar_lea.vmem [#allocation15], %s7789_s10  ;;  %s8379_s10 = sshll.u32 %s10527_s26, 12 }
 0x738   : > { %14263 = vst [vmem:[#allocation66_spill] sm:$0xff] %v11994_v4  ;;  %v12002_v15 = vadd.f32 %v10136_v18, %v3656_v10  ;;  %v3733_v16 = vmul.f32 %v11994_v4, %v11994_v4  ;;  %s7646_s3 = sshll.u32 %s13730_s2, 4  ;;  %s13823_s12 = scalar_lea.hbm %s14555_s17, %s8379_s10  ;;  %s13825_s3 = int_to_ptr.vmem [resolvable:$true] %s7646_s3 }
 0x739   : > { %14264 = vst [vmem:[#allocation34_spill] sm:$0xff] %v11997_v20  ;;  %v3734_v37 = vmul.f32 %v11997_v20, %v11997_v20  ;;  %s7633_s26 = scalar_lea.sflag [#allocation5], %s10779_s11  ;;  %s10343_s13 = scalar_lea.vmem %s13825_s3, 4096 }
 0x73a   : > { %14265 = vst [vmem:[#allocation35_spill] sm:$0xff] %v12002_v15  ;;  %v3774_v34 = vadd.f32 %v3733_v16, %v3732_v61  ;;  %v3735_v54 = vmul.f32 %v12002_v15, %v12002_v15  ;;  %p10344_p6 = scmp.ne.s32.totalorder %s13825_s3, %s10343_s13  ;;  %p10350_p11 = scmp.lt.s32.totalorder %s13825_s3, %s10348_s16 }
 0x73b   : > { %p10351_p12 = scmp.lt.s32.totalorder %s10349_s29, %s10343_s13 }
 0x73c   : > { %3775 = vadd.xlane.f32.xlu0 %v3774_v34  ;;  %v3660_v51 = vpop.f32.mrb[168].mxu0  ;;  %v3777_v38 = vadd.f32 %v3735_v54, %v3734_v37  ;;  %p10345_p10 = pnand %p10344_p6, %p14557_p5 }
 0x73d   : > { %v12011_v42 = vadd.f32 %v10137_v17, %v3660_v51  ;;  %v3662_v50 = vpop.f32.mrb[169].mxu0  ;;  %p10352_p13 = por %p10351_p12, %p10350_p11 }
 0x73e   : > { %v12014_v59 = vadd.f32 %v10138_v6, %v3662_v50  ;;  %3778 = vadd.xlane.f32.xlu1 %v3777_v38  ;;  %v3664_v19 = vpop.f32.mrb[170].mxu0  ;;  %p10346_p1 = pneg %p10345_p10 }
 0x73f   : > { %14266 = vst [vmem:[#allocation36_spill] sm:$0xff] %v12011_v42  ;;  %v12017_v55 = vadd.f32 %v10139_v53, %v3664_v19  ;;  %v3666_v23 = vpop.f32.mrb[171].mxu0  ;;  %v3736_v12 = vmul.f32 %v12011_v42, %v12011_v42 }
 0x740   : > { %14267 = vst [vmem:[#allocation73_spill] sm:$0xff] %v12014_v59  ;;  %v12022_v48 = vadd.f32 %v10140_v32, %v3666_v23  ;;  %v3737_v1 = vmul.f32 %v12014_v59, %v12014_v59  ;;  %p10353_p8 = pnand %p10352_p13, %p10346_p1 }
 0x741   : > { %14268 = vst [vmem:[#allocation72_spill] sm:$0xff] %v12017_v55  ;;  %v3738_v24 = vmul.f32 %v12017_v55, %v12017_v55 }
 0x742   : > { %14269 = vst [vmem:[#allocation37_spill] sm:$0xff] %v12022_v48  ;;  %v3780_v13 = vadd.f32 %v3737_v1, %v3736_v12  ;;  %v3739_v63 = vmul.f32 %v12022_v48, %v12022_v48  ;;  %v3711_v12 = vld [vmem:[%s13879_s6] sm:$0x3] }
 0x744   : > { %3781 = vadd.xlane.f32.xlu0 %v3780_v13  ;;  %v3670_v57 = vpop.f32.mrb[172].mxu0  ;;  %v3783_v29 = vadd.f32 %v3739_v63, %v3738_v24  ;;  %v14274_v24 = vld [vmem:[#allocation23_spill] sm:$0xff]  ;;  %v14275_v63 = vld [vmem:[#allocation22_spill] sm:$0xff] }
 0x745   : > { %v12031_v14 = vadd.f32 %v10141_v41, %v3670_v57  ;;  %v3672_v35 = vpop.f32.mrb[173].mxu0  ;;  %v12054_v13 = vrot.slane %v3711_v12, %v14274_v24  ;;  %v12057_v57 = vrot.slane %v3711_v12, %v14275_v63 }
 0x746   : > { %v12034_v40 = vadd.f32 %v10142_v8, %v3672_v35  ;;  %3784 = vadd.xlane.f32.xlu1 %v3783_v29  ;;  %v3674_v58 = vpop.f32.mrb[174].mxu0 }
 0x747   : > { %14270 = vst [vmem:[#allocation79_spill] sm:$0xff] %v12031_v14  ;;  %v12037_v30 = vadd.f32 %v10143_v2, %v3674_v58  ;;  %v3676_v0 = vpop.f32.mrb[175].mxu0  ;;  %v3740_v3 = vmul.f32 %v12031_v14, %v12031_v14 }
 0x748   : > { %14271 = vst [vmem:[#allocation74_spill] sm:$0xff] %v12034_v40  ;;  %v12042_v10 = vadd.f32 %v10144_v5, %v3676_v0  ;;  %v3741_v61 = vmul.f32 %v12034_v40, %v12034_v40 }
 0x749   : > { %14272 = vst [vmem:[#allocation38_spill] sm:$0xff] %v12037_v30  ;;  %v3742_v18 = vmul.f32 %v12037_v30, %v12037_v30 }
 0x74a   : > { %14273 = vst [vmem:[#allocation39_spill] sm:$0xff] %v12042_v10  ;;  %v3786_v16 = vadd.f32 %v3741_v61, %v3740_v3  ;;  %v3743_v37 = vmul.f32 %v12042_v10, %v12042_v10 }
 0x74c   : > { %3787 = vadd.xlane.f32.xlu0 %v3786_v16  ;;  %v3789_v28 = vadd.f32 %v3743_v37, %v3742_v18 }
 0x74e   : > { %3790 = vadd.xlane.f32.xlu1 %v3789_v28 }
 0x7a1   : > { %v3746_v9 = vpop.xlane.xlu0 %3745 }
 0x7a2   : > { %v3792_v34 = vmul.f32 0.00390625, %v3746_v9 }
 0x7a3   : > { %v3749_v54 = vpop.xlane.xlu1 %3748 }
 0x7a4   : > { %v3808_v51 = vadd.f32 1e-05, %v3792_v34  ;;  %v3793_v38 = vmul.f32 0.00390625, %v3749_v54 }
 0x7a6   : > { %9665 = vrsqrt.f32 %v3808_v51  ;;  %v3809_v17 = vadd.f32 1e-05, %v3793_v38  ;;  %v9169_v51 = vld [vmem:[#allocation12 + $0x10] ss:$48 sps:$4 sm:$0xff]  }
 0x7a8   : > { %9667 = vrsqrt.f32 %v3809_v17  ;;  %v9172_v17 = vld [vmem:[#allocation12 + $0x18] ss:$48 sps:$4 sm:$0xff]  }
 0x7a9   : > { %v3752_v50 = vpop.xlane.xlu0 %3751 }
 0x7aa   : > { %v3794_v6 = vmul.f32 0.00390625, %v3752_v50  ;;  %v9177_v50 = vld [vmem:[#allocation12 + $0x74] ss:$48 sps:$4 sm:$0xff]  }
 0x7ab   : > { %v3755_v19 = vpop.xlane.xlu1 %3754 }
 0x7ac   : > { %v3810_v53 = vadd.f32 1e-05, %v3794_v6  ;;  %v3795_v23 = vmul.f32 0.00390625, %v3755_v19 }
 0x7ae   : > { %9669 = vrsqrt.f32 %v3810_v53  ;;  %v3811_v32 = vadd.f32 1e-05, %v3795_v23  ;;  %v9180_v23 = vld [vmem:[#allocation12 + $0x7c] ss:$48 sps:$4 sm:$0xff]  }
 0x7b0   : > { %v9666_v1 = vpop.eup %9665  ;;  %9671 = vrsqrt.f32 %v3811_v32 }
 0x7b1   : > { %v3840_v29 = vmul.f32 %v9666_v1, %v11891_v36  ;;  %v3841_v41 = vmul.f32 %v9666_v1, %v11894_v27  ;;  %v3758_v35 = vpop.xlane.xlu0 %3757 }
 0x7b2   : > { %v9668_v8 = vpop.eup %9667  ;;  %v3796_v58 = vmul.f32 0.00390625, %v3758_v35  ;;  %v9175_v35 = vld [vmem:[#allocation12 + $0x70] ss:$48 sps:$4 sm:$0xff]  }
 0x7b3   : > { %v3842_v2 = vmul.f32 %v9668_v8, %v11897_v25  ;;  %v3843_v0 = vmul.f32 %v9668_v8, %v11902_v22  ;;  %v3761_v3 = vpop.xlane.xlu1 %3760  ;;  %v3883_v18 = vmul.f32 %v12054_v13, %v3840_v29  ;;  %v3884_v16 = vmul.f32 %v12057_v57, %v3841_v41  ;;  %v9178_v8 = vld [vmem:[#allocation12 + $0x78] ss:$48 sps:$4 sm:$0xff]  }
 0x7b4   : > { %v3812_v5 = vadd.f32 1e-05, %v3796_v58  ;;  %v3797_v61 = vmul.f32 0.00390625, %v3761_v3 }
 0x7b5   : > { %v3885_v37 = vmul.f32 %v12054_v13, %v3842_v2  ;;  %v3886_v28 = vmul.f32 %v12057_v57, %v3843_v0  ;;  %v9183_v0 = vld [vmem:[#allocation12 + $0xd4] ss:$48 sps:$4 sm:$0xff]  }
 0x7b6   : > { %9673 = vrsqrt.f32 %v3812_v5  ;;  %v3813_v9 = vadd.f32 1e-05, %v3797_v61 }
 0x7b7   : > { %v12067_v34 = vpack.c.bf16 %v3885_v37, %v3883_v18  ;;  %v12069_v54 = vpack.c.bf16 %v3886_v28, %v3884_v16 }
 0x7b8   : > { %v9670_v38 = vpop.eup %9669  ;;  %9675 = vrsqrt.f32 %v3813_v9  ;;  %v9186_v9 = vld [vmem:[#allocation12 + $0xdc] ss:$48 sps:$4 sm:$0xff]  }
 0x7b9   : > { %v3844_v6 = vmul.f32 %v9670_v38, %v11911_v43  ;;  %v3845_v19 = vmul.f32 %v9670_v38, %v11914_v45  ;;  %5179 = vmatprep.mubr.bf16.mxu1 %v12069_v54  ;;  %v3764_v53 = vpop.xlane.xlu0 %3763  ;;  %5292 = vmatprep.mubr.bf16.mxu0 %v12069_v54  ;;  %v9181_v38 = vld [vmem:[#allocation12 + $0xd0] ss:$48 sps:$4 sm:$0xff]  }
 0x7ba   : > { %v9672_v12 = vpop.eup %9671  ;;  %v3798_v32 = vmul.f32 0.00390625, %v3764_v53  ;;  %5180 = vmatmul.mubr.bf16.vlgmr.msra.gmra.mrb[80].mxu1 %v12067_v34  ;;  %5293 = vmatmul.mubr.bf16.vlgmr.msra.gmra.mrb[176].mxu0 %v12067_v34  ;;  %v9189_v53 = vld [vmem:[#allocation12 + $0x134] ss:$48 sps:$4 sm:$0xff]  }
 0x7bb   : > { %v3846_v1 = vmul.f32 %v9672_v12, %v11917_v11  ;;  %v3847_v29 = vmul.f32 %v9672_v12, %v11922_v49  ;;  %5374 = vmatpush1.bf16.msra.mxu1 %v9169_v51  ;;  %v3767_v41 = vpop.xlane.xlu1 %3766  ;;  %5487 = vmatpush1.bf16.msra.mxu0 %v9172_v17  ;;  %v3887_v3 = vmul.f32 %v12054_v13, %v3844_v6  ;;  %v9184_v17 = vld [vmem:[#allocation12 + $0xd8] ss:$48 sps:$4 sm:$0xff]  }
 0x7bc   : > { %v3814_v58 = vadd.f32 1e-05, %v3798_v32  ;;  %v3799_v2 = vmul.f32 0.00390625, %v3767_v41  ;;  %5375 = vmatprep.subr.bf16.mxu1 %v9177_v50  ;;  %v3888_v5 = vmul.f32 %v12057_v57, %v3845_v19  ;;  %5488 = vmatprep.subr.bf16.mxu0 %v9180_v23  ;;  %v9192_v23 = vld [vmem:[#allocation12 + $0x13c] ss:$48 sps:$4 sm:$0xff]  }
 0x7bd   : > { %v3889_v61 = vmul.f32 %v12054_v13, %v3846_v1  ;;  %v3890_v18 = vmul.f32 %v12057_v57, %v3847_v29 }
 0x7be   : > { %9677 = vrsqrt.f32 %v3814_v58  ;;  %v3815_v16 = vadd.f32 1e-05, %v3799_v2 }
 0x7bf   : > { %v12083_v37 = vpack.c.bf16 %v3889_v61, %v3887_v3  ;;  %v12085_v28 = vpack.c.bf16 %v3890_v18, %v3888_v5  ;;  %5376 = vmatpush1.bf16.msra.mxu1 %v9175_v35  ;;  %5489 = vmatpush1.bf16.msra.mxu0 %v9178_v8  ;;  %v9187_v35 = vld [vmem:[#allocation12 + $0x130] ss:$48 sps:$4 sm:$0xff]  }
 0x7c0   : > { %v9674_v51 = vpop.eup %9673  ;;  %9679 = vrsqrt.f32 %v3815_v16  ;;  %5377 = vmatprep.subr.bf16.mxu1 %v9183_v0  ;;  %5490 = vmatprep.subr.bf16.mxu0 %v9186_v9  ;;  %v9190_v0 = vld [vmem:[#allocation12 + $0x138] ss:$48 sps:$4 sm:$0xff]  }
 0x7c1   : > { %v3848_v50 = vmul.f32 %v9674_v51, %v11931_v47  ;;  %v3849_v6 = vmul.f32 %v9674_v51, %v11934_v46  ;;  %5189 = vmatprep.mubr.bf16.mxu1 %v12085_v28  ;;  %v3770_v19 = vpop.xlane.xlu0 %3769  ;;  %5302 = vmatprep.mubr.bf16.mxu0 %v12085_v28  ;;  %v9195_v51 = vld [vmem:[#allocation12 + $0x194] ss:$48 sps:$4 sm:$0xff]  }
 0x7c2   : > { %v9676_v12 = vpop.eup %9675  ;;  %v3800_v32 = vmul.f32 0.00390625, %v3770_v19  ;;  %5190 = vmatmul.mubr.bf16.gmra.mrb[84].mxu1 %v12083_v37  ;;  %5303 = vmatmul.mubr.bf16.gmra.mrb[180].mxu0 %v12083_v37 }
 0x7c3   : > { %v3850_v1 = vmul.f32 %v9676_v12, %v11937_v7  ;;  %v3851_v29 = vmul.f32 %v9676_v12, %v11942_v33  ;;  %v3773_v41 = vpop.xlane.xlu1 %3772  ;;  %v3891_v8 = vmul.f32 %v12054_v13, %v3848_v50  ;;  %5378 = vmatpush1.bf16.msra.mxu1 %v9181_v38  ;;  %5491 = vmatpush1.bf16.msra.mxu0 %v9184_v17  ;;  %v9193_v38 = vld [vmem:[#allocation12 + $0x190] ss:$48 sps:$4 sm:$0xff]   ;;  %v9198_v17 = vld [vmem:[#allocation12 + $0x19c] ss:$48 sps:$4 sm:$0xff]   ;;  %v9201_v12 = vld [vmem:[#allocation12 + $0x1f4] ss:$48 sps:$4 sm:$0xff]  }
 0x7c4   : > { %v3816_v58 = vadd.f32 1e-05, %v3800_v32  ;;  %v3801_v2 = vmul.f32 0.00390625, %v3773_v41  ;;  %v3892_v3 = vmul.f32 %v12057_v57, %v3849_v6  ;;  %5379 = vmatprep.subr.bf16.mxu1 %v9189_v53  ;;  %5492 = vmatprep.subr.bf16.mxu0 %v9192_v23  ;;  %v9196_v23 = vld [vmem:[#allocation12 + $0x198] ss:$48 sps:$4 sm:$0xff]  }
 0x7c5   : > { %v3893_v5 = vmul.f32 %v12054_v13, %v3850_v1  ;;  %v3894_v61 = vmul.f32 %v12057_v57, %v3851_v29  ;;  %v9204_v29 = vld [vmem:[#allocation12 + $0x1fc] ss:$48 sps:$4 sm:$0xff]  }
 0x7c6   : > { %9681 = vrsqrt.f32 %v3816_v58  ;;  %v3817_v18 = vadd.f32 1e-05, %v3801_v2 }
 0x7c7   : > { %v12099_v16 = vpack.c.bf16 %v3893_v5, %v3891_v8  ;;  %v12101_v9 = vpack.c.bf16 %v3894_v61, %v3892_v3  ;;  %5380 = vmatpush1.bf16.msra.mxu1 %v9187_v35  ;;  %5493 = vmatpush1.bf16.msra.mxu0 %v9190_v0  ;;  %v9199_v3 = vld [vmem:[#allocation12 + $0x1f0] ss:$48 sps:$4 sm:$0xff]  }
 0x7c8   : > { %v9678_v50 = vpop.eup %9677  ;;  %9683 = vrsqrt.f32 %v3817_v18  ;;  %5381 = vmatprep.subr.bf16.mxu1 %v9195_v51  ;;  %5494 = vmatprep.subr.bf16.mxu0 %v9198_v17 }
 0x7c9   : > { %v3852_v6 = vmul.f32 %v9678_v50, %v11951_v21  ;;  %v3853_v19 = vmul.f32 %v9678_v50, %v11954_v52  ;;  %5199 = vmatprep.mubr.bf16.mxu1 %v12101_v9  ;;  %v3776_v53 = vpop.xlane.xlu0 %3775  ;;  %5312 = vmatprep.mubr.bf16.mxu0 %v12101_v9  ;;  %v9202_v50 = vld [vmem:[#allocation12 + $0x1f8] ss:$48 sps:$4 sm:$0xff]  }
 0x7ca   : > { %v9680_v32 = vpop.eup %9679  ;;  %v3802_v1 = vmul.f32 0.00390625, %v3776_v53  ;;  %5200 = vmatmul.mubr.bf16.gmra.mrb[88].mxu1 %v12099_v16  ;;  %5313 = vmatmul.mubr.bf16.gmra.mrb[184].mxu0 %v12099_v16 }
 0x7cb   : > { %v3854_v41 = vmul.f32 %v9680_v32, %v11957_v31  ;;  %v3855_v35 = vmul.f32 %v9680_v32, %v11962_v56  ;;  %v3779_v8 = vpop.xlane.xlu1 %3778  ;;  %v3895_v58 = vmul.f32 %v12054_v13, %v3852_v6  ;;  %5382 = vmatpush1.bf16.msra.mxu1 %v9193_v38  ;;  %v3896_v5 = vmul.f32 %v12057_v57, %v3853_v19  ;;  %v9207_v38 = vld [vmem:[#allocation12 + $0x254] ss:$48 sps:$4 sm:$0xff]   ;;  %v9210_v32 = vld [vmem:[#allocation12 + $0x25c] ss:$48 sps:$4 sm:$0xff]  }
 0x7cc   : > { %v3818_v2 = vadd.f32 1e-05, %v3802_v1  ;;  %v3803_v0 = vmul.f32 0.00390625, %v3779_v8  ;;  %5495 = vmatpush1.bf16.msra.mxu0 %v9196_v23  ;;  %5383 = vmatprep.subr.bf16.mxu1 %v9201_v12  ;;  %v9205_v12 = vld [vmem:[#allocation12 + $0x250] ss:$48 sps:$4 sm:$0xff]  }
 0x7cd   : > { %v3897_v61 = vmul.f32 %v12054_v13, %v3854_v41  ;;  %v3898_v18 = vmul.f32 %v12057_v57, %v3855_v35  ;;  %5496 = vmatprep.subr.bf16.mxu0 %v9204_v29  ;;  %v9208_v41 = vld [vmem:[#allocation12 + $0x258] ss:$48 sps:$4 sm:$0xff]   ;;  %v9213_v8 = vld [vmem:[#allocation12 + $0x2b4] ss:$48 sps:$4 sm:$0xff]  }
 0x7ce   : > { %9685 = vrsqrt.f32 %v3818_v2  ;;  %v3819_v53 = vadd.f32 1e-05, %v3803_v0 }
 0x7cf   : > { %v12115_v51 = vpack.c.bf16 %v3897_v61, %v3895_v58  ;;  %v12117_v6 = vpack.c.bf16 %v3898_v18, %v3896_v5  ;;  %5384 = vmatpush1.bf16.msra.mxu1 %v9199_v3  ;;  %v9216_v58 = vld [vmem:[#allocation12 + $0x2bc] ss:$48 sps:$4 sm:$0xff]  }
 0x7d0   : > { %v9682_v17 = vpop.eup %9681  ;;  %9687 = vrsqrt.f32 %v3819_v53  ;;  %5497 = vmatpush1.bf16.msra.mxu0 %v9202_v50  ;;  %5385 = vmatprep.subr.bf16.mxu1 %v9207_v38 }
 0x7d1   : > { %v3856_v19 = vmul.f32 %v9682_v17, %v11971_v39  ;;  %v3857_v1 = vmul.f32 %v9682_v17, %v11974_v62  ;;  %5209 = vmatprep.mubr.bf16.mxu1 %v12117_v6  ;;  %v3782_v23 = vpop.xlane.xlu0 %3781  ;;  %5322 = vmatprep.mubr.bf16.mxu0 %v12117_v6 }
 0x7d2   : > { %v9684_v29 = vpop.eup %9683  ;;  %v3804_v35 = vmul.f32 0.00390625, %v3782_v23  ;;  %5210 = vmatmul.mubr.bf16.gmra.mrb[92].mxu1 %v12115_v51  ;;  %5323 = vmatmul.mubr.bf16.gmra.mrb[188].mxu0 %v12115_v51  ;;  %v9211_v23 = vld [vmem:[#allocation12 + $0x2b0] ss:$48 sps:$4 sm:$0xff]  }
 0x7d3   : > { %v3858_v2 = vmul.f32 %v9684_v29, %v11977_v44  ;;  %v3859_v0 = vmul.f32 %v9684_v29, %v11982_v26  ;;  %v3785_v3 = vpop.xlane.xlu1 %3784  ;;  %v3899_v5 = vmul.f32 %v12054_v13, %v3856_v19  ;;  %5498 = vmatprep.subr.bf16.mxu0 %v9210_v32  ;;  %v3900_v50 = vmul.f32 %v12057_v57, %v3857_v1  ;;  %v9214_v44 = vld [vmem:[#allocation12 + $0x2b8] ss:$48 sps:$4 sm:$0xff]   ;;  %v9219_v32 = vld [vmem:[#allocation12 + $0x314] ss:$48 sps:$4 sm:$0xff]  }
 0x7d4   : > { %v3820_v61 = vadd.f32 1e-05, %v3804_v35  ;;  %v3805_v18 = vmul.f32 0.00390625, %v3785_v3  ;;  %5386 = vmatpush1.bf16.msra.mxu1 %v9205_v12  ;;  %5499 = vmatpush1.bf16.msra.mxu0 %v9208_v41  ;;  %v9217_v41 = vld [vmem:[#allocation12 + $0x310] ss:$48 sps:$4 sm:$0xff]  }
 0x7d5   : > { %v3901_v53 = vmul.f32 %v12054_v13, %v3858_v2  ;;  %v3902_v17 = vmul.f32 %v12057_v57, %v3859_v0  ;;  %5387 = vmatprep.subr.bf16.mxu1 %v9213_v8  ;;  %5500 = vmatprep.subr.bf16.mxu0 %v9216_v58  ;;  %v9222_v2 = vld [vmem:[#allocation12 + $0x31c] ss:$48 sps:$4 sm:$0xff]   ;;  %v9220_v58 = vld [vmem:[#allocation12 + $0x318] ss:$48 sps:$4 sm:$0xff]   ;;  %v9225_v3 = vld [vmem:[#allocation12 + $0x374] ss:$48 sps:$4 sm:$0xff]  }
 0x7d6   : > { %9689 = vrsqrt.f32 %v3820_v61  ;;  %v3821_v29 = vadd.f32 1e-05, %v3805_v18 }
 0x7d7   : > { %v12131_v26 = vpack.c.bf16 %v3901_v53, %v3899_v5  ;;  %v12133_v19 = vpack.c.bf16 %v3902_v17, %v3900_v50  ;;  %v9228_v50 = vld [vmem:[#allocation12 + $0x37c] ss:$48 sps:$4 sm:$0xff]  }
 0x7d8   : > { %v9686_v38 = vpop.eup %9685  ;;  %9691 = vrsqrt.f32 %v3821_v29  ;;  %5388 = vmatpush1.bf16.msra.mxu1 %v9211_v23  ;;  %5501 = vmatpush1.bf16.msra.mxu0 %v9214_v44 }
 0x7d9   : > { %v3860_v1 = vmul.f32 %v9686_v38, %v11991_v60  ;;  %v3861_v35 = vmul.f32 %v9686_v38, %v11994_v4  ;;  %v3788_v12 = vpop.xlane.xlu0 %3787  ;;  %5219 = vmatprep.mubr.bf16.mxu1 %v12133_v19  ;;  %5332 = vmatprep.mubr.bf16.mxu0 %v12133_v19 }
 0x7da   : > { %v9688_v0 = vpop.eup %9687  ;;  %v3806_v8 = vmul.f32 0.00390625, %v3788_v12  ;;  %5220 = vmatmul.mubr.bf16.gmra.mrb[96].mxu1 %v12131_v26  ;;  %5333 = vmatmul.mubr.bf16.gmra.mrb[192].mxu0 %v12131_v26  ;;  %v9223_v12 = vld [vmem:[#allocation12 + $0x370] ss:$48 sps:$4 sm:$0xff]  }
 0x7db   : > { %v3862_v5 = vmul.f32 %v9688_v0, %v11997_v20  ;;  %v3863_v61 = vmul.f32 %v9688_v0, %v12002_v15  ;;  %v3791_v18 = vpop.xlane.xlu1 %3790  ;;  %v3903_v44 = vmul.f32 %v12054_v13, %v3860_v1  ;;  %5389 = vmatprep.subr.bf16.mxu1 %v9219_v32  ;;  %v3904_v23 = vmul.f32 %v12057_v57, %v3861_v35  ;;  %v9226_v15 = vld [vmem:[#allocation12 + $0x378] ss:$48 sps:$4 sm:$0xff]   ;;  %v9231_v35 = vld [vmem:[#allocation12 + $0x3d4] ss:$48 sps:$4 sm:$0xff]  }
 0x7dc   : > { %v3822_v53 = vadd.f32 1e-05, %v3806_v8  ;;  %v3807_v17 = vmul.f32 0.00390625, %v3791_v18  ;;  %5502 = vmatprep.subr.bf16.mxu0 %v9222_v2  ;;  %5390 = vmatpush1.bf16.msra.mxu1 %v9217_v41  ;;  %v9229_v41 = vld [vmem:[#allocation12 + $0x3d0] ss:$48 sps:$4 sm:$0xff]  }
 0x7dd   : > { %v3905_v29 = vmul.f32 %v12054_v13, %v3862_v5  ;;  %v3906_v38 = vmul.f32 %v12057_v57, %v3863_v61  ;;  %5503 = vmatpush1.bf16.msra.mxu0 %v9220_v58  ;;  %5391 = vmatprep.subr.bf16.mxu1 %v9225_v3  ;;  %v9234_v2 = vld [vmem:[#allocation12 + $0x3dc] ss:$48 sps:$4 sm:$0xff]   ;;  %v9232_v3 = vld [vmem:[#allocation12 + $0x3d8] ss:$48 sps:$4 sm:$0xff]   ;;  %v9237_v18 = vld [vmem:[#allocation12 + $0x434] ss:$48 sps:$4 sm:$0xff]  }
 0x7de   : > { %9693 = vrsqrt.f32 %v3822_v53  ;;  %v3823_v0 = vadd.f32 1e-05, %v3807_v17  ;;  %5504 = vmatprep.subr.bf16.mxu0 %v9228_v50  ;;  %v9240_v53 = vld [vmem:[#allocation12 + $0x43c] ss:$48 sps:$4 sm:$0xff]  }
 0x7df   : > { %v12147_v1 = vpack.c.bf16 %v3905_v29, %v3903_v44  ;;  %v12149_v8 = vpack.c.bf16 %v3906_v38, %v3904_v23  ;;  %v9235_v38 = vld [vmem:[#allocation12 + $0x430] ss:$48 sps:$4 sm:$0xff]  }
 0x7e0   : > { %v9690_v32 = vpop.eup %9689  ;;  %9695 = vrsqrt.f32 %v3823_v0  ;;  %5392 = vmatpush1.bf16.msra.mxu1 %v9223_v12  ;;  %v9238_v12 = vld [vmem:[#allocation12 + $0x438] ss:$48 sps:$4 sm:$0xff]  }
 0x7e1   : > { %v3864_v5 = vmul.f32 %v9690_v32, %v12011_v42  ;;  %v3865_v61 = vmul.f32 %v9690_v32, %v12014_v59  ;;  %5229 = vmatprep.mubr.bf16.mxu1 %v12149_v8  ;;  %5505 = vmatpush1.bf16.msra.mxu0 %v9226_v15 }
 0x7e2   : > { %v9692_v58 = vpop.eup %9691  ;;  %5342 = vmatprep.mubr.bf16.mxu0 %v12149_v8  ;;  %5230 = vmatmul.mubr.bf16.gmra.mrb[100].mxu1 %v12147_v1 }
 0x7e3   : > { %v3866_v50 = vmul.f32 %v9692_v58, %v12017_v55  ;;  %v3867_v44 = vmul.f32 %v9692_v58, %v12022_v48  ;;  %v3907_v17 = vmul.f32 %v12054_v13, %v3864_v5  ;;  %5343 = vmatmul.mubr.bf16.gmra.mrb[196].mxu0 %v12147_v1  ;;  %5393 = vmatprep.subr.bf16.mxu1 %v9231_v35  ;;  %v9243_v58 = vld [vmem:[#allocation12 + $0x494] ss:$48 sps:$4 sm:$0xff]  }
 0x7e4   : > { %v3908_v23 = vmul.f32 %v12057_v57, %v3865_v61  ;;  %5506 = vmatprep.subr.bf16.mxu0 %v9234_v2  ;;  %5394 = vmatpush1.bf16.msra.mxu1 %v9229_v41  ;;  %v9241_v2 = vld [vmem:[#allocation12 + $0x490] ss:$48 sps:$4 sm:$0xff]   ;;  %v9246_v41 = vld [vmem:[#allocation12 + $0x49c] ss:$48 sps:$4 sm:$0xff]  }
 0x7e5   : > { %v3909_v15 = vmul.f32 %v12054_v13, %v3866_v50  ;;  %v3910_v29 = vmul.f32 %v12057_v57, %v3867_v44  ;;  %5507 = vmatpush1.bf16.msra.mxu0 %v9232_v3  ;;  %5395 = vmatprep.subr.bf16.mxu1 %v9237_v18  ;;  %v9244_v3 = vld [vmem:[#allocation12 + $0x498] ss:$48 sps:$4 sm:$0xff]   ;;  %v9249_v18 = vld [vmem:[#allocation12 + $0x4f4] ss:$48 sps:$4 sm:$0xff]  }
 0x7e6   : > { %5508 = vmatprep.subr.bf16.mxu0 %v9240_v53 }
 0x7e7   : > { %v12163_v0 = vpack.c.bf16 %v3909_v15, %v3907_v17  ;;  %v12165_v32 = vpack.c.bf16 %v3910_v29, %v3908_v23  ;;  %v9252_v17 = vld [vmem:[#allocation12 + $0x4fc] ss:$48 sps:$4 sm:$0xff]  }
 0x7e8   : > { %v9694_v5 = vpop.eup %9693  ;;  %5396 = vmatpush1.bf16.msra.mxu1 %v9235_v38 }
 0x7e9   : > { %v3868_v35 = vmul.f32 %v9694_v5, %v12031_v14  ;;  %v3869_v61 = vmul.f32 %v9694_v5, %v12034_v40  ;;  %5239 = vmatprep.mubr.bf16.mxu1 %v12165_v32  ;;  %5509 = vmatpush1.bf16.msra.mxu0 %v9238_v12  ;;  %v9247_v12 = vld [vmem:[#allocation12 + $0x4f0] ss:$48 sps:$4 sm:$0xff]   ;;  %v9250_v5 = vld [vmem:[#allocation12 + $0x4f8] ss:$48 sps:$4 sm:$0xff]  }
 0x7ea   : > { %v9696_v50 = vpop.eup %9695  ;;  %5352 = vmatprep.mubr.bf16.mxu0 %v12165_v32  ;;  %5240 = vmatmul.mubr.bf16.gmra.mrb[104].mxu1 %v12163_v0 }
 0x7eb   : > { %v3870_v44 = vmul.f32 %v9696_v50, %v12037_v30  ;;  %v3871_v53 = vmul.f32 %v9696_v50, %v12042_v10  ;;  %v3911_v23 = vmul.f32 %v12054_v13, %v3868_v35  ;;  %5353 = vmatmul.mubr.bf16.gmra.mrb[200].mxu0 %v12163_v0  ;;  %5397 = vmatprep.subr.bf16.mxu1 %v9243_v58  ;;  %v9255_v35 = vld [vmem:[#allocation12 + $0x554] ss:$48 sps:$4 sm:$0xff]   ;;  %v9258_v30 = vld [vmem:[#allocation12 + $0x55c] ss:$48 sps:$4 sm:$0xff]   ;;  %v9253_v58 = vld [vmem:[#allocation12 + $0x550] ss:$48 sps:$4 sm:$0xff]  }
 0x7ec   : > { %v3912_v15 = vmul.f32 %v12057_v57, %v3869_v61  ;;  %5510 = vmatprep.subr.bf16.mxu0 %v9246_v41  ;;  %5398 = vmatpush1.bf16.msra.mxu1 %v9241_v2  ;;  %v9264_v61 = vld [vmem:[#allocation12 + $0x5bc] ss:$48 sps:$4 sm:$0xff]   ;;  %v9259_v2 = vld [vmem:[#allocation12 + $0x5b0] ss:$48 sps:$4 sm:$0xff]   ;;  %v9262_v41 = vld [vmem:[#allocation12 + $0x5b8] ss:$48 sps:$4 sm:$0xff]  }
 0x7ed   : > { %v3913_v29 = vmul.f32 %v12054_v13, %v3870_v44  ;;  %v3914_v38 = vmul.f32 %v12057_v57, %v3871_v53  ;;  %5511 = vmatpush1.bf16.msra.mxu0 %v9244_v3  ;;  %5399 = vmatprep.subr.bf16.mxu1 %v9249_v18  ;;  %v9256_v13 = vld [vmem:[#allocation12 + $0x558] ss:$48 sps:$4 sm:$0xff]   ;;  %v9261_v57 = vld [vmem:[#allocation12 + $0x5b4] ss:$48 sps:$4 sm:$0xff]   ;;  %v9270_v18 = vld [vmem:[#allocation12 + $0x2c] ss:$48 sps:$4 sm:$0xff]  }
 0x7ee   : > { %5512 = vmatprep.subr.bf16.mxu0 %v9252_v17  ;;  %v9267_v3 = vld [vmem:[#allocation12 + $0x24] ss:$48 sps:$4 sm:$0xff]   ;;  %v9265_v44 = vld [vmem:[#allocation12 + $0x20] ss:$48 sps:$4 sm:$0xff]   ;;  %v9268_v53 = vld [vmem:[#allocation12 + $0x28] ss:$48 sps:$4 sm:$0xff]  }
 0x7ef   : > { %v12179_v50 = vpack.c.bf16 %v3913_v29, %v3911_v23  ;;  %v12181_v10 = vpack.c.bf16 %v3914_v38, %v3912_v15  ;;  %v9273_v17 = vld [vmem:[#allocation12 + $0x84] ss:$48 sps:$4 sm:$0xff]   ;;  %v9271_v23 = vld [vmem:[#allocation12 + $0x80] ss:$48 sps:$4 sm:$0xff]   ;;  %v9274_v15 = vld [vmem:[#allocation12 + $0x88] ss:$48 sps:$4 sm:$0xff]  }
 0x7f0   : > { %5400 = vmatpush1.bf16.msra.mxu1 %v9247_v12  ;;  %v9279_v29 = vld [vmem:[#allocation12 + $0xe4] ss:$48 sps:$4 sm:$0xff]   ;;  %v9282_v38 = vld [vmem:[#allocation12 + $0xec] ss:$48 sps:$4 sm:$0xff]   ;;  %v9277_v12 = vld [vmem:[#allocation12 + $0xe0] ss:$48 sps:$4 sm:$0xff]  }
 0x7f1   : > { %5249 = vmatprep.mubr.bf16.mxu1 %v12181_v10  ;;  %5513 = vmatpush1.bf16.msra.mxu0 %v9250_v5  ;;  %v9280_v5 = vld [vmem:[#allocation12 + $0xe8] ss:$48 sps:$4 sm:$0xff]  }
 0x7f2   : > { %5362 = vmatprep.mubr.bf16.mxu0 %v12181_v10  ;;  %5250 = vmatmul.mubr.bf16.gmra.mrb[108].mxu1 %v12179_v50 }
 0x7f3   : > { %5401 = vmatprep.subr.bf16.mxu1 %v9255_v35  ;;  %5363 = vmatmul.mubr.bf16.gmra.mrb[204].mxu0 %v12179_v50  ;;  %v9285_v35 = vld [vmem:[#allocation12 + $0x144] ss:$48 sps:$4 sm:$0xff]  }
 0x7f4   : > { %5514 = vmatprep.subr.bf16.mxu0 %v9258_v30  ;;  %5402 = vmatpush1.bf16.msra.mxu1 %v9253_v58  ;;  %v9276_v30 = vld [vmem:[#allocation12 + $0x8c] ss:$48 sps:$4 sm:$0xff]  }
 0x7f5   : > { %5405 = vmatprep.mubr.bf16.mxu1 %v12069_v54  ;;  %5515 = vmatpush1.bf16.msra.mxu0 %v9256_v13  ;;  %v9288_v58 = vld [vmem:[#allocation12 + $0x14c] ss:$48 sps:$4 sm:$0xff]   ;;  %v9283_v13 = vld [vmem:[#allocation12 + $0x140] ss:$48 sps:$4 sm:$0xff]  }
 0x7f6   : > { %5518 = vmatprep.mubr.bf16.mxu0 %v12069_v54  ;;  %5403 = vmatprep.subr.bf16.mxu1 %v9261_v57  ;;  %v9286_v57 = vld [vmem:[#allocation12 + $0x148] ss:$48 sps:$4 sm:$0xff]  }
 0x7f7   : > { %5516 = vmatprep.subr.bf16.mxu0 %v9264_v61  ;;  %v9291_v61 = vld [vmem:[#allocation12 + $0x1a4] ss:$48 sps:$4 sm:$0xff]  }
 0x7f8   : > { %5404 = vmatpush1.bf16.msra.mxu1 %v9259_v2  ;;  %v9294_v2 = vld [vmem:[#allocation12 + $0x1ac] ss:$48 sps:$4 sm:$0xff]  }
 0x7f9   : > { %5517 = vmatpush1.bf16.msra.mxu0 %v9262_v41  ;;  %5599 = vmatprep.subr.bf16.mxu1 %v9267_v3  ;;  %v9289_v41 = vld [vmem:[#allocation12 + $0x1a0] ss:$48 sps:$4 sm:$0xff]   ;;  %v9292_v3 = vld [vmem:[#allocation12 + $0x1a8] ss:$48 sps:$4 sm:$0xff]  }
 0x7fa   : > { %5712 = vmatprep.subr.bf16.mxu0 %v9270_v18  ;;  %v9297_v18 = vld [vmem:[#allocation12 + $0x204] ss:$48 sps:$4 sm:$0xff]  }
 0x7fb   : > { %5406 = vmatmul.mubr.bf16.vlgmr.msra.gmra.mrb[112].mxu1 %v12067_v34 }
 0x7fc   : > { %5519 = vmatmul.mubr.bf16.vlgmr.msra.gmra.mrb[208].mxu0 %v12067_v34  ;;  %5415 = vmatprep.mubr.bf16.mxu1 %v12085_v28 }
 0x7fd   : > { %5528 = vmatprep.mubr.bf16.mxu0 %v12085_v28  ;;  %5600 = vmatpush1.bf16.msra.mxu1 %v9265_v44  ;;  %v9300_v44 = vld [vmem:[#allocation12 + $0x20c] ss:$48 sps:$4 sm:$0xff]  }
 0x7fe   : > { %5713 = vmatpush1.bf16.msra.mxu0 %v9268_v53  ;;  %5601 = vmatprep.subr.bf16.mxu1 %v9273_v17  ;;  %v9295_v53 = vld [vmem:[#allocation12 + $0x200] ss:$48 sps:$4 sm:$0xff]   ;;  %v9298_v17 = vld [vmem:[#allocation12 + $0x208] ss:$48 sps:$4 sm:$0xff]  }
 0x7ff   : > { %5714 = vmatprep.subr.bf16.mxu0 %v9276_v30  ;;  %v9303_v30 = vld [vmem:[#allocation12 + $0x264] ss:$48 sps:$4 sm:$0xff]  }
 0x801   : > { %5602 = vmatpush1.bf16.msra.mxu1 %v9271_v23  ;;  %v9306_v23 = vld [vmem:[#allocation12 + $0x26c] ss:$48 sps:$4 sm:$0xff]  }
 0x802   : > { %5715 = vmatpush1.bf16.msra.mxu0 %v9274_v15  ;;  %5603 = vmatprep.subr.bf16.mxu1 %v9279_v29  ;;  %v9301_v15 = vld [vmem:[#allocation12 + $0x260] ss:$48 sps:$4 sm:$0xff]   ;;  %v9304_v29 = vld [vmem:[#allocation12 + $0x268] ss:$48 sps:$4 sm:$0xff]  }
 0x803   : > { %5416 = vmatmul.mubr.bf16.gmra.mrb[116].mxu1 %v12083_v37  ;;  %5716 = vmatprep.subr.bf16.mxu0 %v9282_v38  ;;  %v9309_v38 = vld [vmem:[#allocation12 + $0x2c4] ss:$48 sps:$4 sm:$0xff]  }
 0x804   : > { %5529 = vmatmul.mubr.bf16.gmra.mrb[212].mxu0 %v12083_v37  ;;  %5425 = vmatprep.mubr.bf16.mxu1 %v12101_v9 }
 0x805   : > { %5538 = vmatprep.mubr.bf16.mxu0 %v12101_v9  ;;  %5604 = vmatpush1.bf16.msra.mxu1 %v9277_v12  ;;  %v9312_v12 = vld [vmem:[#allocation12 + $0x2cc] ss:$48 sps:$4 sm:$0xff]  }
 0x806   : > { %5717 = vmatpush1.bf16.msra.mxu0 %v9280_v5  ;;  %5605 = vmatprep.subr.bf16.mxu1 %v9285_v35  ;;  %v9307_v5 = vld [vmem:[#allocation12 + $0x2c0] ss:$48 sps:$4 sm:$0xff]   ;;  %v9310_v35 = vld [vmem:[#allocation12 + $0x2c8] ss:$48 sps:$4 sm:$0xff]  }
 0x807   : > { %5718 = vmatprep.subr.bf16.mxu0 %v9288_v58  ;;  %v9315_v58 = vld [vmem:[#allocation12 + $0x324] ss:$48 sps:$4 sm:$0xff]  }
 0x809   : > { %5606 = vmatpush1.bf16.msra.mxu1 %v9283_v13  ;;  %v9318_v13 = vld [vmem:[#allocation12 + $0x32c] ss:$48 sps:$4 sm:$0xff]  }
 0x80a   : > { %5719 = vmatpush1.bf16.msra.mxu0 %v9286_v57  ;;  %5607 = vmatprep.subr.bf16.mxu1 %v9291_v61  ;;  %v9313_v57 = vld [vmem:[#allocation12 + $0x320] ss:$48 sps:$4 sm:$0xff]   ;;  %v9316_v61 = vld [vmem:[#allocation12 + $0x328] ss:$48 sps:$4 sm:$0xff]  }
 0x80b   : > { %5426 = vmatmul.mubr.bf16.gmra.mrb[120].mxu1 %v12099_v16  ;;  %5720 = vmatprep.subr.bf16.mxu0 %v9294_v2  ;;  %v9321_v2 = vld [vmem:[#allocation12 + $0x384] ss:$48 sps:$4 sm:$0xff]  }
 0x80c   : > { %5539 = vmatmul.mubr.bf16.gmra.mrb[216].mxu0 %v12099_v16  ;;  %5435 = vmatprep.mubr.bf16.mxu1 %v12117_v6 }
 0x80d   : > { %5548 = vmatprep.mubr.bf16.mxu0 %v12117_v6  ;;  %5608 = vmatpush1.bf16.msra.mxu1 %v9289_v41  ;;  %v9324_v41 = vld [vmem:[#allocation12 + $0x38c] ss:$48 sps:$4 sm:$0xff]  }
 0x80e   : > { %5721 = vmatpush1.bf16.msra.mxu0 %v9292_v3  ;;  %5609 = vmatprep.subr.bf16.mxu1 %v9297_v18  ;;  %v9319_v3 = vld [vmem:[#allocation12 + $0x380] ss:$48 sps:$4 sm:$0xff]   ;;  %v9322_v18 = vld [vmem:[#allocation12 + $0x388] ss:$48 sps:$4 sm:$0xff]  }
 0x80f   : > { %5722 = vmatprep.subr.bf16.mxu0 %v9300_v44  ;;  %v9327_v44 = vld [vmem:[#allocation12 + $0x3e4] ss:$48 sps:$4 sm:$0xff]  }
 0x811   : > { %5610 = vmatpush1.bf16.msra.mxu1 %v9295_v53  ;;  %v9330_v53 = vld [vmem:[#allocation12 + $0x3ec] ss:$48 sps:$4 sm:$0xff]  }
 0x812   : > { %5723 = vmatpush1.bf16.msra.mxu0 %v9298_v17  ;;  %5611 = vmatprep.subr.bf16.mxu1 %v9303_v30  ;;  %v9325_v17 = vld [vmem:[#allocation12 + $0x3e0] ss:$48 sps:$4 sm:$0xff]   ;;  %v9328_v30 = vld [vmem:[#allocation12 + $0x3e8] ss:$48 sps:$4 sm:$0xff]  }
 0x813   : > { %5436 = vmatmul.mubr.bf16.gmra.mrb[124].mxu1 %v12115_v51  ;;  %5724 = vmatprep.subr.bf16.mxu0 %v9306_v23  ;;  %v9333_v23 = vld [vmem:[#allocation12 + $0x444] ss:$48 sps:$4 sm:$0xff]  }
 0x814   : > { %5549 = vmatmul.mubr.bf16.gmra.mrb[220].mxu0 %v12115_v51  ;;  %5445 = vmatprep.mubr.bf16.mxu1 %v12133_v19 }
 0x815   : > { %5558 = vmatprep.mubr.bf16.mxu0 %v12133_v19  ;;  %5612 = vmatpush1.bf16.msra.mxu1 %v9301_v15  ;;  %v9336_v15 = vld [vmem:[#allocation12 + $0x44c] ss:$48 sps:$4 sm:$0xff]  }
 0x816   : > { %5725 = vmatpush1.bf16.msra.mxu0 %v9304_v29  ;;  %5613 = vmatprep.subr.bf16.mxu1 %v9309_v38  ;;  %v9331_v29 = vld [vmem:[#allocation12 + $0x440] ss:$48 sps:$4 sm:$0xff]   ;;  %v9334_v38 = vld [vmem:[#allocation12 + $0x448] ss:$48 sps:$4 sm:$0xff]  }
 0x817   : > { %5726 = vmatprep.subr.bf16.mxu0 %v9312_v12  ;;  %v9339_v12 = vld [vmem:[#allocation12 + $0x4a4] ss:$48 sps:$4 sm:$0xff]  }
 0x819   : > { %5614 = vmatpush1.bf16.msra.mxu1 %v9307_v5  ;;  %v9342_v5 = vld [vmem:[#allocation12 + $0x4ac] ss:$48 sps:$4 sm:$0xff]  }
 0x81a   : > { %5727 = vmatpush1.bf16.msra.mxu0 %v9310_v35  ;;  %5615 = vmatprep.subr.bf16.mxu1 %v9315_v58  ;;  %v9337_v35 = vld [vmem:[#allocation12 + $0x4a0] ss:$48 sps:$4 sm:$0xff]   ;;  %v9340_v58 = vld [vmem:[#allocation12 + $0x4a8] ss:$48 sps:$4 sm:$0xff]  }
 0x81b   : > { %5446 = vmatmul.mubr.bf16.gmra.mrb[128].mxu1 %v12131_v26  ;;  %5728 = vmatprep.subr.bf16.mxu0 %v9318_v13  ;;  %v9345_v13 = vld [vmem:[#allocation12 + $0x504] ss:$48 sps:$4 sm:$0xff]  }
 0x81c   : > { %5559 = vmatmul.mubr.bf16.gmra.mrb[224].mxu0 %v12131_v26  ;;  %5455 = vmatprep.mubr.bf16.mxu1 %v12149_v8 }
 0x81d   : > { %5568 = vmatprep.mubr.bf16.mxu0 %v12149_v8  ;;  %5616 = vmatpush1.bf16.msra.mxu1 %v9313_v57  ;;  %v9348_v57 = vld [vmem:[#allocation12 + $0x50c] ss:$48 sps:$4 sm:$0xff]  }
 0x81e   : > { %5729 = vmatpush1.bf16.msra.mxu0 %v9316_v61  ;;  %5617 = vmatprep.subr.bf16.mxu1 %v9321_v2  ;;  %v9343_v61 = vld [vmem:[#allocation12 + $0x500] ss:$48 sps:$4 sm:$0xff]   ;;  %v9346_v2 = vld [vmem:[#allocation12 + $0x508] ss:$48 sps:$4 sm:$0xff]  }
 0x81f   : > { %5730 = vmatprep.subr.bf16.mxu0 %v9324_v41  ;;  %v9351_v41 = vld [vmem:[#allocation12 + $0x564] ss:$48 sps:$4 sm:$0xff]  }
 0x821   : > { %5618 = vmatpush1.bf16.msra.mxu1 %v9319_v3  ;;  %v9354_v3 = vld [vmem:[#allocation12 + $0x56c] ss:$48 sps:$4 sm:$0xff]  }
 0x822   : > { %5731 = vmatpush1.bf16.msra.mxu0 %v9322_v18  ;;  %5619 = vmatprep.subr.bf16.mxu1 %v9327_v44  ;;  %v9349_v18 = vld [vmem:[#allocation12 + $0x560] ss:$48 sps:$4 sm:$0xff]   ;;  %v9352_v44 = vld [vmem:[#allocation12 + $0x568] ss:$48 sps:$4 sm:$0xff]  }
 0x823   : > { %5456 = vmatmul.mubr.bf16.gmra.mrb[132].mxu1 %v12147_v1  ;;  %5732 = vmatprep.subr.bf16.mxu0 %v9330_v53  ;;  %v9357_v53 = vld [vmem:[#allocation12 + $0x5c4] ss:$48 sps:$4 sm:$0xff]  }
 0x824   : > { %5569 = vmatmul.mubr.bf16.gmra.mrb[228].mxu0 %v12147_v1  ;;  %5465 = vmatprep.mubr.bf16.mxu1 %v12165_v32 }
 0x825   : > { %5578 = vmatprep.mubr.bf16.mxu0 %v12165_v32  ;;  %5620 = vmatpush1.bf16.msra.mxu1 %v9325_v17  ;;  %v9360_v17 = vld [vmem:[#allocation12 + $0x5cc] ss:$48 sps:$4 sm:$0xff]  }
 0x826   : > { %5733 = vmatpush1.bf16.msra.mxu0 %v9328_v30  ;;  %5621 = vmatprep.subr.bf16.mxu1 %v9333_v23  ;;  %v9355_v30 = vld [vmem:[#allocation12 + $0x5c0] ss:$48 sps:$4 sm:$0xff]   ;;  %v9358_v23 = vld [vmem:[#allocation12 + $0x5c8] ss:$48 sps:$4 sm:$0xff]  }
 0x827   : > { %5734 = vmatprep.subr.bf16.mxu0 %v9336_v15  ;;  %v9363_v15 = vld [vmem:[#allocation14 + $0x4] ss:$8 sps:$4 sm:$0xff]  }
 0x829   : > { %5622 = vmatpush1.bf16.msra.mxu1 %v9331_v29  ;;  %v9361_v29 = vld [vmem:[#allocation14] ss:$8 sps:$4 sm:$0xff]  }
 0x82a   : > { %5735 = vmatpush1.bf16.msra.mxu0 %v9334_v38  ;;  %5623 = vmatprep.subr.bf16.mxu1 %v9339_v12  ;;  %v9366_v38 = vld [vmem:[#allocation14 + $0x14] ss:$8 sps:$4 sm:$0xff]   ;;  %v9369_v12 = vld [vmem:[#allocation14 + $0x24] ss:$8 sps:$4 sm:$0xff]  }
 0x82b   : > { %5466 = vmatmul.mubr.bf16.gmra.mrb[136].mxu1 %v12163_v0  ;;  %5736 = vmatprep.subr.bf16.mxu0 %v9342_v5  ;;  %v9367_v5 = vld [vmem:[#allocation14 + $0x20] ss:$8 sps:$4 sm:$0xff]  }
 0x82c   : > { %5579 = vmatmul.mubr.bf16.gmra.mrb[232].mxu0 %v12163_v0  ;;  %5475 = vmatprep.mubr.bf16.mxu1 %v12181_v10 }
 0x82d   : > { %5588 = vmatprep.mubr.bf16.mxu0 %v12181_v10  ;;  %5624 = vmatpush1.bf16.msra.mxu1 %v9337_v35  ;;  %v9372_v35 = vld [vmem:[#allocation14 + $0x34] ss:$8 sps:$4 sm:$0xff]  }
 0x82e   : > { %5737 = vmatpush1.bf16.msra.mxu0 %v9340_v58  ;;  %5625 = vmatprep.subr.bf16.mxu1 %v9345_v13  ;;  %v9373_v58 = vld [vmem:[#allocation14 + $0x40] ss:$8 sps:$4 sm:$0xff]   ;;  %v9378_v13 = vld [vmem:[#allocation14 + $0x54] ss:$8 sps:$4 sm:$0xff]  }
 0x82f   : > { %5738 = vmatprep.subr.bf16.mxu0 %v9348_v57  ;;  %v9379_v57 = vld [vmem:[#allocation14 + $0x60] ss:$8 sps:$4 sm:$0xff]  }
 0x831   : > { %5626 = vmatpush1.bf16.msra.mxu1 %v9343_v61  ;;  %v9385_v61 = vld [vmem:[#allocation14 + $0x80] ss:$8 sps:$4 sm:$0xff]  }
 0x832   : > { %5739 = vmatpush1.bf16.msra.mxu0 %v9346_v2  ;;  %5627 = vmatprep.subr.bf16.mxu1 %v9351_v41  ;;  %v9388_v2 = vld [vmem:[#allocation14 + $0x90] ss:$8 sps:$4 sm:$0xff]   ;;  %v9399_v41 = vld [vmem:[#allocation14 + $0xc4] ss:$8 sps:$4 sm:$0xff]  }
 0x833   : > { %5476 = vmatmul.mubr.bf16.gmra.mrb[140].mxu1 %v12179_v50  ;;  %5740 = vmatprep.subr.bf16.mxu0 %v9354_v3  ;;  %v9397_v3 = vld [vmem:[#allocation14 + $0xc0] ss:$8 sps:$4 sm:$0xff]  }
 0x834   : > { %5589 = vmatmul.mubr.bf16.gmra.mrb[236].mxu0 %v12179_v50  ;;  %5631 = vmatprep.mubr.bf16.mxu1 %v12069_v54 }
 0x835   : > { %5628 = vmatpush1.bf16.msra.mxu1 %v9349_v18  ;;  %5744 = vmatprep.mubr.bf16.mxu0 %v12069_v54  ;;  %v9364_v54 = vld [vmem:[#allocation14 + $0x10] ss:$8 sps:$4 sm:$0xff]  }
 0x836   : > { %5741 = vmatpush1.bf16.msra.mxu0 %v9352_v44  ;;  %5629 = vmatprep.subr.bf16.mxu1 %v9357_v53  ;;  %v9400_v18 = vld [vmem:[#allocation14 + $0xd0] ss:$8 sps:$4 sm:$0xff]  }
 0x837   : > { %5742 = vmatprep.subr.bf16.mxu0 %v9360_v17 }
 0x839   : > { %5630 = vmatpush1.bf16.msra.mxu1 %v9355_v30 }
 0x83a   : > { %5743 = vmatpush1.bf16.msra.mxu0 %v9358_v23  ;;  %7229 = vmatprep.subr.bf16.mxu1 %v9363_v15 }
 0x83c   : > { %5632 = vmatmul.mubr.bf16.vlgmr.msra.gmra.mrb[144].mxu1 %v12067_v34 }
 0x83d   : > { %5745 = vmatmul.mubr.bf16.vlgmr.msra.gmra.mrb[240].mxu0 %v12067_v34  ;;  %5641 = vmatprep.mubr.bf16.mxu1 %v12085_v28  ;;  %v9370_v34 = vld [vmem:[#allocation14 + $0x30] ss:$8 sps:$4 sm:$0xff]  }
 0x83e   : > { %5754 = vmatprep.mubr.bf16.mxu0 %v12085_v28  ;;  %7230 = vmatpush1.bf16.msra.mxu1 %v9361_v29  ;;  %v9375_v28 = vld [vmem:[#allocation14 + $0x44] ss:$8 sps:$4 sm:$0xff]  }
 0x83f   : > { %7231 = vmatprep.subr.bf16.mxu1 %v9366_v38 }
 0x842   : > { %7232 = vmatpush1.bf16.msra.mxu1 %v9364_v54 }
 0x843   : > { %7233 = vmatprep.subr.bf16.mxu1 %v9369_v12 }
 0x844   : > { %5642 = vmatmul.mubr.bf16.gmra.mrb[148].mxu1 %v12083_v37 }
 0x845   : > { %5755 = vmatmul.mubr.bf16.gmra.mrb[244].mxu0 %v12083_v37  ;;  %5651 = vmatprep.mubr.bf16.mxu1 %v12101_v9  ;;  %v9376_v37 = vld [vmem:[#allocation14 + $0x50] ss:$8 sps:$4 sm:$0xff]  }
 0x846   : > { %5764 = vmatprep.mubr.bf16.mxu0 %v12101_v9  ;;  %7234 = vmatpush1.bf16.msra.mxu1 %v9367_v5  ;;  %v9381_v9 = vld [vmem:[#allocation14 + $0x64] ss:$8 sps:$4 sm:$0xff]  }
 0x847   : > { %7235 = vmatprep.subr.bf16.mxu1 %v9372_v35 }
 0x84a   : > { %7236 = vmatpush1.bf16.msra.mxu1 %v9370_v34 }
 0x84b   : > { %7237 = vmatprep.subr.bf16.mxu1 %v9375_v28 }
 0x84c   : > { %5652 = vmatmul.mubr.bf16.gmra.mrb[152].mxu1 %v12099_v16 }
 0x84d   : > { %5765 = vmatmul.mubr.bf16.gmra.mrb[248].mxu0 %v12099_v16  ;;  %5661 = vmatprep.mubr.bf16.mxu1 %v12117_v6  ;;  %v9384_v16 = vld [vmem:[#allocation14 + $0x74] ss:$8 sps:$4 sm:$0xff]  }
 0x84e   : > { %5774 = vmatprep.mubr.bf16.mxu0 %v12117_v6  ;;  %7238 = vmatpush1.bf16.msra.mxu1 %v9373_v58  ;;  %v9382_v6 = vld [vmem:[#allocation14 + $0x70] ss:$8 sps:$4 sm:$0xff]  }
 0x84f   : > { %7239 = vmatprep.subr.bf16.mxu1 %v9378_v13 }
 0x852   : > { %7240 = vmatpush1.bf16.msra.mxu1 %v9376_v37  ;;  %v9405_v37 = vld [vmem:[#allocation14 + $0xe4] ss:$8 sps:$4 sm:$0xff]  }
 0x853   : > { %7241 = vmatprep.subr.bf16.mxu1 %v9381_v9 }
 0x854   : > { %5662 = vmatmul.mubr.bf16.gmra.mrb[156].mxu1 %v12115_v51 }
 0x855   : > { %5775 = vmatmul.mubr.bf16.gmra.mrb[252].mxu0 %v12115_v51  ;;  %5671 = vmatprep.mubr.bf16.mxu1 %v12133_v19  ;;  %v9387_v51 = vld [vmem:[#allocation14 + $0x84] ss:$8 sps:$4 sm:$0xff]  }
 0x856   : > { %5784 = vmatprep.mubr.bf16.mxu0 %v12133_v19  ;;  %7242 = vmatpush1.bf16.msra.mxu1 %v9379_v57  ;;  %v9390_v19 = vld [vmem:[#allocation14 + $0x94] ss:$8 sps:$4 sm:$0xff]  }
 0x857   : > { %7243 = vmatprep.subr.bf16.mxu1 %v9384_v16 }
 0x85a   : > { %7244 = vmatpush1.bf16.msra.mxu1 %v9382_v6 }
 0x85b   : > { %7245 = vmatprep.subr.bf16.mxu1 %v9387_v51 }
 0x85c   : > { %5672 = vmatmul.mubr.bf16.gmra.mrb[160].mxu1 %v12131_v26 }
 0x85d   : > { %5785 = vmatmul.mubr.bf16.gmra.mrb[0].mxu0 %v12131_v26  ;;  %5681 = vmatprep.mubr.bf16.mxu1 %v12149_v8  ;;  %v9393_v26 = vld [vmem:[#allocation14 + $0xa4] ss:$8 sps:$4 sm:$0xff]  }
 0x85e   : > { %5794 = vmatprep.mubr.bf16.mxu0 %v12149_v8  ;;  %7246 = vmatpush1.bf16.msra.mxu1 %v9385_v61  ;;  %v9396_v8 = vld [vmem:[#allocation14 + $0xb4] ss:$8 sps:$4 sm:$0xff]  }
 0x85f   : > { %7247 = vmatprep.subr.bf16.mxu1 %v9390_v19 }
 0x862   : > { %7248 = vmatpush1.bf16.msra.mxu1 %v9388_v2 }
 0x863   : > { %7249 = vmatprep.subr.bf16.mxu1 %v9393_v26 }
 0x864   : > { %5682 = vmatmul.mubr.bf16.gmra.mrb[164].mxu1 %v12147_v1 }
 0x865   : > { %5795 = vmatmul.mubr.bf16.gmra.mrb[4].mxu0 %v12147_v1  ;;  %5691 = vmatprep.mubr.bf16.mxu1 %v12165_v32  ;;  %v9391_v1 = vld [vmem:[#allocation14 + $0xa0] ss:$8 sps:$4 sm:$0xff]  }
 0x866   : > { %5804 = vmatprep.mubr.bf16.mxu0 %v12165_v32  ;;  %7250 = vmatpush1.bf16.msra.mxu1 %v9391_v1  ;;  %v9394_v32 = vld [vmem:[#allocation14 + $0xb0] ss:$8 sps:$4 sm:$0xff]  }
 0x867   : > { %7251 = vmatprep.subr.bf16.mxu1 %v9396_v8  ;;  %v9403_v8 = vld [vmem:[#allocation14 + $0xe0] ss:$8 sps:$4 sm:$0xff]  }
 0x86a   : > { %7252 = vmatpush1.bf16.msra.mxu1 %v9394_v32 }
 0x86b   : > { %7253 = vmatprep.subr.bf16.mxu1 %v9399_v41 }
 0x86c   : > { %5692 = vmatmul.mubr.bf16.gmra.mrb[168].mxu1 %v12163_v0 }
 0x86d   : > { %5805 = vmatmul.mubr.bf16.gmra.mrb[8].mxu0 %v12163_v0  ;;  %5701 = vmatprep.mubr.bf16.mxu1 %v12181_v10  ;;  %v9402_v0 = vld [vmem:[#allocation14 + $0xd4] ss:$8 sps:$4 sm:$0xff]  }
 0x86e   : > { %5814 = vmatprep.mubr.bf16.mxu0 %v12181_v10  ;;  %7254 = vmatpush1.bf16.msra.mxu1 %v9397_v3  ;;  %v14276_v10 = vld [vmem:[#allocation21_spill] sm:$0xff]  ;;  %v9408_v3 = vld [vmem:[#allocation14 + $0xf4] ss:$8 sps:$4 sm:$0xff]  }
 0x86f   : > { %7255 = vmatprep.subr.bf16.mxu1 %v9402_v0  ;;  %v13955_v44 = vsub.s32 2, %v14276_v10  ;;  %v13954_v53 = vsub.s32 3, %v14276_v10 }
 0x872   : > { %7256 = vmatpush1.bf16.msra.mxu1 %v9400_v18  ;;  %v9406_v18 = vld [vmem:[#allocation14 + $0xf0] ss:$8 sps:$4 sm:$0xff]  }
 0x873   : > { %7257 = vmatprep.subr.bf16.mxu1 %v9405_v37 }
 0x874   : > { %5702 = vmatmul.mubr.bf16.gmra.mrb[172].mxu1 %v12179_v50 }
 0x875   : > { %5815 = vmatmul.mubr.bf16.gmra.mrb[12].mxu0 %v12179_v50  ;;  %v12255_v50 = vld [vmem:[%s14277_s25] sm:$0xff] }
 0x876   : > { %v12260_v17 = vrot.slane %v12255_v50, %v14274_v24  ;;  %v12265_v30 = vrot.slane %v12255_v50, %v13955_v44  ;;  %v12269_v23 = vrot.slane %v12255_v50, %v14275_v63  ;;  %v12274_v15 = vrot.slane %v12255_v50, %v13954_v53  ;;  %7258 = vmatpush1.bf16.msra.mxu1 %v9403_v8 }
 0x877   : > { %7259 = vmatprep.subr.bf16.mxu1 %v9408_v3 }
 0x87a   : > { %7260 = vmatpush1.bf16.msra.mxu1 %v9406_v18  ;;  %v4149_v18 = vsub.s32 5, %v14276_v10 }
 0x87c   : > { %v12348_v4 = vrot.slane %v12255_v50, %v4149_v18 }
 0x88d   : > { %v5181_v29 = vpop.f32.mrb[80].mxu1  ;;  %v5294_v38 = vpop.f32.mrb[176].mxu0 }
 0x88e   : > { %v12277_v54 = vadd.f32 %v5181_v29, %v12260_v17  ;;  %v12280_v12 = vadd.f32 %v5294_v38, %v12265_v30  ;;  %v5183_v5 = vpop.f32.mrb[81].mxu1  ;;  %v5296_v35 = vpop.f32.mrb[177].mxu0 }
 0x88f   : > { %v12283_v34 = vadd.f32 %v5183_v5, %v12269_v23  ;;  %v12286_v28 = vadd.f32 %v5296_v35, %v12274_v15  ;;  %v5185_v58 = vpop.f32.mrb[82].mxu1  ;;  %v5298_v13 = vpop.f32.mrb[178].mxu0 }
 0x890   : > { %v8181_v9 = vmul.f32 -1.442695, %v12277_v54  ;;  %v8183_v57 = vmul.f32 -1.442695, %v12280_v12  ;;  %v12291_v16 = vadd.f32 %v5185_v58, %v12260_v17  ;;  %v12294_v6 = vadd.f32 %v5298_v13, %v12265_v30  ;;  %v5187_v51 = vpop.f32.mrb[83].mxu1  ;;  %v5300_v61 = vpop.f32.mrb[179].mxu0 }
 0x891   : > { %v8182_v19 = vmul.f32 -1.442695, %v12283_v34  ;;  %v8184_v2 = vmul.f32 -1.442695, %v12286_v28  ;;  %v12299_v26 = vadd.f32 %v5187_v51, %v12269_v23  ;;  %v12302_v1 = vadd.f32 %v5300_v61, %v12274_v15 }
 0x892   : > { %9697 = vpow2.f32 %v8181_v9  ;;  %v8187_v32 = vmul.f32 -1.442695, %v12291_v16  ;;  %v8189_v41 = vmul.f32 -1.442695, %v12294_v6 }
 0x893   : > { %9699 = vpow2.f32 %v8183_v57  ;;  %v8188_v0 = vmul.f32 -1.442695, %v12299_v26  ;;  %v8190_v29 = vmul.f32 -1.442695, %v12302_v1 }
 0x894   : > { %9701 = vpow2.f32 %v8182_v19  ;;  %v4145_v19 = vsub.s32 4, %v14276_v10 }
 0x895   : > { %9703 = vpow2.f32 %v8184_v2  ;;  %v5191_v38 = vpop.f32.mrb[84].mxu1  ;;  %v5304_v5 = vpop.f32.mrb[180].mxu0  ;;  %v9411_v2 = vld [vmem:[#allocation14 + $0x104] ss:$8 sps:$4 sm:$0xff]  }
 0x896   : > { %9705 = vpow2.f32 %v8187_v32  ;;  %v12309_v35 = vadd.f32 %v5191_v38, %v12260_v17  ;;  %v12312_v58 = vadd.f32 %v5304_v5, %v12265_v30  ;;  %v5193_v13 = vpop.f32.mrb[85].mxu1  ;;  %v5306_v37 = vpop.f32.mrb[181].mxu0  ;;  %7342 = vmatprep.subr.bf16.mxu1 %v9411_v2  ;;  %v4157_v2 = vsub.s32 7, %v14276_v10 }
 0x897   : > { %9707 = vpow2.f32 %v8189_v41  ;;  %v12315_v9 = vadd.f32 %v5193_v13, %v12269_v23  ;;  %v12318_v57 = vadd.f32 %v5306_v37, %v12274_v15  ;;  %v5195_v51 = vpop.f32.mrb[86].mxu1  ;;  %v5308_v61 = vpop.f32.mrb[182].mxu0  ;;  %v4153_v37 = vsub.s32 6, %v14276_v10 }
 0x898   : > { %9709 = vpow2.f32 %v8188_v0  ;;  %v8193_v8 = vmul.f32 -1.442695, %v12309_v35  ;;  %v8195_v32 = vmul.f32 -1.442695, %v12312_v58  ;;  %v12324_v3 = vadd.f32 %v5195_v51, %v12260_v17  ;;  %v5197_v41 = vpop.f32.mrb[87].mxu1  ;;  %v5310_v38 = vpop.f32.mrb[183].mxu0 }
 0x899   : > { %9711 = vpow2.f32 %v8190_v29  ;;  %v8194_v5 = vmul.f32 -1.442695, %v12315_v9  ;;  %v8196_v13 = vmul.f32 -1.442695, %v12318_v57  ;;  %v12332_v51 = vrot.slane %v12255_v50, %v4145_v19 }
 0x89a   : > { %9713 = vpow2.f32 %v8193_v8  ;;  %v8199_v0 = vmul.f32 -1.442695, %v12324_v3  ;;  %v12335_v48 = vrot.slane %v12255_v50, %v4153_v37  ;;  %v12345_v42 = vadd.f32 %v5310_v38, %v12274_v15 }
 0x89b   : > { %9715 = vpow2.f32 %v8195_v32  ;;  %v12339_v32 = vadd.f32 %v5308_v61, %v12265_v30  ;;  %v12360_v18 = vrot.slane %v12255_v50, %v4157_v2 }
 0x89c   : > { %v9698_v53 = vpop.eup %9697  ;;  %9717 = vpow2.f32 %v8194_v5  ;;  %v12342_v5 = vadd.f32 %v5197_v41, %v12269_v23 }
 0x89d   : > { %v9700_v44 = vpop.eup %9699  ;;  %v6113_v29 = vadd.f32 1.0, %v9698_v53  ;;  %9719 = vpow2.f32 %v8196_v13  ;;  %v5201_v40 = vpop.f32.mrb[88].mxu1 }
 0x89e   : > { %v5314_v14 = vpop.f32.mrb[184].mxu0  ;;  %v9702_v8 = vpop.eup %9701  ;;  %v6115_v55 = vadd.f32 1.0, %v9700_v44  ;;  %9721 = vpow2.f32 %v8199_v0  ;;  %v12351_v0 = vadd.f32 %v5201_v40, %v12260_v17  ;;  %v8201_v40 = vmul.f32 -1.442695, %v12339_v32 }
 0x89f   : > { %v5203_v19 = vpop.f32.mrb[89].mxu1  ;;  %v5316_v59 = vpop.f32.mrb[185].mxu0  ;;  %9723 = vrcp.f32 %v6113_v29  ;;  %v6114_v13 = vadd.f32 1.0, %v9702_v8  ;;  %v12354_v41 = vadd.f32 %v5314_v14, %v12265_v30 }
 0x8a0   : > { %v9704_v53 = vpop.eup %9703  ;;  %v5205_v37 = vpop.f32.mrb[90].mxu1  ;;  %9725 = vrcp.f32 %v6115_v55  ;;  %v12357_v38 = vadd.f32 %v5203_v19, %v12269_v23  ;;  %v12368_v19 = vadd.f32 %v5316_v59, %v12274_v15  ;;  %v12371_v2 = vmul.f32 -1.442695, %v12351_v0 }
 0x8a1   : > { %v5318_v20 = vpop.f32.mrb[186].mxu0  ;;  %v9706_v44 = vpop.eup %9705  ;;  %v6116_v61 = vadd.f32 1.0, %v9704_v53  ;;  %9727 = vrcp.f32 %v6114_v13  ;;  %v8200_v53 = vmul.f32 -1.442695, %v12342_v5  ;;  %v12365_v13 = vmul.f32 -1.442695, %v12345_v42 }
 0x8a2   : > { %v5207_v60 = vpop.f32.mrb[91].mxu1  ;;  %v9708_v29 = vpop.eup %9707  ;;  %v6119_v8 = vadd.f32 1.0, %v9706_v44  ;;  %v8208_v45 = vmul.f32 -1.442695, %v12368_v19 }
 0x8a3   : > { %v5320_v62 = vpop.f32.mrb[187].mxu0  ;;  %v9710_v39 = vpop.eup %9709  ;;  %9729 = vrcp.f32 %v6116_v61  ;;  %v6121_v55 = vadd.f32 1.0, %v9708_v29  ;;  %v12374_v61 = vmul.f32 -1.442695, %v12354_v41  ;;  %v12386_v21 = vadd.f32 %v5207_v60, %v12269_v23 }
 0x8a4   : > { %v9712_v14 = vpop.eup %9711  ;;  %9731 = vrcp.f32 %v6119_v8  ;;  %v6120_v56 = vadd.f32 1.0, %v9710_v39  ;;  %v12377_v39 = vmul.f32 -1.442695, %v12357_v38  ;;  %v12380_v8 = vadd.f32 %v5205_v37, %v12260_v17 }
 0x8a5   : > { %v9714_v44 = vpop.eup %9713  ;;  %9733 = vrcp.f32 %v6121_v55  ;;  %v6122_v50 = vadd.f32 1.0, %v9712_v14  ;;  %v5211_v59 = vpop.f32.mrb[92].mxu1  ;;  %v12383_v14 = vadd.f32 %v5318_v20, %v12265_v30  ;;  %v12389_v46 = vadd.f32 %v5320_v62, %v12274_v15 }
 0x8a6   : > { %v9716_v29 = vpop.eup %9715  ;;  %9735 = vrcp.f32 %v6120_v56  ;;  %v6125_v31 = vadd.f32 1.0, %v9714_v44  ;;  %v5324_v33 = vpop.f32.mrb[188].mxu0  ;;  %v12392_v37 = vadd.f32 %v5211_v59, %v12260_v17 }
 0x8a7   : > { %v9718_v52 = vpop.eup %9717  ;;  %9737 = vrcp.f32 %v6122_v50  ;;  %v6127_v55 = vadd.f32 1.0, %v9716_v29  ;;  %v5213_v7 = vpop.f32.mrb[93].mxu1  ;;  %v12395_v49 = vadd.f32 %v5324_v33, %v12265_v30  ;;  %v8213_v33 = vmul.f32 -1.442695, %v12383_v14 }
 0x8a8   : > { %v9720_v56 = vpop.eup %9719  ;;  %9739 = vrcp.f32 %v6125_v31  ;;  %v6126_v44 = vadd.f32 1.0, %v9718_v52  ;;  %v5326_v47 = vpop.f32.mrb[189].mxu0  ;;  %v12398_v60 = vadd.f32 %v5213_v7, %v12269_v23  ;;  %v8212_v7 = vmul.f32 -1.442695, %v12386_v21 }
 0x8a9   : > { %v5215_v50 = vpop.f32.mrb[94].mxu1  ;;  %v9722_v29 = vpop.eup %9721  ;;  %9741 = vrcp.f32 %v6127_v55  ;;  %v6128_v20 = vadd.f32 1.0, %v9720_v56  ;;  %v12402_v59 = vadd.f32 %v5326_v47, %v12274_v15  ;;  %v8211_v55 = vmul.f32 -1.442695, %v12380_v8 }
 0x8aa   : > { %14278 = vst [vmem:[#allocation40_spill] sm:$0xff] %v12398_v60  ;;  %v5328_v11 = vpop.f32.mrb[190].mxu0  ;;  %v5217_v31 = vpop.f32.mrb[95].mxu1  ;;  %9743 = vrcp.f32 %v6126_v44  ;;  %v6131_v62 = vadd.f32 1.0, %v9722_v29  ;;  %v12408_v25 = vmul.f32 -1.442695, %v12389_v46  ;;  %v12414_v47 = vadd.f32 %v5215_v50, %v12260_v17 }
 0x8ab   : > { %v9724_v52 = vpop.eup %9723  ;;  %14279 = vst [vmem:[#allocation81_spill] sm:$0xff] %v12402_v59  ;;  %v5330_v43 = vpop.f32.mrb[191].mxu0  ;;  %9745 = vrcp.f32 %v6128_v20  ;;  %v12411_v44 = vmul.f32 -1.442695, %v12392_v37  ;;  %v12417_v20 = vmul.f32 -1.442695, %v12395_v49  ;;  %v12423_v36 = vadd.f32 %v5328_v11, %v12265_v30 }
 0x8ac   : > { %v9726_v22 = vpop.eup %9725  ;;  %9747 = vrcp.f32 %v6131_v62  ;;  %14280 = vst [vmem:[#allocation80_spill] sm:$0xff] %v12414_v47  ;;  %v12420_v27 = vmul.f32 -1.442695, %v12398_v60  ;;  %v12426_v10 = vmul.f32 %v9724_v52, %v12277_v54  ;;  %v12429_v63 = vmul.f32 -1.442695, %v12402_v59 }
 0x8ad   : > { %v9728_v56 = vpop.eup %9727  ;;  %9749 = vpow2.f32 %v8201_v40  ;;  %14281 = vst [vmem:[#allocation41_spill] sm:$0xff] %v12423_v36  ;;  %v12432_v50 = vadd.f32 %v5217_v31, %v12269_v23  ;;  %v12435_v24 = vmul.f32 %v9726_v22, %v12280_v12  ;;  %v12442_v11 = vadd.f32 %v5330_v43, %v12274_v15  ;;  %v5221_v54 = vpop.f32.mrb[96].mxu1 }
 0x8ae   : > { %v9730_v29 = vpop.eup %9729  ;;  %9751 = vpow2.f32 %v8200_v53  ;;  %v12438_v60 = vmul.f32 %v9728_v56, %v12283_v34  ;;  %v12449_v31 = vmul.f32 -1.442695, %v12414_v47  ;;  %v12452_v22 = vadd.f32 %v5221_v54, %v12260_v17  ;;  %v5334_v12 = vpop.f32.mrb[192].mxu0 }
 0x8af   : > { %v9732_v62 = vpop.eup %9731  ;;  %14282 = vst [vmem:[#allocation87_spill] sm:$0xff] %v12432_v50  ;;  %14283 = vst [vmem:[#allocation82_spill] sm:$0xff] %v12435_v24  ;;  %9753 = vpow2.f32 %v12365_v13  ;;  %v12445_v52 = vmul.f32 %v9730_v29, %v12286_v28  ;;  %v5223_v34 = vpop.f32.mrb[97].mxu1  ;;  %v12456_v43 = vmul.f32 -1.442695, %v12423_v36  ;;  %v12459_v13 = vadd.f32 %v5334_v12, %v12265_v30 }
 0x8b0   : > { %v9734_v40 = vpop.eup %9733  ;;  %14284 = vst [vmem:[#allocation42_spill] sm:$0xff] %v12442_v11  ;;  %9755 = vpow2.f32 %v12371_v2  ;;  %14286 = vst [vmem:[#allocation44_spill] sm:$0xff] %v12452_v22  ;;  %v12462_v28 = vadd.f32 %v5223_v34, %v12269_v23  ;;  %v5336_v2 = vpop.f32.mrb[193].mxu0  ;;  %v12465_v54 = vmul.f32 %v9732_v62, %v12291_v16  ;;  %v12469_v24 = vmul.f32 -1.442695, %v12432_v50 }
 0x8b1   : > { %v9736_v53 = vpop.eup %9735  ;;  %14285 = vst [vmem:[#allocation43_spill] sm:$0xff] %v12445_v52  ;;  %9757 = vpow2.f32 %v12374_v61  ;;  %14287 = vst [vmem:[#allocation89_spill] sm:$0xff] %v12459_v13  ;;  %v5225_v29 = vpop.f32.mrb[98].mxu1  ;;  %v12472_v61 = vadd.f32 %v5336_v2, %v12274_v15  ;;  %v12475_v34 = vmul.f32 %v9734_v40, %v12294_v6  ;;  %v12481_v16 = vmul.f32 -1.442695, %v12442_v11 }
 0x8b2   : > { %v9738_v56 = vpop.eup %9737  ;;  %14288 = vst [vmem:[#allocation88_spill] sm:$0xff] %v12462_v28  ;;  %14289 = vst [vmem:[#allocation45_spill] sm:$0xff] %v12465_v54  ;;  %9759 = vpow2.f32 %v12377_v39  ;;  %v5338_v36 = vpop.f32.mrb[194].mxu0  ;;  %v12478_v59 = vmul.f32 %v9736_v53, %v12299_v26  ;;  %v12487_v2 = vmul.f32 -1.442695, %v12452_v22  ;;  %v12490_v54 = vadd.f32 %v5225_v29, %v12260_v17 }
 0x8b3   : > { %v9740_v52 = vpop.eup %9739  ;;  %14290 = vst [vmem:[#allocation94_spill] sm:$0xff] %v12472_v61  ;;  %v5227_v12 = vpop.f32.mrb[99].mxu1  ;;  %14291 = vst [vmem:[#allocation90_spill] sm:$0xff] %v12475_v34  ;;  %9761 = vpow2.f32 %v8208_v45  ;;  %v12484_v50 = vmul.f32 %v9738_v56, %v12302_v1  ;;  %v12496_v45 = vmul.f32 -1.442695, %v12459_v13 }
 0x8b4   : > { %v9742_v47 = vpop.eup %9741  ;;  %v5340_v39 = vpop.f32.mrb[195].mxu0  ;;  %9763 = vpow2.f32 %v8211_v55  ;;  %14293 = vst [vmem:[#allocation47_spill] sm:$0xff] %v12490_v54  ;;  %v12493_v26 = vmul.f32 %v9740_v52, %v12309_v35  ;;  %v12499_v40 = vmul.f32 -1.442695, %v12462_v28  ;;  %v12508_v56 = vmul.f32 -1.442695, %v12472_v61 }
 0x8b5   : > { %v9744_v62 = vpop.eup %9743  ;;  %14292 = vst [vmem:[#allocation46_spill] sm:$0xff] %v12484_v50  ;;  %9765 = vpow2.f32 %v8213_v33  ;;  %v12502_v55 = vmul.f32 %v9742_v47, %v12312_v58  ;;  %v12515_v52 = vadd.f32 %v5338_v36, %v12265_v30  ;;  %v12518_v29 = vadd.f32 %v5227_v12, %v12269_v23  ;;  %v5231_v58 = vpop.f32.mrb[100].mxu1 }
 0x8b6   : > { %v9746_v6 = vpop.eup %9745  ;;  %v12505_v53 = vmul.f32 %v9744_v62, %v12315_v9  ;;  %9767 = vpow2.f32 %v8212_v7  ;;  %v12522_v7 = vmul.f32 -1.442695, %v12490_v54  ;;  %v12525_v62 = vadd.f32 %v5340_v39, %v12274_v15 }
 0x8b7   : > { %v9748_v1 = vpop.eup %9747  ;;  %14294 = vst [vmem:[#allocation51_spill] sm:$0xff] %v12502_v55  ;;  %v12511_v33 = vmul.f32 %v9746_v6, %v12318_v57  ;;  %9769 = vpow2.f32 %v12408_v25  ;;  %14296 = vst [vmem:[#allocation59_spill] sm:$0xff] %v12515_v52  ;;  %v5344_v57 = vpop.f32.mrb[196].mxu0  ;;  %v12532_v12 = vadd.f32 %v5231_v58, %v12260_v17 }
 0x8b8   : > { %v9750_v35 = vpop.eup %9749  ;;  %14297 = vst [vmem:[#allocation58_spill] sm:$0xff] %v12518_v29  ;;  %9771 = vpow2.f32 %v12411_v44  ;;  %14298 = vst [vmem:[#allocation53_spill] sm:$0xff] %v12525_v62  ;;  %v5233_v6 = vpop.f32.mrb[101].mxu1  ;;  %v12528_v36 = vmul.f32 %v9748_v1, %v12324_v3  ;;  %v12535_v39 = vadd.f32 %v5344_v57, %v12265_v30  ;;  %v12547_v57 = vmul.f32 -1.442695, %v12518_v29 }
 0x8b9   : > { %14295 = vst [vmem:[#allocation50_spill] sm:$0xff] %v12511_v33  ;;  %v9752_v47 = vpop.eup %9751  ;;  %v6133_v9 = vadd.f32 1.0, %v9750_v35  ;;  %9773 = vpow2.f32 %v12417_v20  ;;  %14299 = vst [vmem:[#allocation52_spill] sm:$0xff] %v12532_v12  ;;  %v5346_v35 = vpop.f32.mrb[197].mxu0  ;;  %v12538_v34 = vadd.f32 %v5233_v6, %v12269_v23  ;;  %v12541_v20 = vmul.f32 -1.442695, %v12515_v52 }
 0x8ba   : > { %v9754_v25 = vpop.eup %9753  ;;  %v6132_v33 = vadd.f32 1.0, %v9752_v47  ;;  %v5235_v44 = vpop.f32.mrb[102].mxu1  ;;  %14300 = vst [vmem:[#allocation62_spill] sm:$0xff] %v12535_v39  ;;  %v12544_v58 = vadd.f32 %v5346_v35, %v12274_v15  ;;  %v12556_v52 = vmul.f32 -1.442695, %v12532_v12 }
 0x8bb   : > { %v9756_v55 = vpop.eup %9755  ;;  %9775 = vrcp.f32 %v6133_v9  ;;  %v6134_v50 = vadd.f32 1.0, %v9754_v25  ;;  %14301 = vst [vmem:[#allocation61_spill] sm:$0xff] %v12538_v34  ;;  %v5348_v54 = vpop.f32.mrb[198].mxu0  ;;  %v12550_v6 = vadd.f32 %v5235_v44, %v12260_v17 }
 0x8bc   : > { %v5237_v3 = vpop.f32.mrb[103].mxu1  ;;  %v9758_v1 = vpop.eup %9757  ;;  %9777 = vrcp.f32 %v6132_v33  ;;  %v6137_v47 = vadd.f32 1.0, %v9756_v55  ;;  %14302 = vst [vmem:[#allocation68_spill] sm:$0xff] %v12544_v58  ;;  %v12553_v55 = vmul.f32 -1.442695, %v12525_v62  ;;  %14304 = vst [vmem:[#allocation76_spill] sm:$0xff] %v12556_v52 }
 0x8bd   : > { %v5350_v61 = vpop.f32.mrb[199].mxu0  ;;  %v9760_v9 = vpop.eup %9759  ;;  %9779 = vrcp.f32 %v6134_v50  ;;  %v6139_v25 = vadd.f32 1.0, %v9758_v1  ;;  %14303 = vst [vmem:[#allocation67_spill] sm:$0xff] %v12550_v6  ;;  %v12559_v50 = vmul.f32 -1.442695, %v12535_v39  ;;  %v12574_v39 = vadd.f32 %v5237_v3, %v12269_v23 }
 0x8be   : > { %v9762_v28 = vpop.eup %9761  ;;  %9781 = vrcp.f32 %v6137_v47  ;;  %v6138_v33 = vadd.f32 1.0, %v9760_v9  ;;  %v12562_v1 = vmul.f32 -1.442695, %v12538_v34  ;;  %v12565_v47 = vmul.f32 -1.442695, %v12544_v58  ;;  %v5241_v12 = vpop.f32.mrb[104].mxu1 }
 0x8bf   : > { %v9764_v35 = vpop.eup %9763  ;;  %9783 = vrcp.f32 %v6139_v25  ;;  %v6140_v13 = vadd.f32 1.0, %v9762_v28  ;;  %14305 = vst [vmem:[#allocation75_spill] sm:$0xff] %v12559_v50  ;;  %v12568_v9 = vadd.f32 %v5348_v54, %v12265_v30  ;;  %v12571_v28 = vmul.f32 -1.442695, %v12550_v6  ;;  %14310 = vst [vmem:[#allocation84_spill] sm:$0xff] %v12574_v39  ;;  %v5354_v34 = vpop.f32.mrb[200].mxu0 }
 0x8c0   : > { %14306 = vst [vmem:[#allocation70_spill] sm:$0xff] %v12562_v1  ;;  %v9766_v44 = vpop.eup %9765  ;;  %9785 = vrcp.f32 %v6138_v33  ;;  %v6143_v29 = vadd.f32 1.0, %v9764_v35  ;;  %14307 = vst [vmem:[#allocation69_spill] sm:$0xff] %v12565_v47  ;;  %v5243_v22 = vpop.f32.mrb[105].mxu1  ;;  %v12577_v58 = vadd.f32 %v5350_v61, %v12274_v15  ;;  %v12580_v54 = vadd.f32 %v5241_v12, %v12260_v17 }
 0x8c1   : > { %14308 = vst [vmem:[#allocation78_spill] sm:$0xff] %v12568_v9  ;;  %v9768_v62 = vpop.eup %9767  ;;  %9787 = vrcp.f32 %v6140_v13  ;;  %v6145_v25 = vadd.f32 1.0, %v9766_v44  ;;  %14309 = vst [vmem:[#allocation77_spill] sm:$0xff] %v12571_v28  ;;  %v5356_v11 = vpop.f32.mrb[201].mxu0  ;;  %v12583_v28 = vadd.f32 %v5354_v34, %v12265_v30  ;;  %v12586_v3 = vadd.f32 %v5243_v22, %v12269_v23 }
 0x8c2   : > { %v9770_v33 = vpop.eup %9769  ;;  %9789 = vrcp.f32 %v6143_v29  ;;  %v6144_v35 = vadd.f32 1.0, %v9768_v62  ;;  %14311 = vst [vmem:[#allocation83_spill] sm:$0xff] %v12577_v58  ;;  %14312 = vst [vmem:[#allocation92_spill] sm:$0xff] %v12580_v54  ;;  %v5245_v13 = vpop.f32.mrb[106].mxu1  ;;  %v12589_v1 = vmul.f32 -1.442695, %v12568_v9  ;;  %v12592_v12 = vadd.f32 %v5356_v11, %v12274_v15 }
 0x8c3   : > { %v9772_v44 = vpop.eup %9771  ;;  %9791 = vrcp.f32 %v6145_v25  ;;  %v6146_v6 = vadd.f32 1.0, %v9770_v33  ;;  %14313 = vst [vmem:[#allocation91_spill] sm:$0xff] %v12583_v28  ;;  %14314 = vst [vmem:[#allocation86_spill] sm:$0xff] %v12586_v3  ;;  %v5358_v47 = vpop.f32.mrb[202].mxu0  ;;  %v12595_v34 = vmul.f32 -1.442695, %v12574_v39  ;;  %v12598_v22 = vadd.f32 %v5245_v13, %v12260_v17 }
 0x8c4   : > { %v5247_v29 = vpop.f32.mrb[107].mxu1  ;;  %v9774_v62 = vpop.eup %9773  ;;  %9793 = vrcp.f32 %v6144_v35  ;;  %v6149_v61 = vadd.f32 1.0, %v9772_v44  ;;  %14315 = vst [vmem:[#allocation85_spill] sm:$0xff] %v12592_v12  ;;  %v12601_v35 = vmul.f32 -1.442695, %v12577_v58  ;;  %v12607_v11 = vadd.f32 %v5358_v47, %v12265_v30 }
 0x8c5   : > { %v5360_v50 = vpop.f32.mrb[203].mxu0  ;;  %v9776_v25 = vpop.eup %9775  ;;  %9795 = vrcp.f32 %v6146_v6  ;;  %v6151_v33 = vadd.f32 1.0, %v9774_v62  ;;  %14316 = vst [vmem:[#allocation93_spill] sm:$0xff] %v12598_v22  ;;  %v12604_v44 = vmul.f32 -1.442695, %v12580_v54  ;;  %v12616_v13 = vadd.f32 %v5247_v29, %v12269_v23 }
 0x8c6   : > { %v9778_v52 = vpop.eup %9777  ;;  %9797 = vrcp.f32 %v6149_v61  ;;  %14317 = vst [vmem:[#allocation95_spill] sm:$0xff] %v12607_v11  ;;  %v12610_v6 = vmul.f32 -1.442695, %v12583_v28  ;;  %v12613_v62 = vmul.f32 -1.442695, %v12586_v3  ;;  %v12619_v58 = vmul.f32 %v9776_v25, %v12339_v32  ;;  %v5251_v28 = vpop.f32.mrb[108].mxu1 }
 0x8c7   : > { %v9780_v9 = vpop.eup %9779  ;;  %9799 = vrcp.f32 %v6151_v33  ;;  %14318 = vst [vmem:[#allocation96_spill] sm:$0xff] %v12616_v13  ;;  %v12623_v47 = vmul.f32 -1.442695, %v12592_v12  ;;  %v12626_v33 = vadd.f32 %v5360_v50, %v12274_v15  ;;  %v12629_v3 = vmul.f32 %v9778_v52, %v12342_v5  ;;  %v5253_v25 = vpop.f32.mrb[109].mxu1 }
 0x8c8   : > { %v9782_v61 = vpop.eup %9781  ;;  %14319 = vst [vmem:[#allocation97_spill] sm:$0xff] %v12619_v58  ;;  %9801 = vpow2.f32 %v12420_v27  ;;  %v12633_v29 = vmul.f32 -1.442695, %v12598_v22  ;;  %v12636_v32 = vadd.f32 %v5251_v28, %v12260_v17  ;;  %v5364_v27 = vpop.f32.mrb[204].mxu0  ;;  %v12639_v12 = vmul.f32 %v9780_v9, %v12345_v42 }
 0x8c9   : > { %14320 = vst [vmem:[#allocation98_spill] sm:$0xff] %v12626_v33  ;;  %v9784_v54 = vpop.eup %9783  ;;  %9803 = vpow2.f32 %v12429_v63  ;;  %v12643_v50 = vmul.f32 -1.442695, %v12607_v11  ;;  %v12646_v5 = vadd.f32 %v5253_v25, %v12269_v23  ;;  %v5366_v63 = vpop.f32.mrb[205].mxu0  ;;  %v12649_v28 = vmul.f32 %v9782_v61, %v12351_v0 }
 0x8ca   : > { %14321 = vst [vmem:[#allocation99_spill] sm:$0xff] %v12636_v32  ;;  %v9786_v58 = vpop.eup %9785  ;;  %14322 = vst [vmem:[#allocation100_spill] sm:$0xff] %v12639_v12  ;;  %9805 = vpow2.f32 %v12449_v31  ;;  %v5255_v52 = vpop.f32.mrb[110].mxu1  ;;  %v12653_v39 = vmul.f32 -1.442695, %v12616_v13  ;;  %v12656_v42 = vadd.f32 %v5364_v27, %v12265_v30  ;;  %v12659_v25 = vmul.f32 %v9784_v54, %v12354_v41 }
 0x8cb   : > { %14323 = vst [vmem:[#allocation101_spill] sm:$0xff] %v12646_v5  ;;  %v9788_v22 = vpop.eup %9787  ;;  %9807 = vpow2.f32 %v12456_v43  ;;  %v5368_v31 = vpop.f32.mrb[206].mxu0  ;;  %v12663_v11 = vmul.f32 -1.442695, %v12626_v33  ;;  %v12666_v0 = vadd.f32 %v5366_v63, %v12274_v15  ;;  %v12669_v13 = vmul.f32 %v9786_v58, %v12357_v38 }
 0x8cc   : > { %14324 = vst [vmem:[#allocation102_spill] sm:$0xff] %v12656_v42  ;;  %v5257_v9 = vpop.f32.mrb[111].mxu1  ;;  %v9790_v12 = vpop.eup %9789  ;;  %14325 = vst [vmem:[#allocation103_spill] sm:$0xff] %v12659_v25  ;;  %9809 = vpow2.f32 %v12469_v24  ;;  %v12673_v27 = vmul.f32 -1.442695, %v12636_v32  ;;  %v12676_v41 = vadd.f32 %v5255_v52, %v12260_v17  ;;  %v12679_v54 = vmul.f32 %v9788_v22, %v12368_v19  ;;  %v14357_v32 = vld [vmem:[#allocation41_spill] sm:$0xff] }
 0x8cd   : > { %14326 = vst [vmem:[#allocation104_spill] sm:$0xff] %v12666_v0  ;;  %v5370_v43 = vpop.f32.mrb[207].mxu0  ;;  %v9792_v61 = vpop.eup %9791  ;;  %9811 = vpow2.f32 %v12481_v16  ;;  %v12683_v63 = vadd.f32 %v5368_v31, %v12265_v30  ;;  %v12686_v38 = vadd.f32 %v5257_v9, %v12269_v23  ;;  %v12690_v16 = vmul.f32 -1.442695, %v12656_v42 }
 0x8ce   : > { %14327 = vst [vmem:[#allocation105_spill] sm:$0xff] %v12676_v41  ;;  %v9794_v24 = vpop.eup %9793  ;;  %14328 = vst [vmem:[#allocation106_spill] sm:$0xff] %v12679_v54  ;;  %9813 = vpow2.f32 %v12487_v2  ;;  %v12693_v17 = vmul.f32 -1.442695, %v12646_v5  ;;  %v12696_v19 = vadd.f32 %v5370_v43, %v12274_v15  ;;  %v12699_v2 = vmul.f32 %v9790_v12, %v12380_v8  ;;  %v5407_v8 = vpop.f32.mrb[112].mxu1 }
 0x8cf   : > { %14329 = vst [vmem:[#allocation107_spill] sm:$0xff] %v12683_v63  ;;  %14330 = vst [vmem:[#allocation108_spill] sm:$0xff] %v12686_v38  ;;  %v9796_v58 = vpop.eup %9795  ;;  %9815 = vpow2.f32 %v12496_v45  ;;  %v12702_v30 = vmul.f32 %v9792_v61, %v12383_v14  ;;  %v12706_v23 = vmul.f32 -1.442695, %v12666_v0  ;;  %v12709_v52 = vmul.f32 %v9794_v24, %v12386_v21  ;;  %v5409_v9 = vpop.f32.mrb[113].mxu1 }
 0x8d0   : > { %14331 = vst [vmem:[#allocation109_spill] sm:$0xff] %v12696_v19  ;;  %v9798_v22 = vpop.eup %9797  ;;  %9817 = vpow2.f32 %v12499_v40  ;;  %v12712_v31 = vmul.f32 %v9796_v58, %v12389_v46  ;;  %v12716_v15 = vmul.f32 -1.442695, %v12676_v41  ;;  %v12723_v40 = vmul.f32 -1.442695, %v12683_v63  ;;  %v5520_v46 = vpop.f32.mrb[208].mxu0 }
 0x8d1   : > { %14332 = vst [vmem:[#allocation110_spill] sm:$0xff] %v12702_v30  ;;  %v9800_v45 = vpop.eup %9799  ;;  %9819 = vpow2.f32 %v12508_v56  ;;  %v12719_v12 = vmul.f32 %v9798_v22, %v12392_v37  ;;  %v12726_v21 = vmul.f32 -1.442695, %v12686_v38  ;;  %v12730_v61 = vmul.f32 -1.442695, %v12696_v19  ;;  %v5522_v24 = vpop.f32.mrb[209].mxu0 }
 0x8d2   : > { %14333 = vst [vmem:[#allocation111_spill] sm:$0xff] %v12712_v31  ;;  %v9802_v14 = vpop.eup %9801  ;;  %9821 = vpow2.f32 %v12522_v7  ;;  %v5521_v37 = vadd.f32 %v5520_v46, %v12335_v48  ;;  %v5411_v58 = vpop.f32.mrb[114].mxu1  ;;  %v12735_v63 = vadd.f32 %v5407_v8, %v12332_v51  ;;  %v5523_v0 = vadd.f32 %v5522_v24, %v12360_v18 }
 0x8d3   : > { %v9804_v43 = vpop.eup %9803  ;;  %v6150_v56 = vadd.f32 1.0, %v9802_v14  ;;  %9823 = vpow2.f32 %v12541_v20  ;;  %v5524_v42 = vpop.f32.mrb[210].mxu0  ;;  %v12741_v20 = vld [vmem:[%s14277_s25 + $0x8] sm:$0xf]  ;;  %v12750_v24 = vmul.f32 %v9800_v45, %v12395_v49 }
 0x8d4   : > { %v9806_v7 = vpop.eup %9805  ;;  %v6152_v22 = vadd.f32 1.0, %v9804_v43  ;;  %9825 = vpow2.f32 %v12547_v57  ;;  %14334 = vst [vmem:[#allocation112_spill] sm:$0xff] %v12735_v63  ;;  %v5413_v14 = vpop.f32.mrb[115].mxu1  ;;  %14335 = vst [vmem:[#allocation113_spill] sm:$0xff] %v12741_v20  ;;  %v12744_v31 = vmul.f32 %v12426_v10, %v5521_v37  ;;  %v12747_v57 = vadd.f32 %v5409_v9, %v12348_v4  ;;  %v14338_v10 = vld [vmem:[#allocation23_spill] sm:$0xff] }
 0x8d5   : > { %v9808_v19 = vpop.eup %9807  ;;  %9827 = vrcp.f32 %v6150_v56  ;;  %v6155_v46 = vadd.f32 1.0, %v9806_v7  ;;  %v5526_v8 = vpop.f32.mrb[211].mxu0  ;;  %14337 = vst [vmem:[#allocation115_spill] sm:$0xff] %v12750_v24  ;;  %v12753_v54 = vmul.f32 %v12438_v60, %v5523_v0  ;;  %v5525_v7 = vadd.f32 %v5524_v42, %v12335_v48 }
 0x8d6   : > { %14336 = vst [vmem:[#allocation114_spill] sm:$0xff] %v12747_v57  ;;  %v9810_v43 = vpop.eup %9809  ;;  %9829 = vrcp.f32 %v6152_v22  ;;  %v6157_v30 = vadd.f32 1.0, %v9808_v19  ;;  %v12758_v37 = vrot.slane %v12741_v20, %v14338_v10  ;;  %v12761_v49 = vmul.f32 -1.442695, %v12735_v63  ;;  %v14339_v22 = vld [vmem:[#allocation45_spill] sm:$0xff]  ;;  %v14359_v20 = vld [vmem:[#allocation70_spill] sm:$0xff] }
 0x8d7   : > { %v9812_v25 = vpop.eup %9811  ;;  %9831 = vrcp.f32 %v6155_v46  ;;  %v6156_v56 = vadd.f32 1.0, %v9810_v43  ;;  %v5527_v19 = vadd.f32 %v5526_v8, %v12360_v18  ;;  %v12765_v0 = vmul.f32 -1.442695, %v12747_v57  ;;  %v5417_v46 = vpop.f32.mrb[116].mxu1 }
 0x8d8   : > { %v9814_v9 = vpop.eup %9813  ;;  %9833 = vrcp.f32 %v6157_v30  ;;  %v6158_v38 = vadd.f32 1.0, %v9812_v25  ;;  %v12768_v42 = vmul.f32 %v14339_v22, %v5525_v7  ;;  %v12771_v25 = vadd.f32 %v5411_v58, %v12332_v51  ;;  %v5530_v24 = vpop.f32.mrb[212].mxu0 }
 0x8d9   : > { %v9816_v45 = vpop.eup %9815  ;;  %9835 = vrcp.f32 %v6156_v56  ;;  %v6161_v60 = vadd.f32 1.0, %v9814_v9  ;;  %v6504_v30 = vmul.f32 %v12478_v59, %v5527_v19  ;;  %v5419_v8 = vpop.f32.mrb[117].mxu1  ;;  %v5531_v7 = vadd.f32 %v5530_v24, %v12335_v48 }
 0x8da   : > { %v9818_v43 = vpop.eup %9817  ;;  %9837 = vrcp.f32 %v6158_v38  ;;  %v6163_v10 = vadd.f32 1.0, %v9816_v45  ;;  %14340 = vst [vmem:[#allocation45_spill] sm:$0xff] %v12771_v25  ;;  %v6593_v9 = vpack.c.bf16 %v12768_v42, %v12744_v31  ;;  %v5532_v22 = vpop.f32.mrb[213].mxu0  ;;  %v12778_v58 = vadd.f32 %v5413_v14, %v12348_v4 }
 0x8db   : > { %v9820_v63 = vpop.eup %9819  ;;  %9839 = vrcp.f32 %v6161_v60  ;;  %v6162_v56 = vadd.f32 1.0, %v9818_v43  ;;  %v5421_v57 = vpop.f32.mrb[118].mxu1  ;;  %v12781_v59 = vadd.f32 %v5417_v46, %v12332_v51  ;;  %v12784_v31 = vmul.f32 %v12493_v26, %v5531_v7 }
 0x8dc   : > { %v9822_v33 = vpop.eup %9821  ;;  %9841 = vrcp.f32 %v6163_v10  ;;  %v6164_v38 = vadd.f32 1.0, %v9820_v63  ;;  %14341 = vst [vmem:[#allocation116_spill] sm:$0xff] %v12778_v58  ;;  %v5534_v19 = vpop.f32.mrb[214].mxu0  ;;  %v5533_v24 = vadd.f32 %v5532_v22, %v12360_v18  ;;  %v12788_v14 = vadd.f32 %v5419_v8, %v12348_v4 }
 0x8dd   : > { %14342 = vst [vmem:[#allocation117_spill] sm:$0xff] %v12781_v59  ;;  %v5423_v45 = vpop.f32.mrb[119].mxu1  ;;  %v9824_v60 = vpop.eup %9823  ;;  %9843 = vrcp.f32 %v6162_v56  ;;  %v6167_v43 = vadd.f32 1.0, %v9822_v33  ;;  %v12791_v10 = vadd.f32 %v5421_v57, %v12332_v51  ;;  %v5535_v26 = vadd.f32 %v5534_v19, %v12335_v48  ;;  %v9409_v57 = vld [vmem:[#allocation14 + $0x100] ss:$8 sps:$4 sm:$0xff]  }
 0x8de   : > { %v5536_v42 = vpop.f32.mrb[215].mxu0  ;;  %v9826_v41 = vpop.eup %9825  ;;  %9845 = vrcp.f32 %v6164_v38  ;;  %v6169_v63 = vadd.f32 1.0, %v9824_v60  ;;  %14343 = vst [vmem:[#allocation118_spill] sm:$0xff] %v12788_v14  ;;  %v12794_v33 = vmul.f32 %v12505_v53, %v5533_v24  ;;  %v12798_v7 = vmul.f32 -1.442695, %v12771_v25 }
 0x8df   : > { %14344 = vst [vmem:[#allocation119_spill] sm:$0xff] %v12791_v10  ;;  %v9828_v46 = vpop.eup %9827  ;;  %9847 = vrcp.f32 %v6167_v43  ;;  %v6168_v5 = vadd.f32 1.0, %v9826_v41  ;;  %v12801_v22 = vmul.f32 -1.442695, %v12778_v58  ;;  %v6594_v8 = vpack.c.bf16 %v6504_v30, %v12753_v54  ;;  %v9414_v60 = vld [vmem:[#allocation14 + $0x114] ss:$8 sps:$4 sm:$0xff]  }
 0x8e0   : > { %v9830_v56 = vpop.eup %9829  ;;  %9849 = vrcp.f32 %v6169_v63  ;;  %v12805_v41 = vmul.f32 -1.442695, %v12781_v59  ;;  %v12808_v53 = vmul.f32 %v12528_v36, %v5535_v26  ;;  %v12811_v19 = vadd.f32 %v5423_v45, %v12348_v4  ;;  %v5427_v43 = vpop.f32.mrb[120].mxu1  ;;  %v14348_v63 = vld [vmem:[#allocation40_spill] sm:$0xff] }
 0x8e1   : > { %14345 = vst [vmem:[#allocation120_spill] sm:$0xff] %v12801_v22  ;;  %v9832_v38 = vpop.eup %9831  ;;  %9851 = vrcp.f32 %v6168_v5  ;;  %v12814_v58 = vmul.f32 %v9828_v46, %v14348_v63  ;;  %v12818_v54 = vmul.f32 -1.442695, %v12788_v14  ;;  %7261 = vmatprep.mubr.bf16.mxu1 %v6594_v8  ;;  %v5537_v5 = vadd.f32 %v5536_v42, %v12360_v18  ;;  %v5540_v30 = vpop.f32.mrb[216].mxu0  ;;  %v14350_v59 = vld [vmem:[#allocation76_spill] sm:$0xff]  ;;  %v14353_v8 = vld [vmem:[#allocation81_spill] sm:$0xff] }
 0x8e2   : > { %14346 = vst [vmem:[#allocation121_spill] sm:$0xff] %v12805_v41  ;;  %14347 = vst [vmem:[#allocation122_spill] sm:$0xff] %v12811_v19  ;;  %v9834_v24 = vpop.eup %9833  ;;  %9853 = vpow2.f32 %v12553_v55  ;;  %v5429_v36 = vpop.f32.mrb[121].mxu1  ;;  %v12823_v45 = vmul.f32 -1.442695, %v12791_v10  ;;  %7262 = vmatmul.mubr.bf16.vlgmr.msra.gmra.mrb[176].mxu1 %v6593_v9  ;;  %v12826_v46 = vadd.f32 %v5427_v43, %v12332_v51  ;;  %v5541_v55 = vadd.f32 %v5540_v30, %v12335_v48  ;;  %v14355_v42 = vld [vmem:[#allocation80_spill] sm:$0xff] }
 0x8e3   : > { %14349 = vst [vmem:[#allocation40_spill] sm:$0xff] %v12818_v54  ;;  %v9836_v26 = vpop.eup %9835  ;;  %9855 = vpow2.f32 %v14350_v59  ;;  %v5542_v63 = vpop.f32.mrb[217].mxu0  ;;  %v12830_v54 = vmul.f32 %v9830_v56, %v14353_v8  ;;  %v12833_v41 = vmul.f32 %v9832_v38, %v14355_v42  ;;  %v14356_v22 = vld [vmem:[#allocation75_spill] sm:$0xff]  ;;  %v6516_v59 = vmul.f32 %v12629_v3, %v5537_v5  ;;  %7343 = vmatpush1.bf16.msra.mxu1 %v9409_v57  ;;  %v9417_v8 = vld [vmem:[#allocation14 + $0x124] ss:$8 sps:$4 sm:$0xff]  }
 0x8e4   : > { %14351 = vst [vmem:[#allocation76_spill] sm:$0xff] %v12823_v45  ;;  %14352 = vst [vmem:[#allocation123_spill] sm:$0xff] %v12826_v46  ;;  %v5431_v14 = vpop.f32.mrb[122].mxu1  ;;  %v9838_v25 = vpop.eup %9837  ;;  %9857 = vpow2.f32 %v14356_v22  ;;  %v9412_v9 = vld [vmem:[#allocation14 + $0x110] ss:$8 sps:$4 sm:$0xff]   ;;  %v12838_v30 = vmul.f32 %v9834_v24, %v14357_v32  ;;  %7344 = vmatprep.subr.bf16.mxu1 %v9414_v60  ;;  %v12845_v38 = vmul.f32 %v12649_v28, %v5541_v55  ;;  %v14361_v42 = vld [vmem:[#allocation69_spill] sm:$0xff] }
 0x8e5   : > { %14354 = vst [vmem:[#allocation81_spill] sm:$0xff] %v12830_v54  ;;  %v5544_v10 = vpop.f32.mrb[218].mxu0  ;;  %v5433_v43 = vpop.f32.mrb[123].mxu1  ;;  %9859 = vpow2.f32 %v14359_v20  ;;  %v12842_v56 = vmul.f32 -1.442695, %v12811_v19  ;;  %v14360_v57 = vld [vmem:[#allocation87_spill] sm:$0xff]  ;;  %v12852_v32 = vadd.f32 %v5429_v36, %v12348_v4  ;;  %v5543_v20 = vadd.f32 %v5542_v63, %v12360_v18 }
 0x8e6   : > { %v9840_v45 = vpop.eup %9839  ;;  %14358 = vst [vmem:[#allocation80_spill] sm:$0xff] %v12838_v30  ;;  %v5546_v22 = vpop.f32.mrb[219].mxu0  ;;  %v12848_v5 = vmul.f32 %v9836_v26, %v14360_v57  ;;  %9861 = vpow2.f32 %v14361_v42  ;;  %v14363_v30 = vld [vmem:[#allocation77_spill] sm:$0xff]  ;;  %v12857_v60 = vmul.f32 -1.442695, %v12826_v46  ;;  %v12860_v28 = vadd.f32 %v5431_v14, %v12332_v51  ;;  %v14365_v57 = vld [vmem:[#allocation42_spill] sm:$0xff] }
 0x8e7   : > { %v9842_v3 = vpop.eup %9841  ;;  %14362 = vst [vmem:[#allocation75_spill] sm:$0xff] %v12852_v32  ;;  %9863 = vpow2.f32 %v14363_v30  ;;  %v5545_v55 = vadd.f32 %v5544_v10, %v12335_v48  ;;  %v12864_v54 = vmul.f32 %v9838_v25, %v14365_v57  ;;  %v14367_v42 = vld [vmem:[#allocation44_spill] sm:$0xff]  ;;  %7345 = vmatpush1.bf16.msra.mxu1 %v9412_v9  ;;  %v12871_v63 = vmul.f32 %v12669_v13, %v5543_v20  ;;  %v9415_v30 = vld [vmem:[#allocation14 + $0x120] ss:$8 sps:$4 sm:$0xff]   ;;  %v5437_v57 = vpop.f32.mrb[124].mxu1 }
 0x8e8   : > { %v9844_v24 = vpop.eup %9843  ;;  %14364 = vst [vmem:[#allocation41_spill] sm:$0xff] %v12860_v28  ;;  %v12867_v36 = vmul.f32 %v9840_v45, %v14367_v42  ;;  %9865 = vpow2.f32 %v12589_v1  ;;  %v14368_v19 = vld [vmem:[#allocation89_spill] sm:$0xff]  ;;  %v6600_v25 = vpack.c.bf16 %v6516_v59, %v12794_v33  ;;  %7346 = vmatprep.subr.bf16.mxu1 %v9417_v8  ;;  %v9420_v45 = vld [vmem:[#allocation14 + $0x134] ss:$8 sps:$4 sm:$0xff]   ;;  %v12886_v13 = vmul.f32 -1.442695, %v12852_v32 }
 0x8e9   : > { %v9846_v26 = vpop.eup %9845  ;;  %14366 = vst [vmem:[#allocation70_spill] sm:$0xff] %v12864_v54  ;;  %v12874_v14 = vmul.f32 %v9842_v3, %v14368_v19  ;;  %9867 = vpow2.f32 %v12595_v34  ;;  %v12878_v10 = vmul.f32 %v12699_v2, %v5545_v55  ;;  %v14370_v9 = vld [vmem:[#allocation88_spill] sm:$0xff]  ;;  %v5547_v19 = vadd.f32 %v5546_v22, %v12360_v18  ;;  %v5550_v34 = vpop.f32.mrb[220].mxu0  ;;  %v14371_v22 = vld [vmem:[#allocation94_spill] sm:$0xff] }
 0x8ea   : > { %v9848_v46 = vpop.eup %9847  ;;  %v12882_v42 = vmul.f32 %v9844_v24, %v14370_v9  ;;  %9869 = vpow2.f32 %v12601_v35  ;;  %v5439_v3 = vpop.f32.mrb[125].mxu1  ;;  %v12893_v33 = vmul.f32 -1.442695, %v12860_v28  ;;  %7271 = vmatprep.mubr.bf16.mxu1 %v6600_v25  ;;  %v12896_v59 = vadd.f32 %v5433_v43, %v12348_v4  ;;  %v14373_v9 = vld [vmem:[#allocation47_spill] sm:$0xff] }
 0x8eb   : > { %14369 = vst [vmem:[#allocation87_spill] sm:$0xff] %v12874_v14  ;;  %v9850_v1 = vpop.eup %9849  ;;  %9871 = vpow2.f32 %v12604_v44  ;;  %v6599_v35 = vpack.c.bf16 %v12808_v53, %v12784_v31  ;;  %v5552_v8 = vpop.f32.mrb[221].mxu0  ;;  %v12901_v55 = vmul.f32 %v9846_v26, %v14371_v22  ;;  %v12904_v14 = vmul.f32 %v9848_v46, %v14373_v9  ;;  %7347 = vmatpush1.bf16.msra.mxu1 %v9415_v30  ;;  %v9418_v25 = vld [vmem:[#allocation14 + $0x130] ss:$8 sps:$4 sm:$0xff]   ;;  %v9423_v26 = vld [vmem:[#allocation14 + $0x144] ss:$8 sps:$4 sm:$0xff]  }
 0x8ec   : > { %v12889_v2 = vpop.eup %9851  ;;  %v5441_v20 = vpop.f32.mrb[126].mxu1  ;;  %9873 = vpow2.f32 %v12610_v6  ;;  %v6528_v44 = vmul.f32 %v12709_v52, %v5547_v19  ;;  %7348 = vmatprep.subr.bf16.mxu1 %v9420_v45  ;;  %v12910_v31 = vadd.f32 %v5437_v57, %v12332_v51  ;;  %v5551_v53 = vadd.f32 %v5550_v34, %v12335_v48  ;;  %v14375_v22 = vld [vmem:[#allocation59_spill] sm:$0xff] }
 0x8ed   : > { %v9854_v24 = vpop.eup %9853  ;;  %14372 = vst [vmem:[#allocation69_spill] sm:$0xff] %v12901_v55  ;;  %v5554_v43 = vpop.f32.mrb[222].mxu0  ;;  %9875 = vpow2.f32 %v12613_v62  ;;  %7272 = vmatmul.mubr.bf16.gmra.mrb[180].mxu1 %v6599_v35  ;;  %v12914_v52 = vmul.f32 %v9850_v1, %v14375_v22  ;;  %v5553_v19 = vadd.f32 %v5552_v8, %v12360_v18  ;;  %v12919_v45 = vmul.f32 -1.442695, %v12896_v59 }
 0x8ee   : > { %v5443_v54 = vpop.f32.mrb[127].mxu1  ;;  %v9856_v28 = vpop.eup %9855  ;;  %v6170_v32 = vadd.f32 1.0, %v9854_v24  ;;  %14374 = vst [vmem:[#allocation77_spill] sm:$0xff] %v12910_v31  ;;  %9877 = vpow2.f32 %v12623_v47  ;;  %v12922_v57 = vmul.f32 %v12719_v12, %v5551_v53  ;;  %v12925_v1 = vadd.f32 %v5439_v3, %v12348_v4  ;;  %v9426_v53 = vld [vmem:[#allocation14 + $0x154] ss:$8 sps:$4 sm:$0xff]  }
 0x8ef   : > { %v5556_v46 = vpop.f32.mrb[223].mxu0  ;;  %v9858_v6 = vpop.eup %9857  ;;  %14376 = vst [vmem:[#allocation42_spill] sm:$0xff] %v12914_v52  ;;  %v6173_v30 = vadd.f32 1.0, %v9856_v28  ;;  %7349 = vmatpush1.bf16.msra.mxu1 %v9418_v25  ;;  %v12928_v47 = vmul.f32 %v12814_v58, %v5553_v19  ;;  %v9421_v28 = vld [vmem:[#allocation14 + $0x140] ss:$8 sps:$4 sm:$0xff]   ;;  %v5555_v12 = vadd.f32 %v5554_v43, %v12335_v48  ;;  %v12935_v3 = vadd.f32 %v5441_v20, %v12332_v51 }
 0x8f0   : > { %v9860_v24 = vpop.eup %9859  ;;  %9879 = vrcp.f32 %v6170_v32  ;;  %v6175_v62 = vadd.f32 1.0, %v9858_v6  ;;  %14377 = vst [vmem:[#allocation44_spill] sm:$0xff] %v12925_v1  ;;  %v12931_v9 = vmul.f32 -1.442695, %v12910_v31  ;;  %7350 = vmatprep.subr.bf16.mxu1 %v9423_v26  ;;  %v5447_v6 = vpop.f32.mrb[128].mxu1  ;;  %v6606_v58 = vpack.c.bf16 %v6528_v44, %v12871_v63  ;;  %v14387_v31 = vld [vmem:[#allocation52_spill] sm:$0xff] }
 0x8f1   : > { %v9862_v34 = vpop.eup %9861  ;;  %9881 = vrcp.f32 %v6173_v30  ;;  %v6174_v35 = vadd.f32 1.0, %v9860_v24  ;;  %14378 = vst [vmem:[#allocation89_spill] sm:$0xff] %v12935_v3  ;;  %v5560_v30 = vpop.f32.mrb[224].mxu0  ;;  %v5557_v43 = vadd.f32 %v5556_v46, %v12360_v18  ;;  %v9424_v26 = vld [vmem:[#allocation14 + $0x150] ss:$8 sps:$4 sm:$0xff]   ;;  %v6605_v63 = vpack.c.bf16 %v12878_v10, %v12845_v38 }
 0x8f2   : > { %v9864_v8 = vpop.eup %9863  ;;  %9883 = vrcp.f32 %v6175_v62  ;;  %v6176_v32 = vadd.f32 1.0, %v9862_v34  ;;  %v5449_v19 = vpop.f32.mrb[129].mxu1  ;;  %v12939_v34 = vmul.f32 %v12833_v41, %v5555_v12  ;;  %v12943_v20 = vmul.f32 -1.442695, %v12925_v1  ;;  %7281 = vmatprep.mubr.bf16.mxu1 %v6606_v58 }
 0x8f3   : > { %v9866_v22 = vpop.eup %9865  ;;  %9885 = vrcp.f32 %v6174_v35  ;;  %v6179_v25 = vadd.f32 1.0, %v9864_v8  ;;  %v5562_v52 = vpop.f32.mrb[225].mxu0  ;;  %7351 = vmatpush1.bf16.msra.mxu1 %v9421_v28  ;;  %v12948_v46 = vadd.f32 %v5443_v54, %v12348_v4  ;;  %v12952_v38 = vadd.f32 %v5447_v6, %v12332_v51  ;;  %v9427_v6 = vld [vmem:[#allocation14 + $0x160] ss:$8 sps:$4 sm:$0xff]  }
 0x8f4   : > { %v9868_v24 = vpop.eup %9867  ;;  %9887 = vrcp.f32 %v6176_v32  ;;  %v6181_v62 = vadd.f32 1.0, %v9866_v22  ;;  %v5451_v55 = vpop.f32.mrb[130].mxu1  ;;  %v6540_v22 = vmul.f32 %v12848_v5, %v5557_v43  ;;  %7352 = vmatprep.subr.bf16.mxu1 %v9426_v53  ;;  %v5561_v10 = vadd.f32 %v5560_v30, %v12335_v48 }
 0x8f5   : > { %v9870_v35 = vpop.eup %9869  ;;  %9889 = vrcp.f32 %v6179_v25  ;;  %v6180_v8 = vadd.f32 1.0, %v9868_v24  ;;  %v5564_v44 = vpop.f32.mrb[226].mxu0  ;;  %14379 = vst [vmem:[#allocation88_spill] sm:$0xff] %v12948_v46  ;;  %v9429_v24 = vld [vmem:[#allocation14 + $0x164] ss:$8 sps:$4 sm:$0xff]   ;;  %7282 = vmatmul.mubr.bf16.gmra.mrb[184].mxu1 %v6605_v63  ;;  %14380 = vst [vmem:[#allocation94_spill] sm:$0xff] %v12952_v38  ;;  %v12956_v54 = vadd.f32 %v5449_v19, %v12348_v4  ;;  %v5563_v5 = vadd.f32 %v5562_v52, %v12360_v18 }
 0x8f6   : > { %v5453_v32 = vpop.f32.mrb[131].mxu1  ;;  %v9872_v41 = vpop.eup %9871  ;;  %9891 = vrcp.f32 %v6181_v62  ;;  %v6182_v12 = vadd.f32 1.0, %v9870_v35  ;;  %v12960_v35 = vmul.f32 -1.442695, %v12935_v3  ;;  %v9432_v52 = vld [vmem:[#allocation14 + $0x174] ss:$8 sps:$4 sm:$0xff]  }
 0x8f7   : > { %v5566_v25 = vpop.f32.mrb[227].mxu0  ;;  %v9874_v1 = vpop.eup %9873  ;;  %9893 = vrcp.f32 %v6180_v8  ;;  %v6185_v58 = vadd.f32 1.0, %v9872_v41  ;;  %14381 = vst [vmem:[#allocation47_spill] sm:$0xff] %v12956_v54  ;;  %v12963_v8 = vmul.f32 %v12867_v36, %v5561_v10  ;;  %7353 = vmatpush1.bf16.msra.mxu1 %v9424_v26  ;;  %v12969_v19 = vmul.f32 %v12882_v42, %v5563_v5 }
 0x8f8   : > { %v9876_v28 = vpop.eup %9875  ;;  %9895 = vrcp.f32 %v6182_v12  ;;  %v6187_v62 = vadd.f32 1.0, %v9874_v1  ;;  %v12966_v1 = vmul.f32 -1.442695, %v12948_v46  ;;  %7354 = vmatprep.subr.bf16.mxu1 %v9429_v24  ;;  %v5457_v41 = vpop.f32.mrb[132].mxu1  ;;  %v5565_v36 = vadd.f32 %v5564_v44, %v12335_v48 }
 0x8f9   : > { %v9878_v53 = vpop.eup %9877  ;;  %9897 = vrcp.f32 %v6185_v58  ;;  %v6186_v43 = vadd.f32 1.0, %v9876_v28  ;;  %v12972_v58 = vadd.f32 %v5451_v55, %v12332_v51  ;;  %v6612_v26 = vpack.c.bf16 %v6540_v22, %v12928_v47  ;;  %v5570_v10 = vpop.f32.mrb[228].mxu0  ;;  %v9430_v22 = vld [vmem:[#allocation14 + $0x170] ss:$8 sps:$4 sm:$0xff]  }
 0x8fa   : > { %v9880_v30 = vpop.eup %9879  ;;  %9899 = vrcp.f32 %v6187_v62  ;;  %v6188_v63 = vadd.f32 1.0, %v9878_v53  ;;  %v5459_v28 = vpop.f32.mrb[133].mxu1  ;;  %v14383_v53 = vld [vmem:[#allocation58_spill] sm:$0xff]  ;;  %v12979_v42 = vmul.f32 -1.442695, %v12952_v38  ;;  %v12988_v47 = vmul.f32 %v12904_v14, %v5565_v36  ;;  %v14385_v38 = vld [vmem:[#allocation53_spill] sm:$0xff] }
 0x8fb   : > { %v9882_v12 = vpop.eup %9881  ;;  %9901 = vrcp.f32 %v6186_v43  ;;  %14382 = vst [vmem:[#allocation59_spill] sm:$0xff] %v12972_v58  ;;  %v6456_v46 = vmul.f32 %v12889_v2, %v14383_v53  ;;  %v12982_v24 = vmul.f32 -1.442695, %v12956_v54  ;;  %v5572_v5 = vpop.f32.mrb[229].mxu0  ;;  %7291 = vmatprep.mubr.bf16.mxu1 %v6612_v26  ;;  %v12991_v44 = vadd.f32 %v5453_v32, %v12348_v4  ;;  %7355 = vmatpush1.bf16.msra.mxu1 %v9427_v6  ;;  %v9435_v36 = vld [vmem:[#allocation14 + $0x184] ss:$8 sps:$4 sm:$0xff]  }
 0x8fc   : > { %v9884_v62 = vpop.eup %9883  ;;  %9903 = vrcp.f32 %v6188_v63  ;;  %v12984_v55 = vpop.f32.mrb[134].mxu1  ;;  %v5567_v2 = vadd.f32 %v5566_v25, %v12360_v18  ;;  %v12997_v3 = vmul.f32 %v9880_v30, %v14385_v38  ;;  %v6611_v14 = vpack.c.bf16 %v12939_v34, %v12922_v57  ;;  %7356 = vmatprep.subr.bf16.mxu1 %v9432_v52 }
 0x8fd   : > { %v9886_v43 = vpop.eup %9885  ;;  %9905 = vpow2.f32 %v12633_v29  ;;  %14384 = vst [vmem:[#allocation58_spill] sm:$0xff] %v12991_v44  ;;  %v5574_v63 = vpop.f32.mrb[230].mxu0  ;;  %v6461_v29 = vmul.f32 %v9882_v12, %v14387_v31  ;;  %v13005_v6 = vmul.f32 -1.442695, %v12972_v58  ;;  %v13008_v38 = vadd.f32 %v5457_v41, %v12332_v51  ;;  %v14389_v31 = vld [vmem:[#allocation62_spill] sm:$0xff] }
 0x8fe   : > { %v12994_v53 = vpop.f32.mrb[135].mxu1  ;;  %v9888_v54 = vpop.eup %9887  ;;  %14386 = vst [vmem:[#allocation53_spill] sm:$0xff] %v12997_v3  ;;  %9907 = vpow2.f32 %v12643_v50  ;;  %v6552_v26 = vmul.f32 %v6456_v46, %v5567_v2  ;;  %v13011_v12 = vmul.f32 %v9884_v62, %v14389_v31  ;;  %v14390_v50 = vld [vmem:[#allocation61_spill] sm:$0xff]  ;;  %7292 = vmatmul.mubr.bf16.gmra.mrb[188].mxu1 %v6611_v14  ;;  %v5571_v57 = vadd.f32 %v5570_v10, %v12335_v48 }
 0x8ff   : > { %v5576_v32 = vpop.f32.mrb[231].mxu0  ;;  %v9890_v25 = vpop.eup %9889  ;;  %9909 = vpow2.f32 %v12653_v39  ;;  %14388 = vst [vmem:[#allocation52_spill] sm:$0xff] %v13008_v38  ;;  %v6462_v3 = vmul.f32 %v9886_v43, %v14390_v50  ;;  %v13018_v39 = vmul.f32 -1.442695, %v12991_v44  ;;  %7357 = vmatpush1.bf16.msra.mxu1 %v9430_v22  ;;  %v13021_v46 = vadd.f32 %v5459_v28, %v12348_v4  ;;  %v9433_v41 = vld [vmem:[#allocation14 + $0x180] ss:$8 sps:$4 sm:$0xff]  }
 0x900   : > { %v9892_v30 = vpop.eup %9891  ;;  %9911 = vpow2.f32 %v12663_v11  ;;  %v5573_v52 = vadd.f32 %v5572_v5, %v12360_v18  ;;  %v14392_v43 = vld [vmem:[#allocation68_spill] sm:$0xff]  ;;  %v14393_v11 = vld [vmem:[#allocation67_spill] sm:$0xff]  ;;  %v13029_v10 = vmul.f32 %v6461_v29, %v5571_v57  ;;  %7358 = vmatprep.subr.bf16.mxu1 %v9435_v36  ;;  %v5467_v31 = vpop.f32.mrb[136].mxu1  ;;  %v14394_v50 = vld [vmem:[#allocation78_spill] sm:$0xff]  ;;  %v13036_v5 = vmul.f32 -1.442695, %v13008_v38 }
 0x901   : > { %v9894_v34 = vpop.eup %9893  ;;  %9913 = vpow2.f32 %v12673_v27  ;;  %14391 = vst [vmem:[#allocation62_spill] sm:$0xff] %v13021_v46  ;;  %v13025_v2 = vmul.f32 %v9888_v54, %v14392_v43  ;;  %v6467_v14 = vmul.f32 %v9890_v25, %v14393_v11  ;;  %v9438_v27 = vld [vmem:[#allocation14 + $0x194] ss:$8 sps:$4 sm:$0xff]   ;;  %v13032_v28 = vmul.f32 %v9892_v30, %v14394_v50  ;;  %v5580_v43 = vpop.f32.mrb[232].mxu0 }
 0x902   : > { %v9896_v62 = vpop.eup %9895  ;;  %9915 = vpow2.f32 %v12690_v16  ;;  %v13038_v54 = vmul.f32 %v6462_v3, %v5573_v52  ;;  %v5469_v25 = vpop.f32.mrb[137].mxu1  ;;  %v14396_v16 = vld [vmem:[#allocation84_spill] sm:$0xff]  ;;  %v5575_v36 = vadd.f32 %v5574_v63, %v12335_v48  ;;  %v6618_v57 = vpack.c.bf16 %v6552_v26, %v12969_v19  ;;  %v14397_v44 = vld [vmem:[#allocation83_spill] sm:$0xff] }
 0x903   : > { %v9898_v22 = vpop.eup %9897  ;;  %14395 = vst [vmem:[#allocation61_spill] sm:$0xff] %v13032_v28  ;;  %9917 = vpow2.f32 %v12693_v17  ;;  %v6468_v29 = vmul.f32 %v9894_v34, %v14396_v16  ;;  %v5582_v30 = vpop.f32.mrb[233].mxu0  ;;  %v13047_v38 = vmul.f32 %v9896_v62, %v14397_v44  ;;  %v13051_v3 = vmul.f32 -1.442695, %v13021_v46  ;;  %7359 = vmatpush1.bf16.msra.mxu1 %v9433_v41  ;;  %v14400_v26 = vld [vmem:[#allocation92_spill] sm:$0xff]  ;;  %v14401_v41 = vld [vmem:[#allocation91_spill] sm:$0xff] }
 0x904   : > { %v9900_v11 = vpop.eup %9899  ;;  %9919 = vpow2.f32 %v12706_v23  ;;  %v13044_v50 = vpop.f32.mrb[138].mxu1  ;;  %v13055_v34 = vadd.f32 %v12984_v55, %v12332_v51  ;;  %v6473_v52 = vmul.f32 %v9898_v22, %v14400_v26  ;;  %v13063_v44 = vmul.f32 %v6467_v14, %v5575_v36  ;;  %7301 = vmatprep.mubr.bf16.mxu1 %v6618_v57  ;;  %v9436_v62 = vld [vmem:[#allocation14 + $0x190] ss:$8 sps:$4 sm:$0xff]   ;;  %7360 = vmatprep.subr.bf16.mxu1 %v9438_v27  ;;  %v9441_v14 = vld [vmem:[#allocation14 + $0x1a4] ss:$8 sps:$4 sm:$0xff]  }
 0x905   : > { %v9902_v17 = vpop.eup %9901  ;;  %14398 = vst [vmem:[#allocation68_spill] sm:$0xff] %v13047_v38  ;;  %9921 = vpow2.f32 %v12716_v15  ;;  %v13057_v23 = vpop.f32.mrb[234].mxu0  ;;  %v5577_v15 = vadd.f32 %v5576_v32, %v12360_v18  ;;  %v13069_v46 = vmul.f32 %v9900_v11, %v14401_v41  ;;  %v13074_v22 = vadd.f32 %v12994_v53, %v12348_v4  ;;  %v14404_v32 = vld [vmem:[#allocation86_spill] sm:$0xff]  ;;  %v9460_v28 = vld [vmem:[#allocation14 + $0x210] ss:$8 sps:$4 sm:$0xff]  }
 0x906   : > { %14399 = vst [vmem:[#allocation67_spill] sm:$0xff] %v13055_v34  ;;  %v13059_v19 = vpop.f32.mrb[139].mxu1  ;;  %v9904_v63 = vpop.eup %9903  ;;  %9923 = vpow2.f32 %v12723_v40  ;;  %v6617_v40 = vpack.c.bf16 %v12988_v47, %v12963_v8  ;;  %v6474_v57 = vmul.f32 %v9902_v17, %v14404_v32  ;;  %v5581_v53 = vadd.f32 %v5580_v43, %v12335_v48  ;;  %v9444_v17 = vld [vmem:[#allocation14 + $0x1b4] ss:$8 sps:$4 sm:$0xff]  }
 0x907   : > { %v13066_v16 = vpop.f32.mrb[235].mxu0  ;;  %v9906_v55 = vpop.eup %9905  ;;  %14402 = vst [vmem:[#allocation78_spill] sm:$0xff] %v13069_v46  ;;  %9925 = vpow2.f32 %v12726_v21  ;;  %14403 = vst [vmem:[#allocation84_spill] sm:$0xff] %v13074_v22  ;;  %v6564_v26 = vmul.f32 %v6468_v29, %v5577_v15  ;;  %v13082_v21 = vadd.f32 %v5467_v31, %v12332_v51  ;;  %7361 = vmatpush1.bf16.msra.mxu1 %v9436_v62  ;;  %v9439_v29 = vld [vmem:[#allocation14 + $0x1a0] ss:$8 sps:$4 sm:$0xff]  }
 0x908   : > { %v9908_v36 = vpop.eup %9907  ;;  %v6191_v27 = vadd.f32 1.0, %v9906_v55  ;;  %9927 = vpow2.f32 %v12730_v61  ;;  %7302 = vmatmul.mubr.bf16.gmra.mrb[192].mxu1 %v6617_v40  ;;  %v13086_v47 = vadd.f32 %v5469_v25, %v12348_v4  ;;  %v5583_v61 = vadd.f32 %v5582_v30, %v12360_v18  ;;  %v5477_v15 = vpop.f32.mrb[140].mxu1  ;;  %7362 = vmatprep.subr.bf16.mxu1 %v9441_v14 }
 0x909   : > { %v9910_v38 = vpop.eup %9909  ;;  %v6193_v11 = vadd.f32 1.0, %v9908_v36  ;;  %9929 = vpow2.f32 %v12761_v49  ;;  %14405 = vst [vmem:[#allocation83_spill] sm:$0xff] %v13082_v21  ;;  %v13090_v31 = vmul.f32 -1.442695, %v13055_v34  ;;  %v13092_v40 = vmul.f32 %v6473_v52, %v5581_v53  ;;  %v5590_v43 = vpop.f32.mrb[236].mxu0  ;;  %v14407_v36 = vld [vmem:[#allocation85_spill] sm:$0xff] }
 0x90a   : > { %v9912_v41 = vpop.eup %9911  ;;  %9931 = vrcp.f32 %v6191_v27  ;;  %v6192_v8 = vadd.f32 1.0, %v9910_v38  ;;  %14406 = vst [vmem:[#allocation92_spill] sm:$0xff] %v13086_v47  ;;  %v5479_v38 = vpop.f32.mrb[141].mxu1  ;;  %v13095_v25 = vmul.f32 %v9904_v63, %v14407_v36  ;;  %v13097_v32 = vmul.f32 %v6474_v57, %v5583_v61  ;;  %v9442_v27 = vld [vmem:[#allocation14 + $0x1b0] ss:$8 sps:$4 sm:$0xff]  }
 0x90b   : > { %v9914_v55 = vpop.eup %9913  ;;  %9933 = vrcp.f32 %v6193_v11  ;;  %v6194_v49 = vadd.f32 1.0, %v9912_v41  ;;  %v5592_v46 = vpop.f32.mrb[237].mxu0  ;;  %v13100_v52 = vmul.f32 -1.442695, %v13074_v22  ;;  %v6624_v14 = vpack.c.bf16 %v6564_v26, %v13038_v54  ;;  %7363 = vmatpush1.bf16.msra.mxu1 %v9439_v29  ;;  %v9447_v36 = vld [vmem:[#allocation14 + $0x1c4] ss:$8 sps:$4 sm:$0xff]  }
 0x90c   : > { %v9916_v62 = vpop.eup %9915  ;;  %14408 = vst [vmem:[#allocation91_spill] sm:$0xff] %v13095_v25  ;;  %9935 = vrcp.f32 %v6192_v8  ;;  %v6197_v30 = vadd.f32 1.0, %v9914_v55  ;;  %v5481_v11 = vpop.f32.mrb[142].mxu1  ;;  %v13106_v57 = vmul.f32 -1.442695, %v13082_v21  ;;  %v13113_v54 = vadd.f32 %v13044_v50, %v12332_v51  ;;  %7364 = vmatprep.subr.bf16.mxu1 %v9444_v17  ;;  %v14420_v21 = vld [vmem:[#allocation82_spill] sm:$0xff] }
 0x90d   : > { %v9918_v41 = vpop.eup %9917  ;;  %9937 = vrcp.f32 %v6194_v49  ;;  %v6199_v34 = vadd.f32 1.0, %v9916_v62  ;;  %v5594_v53 = vpop.f32.mrb[238].mxu0  ;;  %v13109_v61 = vmul.f32 -1.442695, %v13086_v47  ;;  %7311 = vmatprep.mubr.bf16.mxu1 %v6624_v14  ;;  %v6623_v26 = vpack.c.bf16 %v13063_v44, %v13029_v10 }
 0x90e   : > { %v13103_v58 = vpop.f32.mrb[143].mxu1  ;;  %v9920_v63 = vpop.eup %9919  ;;  %9939 = vrcp.f32 %v6197_v30  ;;  %v6198_v8 = vadd.f32 1.0, %v9918_v41  ;;  %14409 = vst [vmem:[#allocation86_spill] sm:$0xff] %v13113_v54  ;;  %v5585_v29 = vadd.f32 %v13057_v23, %v12335_v48  ;;  %v13124_v14 = vadd.f32 %v5477_v15, %v12332_v51 }
 0x90f   : > { %v5596_v55 = vpop.f32.mrb[239].mxu0  ;;  %v9922_v49 = vpop.eup %9921  ;;  %9941 = vrcp.f32 %v6199_v34  ;;  %v6200_v62 = vadd.f32 1.0, %v9920_v63  ;;  %v13121_v34 = vadd.f32 %v13059_v19, %v12348_v4  ;;  %v13127_v10 = vadd.f32 %v5590_v43, %v12335_v48  ;;  %7365 = vmatpush1.bf16.msra.mxu1 %v9442_v27 }
 0x910   : > { %v9924_v30 = vpop.eup %9923  ;;  %9943 = vrcp.f32 %v6198_v8  ;;  %v6203_v41 = vadd.f32 1.0, %v9922_v49  ;;  %7312 = vmatmul.mubr.bf16.gmra.mrb[196].mxu1 %v6623_v26  ;;  %14411 = vst [vmem:[#allocation124_spill] sm:$0xff] %v13124_v14  ;;  %v13130_v23 = vadd.f32 %v5479_v38, %v12348_v4  ;;  %v13133_v19 = vadd.f32 %v5592_v46, %v12360_v18  ;;  %v9445_v8 = vld [vmem:[#allocation14 + $0x1c0] ss:$8 sps:$4 sm:$0xff]   ;;  %7366 = vmatprep.subr.bf16.mxu1 %v9447_v36  ;;  %v9450_v26 = vld [vmem:[#allocation14 + $0x1d4] ss:$8 sps:$4 sm:$0xff]  }
 0x911   : > { %14410 = vst [vmem:[#allocation85_spill] sm:$0xff] %v13121_v34  ;;  %v9926_v63 = vpop.eup %9925  ;;  %9945 = vrcp.f32 %v6200_v62  ;;  %v6205_v50 = vadd.f32 1.0, %v9924_v30  ;;  %v13136_v15 = vmul.f32 -1.442695, %v13113_v54  ;;  %v5587_v43 = vadd.f32 %v13066_v16, %v12360_v18  ;;  %v5633_v30 = vpop.f32.mrb[144].mxu1  ;;  %v14414_v54 = vld [vmem:[#allocation93_spill] sm:$0xff] }
 0x912   : > { %v9928_v44 = vpop.eup %9927  ;;  %9947 = vrcp.f32 %v6203_v41  ;;  %v6204_v17 = vadd.f32 1.0, %v9926_v63  ;;  %14412 = vst [vmem:[#allocation125_spill] sm:$0xff] %v13130_v23  ;;  %v13141_v41 = vadd.f32 %v5481_v11, %v12332_v51  ;;  %v13144_v46 = vadd.f32 %v5594_v53, %v12335_v48  ;;  %v13146_v63 = vpop.f32.mrb[240].mxu0 }
 0x913   : > { %v9930_v49 = vpop.eup %9929  ;;  %9949 = vrcp.f32 %v6205_v50  ;;  %v6206_v62 = vadd.f32 1.0, %v9928_v44  ;;  %v5635_v50 = vpop.f32.mrb[145].mxu1  ;;  %v13150_v16 = vmul.f32 -1.442695, %v13121_v34  ;;  %v13153_v36 = vadd.f32 %v5596_v55, %v12360_v18  ;;  %7367 = vmatpush1.bf16.msra.mxu1 %v9445_v8  ;;  %v14417_v55 = vld [vmem:[#allocation96_spill] sm:$0xff] }
 0x914   : > { %v9932_v27 = vpop.eup %9931  ;;  %9951 = vrcp.f32 %v6204_v17  ;;  %v6117_v38 = vadd.f32 1.0, %v9930_v49  ;;  %14413 = vst [vmem:[#allocation126_spill] sm:$0xff] %v13141_v41  ;;  %v9448_v17 = vld [vmem:[#allocation14 + $0x1d0] ss:$8 sps:$4 sm:$0xff]   ;;  %v13155_v49 = vpop.f32.mrb[241].mxu0  ;;  %7368 = vmatprep.subr.bf16.mxu1 %v9450_v26 }
 0x915   : > { %v9934_v44 = vpop.eup %9933  ;;  %v6479_v47 = vmul.f32 %v9932_v27, %v14414_v54  ;;  %9953 = vrcp.f32 %v6206_v62  ;;  %v5637_v51 = vpop.f32.mrb[146].mxu1  ;;  %v13158_v48 = vmul.f32 -1.442695, %v13124_v14  ;;  %v13161_v53 = vmul.f32 -1.442695, %v13130_v23 }
 0x916   : > { %v9936_v11 = vpop.eup %9935  ;;  %9955 = vrcp.f32 %v6117_v38  ;;  %v5634_v54 = vadd.f32 %v5633_v30, %v12758_v37  ;;  %v13164_v62 = vpop.f32.mrb[242].mxu0  ;;  %v13172_v38 = vadd.f32 %v13103_v58, %v12348_v4  ;;  %v9453_v14 = vld [vmem:[#allocation14 + $0x1e4] ss:$8 sps:$4 sm:$0xff]   ;;  %v13176_v30 = vmul.f32 -1.442695, %v13141_v41  ;;  %v14424_v4 = vld [vmem:[#allocation99_spill] sm:$0xff] }
 0x917   : > { %14415 = vst [vmem:[#allocation93_spill] sm:$0xff] %v13158_v48  ;;  %14416 = vst [vmem:[#allocation127_spill] sm:$0xff] %v13161_v53  ;;  %v13166_v27 = vpop.f32.mrb[147].mxu1  ;;  %v9938_v18 = vpop.eup %9937  ;;  %v6480_v34 = vmul.f32 %v9936_v11, %v14417_v55  ;;  %9957 = vpow2.f32 %v12765_v0  ;;  %v6575_v25 = vmul.f32 %v6479_v47, %v5585_v29  ;;  %v14421_v11 = vld [vmem:[#allocation22_spill] sm:$0xff]  ;;  %v14422_v55 = vld [vmem:[#allocation113_spill] sm:$0xff]  ;;  %7369 = vmatpush1.bf16.msra.mxu1 %v9448_v17 }
 0x918   : > { %14418 = vst [vmem:[#allocation96_spill] sm:$0xff] %v13172_v38  ;;  %v5752_v23 = vpop.f32.mrb[243].mxu0  ;;  %v9940_v8 = vpop.eup %9939  ;;  %9959 = vpow2.f32 %v12798_v7  ;;  %14419 = vst [vmem:[#allocation128_spill] sm:$0xff] %v13176_v30  ;;  %v13179_v22 = vmul.f32 %v14420_v21, %v5634_v54  ;;  %v13183_v0 = vrot.slane %v14422_v55, %v14421_v11  ;;  %v14425_v29 = vld [vmem:[#allocation120_spill] sm:$0xff]  ;;  %v14426_v48 = vld [vmem:[#allocation95_spill] sm:$0xff]  ;;  %7370 = vmatprep.subr.bf16.mxu1 %v9453_v14 }
 0x919   : > { %v13185_v47 = vpop.eup %9941  ;;  %v6485_v58 = vmul.f32 %v9940_v8, %v14424_v4  ;;  %9961 = vpow2.f32 %v14425_v29  ;;  %v6576_v26 = vmul.f32 %v6480_v34, %v5587_v43  ;;  %v6629_v53 = vpack.c.bf16 %v6575_v25, %v13092_v40  ;;  %v14428_v30 = vld [vmem:[#allocation121_spill] sm:$0xff]  ;;  %v14433_v43 = vld [vmem:[#allocation40_spill] sm:$0xff] }
 0x91a   : > { %14423 = vst [vmem:[#allocation82_spill] sm:$0xff] %v13185_v47  ;;  %v9944_v7 = vpop.eup %9943  ;;  %v13191_v41 = vmul.f32 %v9934_v44, %v14426_v48  ;;  %9963 = vpow2.f32 %v14428_v30  ;;  %v14429_v21 = vld [vmem:[#allocation21_spill] sm:$0xff]  ;;  %v5636_v47 = vadd.f32 %v5635_v50, %v13183_v0  ;;  %v5643_v48 = vpop.f32.mrb[148].mxu1  ;;  %v14434_v29 = vld [vmem:[#allocation76_spill] sm:$0xff]  ;;  %v13210_v17 = vmul.f32 -1.442695, %v13172_v38 }
 0x91b   : > { %v14430_v54 = vsub.s32 2, %v14429_v21  ;;  %v13200_v8 = vpop.eup %9945  ;;  %v14432_v4 = vld [vmem:[#allocation101_spill] sm:$0xff]  ;;  %9965 = vpow2.f32 %v14433_v43  ;;  %v13205_v40 = vmul.f32 %v6485_v58, %v13127_v10  ;;  %v6630_v25 = vpack.c.bf16 %v6576_v26, %v13097_v32  ;;  %v14436_v50 = vld [vmem:[#allocation43_spill] sm:$0xff]  ;;  %v5756_v58 = vpop.f32.mrb[244].mxu0 }
 0x91c   : > { %14427 = vst [vmem:[#allocation113_spill] sm:$0xff] %v13191_v41  ;;  %14431 = vst [vmem:[#allocation99_spill] sm:$0xff] %v13200_v8  ;;  %v6486_v34 = vmul.f32 %v9944_v7, %v14432_v4  ;;  %v9451_v44 = vld [vmem:[#allocation14 + $0x1e0] ss:$8 sps:$4 sm:$0xff]   ;;  %v9948_v30 = vpop.eup %9947  ;;  %9967 = vpow2.f32 %v14434_v29  ;;  %v14437_v7 = vsub.s32 3, %v14429_v21  ;;  %v5645_v32 = vpop.f32.mrb[149].mxu1 }
 0x91d   : > { %v13197_v11 = vrot.slane %v14422_v55, %v14430_v54  ;;  %14435 = vst [vmem:[#allocation120_spill] sm:$0xff] %v13210_v17  ;;  %v13213_v54 = vmul.f32 %v14436_v50, %v5636_v47  ;;  %v9456_v10 = vld [vmem:[#allocation14 + $0x1f4] ss:$8 sps:$4 sm:$0xff]   ;;  %v13220_v26 = vpop.eup %9949  ;;  %v14439_v14 = vld [vmem:[#allocation105_spill] sm:$0xff]  ;;  %9969 = vpow2.f32 %v12842_v56  ;;  %7321 = vmatprep.mubr.bf16.mxu1 %v6630_v25  ;;  %v5638_v47 = vadd.f32 %v5637_v51, %v12758_v37  ;;  %v5758_v50 = vpop.f32.mrb[245].mxu0  ;;  %v14440_v8 = vld [vmem:[#allocation98_spill] sm:$0xff] }
 0x91e   : > { %v13218_v4 = vrot.slane %v14422_v55, %v14437_v7  ;;  %14438 = vst [vmem:[#allocation95_spill] sm:$0xff] %v13220_v26  ;;  %v6491_v43 = vmul.f32 %v9948_v30, %v14439_v14  ;;  %v6582_v29 = vmul.f32 %v6486_v34, %v13133_v19  ;;  %v5647_v38 = vpop.f32.mrb[150].mxu1  ;;  %v9952_v21 = vpop.eup %9951  ;;  %v13227_v55 = vmul.f32 %v9938_v18, %v14440_v8  ;;  %v14443_v25 = vld [vmem:[#allocation108_spill] sm:$0xff] }
 0x91f   : > { %9971 = vpow2.f32 %v12857_v60  ;;  %7322 = vmatmul.mubr.bf16.gmra.mrb[200].mxu1 %v6629_v53  ;;  %v5747_v7 = vadd.f32 %v13146_v63, %v13197_v11  ;;  %v5760_v19 = vpop.f32.mrb[246].mxu0  ;;  %v13236_v34 = vpop.f32.mrb[151].mxu1  ;;  %v6492_v30 = vmul.f32 %v9952_v21, %v14443_v25  ;;  %v14444_v60 = vld [vmem:[#allocation90_spill] sm:$0xff]  ;;  %v9454_v63 = vld [vmem:[#allocation14 + $0x1f0] ss:$8 sps:$4 sm:$0xff]   ;;  %v13251_v14 = vadd.f32 %v13164_v62, %v13197_v11 }
 0x920   : > { %14441 = vst [vmem:[#allocation121_spill] sm:$0xff] %v13227_v55  ;;  %v13234_v56 = vadd.f32 %v13155_v49, %v13218_v4  ;;  %v13238_v51 = vpop.eup %9953  ;;  %9973 = vpow2.f32 %v12886_v13  ;;  %v6587_v18 = vmul.f32 %v6491_v43, %v13144_v46  ;;  %v13244_v53 = vmul.f32 %v14444_v60, %v5638_v47  ;;  %7371 = vmatpush1.bf16.msra.mxu1 %v9451_v44  ;;  %v13246_v8 = vpop.f32.mrb[247].mxu0  ;;  %v9459_v46 = vld [vmem:[#allocation14 + $0x204] ss:$8 sps:$4 sm:$0xff]   ;;  %v14445_v44 = vld [vmem:[#allocation112_spill] sm:$0xff] }
 0x921   : > { %14442 = vst [vmem:[#allocation21_spill] sm:$0xff] %v13238_v51  ;;  %v9956_v49 = vpop.eup %9955  ;;  %9975 = vpow2.f32 %v12893_v33  ;;  %v5640_v21 = vadd.f32 %v13166_v27, %v13183_v0  ;;  %v13256_v13 = vadd.f32 %v5752_v23, %v13218_v4  ;;  %7372 = vmatprep.subr.bf16.mxu1 %v9456_v10  ;;  %v6588_v25 = vmul.f32 %v6492_v30, %v13153_v36  ;;  %v14446_v27 = vld [vmem:[#allocation46_spill] sm:$0xff]  ;;  %v5653_v36 = vpop.f32.mrb[152].mxu1 }
 0x922   : > { %v9958_v43 = vpop.eup %9957  ;;  %v6405_v47 = vmul.f32 %v9956_v49, %v14445_v44  ;;  %9977 = vpow2.f32 %v12919_v45  ;;  %v6635_v23 = vpack.c.bf16 %v6587_v18, %v13205_v40  ;;  %v5655_v40 = vpop.f32.mrb[153].mxu1 }
 0x923   : > { %v9960_v62 = vpop.eup %9959  ;;  %v6118_v60 = vadd.f32 1.0, %v9958_v43  ;;  %9979 = vpow2.f32 %v12931_v9  ;;  %v6506_v51 = vmul.f32 %v14446_v27, %v5640_v21  ;;  %v6636_v45 = vpack.c.bf16 %v6588_v25, %v6582_v29  ;;  %v5766_v21 = vpop.f32.mrb[248].mxu0 }
 0x924   : > { %v9962_v10 = vpop.eup %9961  ;;  %v6123_v26 = vadd.f32 1.0, %v9960_v62  ;;  %9981 = vpow2.f32 %v12943_v20  ;;  %v13267_v49 = vmul.f32 %v6405_v47, %v5747_v7  ;;  %7373 = vmatpush1.bf16.msra.mxu1 %v9454_v63  ;;  %v5644_v43 = vadd.f32 %v5643_v48, %v12758_v37  ;;  %v5768_v7 = vpop.f32.mrb[249].mxu0 }
 0x925   : > { %v9964_v30 = vpop.eup %9963  ;;  %9983 = vrcp.f32 %v6118_v60  ;;  %v6124_v44 = vadd.f32 1.0, %v9962_v10  ;;  %v13271_v9 = vadd.f32 %v5756_v58, %v13197_v11  ;;  %7455 = vmatprep.subr.bf16.mxu1 %v9459_v46  ;;  %7331 = vmatprep.mubr.bf16.mxu1 %v6636_v45  ;;  %v5646_v20 = vadd.f32 %v5645_v32, %v13183_v0  ;;  %v5657_v63 = vpop.f32.mrb[154].mxu1  ;;  %v14448_v58 = vld [vmem:[#allocation51_spill] sm:$0xff]  ;;  %v14449_v32 = vld [vmem:[#allocation50_spill] sm:$0xff] }
 0x926   : > { %14447 = vst [vmem:[#allocation101_spill] sm:$0xff] %v13267_v49  ;;  %v9966_v18 = vpop.eup %9965  ;;  %9985 = vrcp.f32 %v6123_v26  ;;  %v6129_v62 = vadd.f32 1.0, %v9964_v30  ;;  %v13275_v29 = vadd.f32 %v5758_v50, %v13218_v4  ;;  %v13278_v25 = vmul.f32 %v14448_v58, %v5644_v43  ;;  %v5770_v60 = vpop.f32.mrb[250].mxu0  ;;  %v14491_v49 = vld [vmem:[#allocation120_spill] sm:$0xff] }
 0x927   : > { %v9968_v47 = vpop.eup %9967  ;;  %9987 = vrcp.f32 %v6124_v44  ;;  %v6130_v48 = vadd.f32 1.0, %v9966_v18  ;;  %7332 = vmatmul.mubr.bf16.gmra.mrb[204].mxu1 %v6635_v23  ;;  %v5648_v46 = vadd.f32 %v5647_v38, %v12758_v37  ;;  %v5659_v26 = vpop.f32.mrb[155].mxu1  ;;  %v6512_v45 = vmul.f32 %v14449_v32, %v5646_v20  ;;  %v14450_v23 = vld [vmem:[#allocation97_spill] sm:$0xff] }
 0x928   : > { %v9970_v27 = vpop.eup %9969  ;;  %9989 = vrcp.f32 %v6129_v62  ;;  %v6135_v10 = vadd.f32 1.0, %v9968_v47  ;;  %v13283_v50 = vadd.f32 %v5760_v19, %v13197_v11  ;;  %v5772_v30 = vpop.f32.mrb[251].mxu0  ;;  %v6596_v43 = vpack.c.bf16 %v6506_v51, %v13213_v54 }
 0x929   : > { %v9972_v33 = vpop.eup %9971  ;;  %9991 = vrcp.f32 %v6130_v48  ;;  %v6136_v44 = vadd.f32 1.0, %v9970_v27  ;;  %v13286_v18 = vmul.f32 %v14450_v23, %v5648_v46  ;;  %v5650_v62 = vadd.f32 %v13236_v34, %v13183_v0  ;;  %v5663_v32 = vpop.f32.mrb[156].mxu1 }
 0x92a   : > { %v9974_v38 = vpop.eup %9973  ;;  %9993 = vrcp.f32 %v6135_v10  ;;  %v6141_v58 = vadd.f32 1.0, %v9972_v33  ;;  %v13293_v20 = vadd.f32 %v13246_v8, %v13218_v4  ;;  %7374 = vmatprep.mubr.bf16.mxu1 %v6596_v43  ;;  %v5654_v48 = vadd.f32 %v5653_v36, %v12758_v37  ;;  %v14451_v33 = vld [vmem:[#allocation100_spill] sm:$0xff]  ;;  %v9457_v10 = vld [vmem:[#allocation14 + $0x200] ss:$8 sps:$4 sm:$0xff]   ;;  %v13307_v55 = vpop.f32.mrb[157].mxu1 }
 0x92b   : > { %v9976_v19 = vpop.eup %9975  ;;  %9995 = vrcp.f32 %v6136_v44  ;;  %v6142_v47 = vadd.f32 1.0, %v9974_v38  ;;  %v13297_v46 = vadd.f32 %v5766_v21, %v13197_v11  ;;  %v6518_v27 = vmul.f32 %v14451_v33, %v5650_v62  ;;  %v9462_v44 = vld [vmem:[#allocation14 + $0x214] ss:$8 sps:$4 sm:$0xff]   ;;  %v5776_v21 = vpop.f32.mrb[252].mxu0 }
 0x92c   : > { %v9978_v54 = vpop.eup %9977  ;;  %9997 = vrcp.f32 %v6141_v58  ;;  %v6147_v51 = vadd.f32 1.0, %v9976_v19  ;;  %v5656_v34 = vadd.f32 %v5655_v40, %v13183_v0  ;;  %v14452_v38 = vld [vmem:[#allocation103_spill] sm:$0xff]  ;;  %v13305_v36 = vadd.f32 %v5768_v7, %v13218_v4  ;;  %v14453_v19 = vld [vmem:[#allocation106_spill] sm:$0xff] }
 0x92d   : > { %v9980_v8 = vpop.eup %9979  ;;  %9999 = vrcp.f32 %v6142_v47  ;;  %v6148_v23 = vadd.f32 1.0, %v9978_v54  ;;  %v13302_v43 = vmul.f32 %v14452_v38, %v5654_v48  ;;  %v5658_v40 = vadd.f32 %v5657_v63, %v12758_v37  ;;  %v13313_v47 = vpop.f32.mrb[253].mxu0 }
 0x92e   : > { %v9982_v58 = vpop.eup %9981  ;;  %10001 = vrcp.f32 %v6147_v51  ;;  %v6153_v62 = vadd.f32 1.0, %v9980_v8  ;;  %v13310_v33 = vmul.f32 %v14453_v19, %v5656_v34  ;;  %v13315_v54 = vpop.f32.mrb[158].mxu1  ;;  %v14454_v7 = vpack.c.bf16 %v13244_v53, %v13179_v22  ;;  %v14455_v19 = vld [vmem:[#allocation114_spill] sm:$0xff] }
 0x92f   : > { %v9984_v48 = vpop.eup %9983  ;;  %10003 = vrcp.f32 %v6148_v23  ;;  %v6154_v38 = vadd.f32 1.0, %v9982_v58  ;;  %v13321_v41 = vadd.f32 %v5770_v60, %v13197_v11  ;;  %v6602_v51 = vpack.c.bf16 %v6518_v27, %v6512_v45  ;;  %v13323_v8 = vpop.f32.mrb[254].mxu0  ;;  %v14456_v23 = vld [vmem:[#allocation110_spill] sm:$0xff] }
 0x930   : > { %7375 = vmatmul.mubr.bf16.vlgmr.msra.gmra.mrb[176].mxu1 %v14454_v7  ;;  %v13325_v34 = vpop.f32.mrb[159].mxu1  ;;  %v9986_v63 = vpop.eup %9985  ;;  %v6406_v17 = vmul.f32 %v9984_v48, %v14455_v19  ;;  %10005 = vrcp.f32 %v6153_v62  ;;  %v13329_v58 = vmul.f32 %v14456_v23, %v5658_v40  ;;  %v5660_v22 = vadd.f32 %v5659_v26, %v13183_v0  ;;  %v14457_v7 = vld [vmem:[#allocation45_spill] sm:$0xff]  ;;  %v14458_v40 = vld [vmem:[#allocation116_spill] sm:$0xff]  ;;  %v14459_v23 = vld [vmem:[#allocation111_spill] sm:$0xff] }
 0x931   : > { %7456 = vmatpush1.bf16.msra.mxu1 %v9457_v10  ;;  %v13332_v53 = vpop.f32.mrb[255].mxu0  ;;  %v9988_v60 = vpop.eup %9987  ;;  %v6411_v45 = vmul.f32 %v9986_v63, %v14457_v7  ;;  %10007 = vrcp.f32 %v6154_v38  ;;  %7384 = vmatprep.mubr.bf16.mxu1 %v6602_v51  ;;  %v13336_v27 = vadd.f32 %v5772_v30, %v13218_v4  ;;  %v6601_v10 = vpack.c.bf16 %v13286_v18, %v13278_v25  ;;  %v9465_v62 = vld [vmem:[#allocation14 + $0x224] ss:$8 sps:$4 sm:$0xff]  }
 0x932   : > { %7457 = vmatprep.subr.bf16.mxu1 %v9462_v44  ;;  %v9990_v48 = vpop.eup %9989  ;;  %v6412_v19 = vmul.f32 %v9988_v60, %v14458_v40  ;;  %10009 = vpow2.f32 %v12960_v35  ;;  %v13343_v26 = vmul.f32 %v6406_v17, %v13234_v56  ;;  %v13346_v63 = vmul.f32 %v14459_v23, %v5660_v22  ;;  %v14460_v38 = vld [vmem:[#allocation117_spill] sm:$0xff]  ;;  %v14462_v60 = vld [vmem:[#allocation118_spill] sm:$0xff]  ;;  %v13360_v22 = vpop.f32.mrb[160].mxu1 }
 0x933   : > { %v9992_v44 = vpop.eup %9991  ;;  %v6417_v51 = vmul.f32 %v9990_v48, %v14460_v38  ;;  %10011 = vpow2.f32 %v12966_v1  ;;  %v13351_v30 = vmul.f32 %v6411_v45, %v13251_v14  ;;  %v5664_v25 = vadd.f32 %v5663_v32, %v12758_v37  ;;  %v9463_v17 = vld [vmem:[#allocation14 + $0x220] ss:$8 sps:$4 sm:$0xff]   ;;  %v14463_v48 = vld [vmem:[#allocation119_spill] sm:$0xff] }
 0x934   : > { %v9994_v18 = vpop.eup %9993  ;;  %v6418_v7 = vmul.f32 %v9992_v44, %v14462_v60  ;;  %10013 = vpow2.f32 %v12979_v42  ;;  %v13357_v35 = vmul.f32 %v6412_v19, %v13256_v13  ;;  %v5777_v56 = vadd.f32 %v5776_v21, %v13197_v11  ;;  %v9468_v42 = vld [vmem:[#allocation14 + $0x234] ss:$8 sps:$4 sm:$0xff]   ;;  %v13369_v13 = vpop.f32.mrb[0].mxu0  ;;  %v14464_v40 = vld [vmem:[#allocation122_spill] sm:$0xff] }
 0x935   : > { %14461 = vst [vmem:[#allocation40_spill] sm:$0xff] %v13351_v30  ;;  %7458 = vmatpush1.bf16.msra.mxu1 %v9460_v28  ;;  %v9996_v1 = vpop.eup %9995  ;;  %v6423_v14 = vmul.f32 %v9994_v18, %v14463_v48  ;;  %10015 = vpow2.f32 %v12982_v24  ;;  %v13367_v45 = vmul.f32 %v6417_v51, %v13271_v9  ;;  %v13371_v28 = vpop.f32.mrb[161].mxu1  ;;  %v14465_v24 = vld [vmem:[#allocation115_spill] sm:$0xff] }
 0x936   : > { %7459 = vmatprep.subr.bf16.mxu1 %v9465_v62  ;;  %v9998_v21 = vpop.eup %9997  ;;  %v6424_v19 = vmul.f32 %v9996_v1, %v14464_v40  ;;  %10017 = vpow2.f32 %v13005_v6  ;;  %v13376_v23 = vmul.f32 %v6418_v7, %v13275_v29  ;;  %v13379_v44 = vmul.f32 %v14465_v24, %v5664_v25  ;;  %v13381_v38 = vpop.f32.mrb[1].mxu0  ;;  %v14466_v51 = vld [vmem:[#allocation123_spill] sm:$0xff] }
 0x937   : > { %v13383_v9 = vpop.f32.mrb[162].mxu1  ;;  %v10000_v62 = vpop.eup %9999  ;;  %v6429_v18 = vmul.f32 %v9998_v21, %v14466_v51  ;;  %10019 = vpow2.f32 %v13018_v39  ;;  %v13388_v60 = vmul.f32 %v6423_v14, %v13283_v50  ;;  %v5666_v6 = vadd.f32 %v13307_v55, %v13183_v0  ;;  %v14467_v1 = vld [vmem:[#allocation75_spill] sm:$0xff]  ;;  %v14468_v14 = vld [vmem:[#allocation41_spill] sm:$0xff] }
 0x938   : > { %7385 = vmatmul.mubr.bf16.gmra.mrb[180].mxu1 %v6601_v10  ;;  %v13392_v29 = vpop.f32.mrb[2].mxu0  ;;  %v13394_v25 = vpop.f32.mrb[163].mxu1  ;;  %v6430_v48 = vmul.f32 %v10000_v62, %v14467_v1  ;;  %10021 = vpow2.f32 %v13036_v5  ;;  %v13399_v21 = vmul.f32 %v6424_v19, %v13293_v20  ;;  %v9466_v39 = vld [vmem:[#allocation14 + $0x230] ss:$8 sps:$4 sm:$0xff]   ;;  %v5779_v50 = vadd.f32 %v13313_v47, %v13218_v4  ;;  %v14469_v5 = vld [vmem:[#allocation81_spill] sm:$0xff] }
 0x939   : > { %v10002_v7 = vpop.eup %10001  ;;  %7460 = vmatpush1.bf16.msra.mxu1 %v9463_v17  ;;  %v13403_v10 = vpop.f32.mrb[3].mxu0  ;;  %10023 = vpow2.f32 %v13051_v3  ;;  %v13408_v24 = vmul.f32 %v6429_v18, %v13297_v46  ;;  %v13411_v62 = vmul.f32 %v14469_v5, %v5666_v6  ;;  %v9471_v20 = vld [vmem:[#allocation14 + $0x244] ss:$8 sps:$4 sm:$0xff]   ;;  %v5668_v51 = vadd.f32 %v13315_v54, %v12758_v37  ;;  %v14472_v54 = vld [vmem:[#allocation80_spill] sm:$0xff] }
 0x93a   : > { %v10004_v55 = vpop.eup %10003  ;;  %v6435_v40 = vmul.f32 %v10002_v7, %v14468_v14  ;;  %7461 = vmatprep.subr.bf16.mxu1 %v9468_v42  ;;  %10025 = vpow2.f32 %v13090_v31  ;;  %v13416_v47 = vmul.f32 %v6430_v48, %v13305_v36  ;;  %v14470_v7 = vld [vmem:[#allocation77_spill] sm:$0xff]  ;;  %v13427_v18 = vadd.f32 %v13323_v8, %v13197_v11  ;;  %v14471_v31 = vld [vmem:[#allocation44_spill] sm:$0xff]  ;;  %v13437_v48 = vpop.f32.mrb[164].mxu1 }
 0x93b   : > { %v10006_v17 = vpop.eup %10005  ;;  %v6436_v19 = vmul.f32 %v10004_v55, %v12896_v59  ;;  %10027 = vpow2.f32 %v13100_v52  ;;  %v13435_v1 = vmul.f32 %v14472_v54, %v5668_v51  ;;  %v9469_v52 = vld [vmem:[#allocation14 + $0x240] ss:$8 sps:$4 sm:$0xff]   ;;  %v6608_v14 = vpack.c.bf16 %v13346_v63, %v13310_v33 }
 0x93c   : > { %v10008_v3 = vpop.eup %10007  ;;  %v6441_v46 = vmul.f32 %v10006_v17, %v14470_v7  ;;  %v13423_v42 = vmul.f32 %v6435_v40, %v13321_v41  ;;  %10029 = vpow2.f32 %v13106_v57  ;;  %v9474_v57 = vld [vmem:[#allocation14 + $0x254] ss:$8 sps:$4 sm:$0xff]   ;;  %v14473_v7 = vld [vmem:[#allocation70_spill] sm:$0xff] }
 0x93d   : > { %v10010_v59 = vpop.eup %10009  ;;  %v6442_v6 = vmul.f32 %v10008_v3, %v14471_v31  ;;  %v13432_v36 = vmul.f32 %v6436_v19, %v13336_v27  ;;  %7462 = vmatpush1.bf16.msra.mxu1 %v9466_v39  ;;  %10031 = vpow2.f32 %v13109_v61  ;;  %v13444_v27 = vpop.f32.mrb[4].mxu0  ;;  %v5670_v61 = vadd.f32 %v13325_v34, %v13183_v0  ;;  %7394 = vmatprep.mubr.bf16.mxu1 %v6608_v14  ;;  %v14474_v14 = vld [vmem:[#allocation87_spill] sm:$0xff] }
 0x93e   : > { %v10012_v41 = vpop.eup %10011  ;;  %v6159_v55 = vadd.f32 1.0, %v10010_v59  ;;  %v13440_v8 = vmul.f32 %v6441_v46, %v5777_v56  ;;  %7463 = vmatprep.subr.bf16.mxu1 %v9471_v20  ;;  %v13446_v39 = vpop.f32.mrb[165].mxu1  ;;  %10033 = vpow2.f32 %v13136_v15  ;;  %v13459_v20 = vadd.f32 %v13332_v53, %v13218_v4  ;;  %v9472_v59 = vld [vmem:[#allocation14 + $0x250] ss:$8 sps:$4 sm:$0xff]  }
 0x93f   : > { %v10014_v40 = vpop.eup %10013  ;;  %v6160_v5 = vadd.f32 1.0, %v10012_v41  ;;  %v13449_v17 = vmul.f32 %v6442_v6, %v5779_v50  ;;  %v13453_v56 = vpop.f32.mrb[5].mxu0  ;;  %v6607_v15 = vpack.c.bf16 %v13329_v58, %v13302_v43  ;;  %v6542_v46 = vmul.f32 %v14473_v7, %v5670_v61  ;;  %v9477_v41 = vld [vmem:[#allocation14 + $0x264] ss:$8 sps:$4 sm:$0xff]  }
 0x940   : > { %v13455_v19 = vpop.f32.mrb[166].mxu1  ;;  %v10016_v33 = vpop.eup %10015  ;;  %10035 = vrcp.f32 %v6159_v55  ;;  %v6165_v63 = vadd.f32 1.0, %v10014_v40  ;;  %v5674_v31 = vadd.f32 %v13360_v22, %v12758_v37  ;;  %v13474_v43 = vadd.f32 %v13369_v13, %v13197_v11  ;;  %v14475_v61 = vld [vmem:[#allocation69_spill] sm:$0xff] }
 0x941   : > { %v13463_v50 = vpop.f32.mrb[6].mxu0  ;;  %v13465_v51 = vpop.f32.mrb[167].mxu1  ;;  %10037 = vrcp.f32 %v6160_v5  ;;  %v6166_v3 = vadd.f32 1.0, %v10016_v33  ;;  %7464 = vmatpush1.bf16.msra.mxu1 %v9469_v52  ;;  %v5676_v58 = vadd.f32 %v13371_v28, %v13183_v0  ;;  %v13483_v40 = vadd.f32 %v13381_v38, %v13218_v4 }
 0x942   : > { %v10018_v34 = vpop.eup %10017  ;;  %v13470_v6 = vpop.f32.mrb[7].mxu0  ;;  %10039 = vrcp.f32 %v6165_v63  ;;  %7395 = vmatmul.mubr.bf16.gmra.mrb[184].mxu1 %v6607_v15  ;;  %7465 = vmatprep.subr.bf16.mxu1 %v9474_v57  ;;  %v13479_v22 = vmul.f32 %v14474_v14, %v5674_v31  ;;  %v5678_v28 = vadd.f32 %v13383_v9, %v12758_v37  ;;  %v13492_v15 = vadd.f32 %v13392_v29, %v13197_v11 }
 0x943   : > { %v10020_v53 = vpop.eup %10019  ;;  %v6171_v54 = vadd.f32 1.0, %v10018_v34  ;;  %10041 = vrcp.f32 %v6166_v3  ;;  %v13486_v13 = vmul.f32 %v14475_v61, %v5676_v58  ;;  %v6614_v38 = vpack.c.bf16 %v6542_v46, %v13411_v62  ;;  %v9475_v34 = vld [vmem:[#allocation14 + $0x260] ss:$8 sps:$4 sm:$0xff]   ;;  %v13495_v3 = vpop.f32.mrb[168].mxu1 }
 0x944   : > { %v10022_v52 = vpop.eup %10021  ;;  %v6172_v55 = vadd.f32 1.0, %v10020_v53  ;;  %v14476_v53 = vld [vmem:[#allocation42_spill] sm:$0xff]  ;;  %v5680_v9 = vadd.f32 %v13394_v25, %v13183_v0  ;;  %v13502_v58 = vpop.f32.mrb[8].mxu0  ;;  %v13508_v46 = vadd.f32 %v13403_v10, %v13218_v4 }
 0x945   : > { %v10024_v5 = vpop.eup %10023  ;;  %10043 = vrcp.f32 %v6171_v54  ;;  %v6177_v57 = vadd.f32 1.0, %v10022_v52  ;;  %7466 = vmatpush1.bf16.msra.mxu1 %v9472_v59  ;;  %v13498_v54 = vmul.f32 %v14476_v53, %v5678_v28  ;;  %v9480_v59 = vld [vmem:[#allocation14 + $0x274] ss:$8 sps:$4 sm:$0xff]   ;;  %v13504_v29 = vpop.f32.mrb[169].mxu1  ;;  %7404 = vmatprep.mubr.bf16.mxu1 %v6614_v38  ;;  %v5684_v28 = vadd.f32 %v13437_v48, %v12758_v37 }
 0x946   : > { %v10026_v33 = vpop.eup %10025  ;;  %10045 = vrcp.f32 %v6172_v55  ;;  %v6178_v63 = vadd.f32 1.0, %v10024_v5  ;;  %7467 = vmatprep.subr.bf16.mxu1 %v9477_v41  ;;  %v6613_v55 = vpack.c.bf16 %v13435_v1, %v13379_v44  ;;  %v13512_v14 = vpop.f32.mrb[9].mxu0  ;;  %v9478_v44 = vld [vmem:[#allocation14 + $0x270] ss:$8 sps:$4 sm:$0xff]   ;;  %v13525_v1 = vadd.f32 %v13444_v27, %v13197_v11 }
 0x947   : > { %v10028_v7 = vpop.eup %10027  ;;  %10047 = vrcp.f32 %v6177_v57  ;;  %v6183_v31 = vadd.f32 1.0, %v10026_v33  ;;  %v13514_v25 = vpop.f32.mrb[170].mxu1  ;;  %v14477_v57 = vld [vmem:[#allocation53_spill] sm:$0xff] }
 0x948   : > { %v10030_v52 = vpop.eup %10029  ;;  %10049 = vrcp.f32 %v6178_v63  ;;  %v6184_v62 = vadd.f32 1.0, %v10028_v7  ;;  %v6554_v61 = vmul.f32 %v14477_v57, %v5680_v9  ;;  %v13519_v33 = vpop.f32.mrb[10].mxu0  ;;  %v5686_v7 = vadd.f32 %v13446_v39, %v13183_v0 }
 0x949   : > { %v10032_v41 = vpop.eup %10031  ;;  %10051 = vrcp.f32 %v6183_v31  ;;  %v6189_v5 = vadd.f32 1.0, %v10030_v52  ;;  %v13521_v63 = vpop.f32.mrb[171].mxu1  ;;  %7468 = vmatpush1.bf16.msra.mxu1 %v9475_v34  ;;  %v13532_v9 = vmul.f32 %v13011_v12, %v5684_v28  ;;  %v13536_v34 = vadd.f32 %v13453_v56, %v13218_v4  ;;  %v9483_v52 = vld [vmem:[#allocation14 + $0x284] ss:$8 sps:$4 sm:$0xff]  }
 0x94a   : > { %v10034_v10 = vpop.eup %10033  ;;  %10053 = vrcp.f32 %v6184_v62  ;;  %v6190_v38 = vadd.f32 1.0, %v10032_v41  ;;  %v13529_v31 = vpop.f32.mrb[11].mxu0  ;;  %7405 = vmatmul.mubr.bf16.gmra.mrb[188].mxu1 %v6613_v55  ;;  %7469 = vmatprep.subr.bf16.mxu1 %v9480_v59  ;;  %v14478_v62 = vld [vmem:[#allocation89_spill] sm:$0xff]  ;;  %v13540_v39 = vmul.f32 %v13025_v2, %v5686_v7  ;;  %v14479_v59 = vld [vmem:[#allocation88_spill] sm:$0xff]  ;;  %v5801_v12 = vadd.f32 %v13463_v50, %v13197_v11 }
 0x94b   : > { %v10036_v53 = vpop.eup %10035  ;;  %10055 = vrcp.f32 %v6189_v5  ;;  %v6195_v48 = vadd.f32 1.0, %v10034_v10  ;;  %v5688_v5 = vadd.f32 %v13455_v19, %v12758_v37  ;;  %v6620_v56 = vpack.c.bf16 %v6554_v61, %v13486_v13  ;;  %v14480_v10 = vld [vmem:[#allocation94_spill] sm:$0xff]  ;;  %v13565_v61 = vpop.f32.mrb[12].mxu0 }
 0x94c   : > { %v10038_v27 = vpop.eup %10037  ;;  %v6447_v41 = vmul.f32 %v10036_v53, %v14478_v62  ;;  %10057 = vrcp.f32 %v6190_v38  ;;  %v14481_v38 = vld [vmem:[#allocation61_spill] sm:$0xff]  ;;  %v13556_v53 = vpop.f32.mrb[172].mxu1 }
 0x94d   : > { %v10040_v55 = vpop.eup %10039  ;;  %v6448_v57 = vmul.f32 %v10038_v27, %v14479_v59  ;;  %10059 = vrcp.f32 %v6195_v48  ;;  %7470 = vmatpush1.bf16.msra.mxu1 %v9478_v44  ;;  %v13554_v19 = vmul.f32 %v14481_v38, %v5688_v5  ;;  %v9481_v7 = vld [vmem:[#allocation14 + $0x280] ss:$8 sps:$4 sm:$0xff]   ;;  %v14482_v27 = vld [vmem:[#allocation47_spill] sm:$0xff]  ;;  %7414 = vmatprep.mubr.bf16.mxu1 %v6620_v56  ;;  %v13567_v44 = vpop.f32.mrb[173].mxu1  ;;  %v14487_v38 = vld [vmem:[#allocation128_spill] sm:$0xff] }
 0x94e   : > { %v10042_v28 = vpop.eup %10041  ;;  %v6453_v32 = vmul.f32 %v10040_v55, %v14480_v10  ;;  %10061 = vpow2.f32 %v13150_v16  ;;  %v13551_v2 = vmul.f32 %v6447_v41, %v13427_v18  ;;  %v14483_v62 = vld [vmem:[#allocation93_spill] sm:$0xff]  ;;  %v5690_v16 = vadd.f32 %v13465_v51, %v13183_v0  ;;  %7471 = vmatprep.subr.bf16.mxu1 %v9483_v52  ;;  %v9486_v18 = vld [vmem:[#allocation14 + $0x294] ss:$8 sps:$4 sm:$0xff]   ;;  %v13578_v51 = vpop.f32.mrb[174].mxu1  ;;  %v14486_v56 = vld [vmem:[#allocation58_spill] sm:$0xff] }
 0x94f   : > { %v10044_v48 = vpop.eup %10043  ;;  %v6454_v50 = vmul.f32 %v10042_v28, %v14482_v27  ;;  %10063 = vpow2.f32 %v14483_v62  ;;  %v13561_v13 = vmul.f32 %v6448_v57, %v13459_v20  ;;  %v14484_v5 = vld [vmem:[#allocation59_spill] sm:$0xff]  ;;  %v5803_v20 = vadd.f32 %v13470_v6, %v13218_v4  ;;  %v13576_v57 = vpop.f32.mrb[13].mxu0  ;;  %v14490_v6 = vld [vmem:[#allocation52_spill] sm:$0xff] }
 0x950   : > { %v10046_v41 = vpop.eup %10045  ;;  %v6459_v55 = vmul.f32 %v10044_v48, %v14484_v5  ;;  %v14485_v59 = vld [vmem:[#allocation127_spill] sm:$0xff]  ;;  %v13572_v28 = vmul.f32 %v6453_v32, %v13474_v43  ;;  %v14488_v48 = vld [vmem:[#allocation68_spill] sm:$0xff]  ;;  %v13586_v5 = vpop.f32.mrb[14].mxu0 }
 0x951   : > { %10065 = vpow2.f32 %v14485_v59  ;;  %v10048_v52 = vpop.eup %10047  ;;  %v6460_v10 = vmul.f32 %v10046_v41, %v14486_v56  ;;  %v13583_v27 = vmul.f32 %v6454_v50, %v13483_v40  ;;  %v6566_v62 = vmul.f32 %v14488_v48, %v5690_v16  ;;  %14489 = vst [vmem:[#allocation76_spill] sm:$0xff] %v13586_v5  ;;  %v13588_v32 = vpop.f32.mrb[175].mxu1  ;;  %7472 = vmatpush1.bf16.msra.mxu1 %v9481_v7  ;;  %v9484_v40 = vld [vmem:[#allocation14 + $0x290] ss:$8 sps:$4 sm:$0xff]   ;;  %v14493_v56 = vld [vmem:[#allocation62_spill] sm:$0xff] }
 0x952   : > { %10067 = vpow2.f32 %v14487_v38  ;;  %v10050_v43 = vpop.eup %10049  ;;  %v6465_v59 = vmul.f32 %v10048_v52, %v14490_v6  ;;  %v13593_v30 = vmul.f32 %v6459_v55, %v13492_v15  ;;  %v6619_v41 = vpack.c.bf16 %v13498_v54, %v13479_v22  ;;  %v13597_v50 = vpop.f32.mrb[15].mxu0  ;;  %7473 = vmatprep.subr.bf16.mxu1 %v9486_v18  ;;  %v9489_v55 = vld [vmem:[#allocation14 + $0x2a4] ss:$8 sps:$4 sm:$0xff]   ;;  %v14494_v22 = vld [vmem:[#allocation67_spill] sm:$0xff] }
 0x953   : > { %10069 = vpow2.f32 %v14491_v49  ;;  %14492 = vst [vmem:[#allocation43_spill] sm:$0xff] %v13597_v50  ;;  %v10052_v16 = vpop.eup %10051  ;;  %v6466_v38 = vmul.f32 %v10050_v43, %v14493_v56  ;;  %v13601_v48 = vmul.f32 %v6460_v10, %v13508_v46  ;;  %v5694_v49 = vadd.f32 %v13495_v3, %v12758_v37  ;;  %v14495_v10 = vld [vmem:[#allocation84_spill] sm:$0xff] }
 0x954   : > { %v5807_v15 = vadd.f32 %v13502_v58, %v13197_v11  ;;  %v10054_v52 = vpop.eup %10053  ;;  %v6471_v54 = vmul.f32 %v10052_v16, %v14494_v22  ;;  %v13609_v7 = vmul.f32 %v6465_v59, %v13525_v1  ;;  %7415 = vmatmul.mubr.bf16.gmra.mrb[192].mxu1 %v6619_v41  ;;  %v5696_v43 = vadd.f32 %v13504_v29, %v13183_v0  ;;  %v14496_v58 = vld [vmem:[#allocation78_spill] sm:$0xff]  ;;  %v14497_v41 = vld [vmem:[#allocation83_spill] sm:$0xff] }
 0x955   : > { %v5809_v46 = vadd.f32 %v13512_v14, %v13218_v4  ;;  %v10056_v18 = vpop.eup %10055  ;;  %v6472_v3 = vmul.f32 %v10054_v52, %v14495_v10  ;;  %v13617_v6 = vmul.f32 %v6466_v38, %v13536_v34  ;;  %v13620_v56 = vmul.f32 %v14496_v58, %v5694_v49  ;;  %7474 = vmatpush1.bf16.msra.mxu1 %v9484_v40  ;;  %v14498_v29 = vld [vmem:[#allocation91_spill] sm:$0xff]  ;;  %v9487_v10 = vld [vmem:[#allocation14 + $0x2a0] ss:$8 sps:$4 sm:$0xff]   ;;  %v14499_v38 = vld [vmem:[#allocation92_spill] sm:$0xff] }
 0x956   : > { %v5698_v1 = vadd.f32 %v13514_v25, %v12758_v37  ;;  %v10058_v59 = vpop.eup %10057  ;;  %v6477_v16 = vmul.f32 %v10056_v18, %v14497_v41  ;;  %v13625_v22 = vmul.f32 %v6471_v54, %v5801_v12  ;;  %v6572_v14 = vmul.f32 %v14498_v29, %v5696_v43  ;;  %v14500_v58 = vld [vmem:[#allocation113_spill] sm:$0xff]  ;;  %7475 = vmatprep.subr.bf16.mxu1 %v9489_v55  ;;  %v9492_v12 = vld [vmem:[#allocation14 + $0x2b4] ss:$8 sps:$4 sm:$0xff]   ;;  %v14501_v40 = vld [vmem:[#allocation102_spill] sm:$0xff] }
 0x957   : > { %v5811_v52 = vadd.f32 %v13519_v33, %v13197_v11  ;;  %v10060_v34 = vpop.eup %10059  ;;  %v6478_v50 = vmul.f32 %v10058_v59, %v14499_v38  ;;  %v13631_v49 = vmul.f32 %v6472_v3, %v5803_v20  ;;  %v6626_v25 = vpack.c.bf16 %v6566_v62, %v13540_v39  ;;  %v14502_v18 = vld [vmem:[#allocation82_spill] sm:$0xff] }
 0x958   : > { %v13634_v5 = vmul.f32 %v14500_v58, %v5698_v1  ;;  %v10062_v54 = vpop.eup %10061  ;;  %v6487_v43 = vmul.f32 %v14502_v18, %v14501_v40  ;;  %v14503_v41 = vld [vmem:[#allocation86_spill] sm:$0xff]  ;;  %v13640_v33 = vmul.f32 %v6477_v16, %v5807_v15  ;;  %v5700_v59 = vadd.f32 %v13521_v63, %v13183_v0  ;;  %v14504_v1 = vld [vmem:[#allocation104_spill] sm:$0xff]  ;;  %v14505_v58 = vld [vmem:[#allocation99_spill] sm:$0xff] }
 0x959   : > { %v6483_v29 = vmul.f32 %v10060_v34, %v14503_v41  ;;  %v10064_v20 = vpop.eup %10063  ;;  %v6196_v3 = vadd.f32 1.0, %v10062_v54  ;;  %v13644_v38 = vmul.f32 %v6478_v50, %v5809_v46  ;;  %7424 = vmatprep.mubr.bf16.mxu1 %v6626_v25  ;;  %v6625_v39 = vpack.c.bf16 %v13554_v19, %v13532_v9  ;;  %v14506_v40 = vld [vmem:[#allocation121_spill] sm:$0xff]  ;;  %7476 = vmatpush1.bf16.msra.mxu1 %v9487_v10  ;;  %v9490_v54 = vld [vmem:[#allocation14 + $0x2b0] ss:$8 sps:$4 sm:$0xff]  }
 0x95a   : > { %v5704_v62 = vadd.f32 %v13556_v53, %v12758_v37  ;;  %v6488_v34 = vmul.f32 %v14505_v58, %v14504_v1  ;;  %v6201_v15 = vadd.f32 1.0, %v10064_v20  ;;  %v6578_v63 = vmul.f32 %v14506_v40, %v5700_v59  ;;  %7477 = vmatprep.subr.bf16.mxu1 %v9492_v12  ;;  %v9495_v19 = vld [vmem:[#allocation14 + $0x2c4] ss:$8 sps:$4 sm:$0xff]   ;;  %v14507_v18 = vld [vmem:[#allocation107_spill] sm:$0xff]  ;;  %v9493_v1 = vld [vmem:[#allocation14 + $0x2c0] ss:$8 sps:$4 sm:$0xff]  }
 0x95b   : > { %v10066_v55 = vpop.eup %10065  ;;  %v13652_v16 = vmul.f32 %v6483_v29, %v5811_v52  ;;  %10071 = vrcp.f32 %v6196_v3  ;;  %v5706_v9 = vadd.f32 %v13567_v44, %v13183_v0  ;;  %v14508_v41 = vld [vmem:[#allocation95_spill] sm:$0xff]  ;;  %v5708_v10 = vadd.f32 %v13578_v51, %v12758_v37  ;;  %v14509_v29 = vld [vmem:[#allocation109_spill] sm:$0xff] }
 0x95c   : > { %v10068_v50 = vpop.eup %10067  ;;  %v6202_v46 = vadd.f32 1.0, %v10066_v55  ;;  %v13655_v25 = vmul.f32 %v6487_v43, %v5704_v62  ;;  %v6493_v20 = vmul.f32 %v14508_v41, %v14507_v18  ;;  %10073 = vrcp.f32 %v6201_v15  ;;  %7425 = vmatmul.mubr.bf16.gmra.mrb[196].mxu1 %v6625_v39  ;;  %v14510_v59 = vld [vmem:[#allocation21_spill] sm:$0xff]  ;;  %v9498_v37 = vld [vmem:[#allocation14 + $0x2d4] ss:$8 sps:$4 sm:$0xff]  }
 0x95d   : > { %v10070_v53 = vpop.eup %10069  ;;  %v6207_v52 = vadd.f32 1.0, %v10068_v50  ;;  %v6494_v3 = vmul.f32 %v14510_v59, %v14509_v29  ;;  %v6584_v43 = vmul.f32 %v6488_v34, %v5706_v9  ;;  %7478 = vmatpush1.bf16.msra.mxu1 %v9490_v54  ;;  %v6632_v62 = vpack.c.bf16 %v6578_v63, %v6572_v14  ;;  %v14515_v40 = vld [vmem:[#allocation43_spill] sm:$0xff]  ;;  %v14516_v50 = vld [vmem:[#allocation126_spill] sm:$0xff] }
 0x95e   : > { %10075 = vrcp.f32 %v6202_v46  ;;  %v6208_v12 = vadd.f32 1.0, %v10070_v53  ;;  %v6589_v44 = vmul.f32 %v6493_v20, %v5708_v10  ;;  %v5710_v55 = vadd.f32 %v13588_v32, %v13183_v0  ;;  %7479 = vmatprep.subr.bf16.mxu1 %v9495_v19  ;;  %v9502_v53 = vld [vmem:[#allocation14 + $0x2f0] ss:$8 sps:$4 sm:$0xff]   ;;  %v14519_v10 = vld [vmem:[#allocation101_spill] sm:$0xff] }
 0x95f   : > { %10077 = vrcp.f32 %v6207_v52  ;;  %v6631_v39 = vpack.c.bf16 %v13634_v5, %v13620_v56  ;;  %v6598_v51 = vpack.c.bf16 %v13357_v35, %v13343_v26  ;;  %7434 = vmatprep.mubr.bf16.mxu1 %v6632_v62  ;;  %v6604_v14 = vpack.c.bf16 %v13399_v21, %v13376_v23  ;;  %v9496_v35 = vld [vmem:[#allocation14 + $0x2d0] ss:$8 sps:$4 sm:$0xff]   ;;  %v9501_v21 = vld [vmem:[#allocation14 + $0x2e4] ss:$8 sps:$4 sm:$0xff]  }
 0x960   : > { %10079 = vrcp.f32 %v6208_v12  ;;  %v6590_v58 = vmul.f32 %v6494_v3, %v5710_v55  ;;  %v6637_v34 = vpack.c.bf16 %v6589_v44, %v13655_v25  ;;  %v6603_v0 = vpack.c.bf16 %v13388_v60, %v13367_v45  ;;  %v14517_v25 = vld [vmem:[#allocation96_spill] sm:$0xff]  ;;  %v14522_v59 = vld [vmem:[#allocation23_spill] sm:$0xff]  ;;  %v14523_v12 = vld [vmem:[#allocation22_spill] sm:$0xff] }
 0x961   : > { %v6610_v32 = vpack.c.bf16 %v13432_v36, %v13416_v47  ;;  %v6609_v5 = vpack.c.bf16 %v13423_v42, %v13408_v24  ;;  %v6616_v56 = vpack.c.bf16 %v13561_v13, %v13449_v17  ;;  %v6615_v26 = vpack.c.bf16 %v13551_v2, %v13440_v8  ;;  %7480 = vmatpush1.bf16.msra.mxu1 %v9493_v1  ;;  %v14511_v17 = vld [vmem:[#allocation85_spill] sm:$0xff] }
 0x962   : > { %v6638_v15 = vpack.c.bf16 %v6590_v58, %v6584_v43  ;;  %v6622_v23 = vpack.c.bf16 %v13601_v48, %v13583_v27  ;;  %v6621_v45 = vpack.c.bf16 %v13593_v30, %v13572_v28  ;;  %v6628_v60 = vpack.c.bf16 %v13631_v49, %v13617_v6  ;;  %7481 = vmatprep.subr.bf16.mxu1 %v9498_v37  ;;  %v9499_v28 = vld [vmem:[#allocation14 + $0x2e0] ss:$8 sps:$4 sm:$0xff]   ;;  %v14512_v48 = vld [vmem:[#allocation124_spill] sm:$0xff] }
 0x963   : > { %v6627_v24 = vpack.c.bf16 %v13625_v22, %v13609_v7  ;;  %v6633_v47 = vpack.c.bf16 %v13652_v16, %v13640_v33  ;;  %v5813_v42 = vadd.f32 %v13529_v31, %v13218_v4  ;;  %v5817_v8 = vadd.f32 %v13565_v61, %v13197_v11  ;;  %v14513_v6 = vld [vmem:[#allocation76_spill] sm:$0xff]  ;;  %v14514_v33 = vld [vmem:[#allocation125_spill] sm:$0xff] }
 0x964   : > { %7435 = vmatmul.mubr.bf16.gmra.mrb[200].mxu1 %v6631_v39  ;;  %v5819_v13 = vadd.f32 %v13576_v57, %v13218_v4  ;;  %v5821_v31 = vadd.f32 %v14513_v6, %v13197_v11  ;;  %v9504_v22 = vld [vmem:[#allocation14 + $0x2f4] ss:$8 sps:$4 sm:$0xff]   ;;  %v5823_v63 = vadd.f32 %v14515_v40, %v13218_v4  ;;  %v14533_v40 = vld [vmem:[#allocation57_spill] sm:$0xff] }
 0x965   : > { %v10072_v36 = vpop.eup %10071  ;;  %7444 = vmatprep.mubr.bf16.mxu1 %v6638_v15  ;;  %7482 = vmatpush1.bf16.msra.mxu1 %v9496_v35  ;;  %v14518_v4 = vld [vmem:[#allocation40_spill] sm:$0xff] }
 0x966   : > { %v10074_v30 = vpop.eup %10073  ;;  %v6484_v2 = vmul.f32 %v10072_v36, %v14511_v17  ;;  %7483 = vmatprep.subr.bf16.mxu1 %v9501_v21  ;;  %v14520_v29 = vpack.c.bf16 %v14518_v4, %v14519_v10  ;;  %v14524_v37 = vld [vmem:[#allocation24_spill] sm:$0xff] }
 0x967   : > { %v6489_v7 = vmul.f32 %v10074_v30, %v14512_v48  ;;  %v14537_v10 = vld [vmem:[#allocation60_spill] sm:$0xff] }
 0x968   : > { %v10076_v27 = vpop.eup %10075  ;;  %v6580_v16 = vmul.f32 %v6484_v2, %v5813_v42  ;;  %v14530_v2 = vld [vmem:[#allocation27_spill] sm:$0xff] }
 0x969   : > { %v10078_v49 = vpop.eup %10077  ;;  %v6490_v61 = vmul.f32 %v10076_v27, %v14514_v33  ;;  %v6585_v46 = vmul.f32 %v6489_v7, %v5817_v8  ;;  %7484 = vmatpush1.bf16.msra.mxu1 %v9499_v28  ;;  %v14529_v8 = vld [vmem:[#allocation26_spill] sm:$0xff]  ;;  %v14531_v28 = vld [vmem:[#allocation55_spill] sm:$0xff] }
 0x96a   : > { %v10080_v54 = vpop.eup %10079  ;;  %v6495_v57 = vmul.f32 %v10078_v49, %v14516_v50  ;;  %v6634_v11 = vpack.c.bf16 %v6580_v16, %v13644_v38  ;;  %7485 = vmatprep.subr.bf16.mxu1 %v9504_v22  ;;  %v6737_v38 = vld [vmem:[%s14521_s30] sm:$0x3]  ;;  %v14532_v49 = vld [vmem:[#allocation28_spill] sm:$0xff] }
 0x96b   : > { %v6496_v9 = vmul.f32 %v10080_v54, %v14517_v25  ;;  %v6586_v19 = vmul.f32 %v6490_v61, %v5819_v13  ;;  %v13717_v3 = vrot.slane %v6737_v38, %v14522_v59  ;;  %v13720_v43 = vrot.slane %v6737_v38, %v14523_v12  ;;  %v14534_v50 = vld [vmem:[#allocation56_spill] sm:$0xff]  ;;  %v14538_v59 = vld [vmem:[#allocation30_spill] sm:$0xff] }
 0x96c   : > { %v6591_v18 = vmul.f32 %v6495_v57, %v5821_v31  ;;  %7445 = vmatmul.mubr.bf16.gmra.mrb[204].mxu1 %v6637_v34 }
 0x96d   : > { %v6592_v41 = vmul.f32 %v6496_v9, %v5823_v63  ;;  %7487 = vmatprep.mubr.bf16.mxu1 %v6598_v51  ;;  %7486 = vmatpush1.bf16.msra.mxu1 %v9502_v53 }
 0x96e   : > { %v6639_v20 = vpack.c.bf16 %v6591_v18, %v6585_v46  ;;  %v14535_v46 = vld [vmem:[#allocation29_spill] sm:$0xff] }
 0x96f   : > { %v6640_v52 = vpack.c.bf16 %v6592_v41, %v6586_v19  ;;  %v14536_v41 = vld [vmem:[#allocation63_spill] sm:$0xff] }
 0x974   : > { %7488 = vmatmul.mubr.bf16.vlgmr.msra.gmra.mrb[176].mxu1 %v14520_v29 }
 0x975   : > { %7497 = vmatprep.mubr.bf16.mxu1 %v6604_v14  ;;  %v14525_v14 = vld [vmem:[#allocation49_spill] sm:$0xff] }
 0x97c   : > { %7498 = vmatmul.mubr.bf16.gmra.mrb[180].mxu1 %v6603_v0 }
 0x97d   : > { %7507 = vmatprep.mubr.bf16.mxu1 %v6610_v32 }
 0x984   : > { %7508 = vmatmul.mubr.bf16.gmra.mrb[184].mxu1 %v6609_v5  ;;  %v14526_v5 = vld [vmem:[#allocation48_spill] sm:$0xff] }
 0x985   : > { %7517 = vmatprep.mubr.bf16.mxu1 %v6616_v56 }
 0x98c   : > { %7518 = vmatmul.mubr.bf16.gmra.mrb[188].mxu1 %v6615_v26  ;;  %v14527_v26 = vld [vmem:[#allocation25_spill] sm:$0xff] }
 0x98d   : > { %7527 = vmatprep.mubr.bf16.mxu1 %v6622_v23 }
 0x994   : > { %7528 = vmatmul.mubr.bf16.gmra.mrb[192].mxu1 %v6621_v45 }
 0x995   : > { %7537 = vmatprep.mubr.bf16.mxu1 %v6628_v60 }
 0x99c   : > { %7538 = vmatmul.mubr.bf16.gmra.mrb[196].mxu1 %v6627_v24  ;;  %v14528_v24 = vld [vmem:[#allocation54_spill] sm:$0xff] }
 0x99d   : > { %7547 = vmatprep.mubr.bf16.mxu1 %v6634_v11 }
 0x9a4   : > { %7548 = vmatmul.mubr.bf16.gmra.mrb[200].mxu1 %v6633_v47 }
 0x9a5   : > { %7557 = vmatprep.mubr.bf16.mxu1 %v6640_v52 }
 0x9ac   : > { %7558 = vmatmul.mubr.bf16.gmra.mrb[204].mxu1 %v6639_v20 }
 0xa47   : > { %v7489_v44 = vpop.f32.mrb[176].mxu1 }
 0xa48   : > { %v8572_v62 = vadd.f32 %v7489_v44, %v13717_v3  ;;  %v7491_v55 = vpop.f32.mrb[177].mxu1  ;;  %v14539_v44 = vld [vmem:[#allocation31_spill] sm:$0xff] }
 0xa49   : > { %v8573_v1 = vadd.f32 %v7491_v55, %v13720_v43  ;;  %v7493_v39 = vpop.f32.mrb[178].mxu1 }
 0xa4a   : > { %v7568_v51 = vadd.f32 %v8572_v62, %v14524_v37  ;;  %v8574_v58 = vadd.f32 %v7493_v39, %v13717_v3  ;;  %v7495_v34 = vpop.f32.mrb[179].mxu1 }
 0xa4b   : > { %v7569_v0 = vadd.f32 %v8573_v1, %v14525_v14  ;;  %v8575_v32 = vadd.f32 %v7495_v34, %v13720_v43 }
 0xa4c   : > { %7600 = vst [vmem:[%s13730_s2] sm:$0xff] %v7568_v51  ;;  %v7570_v56 = vadd.f32 %v8574_v58, %v14526_v5  ;;  %v14540_v58 = vld [vmem:[#allocation32_spill] sm:$0xff] }
 0xa4d   : > { %7601 = vst [vmem:[%s13730_s2 + $0x8] sm:$0xff] %v7569_v0  ;;  %v7571_v35 = vadd.f32 %v8575_v32, %v14527_v26  ;;  %v14541_v32 = vld [vmem:[#allocation65_spill] sm:$0xff]  ;;  %v14542_v26 = vld [vmem:[#allocation64_spill] sm:$0xff] }
 0xa4e   : > { %7602 = vst [vmem:[%s13730_s2 + $0x10] sm:$0xff] %v7570_v56 }
 0xa4f   : > { %7603 = vst [vmem:[%s13730_s2 + $0x18] sm:$0xff] %v7571_v35  ;;  %v7499_v15 = vpop.f32.mrb[180].mxu1 }
 0xa50   : > { %v8576_v23 = vadd.f32 %v7499_v15, %v13717_v3  ;;  %v7501_v45 = vpop.f32.mrb[181].mxu1  ;;  %v14543_v15 = vld [vmem:[#allocation33_spill] sm:$0xff] }
 0xa51   : > { %v8577_v60 = vadd.f32 %v7501_v45, %v13720_v43  ;;  %v7503_v21 = vpop.f32.mrb[182].mxu1 }
 0xa52   : > { %v7572_v47 = vadd.f32 %v8576_v23, %v14528_v24  ;;  %v8578_v42 = vadd.f32 %v7503_v21, %v13717_v3  ;;  %v7505_v36 = vpop.f32.mrb[183].mxu1 }
 0xa53   : > { %v7573_v30 = vadd.f32 %v8577_v60, %v14529_v8  ;;  %v8579_v17 = vadd.f32 %v7505_v36, %v13720_v43 }
 0xa54   : > { %7604 = vst [vmem:[%s13730_s2 + $0x20] sm:$0xff] %v7572_v47  ;;  %v7574_v13 = vadd.f32 %v8578_v42, %v14530_v2  ;;  %v14544_v42 = vld [vmem:[#allocation71_spill] sm:$0xff] }
 0xa55   : > { %7605 = vst [vmem:[%s13730_s2 + $0x28] sm:$0xff] %v7573_v30  ;;  %v7575_v27 = vadd.f32 %v8579_v17, %v14531_v28  ;;  %v14545_v17 = vld [vmem:[#allocation66_spill] sm:$0xff] }
 0xa56   : > { %7606 = vst [vmem:[%s13730_s2 + $0x30] sm:$0xff] %v7574_v13  ;;  %v14546_v28 = vld [vmem:[#allocation34_spill] sm:$0xff] }
 0xa57   : > { %7607 = vst [vmem:[%s13730_s2 + $0x38] sm:$0xff] %v7575_v27  ;;  %v7509_v48 = vpop.f32.mrb[184].mxu1 }
 0xa58   : > { %v8580_v7 = vadd.f32 %v7509_v48, %v13717_v3  ;;  %v7511_v6 = vpop.f32.mrb[185].mxu1  ;;  %v14547_v48 = vld [vmem:[#allocation35_spill] sm:$0xff] }
 0xa59   : > { %v8581_v31 = vadd.f32 %v7511_v6, %v13720_v43  ;;  %v7513_v22 = vpop.f32.mrb[186].mxu1 }
 0xa5a   : > { %v7576_v33 = vadd.f32 %v8580_v7, %v14532_v49  ;;  %v8582_v61 = vadd.f32 %v7513_v22, %v13717_v3  ;;  %v7515_v16 = vpop.f32.mrb[187].mxu1 }
 0xa5b   : > { %v7577_v63 = vadd.f32 %v8581_v31, %v14533_v40  ;;  %v8583_v54 = vadd.f32 %v7515_v16, %v13720_v43 }
 0xa5c   : > { %7608 = vst [vmem:[%s13730_s2 + $0x40] sm:$0xff] %v7576_v33  ;;  %v7578_v57 = vadd.f32 %v8582_v61, %v14534_v50  ;;  %v14548_v61 = vld [vmem:[#allocation36_spill] sm:$0xff] }
 0xa5d   : > { %7609 = vst [vmem:[%s13730_s2 + $0x48] sm:$0xff] %v7577_v63  ;;  %v7579_v25 = vadd.f32 %v8583_v54, %v14535_v46  ;;  %v14549_v54 = vld [vmem:[#allocation73_spill] sm:$0xff]  ;;  %v14550_v46 = vld [vmem:[#allocation72_spill] sm:$0xff] }
 0xa5e   : > { %7610 = vst [vmem:[%s13730_s2 + $0x50] sm:$0xff] %v7578_v57 }
 0xa5f   : > { %7611 = vst [vmem:[%s13730_s2 + $0x58] sm:$0xff] %v7579_v25  ;;  %v7519_v9 = vpop.f32.mrb[188].mxu1 }
 0xa60   : > { %v8584_v19 = vadd.f32 %v7519_v9, %v13717_v3  ;;  %v7521_v53 = vpop.f32.mrb[189].mxu1  ;;  %v14551_v9 = vld [vmem:[#allocation37_spill] sm:$0xff] }
 0xa61   : > { %v8585_v11 = vadd.f32 %v7521_v53, %v13720_v43  ;;  %v7523_v18 = vpop.f32.mrb[190].mxu1 }
 0xa62   : > { %v7580_v20 = vadd.f32 %v8584_v19, %v14536_v41  ;;  %v8586_v52 = vadd.f32 %v7523_v18, %v13717_v3  ;;  %v7525_v4 = vpop.f32.mrb[191].mxu1 }
 0xa63   : > { %v7581_v29 = vadd.f32 %v8585_v11, %v14537_v10  ;;  %v8587_v38 = vadd.f32 %v7525_v4, %v13720_v43 }
 0xa64   : > { %7612 = vst [vmem:[%s13730_s2 + $0x60] sm:$0xff] %v7580_v20  ;;  %v7582_v12 = vadd.f32 %v8586_v52, %v14538_v59  ;;  %v14552_v52 = vld [vmem:[#allocation79_spill] sm:$0xff] }
 0xa65   : > { %7613 = vst [vmem:[%s13730_s2 + $0x68] sm:$0xff] %v7581_v29  ;;  %v7583_v62 = vadd.f32 %v8587_v38, %v14539_v44  ;;  %v14553_v38 = vld [vmem:[#allocation74_spill] sm:$0xff] }
 0xa66   : > { %7614 = vst [vmem:[%s13730_s2 + $0x70] sm:$0xff] %v7582_v12  ;;  %v14554_v44 = vld [vmem:[#allocation38_spill] sm:$0xff] }
 0xa67   : > { %7615 = vst [vmem:[%s13730_s2 + $0x78] sm:$0xff] %v7583_v62  ;;  %v7529_v55 = vpop.f32.mrb[192].mxu1 }
 0xa68   : > { %v8588_v1 = vadd.f32 %v7529_v55, %v13717_v3  ;;  %v7531_v39 = vpop.f32.mrb[193].mxu1 }
 0xa69   : > { %v8589_v37 = vadd.f32 %v7531_v39, %v13720_v43  ;;  %v7533_v51 = vpop.f32.mrb[194].mxu1 }
 0xa6a   : > { %v7584_v34 = vadd.f32 %v8588_v1, %v14540_v58  ;;  %v8590_v14 = vadd.f32 %v7533_v51, %v13717_v3  ;;  %v7535_v0 = vpop.f32.mrb[195].mxu1 }
 0xa6b   : > { %v7585_v5 = vadd.f32 %v8589_v37, %v14541_v32  ;;  %v8591_v56 = vadd.f32 %v7535_v0, %v13720_v43 }
 0xa6c   : > { %7616 = vst [vmem:[%s13730_s2 + $0x80] sm:$0xff] %v7584_v34  ;;  %v7586_v35 = vadd.f32 %v8590_v14, %v14542_v26 }
 0xa6d   : > { %7617 = vst [vmem:[%s13730_s2 + $0x88] sm:$0xff] %v7585_v5  ;;  %v7587_v23 = vadd.f32 %v8591_v56, %v14543_v15 }
 0xa6e   : > { %7618 = vst [vmem:[%s13730_s2 + $0x90] sm:$0xff] %v7586_v35 }
 0xa6f   : > { %7619 = vst [vmem:[%s13730_s2 + $0x98] sm:$0xff] %v7587_v23  ;;  %v7539_v45 = vpop.f32.mrb[196].mxu1 }
 0xa70   : > { %v8592_v60 = vadd.f32 %v7539_v45, %v13717_v3  ;;  %v7541_v21 = vpop.f32.mrb[197].mxu1 }
 0xa71   : > { %v8593_v24 = vadd.f32 %v7541_v21, %v13720_v43  ;;  %v7543_v47 = vpop.f32.mrb[198].mxu1 }
 0xa72   : > { %v7588_v36 = vadd.f32 %v8592_v60, %v14544_v42  ;;  %v8594_v8 = vadd.f32 %v7543_v47, %v13717_v3  ;;  %v7545_v30 = vpop.f32.mrb[199].mxu1 }
 0xa73   : > { %v7589_v2 = vadd.f32 %v8593_v24, %v14545_v17  ;;  %v8595_v13 = vadd.f32 %v7545_v30, %v13720_v43 }
 0xa74   : > { %7620 = vst [vmem:[%s13730_s2 + $0xa0] sm:$0xff] %v7588_v36  ;;  %v7590_v27 = vadd.f32 %v8594_v8, %v14546_v28 }
 0xa75   : > { %7621 = vst [vmem:[%s13730_s2 + $0xa8] sm:$0xff] %v7589_v2  ;;  %v7591_v7 = vadd.f32 %v8595_v13, %v14547_v48 }
 0xa76   : > { %7622 = vst [vmem:[%s13730_s2 + $0xb0] sm:$0xff] %v7590_v27 }
 0xa77   : > { %7623 = vst [vmem:[%s13730_s2 + $0xb8] sm:$0xff] %v7591_v7  ;;  %v7549_v6 = vpop.f32.mrb[200].mxu1 }
 0xa78   : > { %v8596_v31 = vadd.f32 %v7549_v6, %v13717_v3  ;;  %v7551_v22 = vpop.f32.mrb[201].mxu1 }
 0xa79   : > { %v8597_v49 = vadd.f32 %v7551_v22, %v13720_v43  ;;  %v7553_v33 = vpop.f32.mrb[202].mxu1 }
 0xa7a   : > { %v7592_v16 = vadd.f32 %v8596_v31, %v14548_v61  ;;  %v8598_v40 = vadd.f32 %v7553_v33, %v13717_v3  ;;  %v7555_v63 = vpop.f32.mrb[203].mxu1 }
 0xa7b   : > { %v7593_v50 = vadd.f32 %v8597_v49, %v14549_v54  ;;  %v8599_v57 = vadd.f32 %v7555_v63, %v13720_v43 }
 0xa7c   : > { %7624 = vst [vmem:[%s13730_s2 + $0xc0] sm:$0xff] %v7592_v16  ;;  %v7594_v25 = vadd.f32 %v8598_v40, %v14550_v46 }
 0xa7d   : > { %7625 = vst [vmem:[%s13730_s2 + $0xc8] sm:$0xff] %v7593_v50  ;;  %v7595_v19 = vadd.f32 %v8599_v57, %v14551_v9 }
 0xa7e   : > { %7626 = vst [vmem:[%s13730_s2 + $0xd0] sm:$0xff] %v7594_v25 }
 0xa7f   : > { %7627 = vst [vmem:[%s13730_s2 + $0xd8] sm:$0xff] %v7595_v19  ;;  %v7559_v53 = vpop.f32.mrb[204].mxu1 }
 0xa80   : > { %v8600_v11 = vadd.f32 %v7559_v53, %v13717_v3  ;;  %v7561_v18 = vpop.f32.mrb[205].mxu1 }
 0xa81   : > { %v8601_v41 = vadd.f32 %v7561_v18, %v13720_v43  ;;  %v7563_v20 = vpop.f32.mrb[206].mxu1 }
 0xa82   : > { %v7596_v4 = vadd.f32 %v8600_v11, %v14552_v52  ;;  %v8602_v10 = vadd.f32 %v7563_v20, %v13717_v3  ;;  %v7565_v29 = vpop.f32.mrb[207].mxu1  ;;  %v14556_v3 = vld [vmem:[#allocation39_spill] sm:$0xff] }
 0xa83   : > { %v7597_v59 = vadd.f32 %v8601_v41, %v14553_v38  ;;  %v8603_v12 = vadd.f32 %v7565_v29, %v13720_v43 }
 0xa84   : > { %7628 = vst [vmem:[%s13730_s2 + $0xe0] sm:$0xff] %v7596_v4  ;;  %v7598_v62 = vadd.f32 %v8602_v10, %v14554_v44 }
 0xa85   : > { %7629 = vst [vmem:[%s13730_s2 + $0xe8] sm:$0xff] %v7597_v59  ;;  %v7599_v55 = vadd.f32 %v8603_v12, %v14556_v3 }
 0xa86   : > { %7630 = vst [vmem:[%s13730_s2 + $0xf0] sm:$0xff] %v7598_v62 }
 0xa87   : > { %7631 = vst [vmem:[%s13730_s2 + $0xf8] sm:$0xff] %v7599_v55 }
 0xa88   : > { %10356 = shalt.err (!%p10353_p8)
}
 0xa89   : > { %s10357_s28 = scalar_lea.hbm %s13823_s12, 4096  ;;  %s10361_s10 = scalar_lea.hbm %s14555_s17, 8192 }
 0xa8a   : > { %p10358_p7 = scmp.ne.s32.totalorder %s13823_s12, %s10357_s28  ;;  %p10362_p3 = scmp.lt.u32.totalorder %s13823_s12, %s14555_s17 }
 0xa8b   : > { %p10363_p0 = scmp.lt.u32.totalorder %s10361_s10, %s10357_s28  ;;  %p10365_p6 = scmp.lt.u32.totalorder %s10357_s28, %s13823_s12 }
 0xa8c   : > { %p10359_p9 = pnand %p10358_p7, %p14557_p5 }
 0xa8d   : > { %p10364_p2 = por %p10363_p0, %p10362_p3 }
 0xa8e   : > { %p10360_p4 = pneg %p10359_p9 }
 0xa8f   : > { %p10366_p10 = por %p10365_p6, %p10364_p2 }
 0xa91   : > { %p10367_p1 = pnand %p10366_p10, %p10360_p4 }
 0xa93   : > { %10370 = shalt.err (!%p10367_p1)
}
 0xa94   : > { %s10439_s13 = smov 256   ;;  %s10440_s19 = smov 16  }
 0xa95   : > { %8694 = dma.vmem_to_hbm [thread:$0]  (%p14557_p5), %s13825_s3, 4096, %s13823_s12, %s7633_s26, %s10439_s13, %s10439_s13, %s10440_s19  }
 0xa96 PF: > { %s7661_s16 = sand.u32 1, %s10409_s21   ;;  %p14558_p11 = scmp.ne.s32.totalorder %s14076_s8, 0 }
 0xa97   : > { %p14559_p12 = scmp.ge.s32.totalorder %s10421_s24, 2  ;;  %s7662_s29 = scalar_lea.sflag [#allocation5], %s7661_s16 }
 0xa99   : > { %p8720_p13 = pnand %p14559_p12, %p14558_p11 }
 0xa9b   : > { %10404 = dma.done.wait (!%p8720_p13), %s7662_s29, 4096  }
 0xa9c   : > { %10406 = vsyncadd (!%p8720_p13), %s7662_s29, 4294963200  ;;  %p28_p8 = scmp.ge.s32.totalorder %s10697_s20, 4   ;;  %s14560_s21 = smov %s10413_s22 }
 0xa9d   : > { %s14561_s22 = smov %s10417_s23  ;;  %s14562_s23 = smov %s10708_s14 }
 0xa9e   : > { %s14563_s24 = smov %s10697_s20  ;;  %30 = sbr.rel (!%p28_p8) target bundleno = 14 (0xe), region = 137 }
 0xaa5   :  { %7667 = vsyncpa [#allocation4], 1 }
 0xaa6   :  { %7669 = vsyncpa [#allocation4 + $0x1], 1 }
 0xaa7   :  { %7670 = vsyncpa [#allocation7], 1 }
 0xaa8   :  { %7671 = vsyncpa [#allocation10], 1 }
 0xaa9   :  { %7672 = vsyncpa [#allocation13], 1 }
 0xaaa   :  { %7673 = vsyncpa [#allocation5], 1 }
 0xaab   :  { %7675 = vsyncpa [#allocation5 + $0x1], 1 }

</bundles_post_ra>
